<compile_context>
chip_gen: v6e
topology: v6e:2x2x1
jax: 0.10.0
libtpu: 0.0.40
codegen_flags: <defaults>
</compile_context>

<pallas_src>
import math
from functools import partial

import numpy as np
import jax
import jax.numpy as jnp
from jax.experimental import pallas as pl
from jax.experimental.pallas import tpu as pltpu

_EPS = 1e-5

_STACKED_NAMES = (
    "normq_g", "normq_b", "normc_g", "normc_b",
    "sa_wqkv", "sa_bqkv", "sa_wo", "sa_bo",
    "ca_wq", "ca_bq", "ca_wkv", "ca_bkv", "ca_wo", "ca_bo",
    "norm1_g", "norm1_b", "norm2_g", "norm2_b",
    "linear1_w", "linear1_b", "linear2_w", "linear2_b",
)


# ------------------------------ in-kernel math ------------------------------

def _ln(x, g, b, eps=_EPS):
    """LayerNorm over the last dim. x: (M, E) f32; g, b: (1, E)."""
    mu = jnp.mean(x, axis=-1, keepdims=True)
    var = jnp.mean((x - mu) ** 2, axis=-1, keepdims=True)
    return (x - mu) * jax.lax.rsqrt(var + eps) * g + b


# ------------------------------- fused kernel --------------------------------

def _decoder_stack_kernel(*refs, num_heads, nb, L, S, has_qmask, has_cmask,
                          mxu_dtype):
    """Full decoder stack; one grid step = (batch tile, layer)."""
    it = iter(refs)
    q_in, c_in, m_in = next(it), next(it), next(it)
    qm_ref = next(it) if has_qmask else None
    cm_ref = next(it) if has_cmask else None
    (nq_g, nq_b, nc_g, nc_b,
     sa_wqkv, sa_bqkv, sa_wo, sa_bo,
     ca_wq, ca_bq, ca_wkv, ca_bkv, ca_wo, ca_bo,
     n1_g, n1_b, n2_g, n2_b,
     l1_w, l1_b, l2_w, l2_b) = (next(it) for _ in range(22))
    fn_g, fn_b, head_w, head_b = next(it), next(it), next(it), next(it)
    logits_out, qnorm_out = next(it), next(it)
    q_scr, c_scr = next(it), next(it)

    layer = pl.program_id(1)
    n_layers = pl.num_programs(1)
    E = q_scr.shape[-1]
    H = num_heads
    Dh = E // H

    def mm(a, b):
        # MXU matmul with f32 accumulation; operands cast to the MXU dtype.
        return jnp.dot(a.astype(mxu_dtype), b.astype(mxu_dtype),
                       preferred_element_type=jnp.float32)

    # Load carried activations into VMEM scratch at the first layer.
    @pl.when(layer == 0)
    def _():
        q_scr[...] = q_in[...].astype(jnp.float32)
        c_scr[...] = c_in[...].astype(jnp.float32)

    query = q_scr[...]                       # (nb*L, E) f32
    content = c_scr[...]                     # (nb*L, E) f32
    memory = m_in[...].astype(jnp.float32)   # (nb*S, E) f32

    # Per-layer weights (strip the leading layer axis of the streamed block).
    sa_wqkv_v, sa_bqkv_v = sa_wqkv[0], sa_bqkv[0]
    sa_wo_v, sa_bo_v = sa_wo[0], sa_bo[0]
    ca_wq_v, ca_bq_v = ca_wq[0], ca_bq[0]
    ca_wkv_v, ca_bkv_v = ca_wkv[0], ca_bkv[0]
    ca_wo_v, ca_bo_v = ca_wo[0], ca_bo[0]
    n1_gv, n1_bv, n2_gv, n2_bv = n1_g[0], n1_b[0], n2_g[0], n2_b[0]
    l1_wv, l1_bv, l2_wv, l2_bv = l1_w[0], l1_b[0], l2_w[0], l2_b[0]

    query_norm = _ln(query, nq_g[0], nq_b[0])
    content_norm = _ln(content, nc_g[0], nc_b[0])

    # Hoisted shared projections (computed ONCE per layer, reused by streams):
    #   * fused QKV of content_norm (one (R,E)x(E,3E) matmul; q pre-scaled),
    #   * self-attn K/V shared by both streams,
    #   * cross-attn K/V from memory shared by both streams.
    c_qkv = mm(content_norm, sa_wqkv_v) + sa_bqkv_v            # (nb*L, 3E)
    k_sa, v_sa = c_qkv[:, E:2 * E], c_qkv[:, 2 * E:]
    q_sa_content = c_qkv[:, :E]                                # pre-scaled q
    q_sa_query = mm(query_norm, sa_wqkv_v[:, :E]) + sa_bqkv_v[:, :E]
    mem_kv = mm(memory, ca_wkv_v) + ca_bkv_v                   # (nb*S, 2E)
    k_ca, v_ca = mem_kv[:, :E], mem_kv[:, E:]

    def attn(q_all, k_all, v_all, Lk, wo_v, bo_v, mask_ref):
        """MHA: per-sample score/context matmuls; per-head context is folded
        directly into the out-projection (no concat / head-split transpose).
        Queries arrive pre-scaled (scale folded into the q weights)."""
        outs = []
        for b in range(nb):
            qb = q_all[b * L:(b + 1) * L, :]
            kb = k_all[b * Lk:(b + 1) * Lk, :]
            vb = v_all[b * Lk:(b + 1) * Lk, :]
            mb = mask_ref[b] if mask_ref is not None else None
            acc = bo_v                                        # (1, E) broadcast
            for h in range(H):
                sl = slice(h * Dh, (h + 1) * Dh)
                s = jax.lax.dot_general(                      # q @ k^T (NT), no .T
                    qb[:, sl].astype(mxu_dtype), kb[:, sl].astype(mxu_dtype),
                    (((1,), (1,)), ((), ())),
                    preferred_element_type=jnp.float32)
                if mb is not None:
                    s = s + mb
                s = s - jnp.max(s, axis=-1, keepdims=True)
                p = jnp.exp(s)
                p = p * pl.reciprocal(jnp.sum(p, axis=-1, keepdims=True),
                                      approx=True)
                oh = mm(p, vb[:, sl])                         # (L, Dh)
                acc = acc + mm(oh, wo_v[sl, :])               # fold into Wo rows
            outs.append(acc)
        return outs[0] if nb == 1 else jnp.concatenate(outs, axis=0)

    def stream(x, q_self, self_mask_ref):
        # self-attention (dropout p=0.0 -> identity)
        x = x + attn(q_self, k_sa, v_sa, L, sa_wo_v, sa_bo_v, self_mask_ref)
        # cross-attention to memory (no mask, matching PARSeq)
        q_cross = mm(_ln(x, n1_gv, n1_bv), ca_wq_v) + ca_bq_v
        x = x + attn(q_cross, k_ca, v_ca, S, ca_wo_v, ca_bo_v, None)
        # GELU MLP
        h = _ln(x, n2_gv, n2_bv)
        h = mm(h, l1_wv) + l1_bv
        # TODO(synk): PyTorch F.gelu (erf form) approximated with the tanh form.
        h = jax.nn.gelu(h, approximate=True)
        h = mm(h, l2_wv) + l2_bv
        return x + h

    new_query = stream(query, q_sa_query, qm_ref)
    q_scr[...] = new_query

    @pl.when(layer < n_layers - 1)          # update_content=False on last layer
    def _():
        c_scr[...] = stream(content, q_sa_content, cm_ref)

    @pl.when(layer == n_layers - 1)         # fused final LayerNorm + head
    def _():
        y = _ln(new_query, fn_g[...], fn_b[...])
        qnorm_out[...] = y.astype(qnorm_out.dtype)
        logits_out[...] = (mm(y, head_w[...]) + head_b[...]).astype(
            logits_out.dtype)


# ------------------------------ pallas wrapper -------------------------------

def _pick_batch_tile(n, seq_len, target_rows=256):
    """Largest batch tile <= target_rows/L that divides N and keeps the
    (Nb*L, E) blocks sublane-legal (multiple of 8 or full extent)."""
    hi = min(n, max(1, target_rows // max(seq_len, 1)))
    for nb in range(hi, 0, -1):
        if n % nb == 0 and ((nb * seq_len) % 8 == 0 or nb == n):
            return nb
    return n


def _padded_bytes(shape, dtype):
    s = list(shape) if shape else [1]
    s[-1] = -(-int(s[-1]) // 128) * 128
    if len(s) >= 2:
        s[-2] = -(-int(s[-2]) // 8) * 8
    total = 1
    for d in s:
        total *= int(d)
    return total * np.dtype(dtype).itemsize


def _combine_masks(attn_mask, key_padding_mask, N, Lq, Lk):
    """Combine an additive/bool attn_mask with a key-padding mask -> (N,Lq,Lk).
    Returns None on the default mask-free path so no zero tensor is built."""
    if attn_mask is None and key_padding_mask is None:
        return None
    m = jnp.zeros((N, Lq, Lk), jnp.float32)
    if attn_mask is not None:
        am = attn_mask
        if am.dtype == jnp.bool_:
            am = jnp.where(am, -1e30, 0.0)
        am = am.astype(jnp.float32)
        if am.ndim == 2:
            am = am[None]
        else:
            # TODO(synk): per-head (N*H, Lq, Lk) masks collapsed to per-batch.
            am = am.reshape(N, -1, Lq, Lk)[:, 0]
        m = m + am
    if key_padding_mask is not None:
        kpm = jnp.where(key_padding_mask.astype(bool), -1e30, 0.0)
        m = m + kpm[:, None, :]
    return m


def _decoder_stack(query, content, memory, q_mask, c_mask, params, *,
                   num_heads, batch_tile=None):
    N, L, E = query.shape
    S = memory.shape[1]
    stacked = params["stacked"]
    n_layers = stacked["sa_wqkv"].shape[0]
    c_pad = params["head_w"].shape[1]
    mxu_dtype = stacked["sa_wqkv"].dtype

    nb = batch_tile or _pick_batch_tile(N, L)
    grid = (N // nb, n_layers)

    qf = query.reshape(N * L, E).astype(jnp.float32)
    cf = content.reshape(N * L, E).astype(jnp.float32)
    mf = memory.reshape(N * S, E).astype(jnp.float32)

    inputs = [qf, cf, mf]
    in_specs = [pl.BlockSpec((nb * L, E), lambda b, l: (b, 0)),
                pl.BlockSpec((nb * L, E), lambda b, l: (b, 0)),
                pl.BlockSpec((nb * S, E), lambda b, l: (b, 0))]

    has_qm = q_mask is not None
    has_cm = (c_mask is not None) and n_layers > 1
    if has_qm:
        inputs.append(q_mask)
        in_specs.append(pl.BlockSpec((nb, L, L), lambda b, l: (b, 0, 0)))
    if has_cm:
        inputs.append(c_mask)
        in_specs.append(pl.BlockSpec((nb, L, L), lambda b, l: (b, 0, 0)))

    # Per-layer weights streamed via the trailing layer grid axis.
    for name in _STACKED_NAMES:
        w = stacked[name]
        inputs.append(w)
        in_specs.append(pl.BlockSpec(
            (1,) + w.shape[1:],
            lambda b, l, nd=w.ndim: (l,) + (0,) * (nd - 1)))
    # Final norm + head weights (resident, constant index map).
    for name in ("norm_g", "norm_b", "head_w", "head_b"):
        w = params[name]
        inputs.append(w)
        in_specs.append(pl.BlockSpec(w.shape, lambda b, l, nd=w.ndim: (0,) * nd))

    out_shape = (jax.ShapeDtypeStruct((N * L, c_pad), jnp.float32),
                 jax.ShapeDtypeStruct((N * L, E), jnp.float32))
    out_specs = (pl.BlockSpec((nb * L, c_pad), lambda b, l: (b, 0)),
                 pl.BlockSpec((nb * L, E), lambda b, l: (b, 0)))
    scratch_shapes = [pltpu.VMEM((nb * L, E), jnp.float32),
                      pltpu.VMEM((nb * L, E), jnp.float32)]

    # Explicit VMEM budget from actual block footprints (double-buffered).
    est = 0
    for spec, arr in zip(in_specs, inputs):
        est += 2 * _padded_bytes(spec.block_shape, arr.dtype)
    for spec, sds in zip(out_specs, out_shape):
        est += 2 * _padded_bytes(spec.block_shape, sds.dtype)
    est += 2 * _padded_bytes((nb * L, E), jnp.float32)
    vmem_limit = int(min(128 << 20, max(32 << 20, 2 * est)))

    kernel = partial(_decoder_stack_kernel, num_heads=num_heads, nb=nb, L=L,
                     S=S, has_qmask=has_qm, has_cmask=has_cm,
                     mxu_dtype=mxu_dtype)
    logits_flat, qnorm_flat = pl.pallas_call(
        kernel,
        grid=grid,
        in_specs=in_specs,
        out_specs=out_specs,
        out_shape=out_shape,
        scratch_shapes=scratch_shapes,
        compiler_params=pltpu.CompilerParams(
            dimension_semantics=("parallel", "arbitrary"),
            vmem_limit_bytes=vmem_limit),
    )(*inputs)
    return logits_flat.reshape(N, L, c_pad), qnorm_flat.reshape(N, L, E)


# --------------------------- Decoder (functional) ----------------------------

def decoder_forward(params, tgt, memory, tgt_query=None, tgt_query_mask=None,
                    content_mask=None, content_key_padding_mask=None, *,
                    num_heads, num_classes, batch_tile=None):
    N, L = tgt.shape
    E = params["embedding"].shape[1]
    sqrt_e = math.sqrt(E)
    # TokenEmbedding + positional queries (gather = JAX glue outside kernel).
    null_ctx = sqrt_e * params["embedding"][tgt[:, :1]]
    tgt_emb = params["pos_queries"][:, :L - 1] + sqrt_e * params["embedding"][tgt[:, 1:]]
    content = jnp.concatenate([null_ctx, tgt_emb], axis=1)
    if tgt_query is None:
        tgt_query = jnp.broadcast_to(params["pos_queries"][:, :L], (N, L, E))
    query = tgt_query

    q_mask = _combine_masks(tgt_query_mask, content_key_padding_mask, N, L, L)
    c_mask = _combine_masks(content_mask, content_key_padding_mask, N, L, L)

    logits_pad, q_norm = _decoder_stack(
        query, content, memory, q_mask, c_mask, params,
        num_heads=num_heads, batch_tile=batch_tile)
    return logits_pad[:, :, :num_classes], q_norm


# ------------------------------ parameter init -------------------------------

def init_decoder_params(key, *, num_layers, embed_dim, dim_ffn, num_classes,
                        charset_size, max_label_length):
    """PyTorch-layout parameters (nn.Linear: (out, in); biases 1-D)."""
    keys = iter(jax.random.split(key, 16 * num_layers + 16))

    def nrm(shape, std=0.02):
        return (std * jax.random.normal(next(keys), shape)).astype(jnp.float32)

    zeros = lambda s: jnp.zeros(s, jnp.float32)
    ones = lambda s: jnp.ones(s, jnp.float32)

    def attn_params():
        return dict(in_proj_w=nrm((3 * embed_dim, embed_dim)),
                    in_proj_b=zeros((3 * embed_dim,)),
                    out_proj_w=nrm((embed_dim, embed_dim)),
                    out_proj_b=zeros((embed_dim,)))

    layers = []
    for _ in range(num_layers):
        layers.append(dict(
            self_attn=attn_params(), cross_attn=attn_params(),
            linear1_w=nrm((dim_ffn, embed_dim)), linear1_b=zeros((dim_ffn,)),
            linear2_w=nrm((embed_dim, dim_ffn)), linear2_b=zeros((embed_dim,)),
            norm1_g=ones((embed_dim,)), norm1_b=zeros((embed_dim,)),
            norm2_g=ones((embed_dim,)), norm2_b=zeros((embed_dim,)),
            normq_g=ones((embed_dim,)), normq_b=zeros((embed_dim,)),
            normc_g=ones((embed_dim,)), normc_b=zeros((embed_dim,)),
        ))
    return dict(layers=layers,
                embedding=nrm((charset_size, embed_dim)),
                pos_queries=nrm((1, max_label_length, embed_dim)),
                head_w=nrm((num_classes, embed_dim)),
                head_b=zeros((num_classes,)),
                norm_g=ones((embed_dim,)), norm_b=zeros((embed_dim,)))


def pack_decoder_params(raw, *, num_classes, num_heads,
                        weight_dtype=jnp.bfloat16):
    """One-time host-side repack: K-leading weights, (1, X) biases, softmax
    scale folded into q-projections, bf16 matmul weights, stacked per-layer
    weights (leading layer axis), head padded to 128 output lanes."""
    E = raw["embedding"].shape[1]
    scale = 1.0 / math.sqrt(E // num_heads)
    c_pad = ((num_classes + 127) // 128) * 128
    vec = lambda b: jnp.asarray(b, jnp.float32).reshape(1, -1)
    wd = lambda w: jnp.asarray(w).astype(weight_dtype)

    per_layer = {name: [] for name in _STACKED_NAMES}
    for lp in raw["layers"]:
        sa_wt = lp["self_attn"]["in_proj_w"].T                 # (E, 3E)
        sa_wt = jnp.concatenate([sa_wt[:, :E] * scale, sa_wt[:, E:]], axis=1)
        sa_b = lp["self_attn"]["in_proj_b"]
        sa_b = jnp.concatenate([sa_b[:E] * scale, sa_b[E:]])
        ca_wt = lp["cross_attn"]["in_proj_w"].T
        ca_b = lp["cross_attn"]["in_proj_b"]
        vals = dict(
            normq_g=vec(lp["normq_g"]), normq_b=vec(lp["normq_b"]),
            normc_g=vec(lp["normc_g"]), normc_b=vec(lp["normc_b"]),
            sa_wqkv=wd(sa_wt), sa_bqkv=vec(sa_b),
            sa_wo=wd(lp["self_attn"]["out_proj_w"].T),
            sa_bo=vec(lp["self_attn"]["out_proj_b"]),
            ca_wq=wd(ca_wt[:, :E] * scale), ca_bq=vec(ca_b[:E] * scale),
            ca_wkv=wd(ca_wt[:, E:]), ca_bkv=vec(ca_b[E:]),
            ca_wo=wd(lp["cross_attn"]["out_proj_w"].T),
            ca_bo=vec(lp["cross_attn"]["out_proj_b"]),
            norm1_g=vec(lp["norm1_g"]), norm1_b=vec(lp["norm1_b"]),
            norm2_g=vec(lp["norm2_g"]), norm2_b=vec(lp["norm2_b"]),
            linear1_w=wd(lp["linear1_w"].T), linear1_b=vec(lp["linear1_b"]),
            linear2_w=wd(lp["linear2_w"].T), linear2_b=vec(lp["linear2_b"]),
        )
        for name in _STACKED_NAMES:
            per_layer[name].append(vals[name])
    stacked = {name: jnp.stack(per_layer[name]) for name in _STACKED_NAMES}

    head_w = jnp.pad(raw["head_w"].T, ((0, 0), (0, c_pad - num_classes)))
    head_b = jnp.pad(raw["head_b"], (0, c_pad - num_classes)).reshape(1, -1)
    return dict(stacked=stacked,
                embedding=jnp.asarray(raw["embedding"], jnp.float32),
                pos_queries=jnp.asarray(raw["pos_queries"], jnp.float32),
                norm_g=vec(raw["norm_g"]), norm_b=vec(raw["norm_b"]),
                head_w=head_w.astype(weight_dtype),
                head_b=head_b.astype(jnp.float32))


# --------------------------- pure-JAX reference ------------------------------

def _ref_layer_norm(x, g, b, eps=_EPS):
    mu = x.mean(-1, keepdims=True)
    var = ((x - mu) ** 2).mean(-1, keepdims=True)
    return (x - mu) / jnp.sqrt(var + eps) * g + b


def _ref_mha(q, k, v, w_in, b_in, w_out, b_out, num_heads, mask=None):
    N, Lq, E = q.shape
    Dh = E // num_heads
    qp = q @ w_in[:E].T + b_in[:E]
    kp = k @ w_in[E:2 * E].T + b_in[E:2 * E]
    vp = v @ w_in[2 * E:].T + b_in[2 * E:]

    def split(x):
        return x.reshape(x.shape[0], x.shape[1], num_heads, Dh).transpose(0, 2, 1, 3)

    qh, kh, vh = split(qp), split(kp), split(vp)
    s = jnp.einsum("nhqd,nhkd->nhqk", qh, kh) / math.sqrt(Dh)
    if mask is not None:
        s = s + mask[:, None]
    p = jax.nn.softmax(s, axis=-1)
    o = jnp.einsum("nhqk,nhkd->nhqd", p, vh).transpose(0, 2, 1, 3).reshape(N, Lq, E)
    return o @ w_out.T + b_out


def reference_forward(raw, tgt, memory, *, num_heads, num_classes,
                      tgt_query_mask=None, content_mask=None,
                      content_key_padding_mask=None):
    N, L = tgt.shape
    E = raw["embedding"].shape[1]
    sqrt_e = math.sqrt(E)
    null_ctx = sqrt_e * raw["embedding"][tgt[:, :1]]
    tgt_emb = raw["pos_queries"][:, :L - 1] + sqrt_e * raw["embedding"][tgt[:, 1:]]
    content = jnp.concatenate([null_ctx, tgt_emb], axis=1)
    query = jnp.broadcast_to(raw["pos_queries"][:, :L], (N, L, E))
    q_mask = _combine_masks(tgt_query_mask, content_key_padding_mask, N, L, L)
    c_mask = _combine_masks(content_mask, content_key_padding_mask, N, L, L)

    n_layers = len(raw["layers"])
    for i, lp in enumerate(raw["layers"]):
        qn = _ref_layer_norm(query, lp["normq_g"], lp["normq_b"])
        cn = _ref_layer_norm(content, lp["normc_g"], lp["normc_b"])

        def stream(x, xn, mask, lp=lp, cn=cn):
            sa, ca = lp["self_attn"], lp["cross_attn"]
            x = x + _ref_mha(xn, cn, cn, sa["in_proj_w"], sa["in_proj_b"],
                             sa["out_proj_w"], sa["out_proj_b"], num_heads, mask)
            x = x + _ref_mha(_ref_layer_norm(x, lp["norm1_g"], lp["norm1_b"]),
                             memory, memory, ca["in_proj_w"], ca["in_proj_b"],
                             ca["out_proj_w"], ca["out_proj_b"], num_heads, None)
            h = _ref_layer_norm(x, lp["norm2_g"], lp["norm2_b"])
            h = jax.nn.gelu(h @ lp["linear1_w"].T + lp["linear1_b"],
                            approximate=True)
            h = h @ lp["linear2_w"].T + lp["linear2_b"]
            return x + h

        query = stream(query, qn, q_mask)
        if i < n_layers - 1:
            content = stream(content, cn, c_mask)
    qf = _ref_layer_norm(query, raw["norm_g"], raw["norm_b"])
    logits = qf @ raw["head_w"].T + raw["head_b"]
    return logits, qf


# ------------------------------------ main -----------------------------------

if __name__ == "__main__":
    key = jax.random.PRNGKey(0)
    kp, kt, km = jax.random.split(key, 3)

    N, L, S = 2, 6, 8                 # batch, target length, memory length
    E, H, F = 32, 4, 64               # embed_dim, heads, ffn dim
    NUM_LAYERS = 2
    CHARSET_SIZE = 13
    NUM_CLASSES = 11
    MAX_LABEL_LEN = 10

    raw = init_decoder_params(
        kp, num_layers=NUM_LAYERS, embed_dim=E, dim_ffn=F,
        num_classes=NUM_CLASSES, charset_size=CHARSET_SIZE,
        max_label_length=MAX_LABEL_LEN)

    tgt = jax.random.randint(kt, (N, L), 0, CHARSET_SIZE, dtype=jnp.int32)
    memory = (0.02 * jax.random.normal(km, (N, S, E))).astype(jnp.float32)

    # (1) f32 weights: validate against the pure-JAX reference.
    params32 = pack_decoder_params(raw, num_classes=NUM_CLASSES, num_heads=H,
                                   weight_dtype=jnp.float32)
    logits32, q32 = decoder_forward(params32, tgt, memory,
                                    num_heads=H, num_classes=NUM_CLASSES)
    with jax.default_matmul_precision("float32"):
        ref_logits, ref_q = reference_forward(raw, tgt, memory, num_heads=H,
                                              num_classes=NUM_CLASSES)
    jax.block_until_ready((logits32, q32, ref_logits, ref_q))
    np.testing.assert_allclose(np.asarray(logits32), np.asarray(ref_logits),
                               rtol=3e-2, atol=2e-3)
    np.testing.assert_allclose(np.asarray(q32), np.asarray(ref_q),
                               rtol=3e-2, atol=2e-3)

    # (2) bf16-weight / bf16-MXU configuration (production-perf path).
    params_bf16 = pack_decoder_params(raw, num_classes=NUM_CLASSES, num_heads=H,
                                      weight_dtype=jnp.bfloat16)
    logits, q_out = decoder_forward(params_bf16, tgt, memory,
                                    num_heads=H, num_classes=NUM_CLASSES)
    jax.block_until_ready((logits, q_out))

    assert logits.shape == (N, L, NUM_CLASSES)
    assert q_out.shape == (N, L, E)
    assert bool(jnp.all(jnp.isfinite(logits))) and bool(jnp.all(jnp.isfinite(q_out)))
    print("KERNEL_OK")
</pallas_src>

<mosaic_0001>
module attributes {stable_mosaic.version = 11 : i64} {
  func.func @_decoder_stack_kernel(%arg0: i32, %arg1: i32, %arg2: memref<12x32xf32, #tpu.memory_space<vmem>>, %arg3: memref<12x32xf32, #tpu.memory_space<vmem>>, %arg4: memref<16x32xf32, #tpu.memory_space<vmem>>, %arg5: memref<1x1x32xf32, #tpu.memory_space<vmem>>, %arg6: memref<1x1x32xf32, #tpu.memory_space<vmem>>, %arg7: memref<1x1x32xf32, #tpu.memory_space<vmem>>, %arg8: memref<1x1x32xf32, #tpu.memory_space<vmem>>, %arg9: memref<1x32x96xf32, #tpu.memory_space<vmem>>, %arg10: memref<1x1x96xf32, #tpu.memory_space<vmem>>, %arg11: memref<1x32x32xf32, #tpu.memory_space<vmem>>, %arg12: memref<1x1x32xf32, #tpu.memory_space<vmem>>, %arg13: memref<1x32x32xf32, #tpu.memory_space<vmem>>, %arg14: memref<1x1x32xf32, #tpu.memory_space<vmem>>, %arg15: memref<1x32x64xf32, #tpu.memory_space<vmem>>, %arg16: memref<1x1x64xf32, #tpu.memory_space<vmem>>, %arg17: memref<1x32x32xf32, #tpu.memory_space<vmem>>, %arg18: memref<1x1x32xf32, #tpu.memory_space<vmem>>, %arg19: memref<1x1x32xf32, #tpu.memory_space<vmem>>, %arg20: memref<1x1x32xf32, #tpu.memory_space<vmem>>, %arg21: memref<1x1x32xf32, #tpu.memory_space<vmem>>, %arg22: memref<1x1x32xf32, #tpu.memory_space<vmem>>, %arg23: memref<1x32x64xf32, #tpu.memory_space<vmem>>, %arg24: memref<1x1x64xf32, #tpu.memory_space<vmem>>, %arg25: memref<1x64x32xf32, #tpu.memory_space<vmem>>, %arg26: memref<1x1x32xf32, #tpu.memory_space<vmem>>, %arg27: memref<1x32xf32, #tpu.memory_space<vmem>>, %arg28: memref<1x32xf32, #tpu.memory_space<vmem>>, %arg29: memref<32x128xf32, #tpu.memory_space<vmem>>, %arg30: memref<1x128xf32, #tpu.memory_space<vmem>>, %arg31: memref<12x128xf32, #tpu.memory_space<vmem>>, %arg32: memref<12x32xf32, #tpu.memory_space<vmem>>, %arg33: memref<12x32xf32, #tpu.memory_space<vmem>>, %arg34: memref<12x32xf32, #tpu.memory_space<vmem>>) attributes {dimension_semantics = [#tpu.dimension_semantics<parallel>, #tpu.dimension_semantics<arbitrary>], iteration_bounds = array<i64: 1, 2>, scalar_prefetch = 0 : i64, scratch_operands = 2 : i64, tpu.core_type = #tpu.core_type<tc>, window_params = [{transform_indices = @transform_0, window_bounds = array<i64: 12, 32>}, {transform_indices = @transform_1, window_bounds = array<i64: 12, 32>}, {transform_indices = @transform_2, window_bounds = array<i64: 16, 32>}, {transform_indices = @transform_3, window_bounds = array<i64: 1, 1, 32>}, {transform_indices = @transform_4, window_bounds = array<i64: 1, 1, 32>}, {transform_indices = @transform_5, window_bounds = array<i64: 1, 1, 32>}, {transform_indices = @transform_6, window_bounds = array<i64: 1, 1, 32>}, {transform_indices = @transform_7, window_bounds = array<i64: 1, 32, 96>}, {transform_indices = @transform_8, window_bounds = array<i64: 1, 1, 96>}, {transform_indices = @transform_9, window_bounds = array<i64: 1, 32, 32>}, {transform_indices = @transform_10, window_bounds = array<i64: 1, 1, 32>}, {transform_indices = @transform_11, window_bounds = array<i64: 1, 32, 32>}, {transform_indices = @transform_12, window_bounds = array<i64: 1, 1, 32>}, {transform_indices = @transform_13, window_bounds = array<i64: 1, 32, 64>}, {transform_indices = @transform_14, window_bounds = array<i64: 1, 1, 64>}, {transform_indices = @transform_15, window_bounds = array<i64: 1, 32, 32>}, {transform_indices = @transform_16, window_bounds = array<i64: 1, 1, 32>}, {transform_indices = @transform_17, window_bounds = array<i64: 1, 1, 32>}, {transform_indices = @transform_18, window_bounds = array<i64: 1, 1, 32>}, {transform_indices = @transform_19, window_bounds = array<i64: 1, 1, 32>}, {transform_indices = @transform_20, window_bounds = array<i64: 1, 1, 32>}, {transform_indices = @transform_21, window_bounds = array<i64: 1, 32, 64>}, {transform_indices = @transform_22, window_bounds = array<i64: 1, 1, 64>}, {transform_indices = @transform_23, window_bounds = array<i64: 1, 64, 32>}, {transform_indices = @transform_24, window_bounds = array<i64: 1, 1, 32>}, {pipeline_mode = #tpu.pipeline_mode<synchronous>, transform_indices = @transform_25, window_bounds = array<i64: 1, 32>}, {pipeline_mode = #tpu.pipeline_mode<synchronous>, transform_indices = @transform_26, window_bounds = array<i64: 1, 32>}, {pipeline_mode = #tpu.pipeline_mode<synchronous>, transform_indices = @transform_27, window_bounds = array<i64: 32, 128>}, {pipeline_mode = #tpu.pipeline_mode<synchronous>, transform_indices = @transform_28, window_bounds = array<i64: 1, 128>}, {transform_indices = @transform_29, window_bounds = array<i64: 12, 128>}, {transform_indices = @transform_30, window_bounds = array<i64: 12, 32>}]} {
    %c0_i32 = arith.constant 0 : i32
    %0 = arith.cmpi eq, %arg1, %c0_i32 : i32
    %1 = arith.extui %0 : i1 to i32
    %c0_i32_0 = arith.constant 0 : i32
    %2 = arith.cmpi ne, %1, %c0_i32_0 : i32
    scf.if %2 {
      %c0_186 = arith.constant 0 : index
      %c0_187 = arith.constant 0 : index
      %492 = vector.load %arg2[%c0_186, %c0_187] : memref<12x32xf32, #tpu.memory_space<vmem>>, vector<12x32xf32>
      %c0_188 = arith.constant 0 : index
      %c0_189 = arith.constant 0 : index
      %493 = vector.load %arg33[%c0_188, %c0_189] : memref<12x32xf32, #tpu.memory_space<vmem>>, vector<12x32xf32>
      tpu.vector_store %arg33[%c0_188, %c0_189], %492 {strides = array<i32>} : memref<12x32xf32, #tpu.memory_space<vmem>>, vector<12x32xf32>,
      %c0_190 = arith.constant 0 : index
      %c0_191 = arith.constant 0 : index
      %494 = vector.load %arg3[%c0_190, %c0_191] : memref<12x32xf32, #tpu.memory_space<vmem>>, vector<12x32xf32>
      %c0_192 = arith.constant 0 : index
      %c0_193 = arith.constant 0 : index
      %495 = vector.load %arg34[%c0_192, %c0_193] : memref<12x32xf32, #tpu.memory_space<vmem>>, vector<12x32xf32>
      tpu.vector_store %arg34[%c0_192, %c0_193], %494 {strides = array<i32>} : memref<12x32xf32, #tpu.memory_space<vmem>>, vector<12x32xf32>,
    } else {
    }
    %c0 = arith.constant 0 : index
    %c0_1 = arith.constant 0 : index
    %3 = vector.load %arg33[%c0, %c0_1] : memref<12x32xf32, #tpu.memory_space<vmem>>, vector<12x32xf32>
    %c0_2 = arith.constant 0 : index
    %c0_3 = arith.constant 0 : index
    %4 = vector.load %arg34[%c0_2, %c0_3] : memref<12x32xf32, #tpu.memory_space<vmem>>, vector<12x32xf32>
    %c0_4 = arith.constant 0 : index
    %c0_5 = arith.constant 0 : index
    %5 = vector.load %arg4[%c0_4, %c0_5] : memref<16x32xf32, #tpu.memory_space<vmem>>, vector<16x32xf32>
    %c0_6 = arith.constant 0 : index
    %c0_7 = arith.constant 0 : index
    %c0_8 = arith.constant 0 : index
    %6 = vector.load %arg9[%c0_6, %c0_7, %c0_8] : memref<1x32x96xf32, #tpu.memory_space<vmem>>, vector<1x32x96xf32>
    %7 = vector.shape_cast %6 : vector<1x32x96xf32> to vector<32x96xf32>
    %c0_9 = arith.constant 0 : index
    %c0_10 = arith.constant 0 : index
    %c0_11 = arith.constant 0 : index
    %8 = vector.load %arg10[%c0_9, %c0_10, %c0_11] : memref<1x1x96xf32, #tpu.memory_space<vmem>>, vector<1x1x96xf32>
    %9 = vector.shape_cast %8 : vector<1x1x96xf32> to vector<1x96xf32>
    %c0_12 = arith.constant 0 : index
    %c0_13 = arith.constant 0 : index
    %c0_14 = arith.constant 0 : index
    %10 = vector.load %arg11[%c0_12, %c0_13, %c0_14] : memref<1x32x32xf32, #tpu.memory_space<vmem>>, vector<1x32x32xf32>
    %11 = vector.shape_cast %10 : vector<1x32x32xf32> to vector<32x32xf32>
    %c0_15 = arith.constant 0 : index
    %c0_16 = arith.constant 0 : index
    %c0_17 = arith.constant 0 : index
    %12 = vector.load %arg12[%c0_15, %c0_16, %c0_17] : memref<1x1x32xf32, #tpu.memory_space<vmem>>, vector<1x1x32xf32>
    %13 = vector.shape_cast %12 : vector<1x1x32xf32> to vector<1x32xf32>
    %c0_18 = arith.constant 0 : index
    %c0_19 = arith.constant 0 : index
    %c0_20 = arith.constant 0 : index
    %14 = vector.load %arg13[%c0_18, %c0_19, %c0_20] : memref<1x32x32xf32, #tpu.memory_space<vmem>>, vector<1x32x32xf32>
    %15 = vector.shape_cast %14 : vector<1x32x32xf32> to vector<32x32xf32>
    %c0_21 = arith.constant 0 : index
    %c0_22 = arith.constant 0 : index
    %c0_23 = arith.constant 0 : index
    %16 = vector.load %arg14[%c0_21, %c0_22, %c0_23] : memref<1x1x32xf32, #tpu.memory_space<vmem>>, vector<1x1x32xf32>
    %17 = vector.shape_cast %16 : vector<1x1x32xf32> to vector<1x32xf32>
    %c0_24 = arith.constant 0 : index
    %c0_25 = arith.constant 0 : index
    %c0_26 = arith.constant 0 : index
    %18 = vector.load %arg15[%c0_24, %c0_25, %c0_26] : memref<1x32x64xf32, #tpu.memory_space<vmem>>, vector<1x32x64xf32>
    %19 = vector.shape_cast %18 : vector<1x32x64xf32> to vector<32x64xf32>
    %c0_27 = arith.constant 0 : index
    %c0_28 = arith.constant 0 : index
    %c0_29 = arith.constant 0 : index
    %20 = vector.load %arg16[%c0_27, %c0_28, %c0_29] : memref<1x1x64xf32, #tpu.memory_space<vmem>>, vector<1x1x64xf32>
    %21 = vector.shape_cast %20 : vector<1x1x64xf32> to vector<1x64xf32>
    %c0_30 = arith.constant 0 : index
    %c0_31 = arith.constant 0 : index
    %c0_32 = arith.constant 0 : index
    %22 = vector.load %arg17[%c0_30, %c0_31, %c0_32] : memref<1x32x32xf32, #tpu.memory_space<vmem>>, vector<1x32x32xf32>
    %23 = vector.shape_cast %22 : vector<1x32x32xf32> to vector<32x32xf32>
    %c0_33 = arith.constant 0 : index
    %c0_34 = arith.constant 0 : index
    %c0_35 = arith.constant 0 : index
    %24 = vector.load %arg18[%c0_33, %c0_34, %c0_35] : memref<1x1x32xf32, #tpu.memory_space<vmem>>, vector<1x1x32xf32>
    %25 = vector.shape_cast %24 : vector<1x1x32xf32> to vector<1x32xf32>
    %c0_36 = arith.constant 0 : index
    %c0_37 = arith.constant 0 : index
    %c0_38 = arith.constant 0 : index
    %26 = vector.load %arg19[%c0_36, %c0_37, %c0_38] : memref<1x1x32xf32, #tpu.memory_space<vmem>>, vector<1x1x32xf32>
    %27 = vector.shape_cast %26 : vector<1x1x32xf32> to vector<1x32xf32>
    %c0_39 = arith.constant 0 : index
    %c0_40 = arith.constant 0 : index
    %c0_41 = arith.constant 0 : index
    %28 = vector.load %arg20[%c0_39, %c0_40, %c0_41] : memref<1x1x32xf32, #tpu.memory_space<vmem>>, vector<1x1x32xf32>
    %29 = vector.shape_cast %28 : vector<1x1x32xf32> to vector<1x32xf32>
    %c0_42 = arith.constant 0 : index
    %c0_43 = arith.constant 0 : index
    %c0_44 = arith.constant 0 : index
    %30 = vector.load %arg21[%c0_42, %c0_43, %c0_44] : memref<1x1x32xf32, #tpu.memory_space<vmem>>, vector<1x1x32xf32>
    %31 = vector.shape_cast %30 : vector<1x1x32xf32> to vector<1x32xf32>
    %c0_45 = arith.constant 0 : index
    %c0_46 = arith.constant 0 : index
    %c0_47 = arith.constant 0 : index
    %32 = vector.load %arg22[%c0_45, %c0_46, %c0_47] : memref<1x1x32xf32, #tpu.memory_space<vmem>>, vector<1x1x32xf32>
    %33 = vector.shape_cast %32 : vector<1x1x32xf32> to vector<1x32xf32>
    %c0_48 = arith.constant 0 : index
    %c0_49 = arith.constant 0 : index
    %c0_50 = arith.constant 0 : index
    %34 = vector.load %arg23[%c0_48, %c0_49, %c0_50] : memref<1x32x64xf32, #tpu.memory_space<vmem>>, vector<1x32x64xf32>
    %35 = vector.shape_cast %34 : vector<1x32x64xf32> to vector<32x64xf32>
    %c0_51 = arith.constant 0 : index
    %c0_52 = arith.constant 0 : index
    %c0_53 = arith.constant 0 : index
    %36 = vector.load %arg24[%c0_51, %c0_52, %c0_53] : memref<1x1x64xf32, #tpu.memory_space<vmem>>, vector<1x1x64xf32>
    %37 = vector.shape_cast %36 : vector<1x1x64xf32> to vector<1x64xf32>
    %c0_54 = arith.constant 0 : index
    %c0_55 = arith.constant 0 : index
    %c0_56 = arith.constant 0 : index
    %38 = vector.load %arg25[%c0_54, %c0_55, %c0_56] : memref<1x64x32xf32, #tpu.memory_space<vmem>>, vector<1x64x32xf32>
    %39 = vector.shape_cast %38 : vector<1x64x32xf32> to vector<64x32xf32>
    %c0_57 = arith.constant 0 : index
    %c0_58 = arith.constant 0 : index
    %c0_59 = arith.constant 0 : index
    %40 = vector.load %arg26[%c0_57, %c0_58, %c0_59] : memref<1x1x32xf32, #tpu.memory_space<vmem>>, vector<1x1x32xf32>
    %41 = vector.shape_cast %40 : vector<1x1x32xf32> to vector<1x32xf32>
    %c0_60 = arith.constant 0 : index
    %c0_61 = arith.constant 0 : index
    %c0_62 = arith.constant 0 : index
    %42 = vector.load %arg5[%c0_60, %c0_61, %c0_62] : memref<1x1x32xf32, #tpu.memory_space<vmem>>, vector<1x1x32xf32>
    %43 = vector.shape_cast %42 : vector<1x1x32xf32> to vector<1x32xf32>
    %c0_63 = arith.constant 0 : index
    %c0_64 = arith.constant 0 : index
    %c0_65 = arith.constant 0 : index
    %44 = vector.load %arg6[%c0_63, %c0_64, %c0_65] : memref<1x1x32xf32, #tpu.memory_space<vmem>>, vector<1x1x32xf32>
    %45 = vector.shape_cast %44 : vector<1x1x32xf32> to vector<1x32xf32>
    %cst = arith.constant dense<0.000000e+00> : vector<12xf32>
    %46 = vector.multi_reduction <add>, %3, %cst [1] : vector<12x32xf32> to vector<12xf32>
    %47 = vector.shape_cast %46 : vector<12xf32> to vector<12x1xf32>
    %cst_66 = arith.constant 3.200000e+01 : f32
    %48 = vector.broadcast %cst_66 : f32 to vector<12x1xf32>
    %49 = arith.divf %47, %48 : vector<12x1xf32>
    %50 = vector.broadcast %49 : vector<12x1xf32> to vector<12x32xf32>
    %51 = arith.subf %3, %50 : vector<12x32xf32>
    %52 = arith.mulf %51, %51 : vector<12x32xf32>
    %cst_67 = arith.constant dense<0.000000e+00> : vector<12xf32>
    %53 = vector.multi_reduction <add>, %52, %cst_67 [1] : vector<12x32xf32> to vector<12xf32>
    %54 = vector.shape_cast %53 : vector<12xf32> to vector<12x1xf32>
    %cst_68 = arith.constant 3.200000e+01 : f32
    %55 = vector.broadcast %cst_68 : f32 to vector<12x1xf32>
    %56 = arith.divf %54, %55 : vector<12x1xf32>
    %57 = vector.broadcast %49 : vector<12x1xf32> to vector<12x32xf32>
    %58 = arith.subf %3, %57 : vector<12x32xf32>
    %cst_69 = arith.constant 9.99999974E-6 : f32
    %59 = vector.broadcast %cst_69 : f32 to vector<12x1xf32>
    %60 = arith.addf %56, %59 : vector<12x1xf32>
    %61 = math.rsqrt %60 : vector<12x1xf32>
    %62 = vector.broadcast %61 : vector<12x1xf32> to vector<12x32xf32>
    %63 = arith.mulf %58, %62 : vector<12x32xf32>
    %64 = vector.broadcast %43 : vector<1x32xf32> to vector<12x32xf32>
    %65 = arith.mulf %63, %64 : vector<12x32xf32>
    %66 = vector.broadcast %45 : vector<1x32xf32> to vector<12x32xf32>
    %67 = arith.addf %65, %66 : vector<12x32xf32>
    %c0_70 = arith.constant 0 : index
    %c0_71 = arith.constant 0 : index
    %c0_72 = arith.constant 0 : index
    %68 = vector.load %arg7[%c0_70, %c0_71, %c0_72] : memref<1x1x32xf32, #tpu.memory_space<vmem>>, vector<1x1x32xf32>
    %69 = vector.shape_cast %68 : vector<1x1x32xf32> to vector<1x32xf32>
    %c0_73 = arith.constant 0 : index
    %c0_74 = arith.constant 0 : index
    %c0_75 = arith.constant 0 : index
    %70 = vector.load %arg8[%c0_73, %c0_74, %c0_75] : memref<1x1x32xf32, #tpu.memory_space<vmem>>, vector<1x1x32xf32>
    %71 = vector.shape_cast %70 : vector<1x1x32xf32> to vector<1x32xf32>
    %cst_76 = arith.constant dense<0.000000e+00> : vector<12xf32>
    %72 = vector.multi_reduction <add>, %4, %cst_76 [1] : vector<12x32xf32> to vector<12xf32>
    %73 = vector.shape_cast %72 : vector<12xf32> to vector<12x1xf32>
    %cst_77 = arith.constant 3.200000e+01 : f32
    %74 = vector.broadcast %cst_77 : f32 to vector<12x1xf32>
    %75 = arith.divf %73, %74 : vector<12x1xf32>
    %76 = vector.broadcast %75 : vector<12x1xf32> to vector<12x32xf32>
    %77 = arith.subf %4, %76 : vector<12x32xf32>
    %78 = arith.mulf %77, %77 : vector<12x32xf32>
    %cst_78 = arith.constant dense<0.000000e+00> : vector<12xf32>
    %79 = vector.multi_reduction <add>, %78, %cst_78 [1] : vector<12x32xf32> to vector<12xf32>
    %80 = vector.shape_cast %79 : vector<12xf32> to vector<12x1xf32>
    %cst_79 = arith.constant 3.200000e+01 : f32
    %81 = vector.broadcast %cst_79 : f32 to vector<12x1xf32>
    %82 = arith.divf %80, %81 : vector<12x1xf32>
    %83 = vector.broadcast %75 : vector<12x1xf32> to vector<12x32xf32>
    %84 = arith.subf %4, %83 : vector<12x32xf32>
    %cst_80 = arith.constant 9.99999974E-6 : f32
    %85 = vector.broadcast %cst_80 : f32 to vector<12x1xf32>
    %86 = arith.addf %82, %85 : vector<12x1xf32>
    %87 = math.rsqrt %86 : vector<12x1xf32>
    %88 = vector.broadcast %87 : vector<12x1xf32> to vector<12x32xf32>
    %89 = arith.mulf %84, %88 : vector<12x32xf32>
    %90 = vector.broadcast %69 : vector<1x32xf32> to vector<12x32xf32>
    %91 = arith.mulf %89, %90 : vector<12x32xf32>
    %92 = vector.broadcast %71 : vector<1x32xf32> to vector<12x32xf32>
    %93 = arith.addf %91, %92 : vector<12x32xf32>
    %cst_81 = arith.constant dense<0.000000e+00> : vector<12x96xf32>
    %94 = tpu.matmul %93, %7, %cst_81 {dimension_numbers = #tpu.dot_dimension_numbers<[1], [0], [0], [1], [0, 0, 1, 1], [], []>} : vector<12x32xf32>, vector<32x96xf32>, vector<12x96xf32> -> vector<12x96xf32>
    %95 = vector.broadcast %9 : vector<1x96xf32> to vector<12x96xf32>
    %96 = arith.addf %94, %95 : vector<12x96xf32>
    %97 = vector.extract_strided_slice %96 {offsets = [0, 32], sizes = [12, 32], strides = [1, 1]} : vector<12x96xf32> to vector<12x32xf32>
    %98 = vector.extract_strided_slice %96 {offsets = [0, 64], sizes = [12, 32], strides = [1, 1]} : vector<12x96xf32> to vector<12x32xf32>
    %99 = vector.extract_strided_slice %96 {offsets = [0, 0], sizes = [12, 32], strides = [1, 1]} : vector<12x96xf32> to vector<12x32xf32>
    %100 = vector.extract_strided_slice %7 {offsets = [0, 0], sizes = [32, 32], strides = [1, 1]} : vector<32x96xf32> to vector<32x32xf32>
    %cst_82 = arith.constant dense<0.000000e+00> : vector<12x32xf32>
    %101 = tpu.matmul %67, %100, %cst_82 {dimension_numbers = #tpu.dot_dimension_numbers<[1], [0], [0], [1], [0, 0, 1, 1], [], []>} : vector<12x32xf32>, vector<32x32xf32>, vector<12x32xf32> -> vector<12x32xf32>
    %102 = vector.extract_strided_slice %9 {offsets = [0, 0], sizes = [1, 32], strides = [1, 1]} : vector<1x96xf32> to vector<1x32xf32>
    %103 = vector.broadcast %102 : vector<1x32xf32> to vector<12x32xf32>
    %104 = arith.addf %101, %103 : vector<12x32xf32>
    %cst_83 = arith.constant dense<0.000000e+00> : vector<16x64xf32>
    %105 = tpu.matmul %5, %19, %cst_83 {dimension_numbers = #tpu.dot_dimension_numbers<[1], [0], [0], [1], [0, 0, 1, 1], [], []>} : vector<16x32xf32>, vector<32x64xf32>, vector<16x64xf32> -> vector<16x64xf32>
    %106 = vector.broadcast %21 : vector<1x64xf32> to vector<16x64xf32>
    %107 = arith.addf %105, %106 : vector<16x64xf32>
    %108 = vector.extract_strided_slice %107 {offsets = [0, 0], sizes = [16, 32], strides = [1, 1]} : vector<16x64xf32> to vector<16x32xf32>
    %109 = vector.extract_strided_slice %107 {offsets = [0, 32], sizes = [16, 32], strides = [1, 1]} : vector<16x64xf32> to vector<16x32xf32>
    %110 = vector.extract_strided_slice %104 {offsets = [0, 0], sizes = [6, 32], strides = [1, 1]} : vector<12x32xf32> to vector<6x32xf32>
    %111 = vector.extract_strided_slice %97 {offsets = [0, 0], sizes = [6, 32], strides = [1, 1]} : vector<12x32xf32> to vector<6x32xf32>
    %112 = vector.extract_strided_slice %98 {offsets = [0, 0], sizes = [6, 32], strides = [1, 1]} : vector<12x32xf32> to vector<6x32xf32>
    %113 = vector.extract_strided_slice %110 {offsets = [0, 0], sizes = [6, 8], strides = [1, 1]} : vector<6x32xf32> to vector<6x8xf32>
    %114 = vector.extract_strided_slice %111 {offsets = [0, 0], sizes = [6, 8], strides = [1, 1]} : vector<6x32xf32> to vector<6x8xf32>
    %cst_84 = arith.constant dense<0.000000e+00> : vector<6x6xf32>
    %115 = tpu.matmul %113, %114, %cst_84 {dimension_numbers = #tpu.dot_dimension_numbers<[1], [1], [0], [0], [0, 0, 1, 0], [], []>} : vector<6x8xf32>, vector<6x8xf32>, vector<6x6xf32> -> vector<6x6xf32>
    %cst_85 = arith.constant dense<0xFF800000> : vector<6xf32>
    %116 = vector.multi_reduction <maximumf>, %115, %cst_85 [1] : vector<6x6xf32> to vector<6xf32>
    %117 = vector.shape_cast %116 : vector<6xf32> to vector<6x1xf32>
    %118 = vector.broadcast %117 : vector<6x1xf32> to vector<6x6xf32>
    %119 = arith.subf %115, %118 : vector<6x6xf32>
    %120 = math.exp %119 : vector<6x6xf32>
    %cst_86 = arith.constant dense<0.000000e+00> : vector<6xf32>
    %121 = vector.multi_reduction <add>, %120, %cst_86 [1] : vector<6x6xf32> to vector<6xf32>
    %122 = vector.shape_cast %121 : vector<6xf32> to vector<6x1xf32>
    %123 = tpu.reciprocal %122 {approx = true} : vector<6x1xf32> -> vector<6x1xf32>
    %124 = vector.broadcast %123 : vector<6x1xf32> to vector<6x6xf32>
    %125 = arith.mulf %120, %124 : vector<6x6xf32>
    %126 = vector.extract_strided_slice %112 {offsets = [0, 0], sizes = [6, 8], strides = [1, 1]} : vector<6x32xf32> to vector<6x8xf32>
    %cst_87 = arith.constant dense<0.000000e+00> : vector<6x8xf32>
    %127 = tpu.matmul %125, %126, %cst_87 {dimension_numbers = #tpu.dot_dimension_numbers<[1], [0], [0], [1], [0, 0, 1, 1], [], []>} : vector<6x6xf32>, vector<6x8xf32>, vector<6x8xf32> -> vector<6x8xf32>
    %128 = vector.extract_strided_slice %11 {offsets = [0, 0], sizes = [8, 32], strides = [1, 1]} : vector<32x32xf32> to vector<8x32xf32>
    %cst_88 = arith.constant dense<0.000000e+00> : vector<6x32xf32>
    %129 = tpu.matmul %127, %128, %cst_88 {dimension_numbers = #tpu.dot_dimension_numbers<[1], [0], [0], [1], [0, 0, 1, 1], [], []>} : vector<6x8xf32>, vector<8x32xf32>, vector<6x32xf32> -> vector<6x32xf32>
    %130 = vector.broadcast %13 : vector<1x32xf32> to vector<6x32xf32>
    %131 = arith.addf %130, %129 : vector<6x32xf32>
    %132 = vector.extract_strided_slice %110 {offsets = [0, 8], sizes = [6, 8], strides = [1, 1]} : vector<6x32xf32> to vector<6x8xf32>
    %133 = vector.extract_strided_slice %111 {offsets = [0, 8], sizes = [6, 8], strides = [1, 1]} : vector<6x32xf32> to vector<6x8xf32>
    %cst_89 = arith.constant dense<0.000000e+00> : vector<6x6xf32>
    %134 = tpu.matmul %132, %133, %cst_89 {dimension_numbers = #tpu.dot_dimension_numbers<[1], [1], [0], [0], [0, 0, 1, 0], [], []>} : vector<6x8xf32>, vector<6x8xf32>, vector<6x6xf32> -> vector<6x6xf32>
    %cst_90 = arith.constant dense<0xFF800000> : vector<6xf32>
    %135 = vector.multi_reduction <maximumf>, %134, %cst_90 [1] : vector<6x6xf32> to vector<6xf32>
    %136 = vector.shape_cast %135 : vector<6xf32> to vector<6x1xf32>
    %137 = vector.broadcast %136 : vector<6x1xf32> to vector<6x6xf32>
    %138 = arith.subf %134, %137 : vector<6x6xf32>
    %139 = math.exp %138 : vector<6x6xf32>
    %cst_91 = arith.constant dense<0.000000e+00> : vector<6xf32>
    %140 = vector.multi_reduction <add>, %139, %cst_91 [1] : vector<6x6xf32> to vector<6xf32>
    %141 = vector.shape_cast %140 : vector<6xf32> to vector<6x1xf32>
    %142 = tpu.reciprocal %141 {approx = true} : vector<6x1xf32> -> vector<6x1xf32>
    %143 = vector.broadcast %142 : vector<6x1xf32> to vector<6x6xf32>
    %144 = arith.mulf %139, %143 : vector<6x6xf32>
    %145 = vector.extract_strided_slice %112 {offsets = [0, 8], sizes = [6, 8], strides = [1, 1]} : vector<6x32xf32> to vector<6x8xf32>
    %cst_92 = arith.constant dense<0.000000e+00> : vector<6x8xf32>
    %146 = tpu.matmul %144, %145, %cst_92 {dimension_numbers = #tpu.dot_dimension_numbers<[1], [0], [0], [1], [0, 0, 1, 1], [], []>} : vector<6x6xf32>, vector<6x8xf32>, vector<6x8xf32> -> vector<6x8xf32>
    %147 = vector.extract_strided_slice %11 {offsets = [8, 0], sizes = [8, 32], strides = [1, 1]} : vector<32x32xf32> to vector<8x32xf32>
    %cst_93 = arith.constant dense<0.000000e+00> : vector<6x32xf32>
    %148 = tpu.matmul %146, %147, %cst_93 {dimension_numbers = #tpu.dot_dimension_numbers<[1], [0], [0], [1], [0, 0, 1, 1], [], []>} : vector<6x8xf32>, vector<8x32xf32>, vector<6x32xf32> -> vector<6x32xf32>
    %149 = arith.addf %131, %148 : vector<6x32xf32>
    %150 = vector.extract_strided_slice %110 {offsets = [0, 16], sizes = [6, 8], strides = [1, 1]} : vector<6x32xf32> to vector<6x8xf32>
    %151 = vector.extract_strided_slice %111 {offsets = [0, 16], sizes = [6, 8], strides = [1, 1]} : vector<6x32xf32> to vector<6x8xf32>
    %cst_94 = arith.constant dense<0.000000e+00> : vector<6x6xf32>
    %152 = tpu.matmul %150, %151, %cst_94 {dimension_numbers = #tpu.dot_dimension_numbers<[1], [1], [0], [0], [0, 0, 1, 0], [], []>} : vector<6x8xf32>, vector<6x8xf32>, vector<6x6xf32> -> vector<6x6xf32>
    %cst_95 = arith.constant dense<0xFF800000> : vector<6xf32>
    %153 = vector.multi_reduction <maximumf>, %152, %cst_95 [1] : vector<6x6xf32> to vector<6xf32>
    %154 = vector.shape_cast %153 : vector<6xf32> to vector<6x1xf32>
    %155 = vector.broadcast %154 : vector<6x1xf32> to vector<6x6xf32>
    %156 = arith.subf %152, %155 : vector<6x6xf32>
    %157 = math.exp %156 : vector<6x6xf32>
    %cst_96 = arith.constant dense<0.000000e+00> : vector<6xf32>
    %158 = vector.multi_reduction <add>, %157, %cst_96 [1] : vector<6x6xf32> to vector<6xf32>
    %159 = vector.shape_cast %158 : vector<6xf32> to vector<6x1xf32>
    %160 = tpu.reciprocal %159 {approx = true} : vector<6x1xf32> -> vector<6x1xf32>
    %161 = vector.broadcast %160 : vector<6x1xf32> to vector<6x6xf32>
    %162 = arith.mulf %157, %161 : vector<6x6xf32>
    %163 = vector.extract_strided_slice %112 {offsets = [0, 16], sizes = [6, 8], strides = [1, 1]} : vector<6x32xf32> to vector<6x8xf32>
    %cst_97 = arith.constant dense<0.000000e+00> : vector<6x8xf32>
    %164 = tpu.matmul %162, %163, %cst_97 {dimension_numbers = #tpu.dot_dimension_numbers<[1], [0], [0], [1], [0, 0, 1, 1], [], []>} : vector<6x6xf32>, vector<6x8xf32>, vector<6x8xf32> -> vector<6x8xf32>
    %165 = vector.extract_strided_slice %11 {offsets = [16, 0], sizes = [8, 32], strides = [1, 1]} : vector<32x32xf32> to vector<8x32xf32>
    %cst_98 = arith.constant dense<0.000000e+00> : vector<6x32xf32>
    %166 = tpu.matmul %164, %165, %cst_98 {dimension_numbers = #tpu.dot_dimension_numbers<[1], [0], [0], [1], [0, 0, 1, 1], [], []>} : vector<6x8xf32>, vector<8x32xf32>, vector<6x32xf32> -> vector<6x32xf32>
    %167 = arith.addf %149, %166 : vector<6x32xf32>
    %168 = vector.extract_strided_slice %110 {offsets = [0, 24], sizes = [6, 8], strides = [1, 1]} : vector<6x32xf32> to vector<6x8xf32>
    %169 = vector.extract_strided_slice %111 {offsets = [0, 24], sizes = [6, 8], strides = [1, 1]} : vector<6x32xf32> to vector<6x8xf32>
    %cst_99 = arith.constant dense<0.000000e+00> : vector<6x6xf32>
    %170 = tpu.matmul %168, %169, %cst_99 {dimension_numbers = #tpu.dot_dimension_numbers<[1], [1], [0], [0], [0, 0, 1, 0], [], []>} : vector<6x8xf32>, vector<6x8xf32>, vector<6x6xf32> -> vector<6x6xf32>
    %cst_100 = arith.constant dense<0xFF800000> : vector<6xf32>
    %171 = vector.multi_reduction <maximumf>, %170, %cst_100 [1] : vector<6x6xf32> to vector<6xf32>
    %172 = vector.shape_cast %171 : vector<6xf32> to vector<6x1xf32>
    %173 = vector.broadcast %172 : vector<6x1xf32> to vector<6x6xf32>
    %174 = arith.subf %170, %173 : vector<6x6xf32>
    %175 = math.exp %174 : vector<6x6xf32>
    %cst_101 = arith.constant dense<0.000000e+00> : vector<6xf32>
    %176 = vector.multi_reduction <add>, %175, %cst_101 [1] : vector<6x6xf32> to vector<6xf32>
    %177 = vector.shape_cast %176 : vector<6xf32> to vector<6x1xf32>
    %178 = tpu.reciprocal %177 {approx = true} : vector<6x1xf32> -> vector<6x1xf32>
    %179 = vector.broadcast %178 : vector<6x1xf32> to vector<6x6xf32>
    %180 = arith.mulf %175, %179 : vector<6x6xf32>
    %181 = vector.extract_strided_slice %112 {offsets = [0, 24], sizes = [6, 8], strides = [1, 1]} : vector<6x32xf32> to vector<6x8xf32>
    %cst_102 = arith.constant dense<0.000000e+00> : vector<6x8xf32>
    %182 = tpu.matmul %180, %181, %cst_102 {dimension_numbers = #tpu.dot_dimension_numbers<[1], [0], [0], [1], [0, 0, 1, 1], [], []>} : vector<6x6xf32>, vector<6x8xf32>, vector<6x8xf32> -> vector<6x8xf32>
    %183 = vector.extract_strided_slice %11 {offsets = [24, 0], sizes = [8, 32], strides = [1, 1]} : vector<32x32xf32> to vector<8x32xf32>
    %cst_103 = arith.constant dense<0.000000e+00> : vector<6x32xf32>
    %184 = tpu.matmul %182, %183, %cst_103 {dimension_numbers = #tpu.dot_dimension_numbers<[1], [0], [0], [1], [0, 0, 1, 1], [], []>} : vector<6x8xf32>, vector<8x32xf32>, vector<6x32xf32> -> vector<6x32xf32>
    %185 = arith.addf %167, %184 : vector<6x32xf32>
    %186 = vector.extract_strided_slice %104 {offsets = [6, 0], sizes = [6, 32], strides = [1, 1]} : vector<12x32xf32> to vector<6x32xf32>
    %187 = vector.extract_strided_slice %97 {offsets = [6, 0], sizes = [6, 32], strides = [1, 1]} : vector<12x32xf32> to vector<6x32xf32>
    %188 = vector.extract_strided_slice %98 {offsets = [6, 0], sizes = [6, 32], strides = [1, 1]} : vector<12x32xf32> to vector<6x32xf32>
    %189 = vector.extract_strided_slice %186 {offsets = [0, 0], sizes = [6, 8], strides = [1, 1]} : vector<6x32xf32> to vector<6x8xf32>
    %190 = vector.extract_strided_slice %187 {offsets = [0, 0], sizes = [6, 8], strides = [1, 1]} : vector<6x32xf32> to vector<6x8xf32>
    %cst_104 = arith.constant dense<0.000000e+00> : vector<6x6xf32>
    %191 = tpu.matmul %189, %190, %cst_104 {dimension_numbers = #tpu.dot_dimension_numbers<[1], [1], [0], [0], [0, 0, 1, 0], [], []>} : vector<6x8xf32>, vector<6x8xf32>, vector<6x6xf32> -> vector<6x6xf32>
    %cst_105 = arith.constant dense<0xFF800000> : vector<6xf32>
    %192 = vector.multi_reduction <maximumf>, %191, %cst_105 [1] : vector<6x6xf32> to vector<6xf32>
    %193 = vector.shape_cast %192 : vector<6xf32> to vector<6x1xf32>
    %194 = vector.broadcast %193 : vector<6x1xf32> to vector<6x6xf32>
    %195 = arith.subf %191, %194 : vector<6x6xf32>
    %196 = math.exp %195 : vector<6x6xf32>
    %cst_106 = arith.constant dense<0.000000e+00> : vector<6xf32>
    %197 = vector.multi_reduction <add>, %196, %cst_106 [1] : vector<6x6xf32> to vector<6xf32>
    %198 = vector.shape_cast %197 : vector<6xf32> to vector<6x1xf32>
    %199 = tpu.reciprocal %198 {approx = true} : vector<6x1xf32> -> vector<6x1xf32>
    %200 = vector.broadcast %199 : vector<6x1xf32> to vector<6x6xf32>
    %201 = arith.mulf %196, %200 : vector<6x6xf32>
    %202 = vector.extract_strided_slice %188 {offsets = [0, 0], sizes = [6, 8], strides = [1, 1]} : vector<6x32xf32> to vector<6x8xf32>
    %cst_107 = arith.constant dense<0.000000e+00> : vector<6x8xf32>
    %203 = tpu.matmul %201, %202, %cst_107 {dimension_numbers = #tpu.dot_dimension_numbers<[1], [0], [0], [1], [0, 0, 1, 1], [], []>} : vector<6x6xf32>, vector<6x8xf32>, vector<6x8xf32> -> vector<6x8xf32>
    %204 = vector.extract_strided_slice %11 {offsets = [0, 0], sizes = [8, 32], strides = [1, 1]} : vector<32x32xf32> to vector<8x32xf32>
    %cst_108 = arith.constant dense<0.000000e+00> : vector<6x32xf32>
    %205 = tpu.matmul %203, %204, %cst_108 {dimension_numbers = #tpu.dot_dimension_numbers<[1], [0], [0], [1], [0, 0, 1, 1], [], []>} : vector<6x8xf32>, vector<8x32xf32>, vector<6x32xf32> -> vector<6x32xf32>
    %206 = vector.broadcast %13 : vector<1x32xf32> to vector<6x32xf32>
    %207 = arith.addf %206, %205 : vector<6x32xf32>
    %208 = vector.extract_strided_slice %186 {offsets = [0, 8], sizes = [6, 8], strides = [1, 1]} : vector<6x32xf32> to vector<6x8xf32>
    %209 = vector.extract_strided_slice %187 {offsets = [0, 8], sizes = [6, 8], strides = [1, 1]} : vector<6x32xf32> to vector<6x8xf32>
    %cst_109 = arith.constant dense<0.000000e+00> : vector<6x6xf32>
    %210 = tpu.matmul %208, %209, %cst_109 {dimension_numbers = #tpu.dot_dimension_numbers<[1], [1], [0], [0], [0, 0, 1, 0], [], []>} : vector<6x8xf32>, vector<6x8xf32>, vector<6x6xf32> -> vector<6x6xf32>
    %cst_110 = arith.constant dense<0xFF800000> : vector<6xf32>
    %211 = vector.multi_reduction <maximumf>, %210, %cst_110 [1] : vector<6x6xf32> to vector<6xf32>
    %212 = vector.shape_cast %211 : vector<6xf32> to vector<6x1xf32>
    %213 = vector.broadcast %212 : vector<6x1xf32> to vector<6x6xf32>
    %214 = arith.subf %210, %213 : vector<6x6xf32>
    %215 = math.exp %214 : vector<6x6xf32>
    %cst_111 = arith.constant dense<0.000000e+00> : vector<6xf32>
    %216 = vector.multi_reduction <add>, %215, %cst_111 [1] : vector<6x6xf32> to vector<6xf32>
    %217 = vector.shape_cast %216 : vector<6xf32> to vector<6x1xf32>
    %218 = tpu.reciprocal %217 {approx = true} : vector<6x1xf32> -> vector<6x1xf32>
    %219 = vector.broadcast %218 : vector<6x1xf32> to vector<6x6xf32>
    %220 = arith.mulf %215, %219 : vector<6x6xf32>
    %221 = vector.extract_strided_slice %188 {offsets = [0, 8], sizes = [6, 8], strides = [1, 1]} : vector<6x32xf32> to vector<6x8xf32>
    %cst_112 = arith.constant dense<0.000000e+00> : vector<6x8xf32>
    %222 = tpu.matmul %220, %221, %cst_112 {dimension_numbers = #tpu.dot_dimension_numbers<[1], [0], [0], [1], [0, 0, 1, 1], [], []>} : vector<6x6xf32>, vector<6x8xf32>, vector<6x8xf32> -> vector<6x8xf32>
    %223 = vector.extract_strided_slice %11 {offsets = [8, 0], sizes = [8, 32], strides = [1, 1]} : vector<32x32xf32> to vector<8x32xf32>
    %cst_113 = arith.constant dense<0.000000e+00> : vector<6x32xf32>
    %224 = tpu.matmul %222, %223, %cst_113 {dimension_numbers = #tpu.dot_dimension_numbers<[1], [0], [0], [1], [0, 0, 1, 1], [], []>} : vector<6x8xf32>, vector<8x32xf32>, vector<6x32xf32> -> vector<6x32xf32>
    %225 = arith.addf %207, %224 : vector<6x32xf32>
    %226 = vector.extract_strided_slice %186 {offsets = [0, 16], sizes = [6, 8], strides = [1, 1]} : vector<6x32xf32> to vector<6x8xf32>
    %227 = vector.extract_strided_slice %187 {offsets = [0, 16], sizes = [6, 8], strides = [1, 1]} : vector<6x32xf32> to vector<6x8xf32>
    %cst_114 = arith.constant dense<0.000000e+00> : vector<6x6xf32>
    %228 = tpu.matmul %226, %227, %cst_114 {dimension_numbers = #tpu.dot_dimension_numbers<[1], [1], [0], [0], [0, 0, 1, 0], [], []>} : vector<6x8xf32>, vector<6x8xf32>, vector<6x6xf32> -> vector<6x6xf32>
    %cst_115 = arith.constant dense<0xFF800000> : vector<6xf32>
    %229 = vector.multi_reduction <maximumf>, %228, %cst_115 [1] : vector<6x6xf32> to vector<6xf32>
    %230 = vector.shape_cast %229 : vector<6xf32> to vector<6x1xf32>
    %231 = vector.broadcast %230 : vector<6x1xf32> to vector<6x6xf32>
    %232 = arith.subf %228, %231 : vector<6x6xf32>
    %233 = math.exp %232 : vector<6x6xf32>
    %cst_116 = arith.constant dense<0.000000e+00> : vector<6xf32>
    %234 = vector.multi_reduction <add>, %233, %cst_116 [1] : vector<6x6xf32> to vector<6xf32>
    %235 = vector.shape_cast %234 : vector<6xf32> to vector<6x1xf32>
    %236 = tpu.reciprocal %235 {approx = true} : vector<6x1xf32> -> vector<6x1xf32>
    %237 = vector.broadcast %236 : vector<6x1xf32> to vector<6x6xf32>
    %238 = arith.mulf %233, %237 : vector<6x6xf32>
    %239 = vector.extract_strided_slice %188 {offsets = [0, 16], sizes = [6, 8], strides = [1, 1]} : vector<6x32xf32> to vector<6x8xf32>
    %cst_117 = arith.constant dense<0.000000e+00> : vector<6x8xf32>
    %240 = tpu.matmul %238, %239, %cst_117 {dimension_numbers = #tpu.dot_dimension_numbers<[1], [0], [0], [1], [0, 0, 1, 1], [], []>} : vector<6x6xf32>, vector<6x8xf32>, vector<6x8xf32> -> vector<6x8xf32>
    %241 = vector.extract_strided_slice %11 {offsets = [16, 0], sizes = [8, 32], strides = [1, 1]} : vector<32x32xf32> to vector<8x32xf32>
    %cst_118 = arith.constant dense<0.000000e+00> : vector<6x32xf32>
    %242 = tpu.matmul %240, %241, %cst_118 {dimension_numbers = #tpu.dot_dimension_numbers<[1], [0], [0], [1], [0, 0, 1, 1], [], []>} : vector<6x8xf32>, vector<8x32xf32>, vector<6x32xf32> -> vector<6x32xf32>
    %243 = arith.addf %225, %242 : vector<6x32xf32>
    %244 = vector.extract_strided_slice %186 {offsets = [0, 24], sizes = [6, 8], strides = [1, 1]} : vector<6x32xf32> to vector<6x8xf32>
    %245 = vector.extract_strided_slice %187 {offsets = [0, 24], sizes = [6, 8], strides = [1, 1]} : vector<6x32xf32> to vector<6x8xf32>
    %cst_119 = arith.constant dense<0.000000e+00> : vector<6x6xf32>
    %246 = tpu.matmul %244, %245, %cst_119 {dimension_numbers = #tpu.dot_dimension_numbers<[1], [1], [0], [0], [0, 0, 1, 0], [], []>} : vector<6x8xf32>, vector<6x8xf32>, vector<6x6xf32> -> vector<6x6xf32>
    %cst_120 = arith.constant dense<0xFF800000> : vector<6xf32>
    %247 = vector.multi_reduction <maximumf>, %246, %cst_120 [1] : vector<6x6xf32> to vector<6xf32>
    %248 = vector.shape_cast %247 : vector<6xf32> to vector<6x1xf32>
    %249 = vector.broadcast %248 : vector<6x1xf32> to vector<6x6xf32>
    %250 = arith.subf %246, %249 : vector<6x6xf32>
    %251 = math.exp %250 : vector<6x6xf32>
    %cst_121 = arith.constant dense<0.000000e+00> : vector<6xf32>
    %252 = vector.multi_reduction <add>, %251, %cst_121 [1] : vector<6x6xf32> to vector<6xf32>
    %253 = vector.shape_cast %252 : vector<6xf32> to vector<6x1xf32>
    %254 = tpu.reciprocal %253 {approx = true} : vector<6x1xf32> -> vector<6x1xf32>
    %255 = vector.broadcast %254 : vector<6x1xf32> to vector<6x6xf32>
    %256 = arith.mulf %251, %255 : vector<6x6xf32>
    %257 = vector.extract_strided_slice %188 {offsets = [0, 24], sizes = [6, 8], strides = [1, 1]} : vector<6x32xf32> to vector<6x8xf32>
    %cst_122 = arith.constant dense<0.000000e+00> : vector<6x8xf32>
    %258 = tpu.matmul %256, %257, %cst_122 {dimension_numbers = #tpu.dot_dimension_numbers<[1], [0], [0], [1], [0, 0, 1, 1], [], []>} : vector<6x6xf32>, vector<6x8xf32>, vector<6x8xf32> -> vector<6x8xf32>
    %259 = vector.extract_strided_slice %11 {offsets = [24, 0], sizes = [8, 32], strides = [1, 1]} : vector<32x32xf32> to vector<8x32xf32>
    %cst_123 = arith.constant dense<0.000000e+00> : vector<6x32xf32>
    %260 = tpu.matmul %258, %259, %cst_123 {dimension_numbers = #tpu.dot_dimension_numbers<[1], [0], [0], [1], [0, 0, 1, 1], [], []>} : vector<6x8xf32>, vector<8x32xf32>, vector<6x32xf32> -> vector<6x32xf32>
    %261 = arith.addf %243, %260 : vector<6x32xf32>
    %262 = tpu.concatenate %185, %261 in 0 : vector<6x32xf32>, vector<6x32xf32> -> vector<12x32xf32>
    %263 = arith.addf %3, %262 : vector<12x32xf32>
    %cst_124 = arith.constant dense<0.000000e+00> : vector<12xf32>
    %264 = vector.multi_reduction <add>, %263, %cst_124 [1] : vector<12x32xf32> to vector<12xf32>
    %265 = vector.shape_cast %264 : vector<12xf32> to vector<12x1xf32>
    %cst_125 = arith.constant 3.200000e+01 : f32
    %266 = vector.broadcast %cst_125 : f32 to vector<12x1xf32>
    %267 = arith.divf %265, %266 : vector<12x1xf32>
    %268 = vector.broadcast %267 : vector<12x1xf32> to vector<12x32xf32>
    %269 = arith.subf %263, %268 : vector<12x32xf32>
    %270 = arith.mulf %269, %269 : vector<12x32xf32>
    %cst_126 = arith.constant dense<0.000000e+00> : vector<12xf32>
    %271 = vector.multi_reduction <add>, %270, %cst_126 [1] : vector<12x32xf32> to vector<12xf32>
    %272 = vector.shape_cast %271 : vector<12xf32> to vector<12x1xf32>
    %cst_127 = arith.constant 3.200000e+01 : f32
    %273 = vector.broadcast %cst_127 : f32 to vector<12x1xf32>
    %274 = arith.divf %272, %273 : vector<12x1xf32>
    %275 = vector.broadcast %267 : vector<12x1xf32> to vector<12x32xf32>
    %276 = arith.subf %263, %275 : vector<12x32xf32>
    %cst_128 = arith.constant 9.99999974E-6 : f32
    %277 = vector.broadcast %cst_128 : f32 to vector<12x1xf32>
    %278 = arith.addf %274, %277 : vector<12x1xf32>
    %279 = math.rsqrt %278 : vector<12x1xf32>
    %280 = vector.broadcast %279 : vector<12x1xf32> to vector<12x32xf32>
    %281 = arith.mulf %276, %280 : vector<12x32xf32>
    %282 = vector.broadcast %27 : vector<1x32xf32> to vector<12x32xf32>
    %283 = arith.mulf %281, %282 : vector<12x32xf32>
    %284 = vector.broadcast %29 : vector<1x32xf32> to vector<12x32xf32>
    %285 = arith.addf %283, %284 : vector<12x32xf32>
    %cst_129 = arith.constant dense<0.000000e+00> : vector<12x32xf32>
    %286 = tpu.matmul %285, %15, %cst_129 {dimension_numbers = #tpu.dot_dimension_numbers<[1], [0], [0], [1], [0, 0, 1, 1], [], []>} : vector<12x32xf32>, vector<32x32xf32>, vector<12x32xf32> -> vector<12x32xf32>
    %287 = vector.broadcast %17 : vector<1x32xf32> to vector<12x32xf32>
    %288 = arith.addf %286, %287 : vector<12x32xf32>
    %289 = vector.extract_strided_slice %288 {offsets = [0, 0], sizes = [6, 32], strides = [1, 1]} : vector<12x32xf32> to vector<6x32xf32>
    %290 = vector.extract_strided_slice %108 {offsets = [0, 0], sizes = [8, 32], strides = [1, 1]} : vector<16x32xf32> to vector<8x32xf32>
    %291 = vector.extract_strided_slice %109 {offsets = [0, 0], sizes = [8, 32], strides = [1, 1]} : vector<16x32xf32> to vector<8x32xf32>
    %292 = vector.extract_strided_slice %289 {offsets = [0, 0], sizes = [6, 8], strides = [1, 1]} : vector<6x32xf32> to vector<6x8xf32>
    %293 = vector.extract_strided_slice %290 {offsets = [0, 0], sizes = [8, 8], strides = [1, 1]} : vector<8x32xf32> to vector<8x8xf32>
    %cst_130 = arith.constant dense<0.000000e+00> : vector<6x8xf32>
    %294 = tpu.matmul %292, %293, %cst_130 {dimension_numbers = #tpu.dot_dimension_numbers<[1], [1], [0], [0], [0, 0, 1, 0], [], []>} : vector<6x8xf32>, vector<8x8xf32>, vector<6x8xf32> -> vector<6x8xf32>
    %cst_131 = arith.constant dense<0xFF800000> : vector<6xf32>
    %295 = vector.multi_reduction <maximumf>, %294, %cst_131 [1] : vector<6x8xf32> to vector<6xf32>
    %296 = vector.shape_cast %295 : vector<6xf32> to vector<6x1xf32>
    %297 = vector.broadcast %296 : vector<6x1xf32> to vector<6x8xf32>
    %298 = arith.subf %294, %297 : vector<6x8xf32>
    %299 = math.exp %298 : vector<6x8xf32>
    %cst_132 = arith.constant dense<0.000000e+00> : vector<6xf32>
    %300 = vector.multi_reduction <add>, %299, %cst_132 [1] : vector<6x8xf32> to vector<6xf32>
    %301 = vector.shape_cast %300 : vector<6xf32> to vector<6x1xf32>
    %302 = tpu.reciprocal %301 {approx = true} : vector<6x1xf32> -> vector<6x1xf32>
    %303 = vector.broadcast %302 : vector<6x1xf32> to vector<6x8xf32>
    %304 = arith.mulf %299, %303 : vector<6x8xf32>
    %305 = vector.extract_strided_slice %291 {offsets = [0, 0], sizes = [8, 8], strides = [1, 1]} : vector<8x32xf32> to vector<8x8xf32>
    %cst_133 = arith.constant dense<0.000000e+00> : vector<6x8xf32>
    %306 = tpu.matmul %304, %305, %cst_133 {dimension_numbers = #tpu.dot_dimension_numbers<[1], [0], [0], [1], [0, 0, 1, 1], [], []>} : vector<6x8xf32>, vector<8x8xf32>, vector<6x8xf32> -> vector<6x8xf32>
    %307 = vector.extract_strided_slice %23 {offsets = [0, 0], sizes = [8, 32], strides = [1, 1]} : vector<32x32xf32> to vector<8x32xf32>
    %cst_134 = arith.constant dense<0.000000e+00> : vector<6x32xf32>
    %308 = tpu.matmul %306, %307, %cst_134 {dimension_numbers = #tpu.dot_dimension_numbers<[1], [0], [0], [1], [0, 0, 1, 1], [], []>} : vector<6x8xf32>, vector<8x32xf32>, vector<6x32xf32> -> vector<6x32xf32>
    %309 = vector.broadcast %25 : vector<1x32xf32> to vector<6x32xf32>
    %310 = arith.addf %309, %308 : vector<6x32xf32>
    %311 = vector.extract_strided_slice %289 {offsets = [0, 8], sizes = [6, 8], strides = [1, 1]} : vector<6x32xf32> to vector<6x8xf32>
    %312 = vector.extract_strided_slice %290 {offsets = [0, 8], sizes = [8, 8], strides = [1, 1]} : vector<8x32xf32> to vector<8x8xf32>
    %cst_135 = arith.constant dense<0.000000e+00> : vector<6x8xf32>
    %313 = tpu.matmul %311, %312, %cst_135 {dimension_numbers = #tpu.dot_dimension_numbers<[1], [1], [0], [0], [0, 0, 1, 0], [], []>} : vector<6x8xf32>, vector<8x8xf32>, vector<6x8xf32> -> vector<6x8xf32>
    %cst_136 = arith.constant dense<0xFF800000> : vector<6xf32>
    %314 = vector.multi_reduction <maximumf>, %313, %cst_136 [1] : vector<6x8xf32> to vector<6xf32>
    %315 = vector.shape_cast %314 : vector<6xf32> to vector<6x1xf32>
    %316 = vector.broadcast %315 : vector<6x1xf32> to vector<6x8xf32>
    %317 = arith.subf %313, %316 : vector<6x8xf32>
    %318 = math.exp %317 : vector<6x8xf32>
    %cst_137 = arith.constant dense<0.000000e+00> : vector<6xf32>
    %319 = vector.multi_reduction <add>, %318, %cst_137 [1] : vector<6x8xf32> to vector<6xf32>
    %320 = vector.shape_cast %319 : vector<6xf32> to vector<6x1xf32>
    %321 = tpu.reciprocal %320 {approx = true} : vector<6x1xf32> -> vector<6x1xf32>
    %322 = vector.broadcast %321 : vector<6x1xf32> to vector<6x8xf32>
    %323 = arith.mulf %318, %322 : vector<6x8xf32>
    %324 = vector.extract_strided_slice %291 {offsets = [0, 8], sizes = [8, 8], strides = [1, 1]} : vector<8x32xf32> to vector<8x8xf32>
    %cst_138 = arith.constant dense<0.000000e+00> : vector<6x8xf32>
    %325 = tpu.matmul %323, %324, %cst_138 {dimension_numbers = #tpu.dot_dimension_numbers<[1], [0], [0], [1], [0, 0, 1, 1], [], []>} : vector<6x8xf32>, vector<8x8xf32>, vector<6x8xf32> -> vector<6x8xf32>
    %326 = vector.extract_strided_slice %23 {offsets = [8, 0], sizes = [8, 32], strides = [1, 1]} : vector<32x32xf32> to vector<8x32xf32>
    %cst_139 = arith.constant dense<0.000000e+00> : vector<6x32xf32>
    %327 = tpu.matmul %325, %326, %cst_139 {dimension_numbers = #tpu.dot_dimension_numbers<[1], [0], [0], [1], [0, 0, 1, 1], [], []>} : vector<6x8xf32>, vector<8x32xf32>, vector<6x32xf32> -> vector<6x32xf32>
    %328 = arith.addf %310, %327 : vector<6x32xf32>
    %329 = vector.extract_strided_slice %289 {offsets = [0, 16], sizes = [6, 8], strides = [1, 1]} : vector<6x32xf32> to vector<6x8xf32>
    %330 = vector.extract_strided_slice %290 {offsets = [0, 16], sizes = [8, 8], strides = [1, 1]} : vector<8x32xf32> to vector<8x8xf32>
    %cst_140 = arith.constant dense<0.000000e+00> : vector<6x8xf32>
    %331 = tpu.matmul %329, %330, %cst_140 {dimension_numbers = #tpu.dot_dimension_numbers<[1], [1], [0], [0], [0, 0, 1, 0], [], []>} : vector<6x8xf32>, vector<8x8xf32>, vector<6x8xf32> -> vector<6x8xf32>
    %cst_141 = arith.constant dense<0xFF800000> : vector<6xf32>
    %332 = vector.multi_reduction <maximumf>, %331, %cst_141 [1] : vector<6x8xf32> to vector<6xf32>
    %333 = vector.shape_cast %332 : vector<6xf32> to vector<6x1xf32>
    %334 = vector.broadcast %333 : vector<6x1xf32> to vector<6x8xf32>
    %335 = arith.subf %331, %334 : vector<6x8xf32>
    %336 = math.exp %335 : vector<6x8xf32>
    %cst_142 = arith.constant dense<0.000000e+00> : vector<6xf32>
    %337 = vector.multi_reduction <add>, %336, %cst_142 [1] : vector<6x8xf32> to vector<6xf32>
    %338 = vector.shape_cast %337 : vector<6xf32> to vector<6x1xf32>
    %339 = tpu.reciprocal %338 {approx = true} : vector<6x1xf32> -> vector<6x1xf32>
    %340 = vector.broadcast %339 : vector<6x1xf32> to vector<6x8xf32>
    %341 = arith.mulf %336, %340 : vector<6x8xf32>
    %342 = vector.extract_strided_slice %291 {offsets = [0, 16], sizes = [8, 8], strides = [1, 1]} : vector<8x32xf32> to vector<8x8xf32>
    %cst_143 = arith.constant dense<0.000000e+00> : vector<6x8xf32>
    %343 = tpu.matmul %341, %342, %cst_143 {dimension_numbers = #tpu.dot_dimension_numbers<[1], [0], [0], [1], [0, 0, 1, 1], [], []>} : vector<6x8xf32>, vector<8x8xf32>, vector<6x8xf32> -> vector<6x8xf32>
    %344 = vector.extract_strided_slice %23 {offsets = [16, 0], sizes = [8, 32], strides = [1, 1]} : vector<32x32xf32> to vector<8x32xf32>
    %cst_144 = arith.constant dense<0.000000e+00> : vector<6x32xf32>
    %345 = tpu.matmul %343, %344, %cst_144 {dimension_numbers = #tpu.dot_dimension_numbers<[1], [0], [0], [1], [0, 0, 1, 1], [], []>} : vector<6x8xf32>, vector<8x32xf32>, vector<6x32xf32> -> vector<6x32xf32>
    %346 = arith.addf %328, %345 : vector<6x32xf32>
    %347 = vector.extract_strided_slice %289 {offsets = [0, 24], sizes = [6, 8], strides = [1, 1]} : vector<6x32xf32> to vector<6x8xf32>
    %348 = vector.extract_strided_slice %290 {offsets = [0, 24], sizes = [8, 8], strides = [1, 1]} : vector<8x32xf32> to vector<8x8xf32>
    %cst_145 = arith.constant dense<0.000000e+00> : vector<6x8xf32>
    %349 = tpu.matmul %347, %348, %cst_145 {dimension_numbers = #tpu.dot_dimension_numbers<[1], [1], [0], [0], [0, 0, 1, 0], [], []>} : vector<6x8xf32>, vector<8x8xf32>, vector<6x8xf32> -> vector<6x8xf32>
    %cst_146 = arith.constant dense<0xFF800000> : vector<6xf32>
    %350 = vector.multi_reduction <maximumf>, %349, %cst_146 [1] : vector<6x8xf32> to vector<6xf32>
    %351 = vector.shape_cast %350 : vector<6xf32> to vector<6x1xf32>
    %352 = vector.broadcast %351 : vector<6x1xf32> to vector<6x8xf32>
    %353 = arith.subf %349, %352 : vector<6x8xf32>
    %354 = math.exp %353 : vector<6x8xf32>
    %cst_147 = arith.constant dense<0.000000e+00> : vector<6xf32>
    %355 = vector.multi_reduction <add>, %354, %cst_147 [1] : vector<6x8xf32> to vector<6xf32>
    %356 = vector.shape_cast %355 : vector<6xf32> to vector<6x1xf32>
    %357 = tpu.reciprocal %356 {approx = true} : vector<6x1xf32> -> vector<6x1xf32>
    %358 = vector.broadcast %357 : vector<6x1xf32> to vector<6x8xf32>
    %359 = arith.mulf %354, %358 : vector<6x8xf32>
    %360 = vector.extract_strided_slice %291 {offsets = [0, 24], sizes = [8, 8], strides = [1, 1]} : vector<8x32xf32> to vector<8x8xf32>
    %cst_148 = arith.constant dense<0.000000e+00> : vector<6x8xf32>
    %361 = tpu.matmul %359, %360, %cst_148 {dimension_numbers = #tpu.dot_dimension_numbers<[1], [0], [0], [1], [0, 0, 1, 1], [], []>} : vector<6x8xf32>, vector<8x8xf32>, vector<6x8xf32> -> vector<6x8xf32>
    %362 = vector.extract_strided_slice %23 {offsets = [24, 0], sizes = [8, 32], strides = [1, 1]} : vector<32x32xf32> to vector<8x32xf32>
    %cst_149 = arith.constant dense<0.000000e+00> : vector<6x32xf32>
    %363 = tpu.matmul %361, %362, %cst_149 {dimension_numbers = #tpu.dot_dimension_numbers<[1], [0], [0], [1], [0, 0, 1, 1], [], []>} : vector<6x8xf32>, vector<8x32xf32>, vector<6x32xf32> -> vector<6x32xf32>
    %364 = arith.addf %346, %363 : vector<6x32xf32>
    %365 = vector.extract_strided_slice %288 {offsets = [6, 0], sizes = [6, 32], strides = [1, 1]} : vector<12x32xf32> to vector<6x32xf32>
    %366 = vector.extract_strided_slice %108 {offsets = [8, 0], sizes = [8, 32], strides = [1, 1]} : vector<16x32xf32> to vector<8x32xf32>
    %367 = vector.extract_strided_slice %109 {offsets = [8, 0], sizes = [8, 32], strides = [1, 1]} : vector<16x32xf32> to vector<8x32xf32>
    %368 = vector.extract_strided_slice %365 {offsets = [0, 0], sizes = [6, 8], strides = [1, 1]} : vector<6x32xf32> to vector<6x8xf32>
    %369 = vector.extract_strided_slice %366 {offsets = [0, 0], sizes = [8, 8], strides = [1, 1]} : vector<8x32xf32> to vector<8x8xf32>
    %cst_150 = arith.constant dense<0.000000e+00> : vector<6x8xf32>
    %370 = tpu.matmul %368, %369, %cst_150 {dimension_numbers = #tpu.dot_dimension_numbers<[1], [1], [0], [0], [0, 0, 1, 0], [], []>} : vector<6x8xf32>, vector<8x8xf32>, vector<6x8xf32> -> vector<6x8xf32>
    %cst_151 = arith.constant dense<0xFF800000> : vector<6xf32>
    %371 = vector.multi_reduction <maximumf>, %370, %cst_151 [1] : vector<6x8xf32> to vector<6xf32>
    %372 = vector.shape_cast %371 : vector<6xf32> to vector<6x1xf32>
    %373 = vector.broadcast %372 : vector<6x1xf32> to vector<6x8xf32>
    %374 = arith.subf %370, %373 : vector<6x8xf32>
    %375 = math.exp %374 : vector<6x8xf32>
    %cst_152 = arith.constant dense<0.000000e+00> : vector<6xf32>
    %376 = vector.multi_reduction <add>, %375, %cst_152 [1] : vector<6x8xf32> to vector<6xf32>
    %377 = vector.shape_cast %376 : vector<6xf32> to vector<6x1xf32>
    %378 = tpu.reciprocal %377 {approx = true} : vector<6x1xf32> -> vector<6x1xf32>
    %379 = vector.broadcast %378 : vector<6x1xf32> to vector<6x8xf32>
    %380 = arith.mulf %375, %379 : vector<6x8xf32>
    %381 = vector.extract_strided_slice %367 {offsets = [0, 0], sizes = [8, 8], strides = [1, 1]} : vector<8x32xf32> to vector<8x8xf32>
    %cst_153 = arith.constant dense<0.000000e+00> : vector<6x8xf32>
    %382 = tpu.matmul %380, %381, %cst_153 {dimension_numbers = #tpu.dot_dimension_numbers<[1], [0], [0], [1], [0, 0, 1, 1], [], []>} : vector<6x8xf32>, vector<8x8xf32>, vector<6x8xf32> -> vector<6x8xf32>
    %383 = vector.extract_strided_slice %23 {offsets = [0, 0], sizes = [8, 32], strides = [1, 1]} : vector<32x32xf32> to vector<8x32xf32>
    %cst_154 = arith.constant dense<0.000000e+00> : vector<6x32xf32>
    %384 = tpu.matmul %382, %383, %cst_154 {dimension_numbers = #tpu.dot_dimension_numbers<[1], [0], [0], [1], [0, 0, 1, 1], [], []>} : vector<6x8xf32>, vector<8x32xf32>, vector<6x32xf32> -> vector<6x32xf32>
    %385 = vector.broadcast %25 : vector<1x32xf32> to vector<6x32xf32>
    %386 = arith.addf %385, %384 : vector<6x32xf32>
    %387 = vector.extract_strided_slice %365 {offsets = [0, 8], sizes = [6, 8], strides = [1, 1]} : vector<6x32xf32> to vector<6x8xf32>
    %388 = vector.extract_strided_slice %366 {offsets = [0, 8], sizes = [8, 8], strides = [1, 1]} : vector<8x32xf32> to vector<8x8xf32>
    %cst_155 = arith.constant dense<0.000000e+00> : vector<6x8xf32>
    %389 = tpu.matmul %387, %388, %cst_155 {dimension_numbers = #tpu.dot_dimension_numbers<[1], [1], [0], [0], [0, 0, 1, 0], [], []>} : vector<6x8xf32>, vector<8x8xf32>, vector<6x8xf32> -> vector<6x8xf32>
    %cst_156 = arith.constant dense<0xFF800000> : vector<6xf32>
    %390 = vector.multi_reduction <maximumf>, %389, %cst_156 [1] : vector<6x8xf32> to vector<6xf32>
    %391 = vector.shape_cast %390 : vector<6xf32> to vector<6x1xf32>
    %392 = vector.broadcast %391 : vector<6x1xf32> to vector<6x8xf32>
    %393 = arith.subf %389, %392 : vector<6x8xf32>
    %394 = math.exp %393 : vector<6x8xf32>
    %cst_157 = arith.constant dense<0.000000e+00> : vector<6xf32>
    %395 = vector.multi_reduction <add>, %394, %cst_157 [1] : vector<6x8xf32> to vector<6xf32>
    %396 = vector.shape_cast %395 : vector<6xf32> to vector<6x1xf32>
    %397 = tpu.reciprocal %396 {approx = true} : vector<6x1xf32> -> vector<6x1xf32>
    %398 = vector.broadcast %397 : vector<6x1xf32> to vector<6x8xf32>
    %399 = arith.mulf %394, %398 : vector<6x8xf32>
    %400 = vector.extract_strided_slice %367 {offsets = [0, 8], sizes = [8, 8], strides = [1, 1]} : vector<8x32xf32> to vector<8x8xf32>
    %cst_158 = arith.constant dense<0.000000e+00> : vector<6x8xf32>
    %401 = tpu.matmul %399, %400, %cst_158 {dimension_numbers = #tpu.dot_dimension_numbers<[1], [0], [0], [1], [0, 0, 1, 1], [], []>} : vector<6x8xf32>, vector<8x8xf32>, vector<6x8xf32> -> vector<6x8xf32>
    %402 = vector.extract_strided_slice %23 {offsets = [8, 0], sizes = [8, 32], strides = [1, 1]} : vector<32x32xf32> to vector<8x32xf32>
    %cst_159 = arith.constant dense<0.000000e+00> : vector<6x32xf32>
    %403 = tpu.matmul %401, %402, %cst_159 {dimension_numbers = #tpu.dot_dimension_numbers<[1], [0], [0], [1], [0, 0, 1, 1], [], []>} : vector<6x8xf32>, vector<8x32xf32>, vector<6x32xf32> -> vector<6x32xf32>
    %404 = arith.addf %386, %403 : vector<6x32xf32>
    %405 = vector.extract_strided_slice %365 {offsets = [0, 16], sizes = [6, 8], strides = [1, 1]} : vector<6x32xf32> to vector<6x8xf32>
    %406 = vector.extract_strided_slice %366 {offsets = [0, 16], sizes = [8, 8], strides = [1, 1]} : vector<8x32xf32> to vector<8x8xf32>
    %cst_160 = arith.constant dense<0.000000e+00> : vector<6x8xf32>
    %407 = tpu.matmul %405, %406, %cst_160 {dimension_numbers = #tpu.dot_dimension_numbers<[1], [1], [0], [0], [0, 0, 1, 0], [], []>} : vector<6x8xf32>, vector<8x8xf32>, vector<6x8xf32> -> vector<6x8xf32>
    %cst_161 = arith.constant dense<0xFF800000> : vector<6xf32>
    %408 = vector.multi_reduction <maximumf>, %407, %cst_161 [1] : vector<6x8xf32> to vector<6xf32>
    %409 = vector.shape_cast %408 : vector<6xf32> to vector<6x1xf32>
    %410 = vector.broadcast %409 : vector<6x1xf32> to vector<6x8xf32>
    %411 = arith.subf %407, %410 : vector<6x8xf32>
    %412 = math.exp %411 : vector<6x8xf32>
    %cst_162 = arith.constant dense<0.000000e+00> : vector<6xf32>
    %413 = vector.multi_reduction <add>, %412, %cst_162 [1] : vector<6x8xf32> to vector<6xf32>
    %414 = vector.shape_cast %413 : vector<6xf32> to vector<6x1xf32>
    %415 = tpu.reciprocal %414 {approx = true} : vector<6x1xf32> -> vector<6x1xf32>
    %416 = vector.broadcast %415 : vector<6x1xf32> to vector<6x8xf32>
    %417 = arith.mulf %412, %416 : vector<6x8xf32>
    %418 = vector.extract_strided_slice %367 {offsets = [0, 16], sizes = [8, 8], strides = [1, 1]} : vector<8x32xf32> to vector<8x8xf32>
    %cst_163 = arith.constant dense<0.000000e+00> : vector<6x8xf32>
    %419 = tpu.matmul %417, %418, %cst_163 {dimension_numbers = #tpu.dot_dimension_numbers<[1], [0], [0], [1], [0, 0, 1, 1], [], []>} : vector<6x8xf32>, vector<8x8xf32>, vector<6x8xf32> -> vector<6x8xf32>
    %420 = vector.extract_strided_slice %23 {offsets = [16, 0], sizes = [8, 32], strides = [1, 1]} : vector<32x32xf32> to vector<8x32xf32>
    %cst_164 = arith.constant dense<0.000000e+00> : vector<6x32xf32>
    %421 = tpu.matmul %419, %420, %cst_164 {dimension_numbers = #tpu.dot_dimension_numbers<[1], [0], [0], [1], [0, 0, 1, 1], [], []>} : vector<6x8xf32>, vector<8x32xf32>, vector<6x32xf32> -> vector<6x32xf32>
    %422 = arith.addf %404, %421 : vector<6x32xf32>
    %423 = vector.extract_strided_slice %365 {offsets = [0, 24], sizes = [6, 8], strides = [1, 1]} : vector<6x32xf32> to vector<6x8xf32>
    %424 = vector.extract_strided_slice %366 {offsets = [0, 24], sizes = [8, 8], strides = [1, 1]} : vector<8x32xf32> to vector<8x8xf32>
    %cst_165 = arith.constant dense<0.000000e+00> : vector<6x8xf32>
    %425 = tpu.matmul %423, %424, %cst_165 {dimension_numbers = #tpu.dot_dimension_numbers<[1], [1], [0], [0], [0, 0, 1, 0], [], []>} : vector<6x8xf32>, vector<8x8xf32>, vector<6x8xf32> -> vector<6x8xf32>
    %cst_166 = arith.constant dense<0xFF800000> : vector<6xf32>
    %426 = vector.multi_reduction <maximumf>, %425, %cst_166 [1] : vector<6x8xf32> to vector<6xf32>
    %427 = vector.shape_cast %426 : vector<6xf32> to vector<6x1xf32>
    %428 = vector.broadcast %427 : vector<6x1xf32> to vector<6x8xf32>
    %429 = arith.subf %425, %428 : vector<6x8xf32>
    %430 = math.exp %429 : vector<6x8xf32>
    %cst_167 = arith.constant dense<0.000000e+00> : vector<6xf32>
    %431 = vector.multi_reduction <add>, %430, %cst_167 [1] : vector<6x8xf32> to vector<6xf32>
    %432 = vector.shape_cast %431 : vector<6xf32> to vector<6x1xf32>
    %433 = tpu.reciprocal %432 {approx = true} : vector<6x1xf32> -> vector<6x1xf32>
    %434 = vector.broadcast %433 : vector<6x1xf32> to vector<6x8xf32>
    %435 = arith.mulf %430, %434 : vector<6x8xf32>
    %436 = vector.extract_strided_slice %367 {offsets = [0, 24], sizes = [8, 8], strides = [1, 1]} : vector<8x32xf32> to vector<8x8xf32>
    %cst_168 = arith.constant dense<0.000000e+00> : vector<6x8xf32>
    %437 = tpu.matmul %435, %436, %cst_168 {dimension_numbers = #tpu.dot_dimension_numbers<[1], [0], [0], [1], [0, 0, 1, 1], [], []>} : vector<6x8xf32>, vector<8x8xf32>, vector<6x8xf32> -> vector<6x8xf32>
    %438 = vector.extract_strided_slice %23 {offsets = [24, 0], sizes = [8, 32], strides = [1, 1]} : vector<32x32xf32> to vector<8x32xf32>
    %cst_169 = arith.constant dense<0.000000e+00> : vector<6x32xf32>
    %439 = tpu.matmul %437, %438, %cst_169 {dimension_numbers = #tpu.dot_dimension_numbers<[1], [0], [0], [1], [0, 0, 1, 1], [], []>} : vector<6x8xf32>, vector<8x32xf32>, vector<6x32xf32> -> vector<6x32xf32>
    %440 = arith.addf %422, %439 : vector<6x32xf32>
    %441 = tpu.concatenate %364, %440 in 0 : vector<6x32xf32>, vector<6x32xf32> -> vector<12x32xf32>
    %442 = arith.addf %263, %441 : vector<12x32xf32>
    %cst_170 = arith.constant dense<0.000000e+00> : vector<12xf32>
    %443 = vector.multi_reduction <add>, %442, %cst_170 [1] : vector<12x32xf32> to vector<12xf32>
    %444 = vector.shape_cast %443 : vector<12xf32> to vector<12x1xf32>
    %cst_171 = arith.constant 3.200000e+01 : f32
    %445 = vector.broadcast %cst_171 : f32 to vector<12x1xf32>
    %446 = arith.divf %444, %445 : vector<12x1xf32>
    %447 = vector.broadcast %446 : vector<12x1xf32> to vector<12x32xf32>
    %448 = arith.subf %442, %447 : vector<12x32xf32>
    %449 = arith.mulf %448, %448 : vector<12x32xf32>
    %cst_172 = arith.constant dense<0.000000e+00> : vector<12xf32>
    %450 = vector.multi_reduction <add>, %449, %cst_172 [1] : vector<12x32xf32> to vector<12xf32>
    %451 = vector.shape_cast %450 : vector<12xf32> to vector<12x1xf32>
    %cst_173 = arith.constant 3.200000e+01 : f32
    %452 = vector.broadcast %cst_173 : f32 to vector<12x1xf32>
    %453 = arith.divf %451, %452 : vector<12x1xf32>
    %454 = vector.broadcast %446 : vector<12x1xf32> to vector<12x32xf32>
    %455 = arith.subf %442, %454 : vector<12x32xf32>
    %cst_174 = arith.constant 9.99999974E-6 : f32
    %456 = vector.broadcast %cst_174 : f32 to vector<12x1xf32>
    %457 = arith.addf %453, %456 : vector<12x1xf32>
    %458 = math.rsqrt %457 : vector<12x1xf32>
    %459 = vector.broadcast %458 : vector<12x1xf32> to vector<12x32xf32>
    %460 = arith.mulf %455, %459 : vector<12x32xf32>
    %461 = vector.broadcast %31 : vector<1x32xf32> to vector<12x32xf32>
    %462 = arith.mulf %460, %461 : vector<12x32xf32>
    %463 = vector.broadcast %33 : vector<1x32xf32> to vector<12x32xf32>
    %464 = arith.addf %462, %463 : vector<12x32xf32>
    %cst_175 = arith.constant dense<0.000000e+00> : vector<12x64xf32>
    %465 = tpu.matmul %464, %35, %cst_175 {dimension_numbers = #tpu.dot_dimension_numbers<[1], [0], [0], [1], [0, 0, 1, 1], [], []>} : vector<12x32xf32>, vector<32x64xf32>, vector<12x64xf32> -> vector<12x64xf32>
    %466 = vector.broadcast %37 : vector<1x64xf32> to vector<12x64xf32>
    %467 = arith.addf %465, %466 : vector<12x64xf32>
    %468 = arith.mulf %467, %467 : vector<12x64xf32>
    %469 = arith.mulf %467, %468 : vector<12x64xf32>
    %cst_176 = arith.constant 4.471500e-02 : f32
    %470 = vector.broadcast %cst_176 : f32 to vector<12x64xf32>
    %471 = arith.mulf %470, %469 : vector<12x64xf32>
    %472 = arith.addf %467, %471 : vector<12x64xf32>
    %cst_177 = arith.constant 0.797884583 : f32
    %473 = vector.broadcast %cst_177 : f32 to vector<12x64xf32>
    %474 = arith.mulf %473, %472 : vector<12x64xf32>
    %475 = math.tanh %474 : vector<12x64xf32>
    %cst_178 = arith.constant 1.000000e+00 : f32
    %476 = vector.broadcast %cst_178 : f32 to vector<12x64xf32>
    %477 = arith.addf %476, %475 : vector<12x64xf32>
    %cst_179 = arith.constant 5.000000e-01 : f32
    %478 = vector.broadcast %cst_179 : f32 to vector<12x64xf32>
    %479 = arith.mulf %478, %477 : vector<12x64xf32>
    %480 = arith.mulf %467, %479 : vector<12x64xf32>
    %cst_180 = arith.constant dense<0.000000e+00> : vector<12x32xf32>
    %481 = tpu.matmul %480, %39, %cst_180 {dimension_numbers = #tpu.dot_dimension_numbers<[1], [0], [0], [1], [0, 0, 1, 1], [], []>} : vector<12x64xf32>, vector<64x32xf32>, vector<12x32xf32> -> vector<12x32xf32>
    %482 = vector.broadcast %41 : vector<1x32xf32> to vector<12x32xf32>
    %483 = arith.addf %481, %482 : vector<12x32xf32>
    %484 = arith.addf %442, %483 : vector<12x32xf32>
    %c0_181 = arith.constant 0 : index
    %c0_182 = arith.constant 0 : index
    %485 = vector.load %arg33[%c0_181, %c0_182] : memref<12x32xf32, #tpu.memory_space<vmem>>, vector<12x32xf32>
    tpu.vector_store %arg33[%c0_181, %c0_182], %484 {strides = array<i32>} : memref<12x32xf32, #tpu.memory_space<vmem>>, vector<12x32xf32>,
    %c1_i32 = arith.constant 1 : i32
    %486 = arith.cmpi slt, %arg1, %c1_i32 : i32
    %487 = arith.extui %486 : i1 to i32
    %c0_i32_183 = arith.constant 0 : i32
    %488 = arith.cmpi ne, %487, %c0_i32_183 : i32
    scf.if %488 {
      %492 = vector.extract_strided_slice %99 {offsets = [0, 0], sizes = [6, 32], strides = [1, 1]} : vector<12x32xf32> to vector<6x32xf32>
      %493 = vector.extract_strided_slice %97 {offsets = [0, 0], sizes = [6, 32], strides = [1, 1]} : vector<12x32xf32> to vector<6x32xf32>
      %494 = vector.extract_strided_slice %98 {offsets = [0, 0], sizes = [6, 32], strides = [1, 1]} : vector<12x32xf32> to vector<6x32xf32>
      %495 = vector.extract_strided_slice %492 {offsets = [0, 0], sizes = [6, 8], strides = [1, 1]} : vector<6x32xf32> to vector<6x8xf32>
      %496 = vector.extract_strided_slice %493 {offsets = [0, 0], sizes = [6, 8], strides = [1, 1]} : vector<6x32xf32> to vector<6x8xf32>
      %cst_186 = arith.constant dense<0.000000e+00> : vector<6x6xf32>
      %497 = tpu.matmul %495, %496, %cst_186 {dimension_numbers = #tpu.dot_dimension_numbers<[1], [1], [0], [0], [0, 0, 1, 0], [], []>} : vector<6x8xf32>, vector<6x8xf32>, vector<6x6xf32> -> vector<6x6xf32>
      %cst_187 = arith.constant dense<0xFF800000> : vector<6xf32>
      %498 = vector.multi_reduction <maximumf>, %497, %cst_187 [1] : vector<6x6xf32> to vector<6xf32>
      %499 = vector.shape_cast %498 : vector<6xf32> to vector<6x1xf32>
      %500 = vector.broadcast %499 : vector<6x1xf32> to vector<6x6xf32>
      %501 = arith.subf %497, %500 : vector<6x6xf32>
      %502 = math.exp %501 : vector<6x6xf32>
      %cst_188 = arith.constant dense<0.000000e+00> : vector<6xf32>
      %503 = vector.multi_reduction <add>, %502, %cst_188 [1] : vector<6x6xf32> to vector<6xf32>
      %504 = vector.shape_cast %503 : vector<6xf32> to vector<6x1xf32>
      %505 = tpu.reciprocal %504 {approx = true} : vector<6x1xf32> -> vector<6x1xf32>
      %506 = vector.broadcast %505 : vector<6x1xf32> to vector<6x6xf32>
      %507 = arith.mulf %502, %506 : vector<6x6xf32>
      %508 = vector.extract_strided_slice %494 {offsets = [0, 0], sizes = [6, 8], strides = [1, 1]} : vector<6x32xf32> to vector<6x8xf32>
      %cst_189 = arith.constant dense<0.000000e+00> : vector<6x8xf32>
      %509 = tpu.matmul %507, %508, %cst_189 {dimension_numbers = #tpu.dot_dimension_numbers<[1], [0], [0], [1], [0, 0, 1, 1], [], []>} : vector<6x6xf32>, vector<6x8xf32>, vector<6x8xf32> -> vector<6x8xf32>
      %510 = vector.extract_strided_slice %11 {offsets = [0, 0], sizes = [8, 32], strides = [1, 1]} : vector<32x32xf32> to vector<8x32xf32>
      %cst_190 = arith.constant dense<0.000000e+00> : vector<6x32xf32>
      %511 = tpu.matmul %509, %510, %cst_190 {dimension_numbers = #tpu.dot_dimension_numbers<[1], [0], [0], [1], [0, 0, 1, 1], [], []>} : vector<6x8xf32>, vector<8x32xf32>, vector<6x32xf32> -> vector<6x32xf32>
      %512 = vector.broadcast %13 : vector<1x32xf32> to vector<6x32xf32>
      %513 = arith.addf %512, %511 : vector<6x32xf32>
      %514 = vector.extract_strided_slice %492 {offsets = [0, 8], sizes = [6, 8], strides = [1, 1]} : vector<6x32xf32> to vector<6x8xf32>
      %515 = vector.extract_strided_slice %493 {offsets = [0, 8], sizes = [6, 8], strides = [1, 1]} : vector<6x32xf32> to vector<6x8xf32>
      %cst_191 = arith.constant dense<0.000000e+00> : vector<6x6xf32>
      %516 = tpu.matmul %514, %515, %cst_191 {dimension_numbers = #tpu.dot_dimension_numbers<[1], [1], [0], [0], [0, 0, 1, 0], [], []>} : vector<6x8xf32>, vector<6x8xf32>, vector<6x6xf32> -> vector<6x6xf32>
      %cst_192 = arith.constant dense<0xFF800000> : vector<6xf32>
      %517 = vector.multi_reduction <maximumf>, %516, %cst_192 [1] : vector<6x6xf32> to vector<6xf32>
      %518 = vector.shape_cast %517 : vector<6xf32> to vector<6x1xf32>
      %519 = vector.broadcast %518 : vector<6x1xf32> to vector<6x6xf32>
      %520 = arith.subf %516, %519 : vector<6x6xf32>
      %521 = math.exp %520 : vector<6x6xf32>
      %cst_193 = arith.constant dense<0.000000e+00> : vector<6xf32>
      %522 = vector.multi_reduction <add>, %521, %cst_193 [1] : vector<6x6xf32> to vector<6xf32>
      %523 = vector.shape_cast %522 : vector<6xf32> to vector<6x1xf32>
      %524 = tpu.reciprocal %523 {approx = true} : vector<6x1xf32> -> vector<6x1xf32>
      %525 = vector.broadcast %524 : vector<6x1xf32> to vector<6x6xf32>
      %526 = arith.mulf %521, %525 : vector<6x6xf32>
      %527 = vector.extract_strided_slice %494 {offsets = [0, 8], sizes = [6, 8], strides = [1, 1]} : vector<6x32xf32> to vector<6x8xf32>
      %cst_194 = arith.constant dense<0.000000e+00> : vector<6x8xf32>
      %528 = tpu.matmul %526, %527, %cst_194 {dimension_numbers = #tpu.dot_dimension_numbers<[1], [0], [0], [1], [0, 0, 1, 1], [], []>} : vector<6x6xf32>, vector<6x8xf32>, vector<6x8xf32> -> vector<6x8xf32>
      %529 = vector.extract_strided_slice %11 {offsets = [8, 0], sizes = [8, 32], strides = [1, 1]} : vector<32x32xf32> to vector<8x32xf32>
      %cst_195 = arith.constant dense<0.000000e+00> : vector<6x32xf32>
      %530 = tpu.matmul %528, %529, %cst_195 {dimension_numbers = #tpu.dot_dimension_numbers<[1], [0], [0], [1], [0, 0, 1, 1], [], []>} : vector<6x8xf32>, vector<8x32xf32>, vector<6x32xf32> -> vector<6x32xf32>
      %531 = arith.addf %513, %530 : vector<6x32xf32>
      %532 = vector.extract_strided_slice %492 {offsets = [0, 16], sizes = [6, 8], strides = [1, 1]} : vector<6x32xf32> to vector<6x8xf32>
      %533 = vector.extract_strided_slice %493 {offsets = [0, 16], sizes = [6, 8], strides = [1, 1]} : vector<6x32xf32> to vector<6x8xf32>
      %cst_196 = arith.constant dense<0.000000e+00> : vector<6x6xf32>
      %534 = tpu.matmul %532, %533, %cst_196 {dimension_numbers = #tpu.dot_dimension_numbers<[1], [1], [0], [0], [0, 0, 1, 0], [], []>} : vector<6x8xf32>, vector<6x8xf32>, vector<6x6xf32> -> vector<6x6xf32>
      %cst_197 = arith.constant dense<0xFF800000> : vector<6xf32>
      %535 = vector.multi_reduction <maximumf>, %534, %cst_197 [1] : vector<6x6xf32> to vector<6xf32>
      %536 = vector.shape_cast %535 : vector<6xf32> to vector<6x1xf32>
      %537 = vector.broadcast %536 : vector<6x1xf32> to vector<6x6xf32>
      %538 = arith.subf %534, %537 : vector<6x6xf32>
      %539 = math.exp %538 : vector<6x6xf32>
      %cst_198 = arith.constant dense<0.000000e+00> : vector<6xf32>
      %540 = vector.multi_reduction <add>, %539, %cst_198 [1] : vector<6x6xf32> to vector<6xf32>
      %541 = vector.shape_cast %540 : vector<6xf32> to vector<6x1xf32>
      %542 = tpu.reciprocal %541 {approx = true} : vector<6x1xf32> -> vector<6x1xf32>
      %543 = vector.broadcast %542 : vector<6x1xf32> to vector<6x6xf32>
      %544 = arith.mulf %539, %543 : vector<6x6xf32>
      %545 = vector.extract_strided_slice %494 {offsets = [0, 16], sizes = [6, 8], strides = [1, 1]} : vector<6x32xf32> to vector<6x8xf32>
      %cst_199 = arith.constant dense<0.000000e+00> : vector<6x8xf32>
      %546 = tpu.matmul %544, %545, %cst_199 {dimension_numbers = #tpu.dot_dimension_numbers<[1], [0], [0], [1], [0, 0, 1, 1], [], []>} : vector<6x6xf32>, vector<6x8xf32>, vector<6x8xf32> -> vector<6x8xf32>
      %547 = vector.extract_strided_slice %11 {offsets = [16, 0], sizes = [8, 32], strides = [1, 1]} : vector<32x32xf32> to vector<8x32xf32>
      %cst_200 = arith.constant dense<0.000000e+00> : vector<6x32xf32>
      %548 = tpu.matmul %546, %547, %cst_200 {dimension_numbers = #tpu.dot_dimension_numbers<[1], [0], [0], [1], [0, 0, 1, 1], [], []>} : vector<6x8xf32>, vector<8x32xf32>, vector<6x32xf32> -> vector<6x32xf32>
      %549 = arith.addf %531, %548 : vector<6x32xf32>
      %550 = vector.extract_strided_slice %492 {offsets = [0, 24], sizes = [6, 8], strides = [1, 1]} : vector<6x32xf32> to vector<6x8xf32>
      %551 = vector.extract_strided_slice %493 {offsets = [0, 24], sizes = [6, 8], strides = [1, 1]} : vector<6x32xf32> to vector<6x8xf32>
      %cst_201 = arith.constant dense<0.000000e+00> : vector<6x6xf32>
      %552 = tpu.matmul %550, %551, %cst_201 {dimension_numbers = #tpu.dot_dimension_numbers<[1], [1], [0], [0], [0, 0, 1, 0], [], []>} : vector<6x8xf32>, vector<6x8xf32>, vector<6x6xf32> -> vector<6x6xf32>
      %cst_202 = arith.constant dense<0xFF800000> : vector<6xf32>
      %553 = vector.multi_reduction <maximumf>, %552, %cst_202 [1] : vector<6x6xf32> to vector<6xf32>
      %554 = vector.shape_cast %553 : vector<6xf32> to vector<6x1xf32>
      %555 = vector.broadcast %554 : vector<6x1xf32> to vector<6x6xf32>
      %556 = arith.subf %552, %555 : vector<6x6xf32>
      %557 = math.exp %556 : vector<6x6xf32>
      %cst_203 = arith.constant dense<0.000000e+00> : vector<6xf32>
      %558 = vector.multi_reduction <add>, %557, %cst_203 [1] : vector<6x6xf32> to vector<6xf32>
      %559 = vector.shape_cast %558 : vector<6xf32> to vector<6x1xf32>
      %560 = tpu.reciprocal %559 {approx = true} : vector<6x1xf32> -> vector<6x1xf32>
      %561 = vector.broadcast %560 : vector<6x1xf32> to vector<6x6xf32>
      %562 = arith.mulf %557, %561 : vector<6x6xf32>
      %563 = vector.extract_strided_slice %494 {offsets = [0, 24], sizes = [6, 8], strides = [1, 1]} : vector<6x32xf32> to vector<6x8xf32>
      %cst_204 = arith.constant dense<0.000000e+00> : vector<6x8xf32>
      %564 = tpu.matmul %562, %563, %cst_204 {dimension_numbers = #tpu.dot_dimension_numbers<[1], [0], [0], [1], [0, 0, 1, 1], [], []>} : vector<6x6xf32>, vector<6x8xf32>, vector<6x8xf32> -> vector<6x8xf32>
      %565 = vector.extract_strided_slice %11 {offsets = [24, 0], sizes = [8, 32], strides = [1, 1]} : vector<32x32xf32> to vector<8x32xf32>
      %cst_205 = arith.constant dense<0.000000e+00> : vector<6x32xf32>
      %566 = tpu.matmul %564, %565, %cst_205 {dimension_numbers = #tpu.dot_dimension_numbers<[1], [0], [0], [1], [0, 0, 1, 1], [], []>} : vector<6x8xf32>, vector<8x32xf32>, vector<6x32xf32> -> vector<6x32xf32>
      %567 = arith.addf %549, %566 : vector<6x32xf32>
      %568 = vector.extract_strided_slice %99 {offsets = [6, 0], sizes = [6, 32], strides = [1, 1]} : vector<12x32xf32> to vector<6x32xf32>
      %569 = vector.extract_strided_slice %97 {offsets = [6, 0], sizes = [6, 32], strides = [1, 1]} : vector<12x32xf32> to vector<6x32xf32>
      %570 = vector.extract_strided_slice %98 {offsets = [6, 0], sizes = [6, 32], strides = [1, 1]} : vector<12x32xf32> to vector<6x32xf32>
      %571 = vector.extract_strided_slice %568 {offsets = [0, 0], sizes = [6, 8], strides = [1, 1]} : vector<6x32xf32> to vector<6x8xf32>
      %572 = vector.extract_strided_slice %569 {offsets = [0, 0], sizes = [6, 8], strides = [1, 1]} : vector<6x32xf32> to vector<6x8xf32>
      %cst_206 = arith.constant dense<0.000000e+00> : vector<6x6xf32>
      %573 = tpu.matmul %571, %572, %cst_206 {dimension_numbers = #tpu.dot_dimension_numbers<[1], [1], [0], [0], [0, 0, 1, 0], [], []>} : vector<6x8xf32>, vector<6x8xf32>, vector<6x6xf32> -> vector<6x6xf32>
      %cst_207 = arith.constant dense<0xFF800000> : vector<6xf32>
      %574 = vector.multi_reduction <maximumf>, %573, %cst_207 [1] : vector<6x6xf32> to vector<6xf32>
      %575 = vector.shape_cast %574 : vector<6xf32> to vector<6x1xf32>
      %576 = vector.broadcast %575 : vector<6x1xf32> to vector<6x6xf32>
      %577 = arith.subf %573, %576 : vector<6x6xf32>
      %578 = math.exp %577 : vector<6x6xf32>
      %cst_208 = arith.constant dense<0.000000e+00> : vector<6xf32>
      %579 = vector.multi_reduction <add>, %578, %cst_208 [1] : vector<6x6xf32> to vector<6xf32>
      %580 = vector.shape_cast %579 : vector<6xf32> to vector<6x1xf32>
      %581 = tpu.reciprocal %580 {approx = true} : vector<6x1xf32> -> vector<6x1xf32>
      %582 = vector.broadcast %581 : vector<6x1xf32> to vector<6x6xf32>
      %583 = arith.mulf %578, %582 : vector<6x6xf32>
      %584 = vector.extract_strided_slice %570 {offsets = [0, 0], sizes = [6, 8], strides = [1, 1]} : vector<6x32xf32> to vector<6x8xf32>
      %cst_209 = arith.constant dense<0.000000e+00> : vector<6x8xf32>
      %585 = tpu.matmul %583, %584, %cst_209 {dimension_numbers = #tpu.dot_dimension_numbers<[1], [0], [0], [1], [0, 0, 1, 1], [], []>} : vector<6x6xf32>, vector<6x8xf32>, vector<6x8xf32> -> vector<6x8xf32>
      %586 = vector.extract_strided_slice %11 {offsets = [0, 0], sizes = [8, 32], strides = [1, 1]} : vector<32x32xf32> to vector<8x32xf32>
      %cst_210 = arith.constant dense<0.000000e+00> : vector<6x32xf32>
      %587 = tpu.matmul %585, %586, %cst_210 {dimension_numbers = #tpu.dot_dimension_numbers<[1], [0], [0], [1], [0, 0, 1, 1], [], []>} : vector<6x8xf32>, vector<8x32xf32>, vector<6x32xf32> -> vector<6x32xf32>
      %588 = vector.broadcast %13 : vector<1x32xf32> to vector<6x32xf32>
      %589 = arith.addf %588, %587 : vector<6x32xf32>
      %590 = vector.extract_strided_slice %568 {offsets = [0, 8], sizes = [6, 8], strides = [1, 1]} : vector<6x32xf32> to vector<6x8xf32>
      %591 = vector.extract_strided_slice %569 {offsets = [0, 8], sizes = [6, 8], strides = [1, 1]} : vector<6x32xf32> to vector<6x8xf32>
      %cst_211 = arith.constant dense<0.000000e+00> : vector<6x6xf32>
      %592 = tpu.matmul %590, %591, %cst_211 {dimension_numbers = #tpu.dot_dimension_numbers<[1], [1], [0], [0], [0, 0, 1, 0], [], []>} : vector<6x8xf32>, vector<6x8xf32>, vector<6x6xf32> -> vector<6x6xf32>
      %cst_212 = arith.constant dense<0xFF800000> : vector<6xf32>
      %593 = vector.multi_reduction <maximumf>, %592, %cst_212 [1] : vector<6x6xf32> to vector<6xf32>
      %594 = vector.shape_cast %593 : vector<6xf32> to vector<6x1xf32>
      %595 = vector.broadcast %594 : vector<6x1xf32> to vector<6x6xf32>
      %596 = arith.subf %592, %595 : vector<6x6xf32>
      %597 = math.exp %596 : vector<6x6xf32>
      %cst_213 = arith.constant dense<0.000000e+00> : vector<6xf32>
      %598 = vector.multi_reduction <add>, %597, %cst_213 [1] : vector<6x6xf32> to vector<6xf32>
      %599 = vector.shape_cast %598 : vector<6xf32> to vector<6x1xf32>
      %600 = tpu.reciprocal %599 {approx = true} : vector<6x1xf32> -> vector<6x1xf32>
      %601 = vector.broadcast %600 : vector<6x1xf32> to vector<6x6xf32>
      %602 = arith.mulf %597, %601 : vector<6x6xf32>
      %603 = vector.extract_strided_slice %570 {offsets = [0, 8], sizes = [6, 8], strides = [1, 1]} : vector<6x32xf32> to vector<6x8xf32>
      %cst_214 = arith.constant dense<0.000000e+00> : vector<6x8xf32>
      %604 = tpu.matmul %602, %603, %cst_214 {dimension_numbers = #tpu.dot_dimension_numbers<[1], [0], [0], [1], [0, 0, 1, 1], [], []>} : vector<6x6xf32>, vector<6x8xf32>, vector<6x8xf32> -> vector<6x8xf32>
      %605 = vector.extract_strided_slice %11 {offsets = [8, 0], sizes = [8, 32], strides = [1, 1]} : vector<32x32xf32> to vector<8x32xf32>
      %cst_215 = arith.constant dense<0.000000e+00> : vector<6x32xf32>
      %606 = tpu.matmul %604, %605, %cst_215 {dimension_numbers = #tpu.dot_dimension_numbers<[1], [0], [0], [1], [0, 0, 1, 1], [], []>} : vector<6x8xf32>, vector<8x32xf32>, vector<6x32xf32> -> vector<6x32xf32>
      %607 = arith.addf %589, %606 : vector<6x32xf32>
      %608 = vector.extract_strided_slice %568 {offsets = [0, 16], sizes = [6, 8], strides = [1, 1]} : vector<6x32xf32> to vector<6x8xf32>
      %609 = vector.extract_strided_slice %569 {offsets = [0, 16], sizes = [6, 8], strides = [1, 1]} : vector<6x32xf32> to vector<6x8xf32>
      %cst_216 = arith.constant dense<0.000000e+00> : vector<6x6xf32>
      %610 = tpu.matmul %608, %609, %cst_216 {dimension_numbers = #tpu.dot_dimension_numbers<[1], [1], [0], [0], [0, 0, 1, 0], [], []>} : vector<6x8xf32>, vector<6x8xf32>, vector<6x6xf32> -> vector<6x6xf32>
      %cst_217 = arith.constant dense<0xFF800000> : vector<6xf32>
      %611 = vector.multi_reduction <maximumf>, %610, %cst_217 [1] : vector<6x6xf32> to vector<6xf32>
      %612 = vector.shape_cast %611 : vector<6xf32> to vector<6x1xf32>
      %613 = vector.broadcast %612 : vector<6x1xf32> to vector<6x6xf32>
      %614 = arith.subf %610, %613 : vector<6x6xf32>
      %615 = math.exp %614 : vector<6x6xf32>
      %cst_218 = arith.constant dense<0.000000e+00> : vector<6xf32>
      %616 = vector.multi_reduction <add>, %615, %cst_218 [1] : vector<6x6xf32> to vector<6xf32>
      %617 = vector.shape_cast %616 : vector<6xf32> to vector<6x1xf32>
      %618 = tpu.reciprocal %617 {approx = true} : vector<6x1xf32> -> vector<6x1xf32>
      %619 = vector.broadcast %618 : vector<6x1xf32> to vector<6x6xf32>
      %620 = arith.mulf %615, %619 : vector<6x6xf32>
      %621 = vector.extract_strided_slice %570 {offsets = [0, 16], sizes = [6, 8], strides = [1, 1]} : vector<6x32xf32> to vector<6x8xf32>
      %cst_219 = arith.constant dense<0.000000e+00> : vector<6x8xf32>
      %622 = tpu.matmul %620, %621, %cst_219 {dimension_numbers = #tpu.dot_dimension_numbers<[1], [0], [0], [1], [0, 0, 1, 1], [], []>} : vector<6x6xf32>, vector<6x8xf32>, vector<6x8xf32> -> vector<6x8xf32>
      %623 = vector.extract_strided_slice %11 {offsets = [16, 0], sizes = [8, 32], strides = [1, 1]} : vector<32x32xf32> to vector<8x32xf32>
      %cst_220 = arith.constant dense<0.000000e+00> : vector<6x32xf32>
      %624 = tpu.matmul %622, %623, %cst_220 {dimension_numbers = #tpu.dot_dimension_numbers<[1], [0], [0], [1], [0, 0, 1, 1], [], []>} : vector<6x8xf32>, vector<8x32xf32>, vector<6x32xf32> -> vector<6x32xf32>
      %625 = arith.addf %607, %624 : vector<6x32xf32>
      %626 = vector.extract_strided_slice %568 {offsets = [0, 24], sizes = [6, 8], strides = [1, 1]} : vector<6x32xf32> to vector<6x8xf32>
      %627 = vector.extract_strided_slice %569 {offsets = [0, 24], sizes = [6, 8], strides = [1, 1]} : vector<6x32xf32> to vector<6x8xf32>
      %cst_221 = arith.constant dense<0.000000e+00> : vector<6x6xf32>
      %628 = tpu.matmul %626, %627, %cst_221 {dimension_numbers = #tpu.dot_dimension_numbers<[1], [1], [0], [0], [0, 0, 1, 0], [], []>} : vector<6x8xf32>, vector<6x8xf32>, vector<6x6xf32> -> vector<6x6xf32>
      %cst_222 = arith.constant dense<0xFF800000> : vector<6xf32>
      %629 = vector.multi_reduction <maximumf>, %628, %cst_222 [1] : vector<6x6xf32> to vector<6xf32>
      %630 = vector.shape_cast %629 : vector<6xf32> to vector<6x1xf32>
      %631 = vector.broadcast %630 : vector<6x1xf32> to vector<6x6xf32>
      %632 = arith.subf %628, %631 : vector<6x6xf32>
      %633 = math.exp %632 : vector<6x6xf32>
      %cst_223 = arith.constant dense<0.000000e+00> : vector<6xf32>
      %634 = vector.multi_reduction <add>, %633, %cst_223 [1] : vector<6x6xf32> to vector<6xf32>
      %635 = vector.shape_cast %634 : vector<6xf32> to vector<6x1xf32>
      %636 = tpu.reciprocal %635 {approx = true} : vector<6x1xf32> -> vector<6x1xf32>
      %637 = vector.broadcast %636 : vector<6x1xf32> to vector<6x6xf32>
      %638 = arith.mulf %633, %637 : vector<6x6xf32>
      %639 = vector.extract_strided_slice %570 {offsets = [0, 24], sizes = [6, 8], strides = [1, 1]} : vector<6x32xf32> to vector<6x8xf32>
      %cst_224 = arith.constant dense<0.000000e+00> : vector<6x8xf32>
      %640 = tpu.matmul %638, %639, %cst_224 {dimension_numbers = #tpu.dot_dimension_numbers<[1], [0], [0], [1], [0, 0, 1, 1], [], []>} : vector<6x6xf32>, vector<6x8xf32>, vector<6x8xf32> -> vector<6x8xf32>
      %641 = vector.extract_strided_slice %11 {offsets = [24, 0], sizes = [8, 32], strides = [1, 1]} : vector<32x32xf32> to vector<8x32xf32>
      %cst_225 = arith.constant dense<0.000000e+00> : vector<6x32xf32>
      %642 = tpu.matmul %640, %641, %cst_225 {dimension_numbers = #tpu.dot_dimension_numbers<[1], [0], [0], [1], [0, 0, 1, 1], [], []>} : vector<6x8xf32>, vector<8x32xf32>, vector<6x32xf32> -> vector<6x32xf32>
      %643 = arith.addf %625, %642 : vector<6x32xf32>
      %644 = tpu.concatenate %567, %643 in 0 : vector<6x32xf32>, vector<6x32xf32> -> vector<12x32xf32>
      %645 = arith.addf %4, %644 : vector<12x32xf32>
      %cst_226 = arith.constant dense<0.000000e+00> : vector<12xf32>
      %646 = vector.multi_reduction <add>, %645, %cst_226 [1] : vector<12x32xf32> to vector<12xf32>
      %647 = vector.shape_cast %646 : vector<12xf32> to vector<12x1xf32>
      %cst_227 = arith.constant 3.200000e+01 : f32
      %648 = vector.broadcast %cst_227 : f32 to vector<12x1xf32>
      %649 = arith.divf %647, %648 : vector<12x1xf32>
      %650 = vector.broadcast %649 : vector<12x1xf32> to vector<12x32xf32>
      %651 = arith.subf %645, %650 : vector<12x32xf32>
      %652 = arith.mulf %651, %651 : vector<12x32xf32>
      %cst_228 = arith.constant dense<0.000000e+00> : vector<12xf32>
      %653 = vector.multi_reduction <add>, %652, %cst_228 [1] : vector<12x32xf32> to vector<12xf32>
      %654 = vector.shape_cast %653 : vector<12xf32> to vector<12x1xf32>
      %cst_229 = arith.constant 3.200000e+01 : f32
      %655 = vector.broadcast %cst_229 : f32 to vector<12x1xf32>
      %656 = arith.divf %654, %655 : vector<12x1xf32>
      %657 = vector.broadcast %649 : vector<12x1xf32> to vector<12x32xf32>
      %658 = arith.subf %645, %657 : vector<12x32xf32>
      %cst_230 = arith.constant 9.99999974E-6 : f32
      %659 = vector.broadcast %cst_230 : f32 to vector<12x1xf32>
      %660 = arith.addf %656, %659 : vector<12x1xf32>
      %661 = math.rsqrt %660 : vector<12x1xf32>
      %662 = vector.broadcast %661 : vector<12x1xf32> to vector<12x32xf32>
      %663 = arith.mulf %658, %662 : vector<12x32xf32>
      %664 = vector.broadcast %27 : vector<1x32xf32> to vector<12x32xf32>
      %665 = arith.mulf %663, %664 : vector<12x32xf32>
      %666 = vector.broadcast %29 : vector<1x32xf32> to vector<12x32xf32>
      %667 = arith.addf %665, %666 : vector<12x32xf32>
      %cst_231 = arith.constant dense<0.000000e+00> : vector<12x32xf32>
      %668 = tpu.matmul %667, %15, %cst_231 {dimension_numbers = #tpu.dot_dimension_numbers<[1], [0], [0], [1], [0, 0, 1, 1], [], []>} : vector<12x32xf32>, vector<32x32xf32>, vector<12x32xf32> -> vector<12x32xf32>
      %669 = vector.broadcast %17 : vector<1x32xf32> to vector<12x32xf32>
      %670 = arith.addf %668, %669 : vector<12x32xf32>
      %671 = vector.extract_strided_slice %670 {offsets = [0, 0], sizes = [6, 32], strides = [1, 1]} : vector<12x32xf32> to vector<6x32xf32>
      %672 = vector.extract_strided_slice %108 {offsets = [0, 0], sizes = [8, 32], strides = [1, 1]} : vector<16x32xf32> to vector<8x32xf32>
      %673 = vector.extract_strided_slice %109 {offsets = [0, 0], sizes = [8, 32], strides = [1, 1]} : vector<16x32xf32> to vector<8x32xf32>
      %674 = vector.extract_strided_slice %671 {offsets = [0, 0], sizes = [6, 8], strides = [1, 1]} : vector<6x32xf32> to vector<6x8xf32>
      %675 = vector.extract_strided_slice %672 {offsets = [0, 0], sizes = [8, 8], strides = [1, 1]} : vector<8x32xf32> to vector<8x8xf32>
      %cst_232 = arith.constant dense<0.000000e+00> : vector<6x8xf32>
      %676 = tpu.matmul %674, %675, %cst_232 {dimension_numbers = #tpu.dot_dimension_numbers<[1], [1], [0], [0], [0, 0, 1, 0], [], []>} : vector<6x8xf32>, vector<8x8xf32>, vector<6x8xf32> -> vector<6x8xf32>
      %cst_233 = arith.constant dense<0xFF800000> : vector<6xf32>
      %677 = vector.multi_reduction <maximumf>, %676, %cst_233 [1] : vector<6x8xf32> to vector<6xf32>
      %678 = vector.shape_cast %677 : vector<6xf32> to vector<6x1xf32>
      %679 = vector.broadcast %678 : vector<6x1xf32> to vector<6x8xf32>
      %680 = arith.subf %676, %679 : vector<6x8xf32>
      %681 = math.exp %680 : vector<6x8xf32>
      %cst_234 = arith.constant dense<0.000000e+00> : vector<6xf32>
      %682 = vector.multi_reduction <add>, %681, %cst_234 [1] : vector<6x8xf32> to vector<6xf32>
      %683 = vector.shape_cast %682 : vector<6xf32> to vector<6x1xf32>
      %684 = tpu.reciprocal %683 {approx = true} : vector<6x1xf32> -> vector<6x1xf32>
      %685 = vector.broadcast %684 : vector<6x1xf32> to vector<6x8xf32>
      %686 = arith.mulf %681, %685 : vector<6x8xf32>
      %687 = vector.extract_strided_slice %673 {offsets = [0, 0], sizes = [8, 8], strides = [1, 1]} : vector<8x32xf32> to vector<8x8xf32>
      %cst_235 = arith.constant dense<0.000000e+00> : vector<6x8xf32>
      %688 = tpu.matmul %686, %687, %cst_235 {dimension_numbers = #tpu.dot_dimension_numbers<[1], [0], [0], [1], [0, 0, 1, 1], [], []>} : vector<6x8xf32>, vector<8x8xf32>, vector<6x8xf32> -> vector<6x8xf32>
      %689 = vector.extract_strided_slice %23 {offsets = [0, 0], sizes = [8, 32], strides = [1, 1]} : vector<32x32xf32> to vector<8x32xf32>
      %cst_236 = arith.constant dense<0.000000e+00> : vector<6x32xf32>
      %690 = tpu.matmul %688, %689, %cst_236 {dimension_numbers = #tpu.dot_dimension_numbers<[1], [0], [0], [1], [0, 0, 1, 1], [], []>} : vector<6x8xf32>, vector<8x32xf32>, vector<6x32xf32> -> vector<6x32xf32>
      %691 = vector.broadcast %25 : vector<1x32xf32> to vector<6x32xf32>
      %692 = arith.addf %691, %690 : vector<6x32xf32>
      %693 = vector.extract_strided_slice %671 {offsets = [0, 8], sizes = [6, 8], strides = [1, 1]} : vector<6x32xf32> to vector<6x8xf32>
      %694 = vector.extract_strided_slice %672 {offsets = [0, 8], sizes = [8, 8], strides = [1, 1]} : vector<8x32xf32> to vector<8x8xf32>
      %cst_237 = arith.constant dense<0.000000e+00> : vector<6x8xf32>
      %695 = tpu.matmul %693, %694, %cst_237 {dimension_numbers = #tpu.dot_dimension_numbers<[1], [1], [0], [0], [0, 0, 1, 0], [], []>} : vector<6x8xf32>, vector<8x8xf32>, vector<6x8xf32> -> vector<6x8xf32>
      %cst_238 = arith.constant dense<0xFF800000> : vector<6xf32>
      %696 = vector.multi_reduction <maximumf>, %695, %cst_238 [1] : vector<6x8xf32> to vector<6xf32>
      %697 = vector.shape_cast %696 : vector<6xf32> to vector<6x1xf32>
      %698 = vector.broadcast %697 : vector<6x1xf32> to vector<6x8xf32>
      %699 = arith.subf %695, %698 : vector<6x8xf32>
      %700 = math.exp %699 : vector<6x8xf32>
      %cst_239 = arith.constant dense<0.000000e+00> : vector<6xf32>
      %701 = vector.multi_reduction <add>, %700, %cst_239 [1] : vector<6x8xf32> to vector<6xf32>
      %702 = vector.shape_cast %701 : vector<6xf32> to vector<6x1xf32>
      %703 = tpu.reciprocal %702 {approx = true} : vector<6x1xf32> -> vector<6x1xf32>
      %704 = vector.broadcast %703 : vector<6x1xf32> to vector<6x8xf32>
      %705 = arith.mulf %700, %704 : vector<6x8xf32>
      %706 = vector.extract_strided_slice %673 {offsets = [0, 8], sizes = [8, 8], strides = [1, 1]} : vector<8x32xf32> to vector<8x8xf32>
      %cst_240 = arith.constant dense<0.000000e+00> : vector<6x8xf32>
      %707 = tpu.matmul %705, %706, %cst_240 {dimension_numbers = #tpu.dot_dimension_numbers<[1], [0], [0], [1], [0, 0, 1, 1], [], []>} : vector<6x8xf32>, vector<8x8xf32>, vector<6x8xf32> -> vector<6x8xf32>
      %708 = vector.extract_strided_slice %23 {offsets = [8, 0], sizes = [8, 32], strides = [1, 1]} : vector<32x32xf32> to vector<8x32xf32>
      %cst_241 = arith.constant dense<0.000000e+00> : vector<6x32xf32>
      %709 = tpu.matmul %707, %708, %cst_241 {dimension_numbers = #tpu.dot_dimension_numbers<[1], [0], [0], [1], [0, 0, 1, 1], [], []>} : vector<6x8xf32>, vector<8x32xf32>, vector<6x32xf32> -> vector<6x32xf32>
      %710 = arith.addf %692, %709 : vector<6x32xf32>
      %711 = vector.extract_strided_slice %671 {offsets = [0, 16], sizes = [6, 8], strides = [1, 1]} : vector<6x32xf32> to vector<6x8xf32>
      %712 = vector.extract_strided_slice %672 {offsets = [0, 16], sizes = [8, 8], strides = [1, 1]} : vector<8x32xf32> to vector<8x8xf32>
      %cst_242 = arith.constant dense<0.000000e+00> : vector<6x8xf32>
      %713 = tpu.matmul %711, %712, %cst_242 {dimension_numbers = #tpu.dot_dimension_numbers<[1], [1], [0], [0], [0, 0, 1, 0], [], []>} : vector<6x8xf32>, vector<8x8xf32>, vector<6x8xf32> -> vector<6x8xf32>
      %cst_243 = arith.constant dense<0xFF800000> : vector<6xf32>
      %714 = vector.multi_reduction <maximumf>, %713, %cst_243 [1] : vector<6x8xf32> to vector<6xf32>
      %715 = vector.shape_cast %714 : vector<6xf32> to vector<6x1xf32>
      %716 = vector.broadcast %715 : vector<6x1xf32> to vector<6x8xf32>
      %717 = arith.subf %713, %716 : vector<6x8xf32>
      %718 = math.exp %717 : vector<6x8xf32>
      %cst_244 = arith.constant dense<0.000000e+00> : vector<6xf32>
      %719 = vector.multi_reduction <add>, %718, %cst_244 [1] : vector<6x8xf32> to vector<6xf32>
      %720 = vector.shape_cast %719 : vector<6xf32> to vector<6x1xf32>
      %721 = tpu.reciprocal %720 {approx = true} : vector<6x1xf32> -> vector<6x1xf32>
      %722 = vector.broadcast %721 : vector<6x1xf32> to vector<6x8xf32>
      %723 = arith.mulf %718, %722 : vector<6x8xf32>
      %724 = vector.extract_strided_slice %673 {offsets = [0, 16], sizes = [8, 8], strides = [1, 1]} : vector<8x32xf32> to vector<8x8xf32>
      %cst_245 = arith.constant dense<0.000000e+00> : vector<6x8xf32>
      %725 = tpu.matmul %723, %724, %cst_245 {dimension_numbers = #tpu.dot_dimension_numbers<[1], [0], [0], [1], [0, 0, 1, 1], [], []>} : vector<6x8xf32>, vector<8x8xf32>, vector<6x8xf32> -> vector<6x8xf32>
      %726 = vector.extract_strided_slice %23 {offsets = [16, 0], sizes = [8, 32], strides = [1, 1]} : vector<32x32xf32> to vector<8x32xf32>
      %cst_246 = arith.constant dense<0.000000e+00> : vector<6x32xf32>
      %727 = tpu.matmul %725, %726, %cst_246 {dimension_numbers = #tpu.dot_dimension_numbers<[1], [0], [0], [1], [0, 0, 1, 1], [], []>} : vector<6x8xf32>, vector<8x32xf32>, vector<6x32xf32> -> vector<6x32xf32>
      %728 = arith.addf %710, %727 : vector<6x32xf32>
      %729 = vector.extract_strided_slice %671 {offsets = [0, 24], sizes = [6, 8], strides = [1, 1]} : vector<6x32xf32> to vector<6x8xf32>
      %730 = vector.extract_strided_slice %672 {offsets = [0, 24], sizes = [8, 8], strides = [1, 1]} : vector<8x32xf32> to vector<8x8xf32>
      %cst_247 = arith.constant dense<0.000000e+00> : vector<6x8xf32>
      %731 = tpu.matmul %729, %730, %cst_247 {dimension_numbers = #tpu.dot_dimension_numbers<[1], [1], [0], [0], [0, 0, 1, 0], [], []>} : vector<6x8xf32>, vector<8x8xf32>, vector<6x8xf32> -> vector<6x8xf32>
      %cst_248 = arith.constant dense<0xFF800000> : vector<6xf32>
      %732 = vector.multi_reduction <maximumf>, %731, %cst_248 [1] : vector<6x8xf32> to vector<6xf32>
      %733 = vector.shape_cast %732 : vector<6xf32> to vector<6x1xf32>
      %734 = vector.broadcast %733 : vector<6x1xf32> to vector<6x8xf32>
      %735 = arith.subf %731, %734 : vector<6x8xf32>
      %736 = math.exp %735 : vector<6x8xf32>
      %cst_249 = arith.constant dense<0.000000e+00> : vector<6xf32>
      %737 = vector.multi_reduction <add>, %736, %cst_249 [1] : vector<6x8xf32> to vector<6xf32>
      %738 = vector.shape_cast %737 : vector<6xf32> to vector<6x1xf32>
      %739 = tpu.reciprocal %738 {approx = true} : vector<6x1xf32> -> vector<6x1xf32>
      %740 = vector.broadcast %739 : vector<6x1xf32> to vector<6x8xf32>
      %741 = arith.mulf %736, %740 : vector<6x8xf32>
      %742 = vector.extract_strided_slice %673 {offsets = [0, 24], sizes = [8, 8], strides = [1, 1]} : vector<8x32xf32> to vector<8x8xf32>
      %cst_250 = arith.constant dense<0.000000e+00> : vector<6x8xf32>
      %743 = tpu.matmul %741, %742, %cst_250 {dimension_numbers = #tpu.dot_dimension_numbers<[1], [0], [0], [1], [0, 0, 1, 1], [], []>} : vector<6x8xf32>, vector<8x8xf32>, vector<6x8xf32> -> vector<6x8xf32>
      %744 = vector.extract_strided_slice %23 {offsets = [24, 0], sizes = [8, 32], strides = [1, 1]} : vector<32x32xf32> to vector<8x32xf32>
      %cst_251 = arith.constant dense<0.000000e+00> : vector<6x32xf32>
      %745 = tpu.matmul %743, %744, %cst_251 {dimension_numbers = #tpu.dot_dimension_numbers<[1], [0], [0], [1], [0, 0, 1, 1], [], []>} : vector<6x8xf32>, vector<8x32xf32>, vector<6x32xf32> -> vector<6x32xf32>
      %746 = arith.addf %728, %745 : vector<6x32xf32>
      %747 = vector.extract_strided_slice %670 {offsets = [6, 0], sizes = [6, 32], strides = [1, 1]} : vector<12x32xf32> to vector<6x32xf32>
      %748 = vector.extract_strided_slice %108 {offsets = [8, 0], sizes = [8, 32], strides = [1, 1]} : vector<16x32xf32> to vector<8x32xf32>
      %749 = vector.extract_strided_slice %109 {offsets = [8, 0], sizes = [8, 32], strides = [1, 1]} : vector<16x32xf32> to vector<8x32xf32>
      %750 = vector.extract_strided_slice %747 {offsets = [0, 0], sizes = [6, 8], strides = [1, 1]} : vector<6x32xf32> to vector<6x8xf32>
      %751 = vector.extract_strided_slice %748 {offsets = [0, 0], sizes = [8, 8], strides = [1, 1]} : vector<8x32xf32> to vector<8x8xf32>
      %cst_252 = arith.constant dense<0.000000e+00> : vector<6x8xf32>
      %752 = tpu.matmul %750, %751, %cst_252 {dimension_numbers = #tpu.dot_dimension_numbers<[1], [1], [0], [0], [0, 0, 1, 0], [], []>} : vector<6x8xf32>, vector<8x8xf32>, vector<6x8xf32> -> vector<6x8xf32>
      %cst_253 = arith.constant dense<0xFF800000> : vector<6xf32>
      %753 = vector.multi_reduction <maximumf>, %752, %cst_253 [1] : vector<6x8xf32> to vector<6xf32>
      %754 = vector.shape_cast %753 : vector<6xf32> to vector<6x1xf32>
      %755 = vector.broadcast %754 : vector<6x1xf32> to vector<6x8xf32>
      %756 = arith.subf %752, %755 : vector<6x8xf32>
      %757 = math.exp %756 : vector<6x8xf32>
      %cst_254 = arith.constant dense<0.000000e+00> : vector<6xf32>
      %758 = vector.multi_reduction <add>, %757, %cst_254 [1] : vector<6x8xf32> to vector<6xf32>
      %759 = vector.shape_cast %758 : vector<6xf32> to vector<6x1xf32>
      %760 = tpu.reciprocal %759 {approx = true} : vector<6x1xf32> -> vector<6x1xf32>
      %761 = vector.broadcast %760 : vector<6x1xf32> to vector<6x8xf32>
      %762 = arith.mulf %757, %761 : vector<6x8xf32>
      %763 = vector.extract_strided_slice %749 {offsets = [0, 0], sizes = [8, 8], strides = [1, 1]} : vector<8x32xf32> to vector<8x8xf32>
      %cst_255 = arith.constant dense<0.000000e+00> : vector<6x8xf32>
      %764 = tpu.matmul %762, %763, %cst_255 {dimension_numbers = #tpu.dot_dimension_numbers<[1], [0], [0], [1], [0, 0, 1, 1], [], []>} : vector<6x8xf32>, vector<8x8xf32>, vector<6x8xf32> -> vector<6x8xf32>
      %765 = vector.extract_strided_slice %23 {offsets = [0, 0], sizes = [8, 32], strides = [1, 1]} : vector<32x32xf32> to vector<8x32xf32>
      %cst_256 = arith.constant dense<0.000000e+00> : vector<6x32xf32>
      %766 = tpu.matmul %764, %765, %cst_256 {dimension_numbers = #tpu.dot_dimension_numbers<[1], [0], [0], [1], [0, 0, 1, 1], [], []>} : vector<6x8xf32>, vector<8x32xf32>, vector<6x32xf32> -> vector<6x32xf32>
      %767 = vector.broadcast %25 : vector<1x32xf32> to vector<6x32xf32>
      %768 = arith.addf %767, %766 : vector<6x32xf32>
      %769 = vector.extract_strided_slice %747 {offsets = [0, 8], sizes = [6, 8], strides = [1, 1]} : vector<6x32xf32> to vector<6x8xf32>
      %770 = vector.extract_strided_slice %748 {offsets = [0, 8], sizes = [8, 8], strides = [1, 1]} : vector<8x32xf32> to vector<8x8xf32>
      %cst_257 = arith.constant dense<0.000000e+00> : vector<6x8xf32>
      %771 = tpu.matmul %769, %770, %cst_257 {dimension_numbers = #tpu.dot_dimension_numbers<[1], [1], [0], [0], [0, 0, 1, 0], [], []>} : vector<6x8xf32>, vector<8x8xf32>, vector<6x8xf32> -> vector<6x8xf32>
      %cst_258 = arith.constant dense<0xFF800000> : vector<6xf32>
      %772 = vector.multi_reduction <maximumf>, %771, %cst_258 [1] : vector<6x8xf32> to vector<6xf32>
      %773 = vector.shape_cast %772 : vector<6xf32> to vector<6x1xf32>
      %774 = vector.broadcast %773 : vector<6x1xf32> to vector<6x8xf32>
      %775 = arith.subf %771, %774 : vector<6x8xf32>
      %776 = math.exp %775 : vector<6x8xf32>
      %cst_259 = arith.constant dense<0.000000e+00> : vector<6xf32>
      %777 = vector.multi_reduction <add>, %776, %cst_259 [1] : vector<6x8xf32> to vector<6xf32>
      %778 = vector.shape_cast %777 : vector<6xf32> to vector<6x1xf32>
      %779 = tpu.reciprocal %778 {approx = true} : vector<6x1xf32> -> vector<6x1xf32>
      %780 = vector.broadcast %779 : vector<6x1xf32> to vector<6x8xf32>
      %781 = arith.mulf %776, %780 : vector<6x8xf32>
      %782 = vector.extract_strided_slice %749 {offsets = [0, 8], sizes = [8, 8], strides = [1, 1]} : vector<8x32xf32> to vector<8x8xf32>
      %cst_260 = arith.constant dense<0.000000e+00> : vector<6x8xf32>
      %783 = tpu.matmul %781, %782, %cst_260 {dimension_numbers = #tpu.dot_dimension_numbers<[1], [0], [0], [1], [0, 0, 1, 1], [], []>} : vector<6x8xf32>, vector<8x8xf32>, vector<6x8xf32> -> vector<6x8xf32>
      %784 = vector.extract_strided_slice %23 {offsets = [8, 0], sizes = [8, 32], strides = [1, 1]} : vector<32x32xf32> to vector<8x32xf32>
      %cst_261 = arith.constant dense<0.000000e+00> : vector<6x32xf32>
      %785 = tpu.matmul %783, %784, %cst_261 {dimension_numbers = #tpu.dot_dimension_numbers<[1], [0], [0], [1], [0, 0, 1, 1], [], []>} : vector<6x8xf32>, vector<8x32xf32>, vector<6x32xf32> -> vector<6x32xf32>
      %786 = arith.addf %768, %785 : vector<6x32xf32>
      %787 = vector.extract_strided_slice %747 {offsets = [0, 16], sizes = [6, 8], strides = [1, 1]} : vector<6x32xf32> to vector<6x8xf32>
      %788 = vector.extract_strided_slice %748 {offsets = [0, 16], sizes = [8, 8], strides = [1, 1]} : vector<8x32xf32> to vector<8x8xf32>
      %cst_262 = arith.constant dense<0.000000e+00> : vector<6x8xf32>
      %789 = tpu.matmul %787, %788, %cst_262 {dimension_numbers = #tpu.dot_dimension_numbers<[1], [1], [0], [0], [0, 0, 1, 0], [], []>} : vector<6x8xf32>, vector<8x8xf32>, vector<6x8xf32> -> vector<6x8xf32>
      %cst_263 = arith.constant dense<0xFF800000> : vector<6xf32>
      %790 = vector.multi_reduction <maximumf>, %789, %cst_263 [1] : vector<6x8xf32> to vector<6xf32>
      %791 = vector.shape_cast %790 : vector<6xf32> to vector<6x1xf32>
      %792 = vector.broadcast %791 : vector<6x1xf32> to vector<6x8xf32>
      %793 = arith.subf %789, %792 : vector<6x8xf32>
      %794 = math.exp %793 : vector<6x8xf32>
      %cst_264 = arith.constant dense<0.000000e+00> : vector<6xf32>
      %795 = vector.multi_reduction <add>, %794, %cst_264 [1] : vector<6x8xf32> to vector<6xf32>
      %796 = vector.shape_cast %795 : vector<6xf32> to vector<6x1xf32>
      %797 = tpu.reciprocal %796 {approx = true} : vector<6x1xf32> -> vector<6x1xf32>
      %798 = vector.broadcast %797 : vector<6x1xf32> to vector<6x8xf32>
      %799 = arith.mulf %794, %798 : vector<6x8xf32>
      %800 = vector.extract_strided_slice %749 {offsets = [0, 16], sizes = [8, 8], strides = [1, 1]} : vector<8x32xf32> to vector<8x8xf32>
      %cst_265 = arith.constant dense<0.000000e+00> : vector<6x8xf32>
      %801 = tpu.matmul %799, %800, %cst_265 {dimension_numbers = #tpu.dot_dimension_numbers<[1], [0], [0], [1], [0, 0, 1, 1], [], []>} : vector<6x8xf32>, vector<8x8xf32>, vector<6x8xf32> -> vector<6x8xf32>
      %802 = vector.extract_strided_slice %23 {offsets = [16, 0], sizes = [8, 32], strides = [1, 1]} : vector<32x32xf32> to vector<8x32xf32>
      %cst_266 = arith.constant dense<0.000000e+00> : vector<6x32xf32>
      %803 = tpu.matmul %801, %802, %cst_266 {dimension_numbers = #tpu.dot_dimension_numbers<[1], [0], [0], [1], [0, 0, 1, 1], [], []>} : vector<6x8xf32>, vector<8x32xf32>, vector<6x32xf32> -> vector<6x32xf32>
      %804 = arith.addf %786, %803 : vector<6x32xf32>
      %805 = vector.extract_strided_slice %747 {offsets = [0, 24], sizes = [6, 8], strides = [1, 1]} : vector<6x32xf32> to vector<6x8xf32>
      %806 = vector.extract_strided_slice %748 {offsets = [0, 24], sizes = [8, 8], strides = [1, 1]} : vector<8x32xf32> to vector<8x8xf32>
      %cst_267 = arith.constant dense<0.000000e+00> : vector<6x8xf32>
      %807 = tpu.matmul %805, %806, %cst_267 {dimension_numbers = #tpu.dot_dimension_numbers<[1], [1], [0], [0], [0, 0, 1, 0], [], []>} : vector<6x8xf32>, vector<8x8xf32>, vector<6x8xf32> -> vector<6x8xf32>
      %cst_268 = arith.constant dense<0xFF800000> : vector<6xf32>
      %808 = vector.multi_reduction <maximumf>, %807, %cst_268 [1] : vector<6x8xf32> to vector<6xf32>
      %809 = vector.shape_cast %808 : vector<6xf32> to vector<6x1xf32>
      %810 = vector.broadcast %809 : vector<6x1xf32> to vector<6x8xf32>
      %811 = arith.subf %807, %810 : vector<6x8xf32>
      %812 = math.exp %811 : vector<6x8xf32>
      %cst_269 = arith.constant dense<0.000000e+00> : vector<6xf32>
      %813 = vector.multi_reduction <add>, %812, %cst_269 [1] : vector<6x8xf32> to vector<6xf32>
      %814 = vector.shape_cast %813 : vector<6xf32> to vector<6x1xf32>
      %815 = tpu.reciprocal %814 {approx = true} : vector<6x1xf32> -> vector<6x1xf32>
      %816 = vector.broadcast %815 : vector<6x1xf32> to vector<6x8xf32>
      %817 = arith.mulf %812, %816 : vector<6x8xf32>
      %818 = vector.extract_strided_slice %749 {offsets = [0, 24], sizes = [8, 8], strides = [1, 1]} : vector<8x32xf32> to vector<8x8xf32>
      %cst_270 = arith.constant dense<0.000000e+00> : vector<6x8xf32>
      %819 = tpu.matmul %817, %818, %cst_270 {dimension_numbers = #tpu.dot_dimension_numbers<[1], [0], [0], [1], [0, 0, 1, 1], [], []>} : vector<6x8xf32>, vector<8x8xf32>, vector<6x8xf32> -> vector<6x8xf32>
      %820 = vector.extract_strided_slice %23 {offsets = [24, 0], sizes = [8, 32], strides = [1, 1]} : vector<32x32xf32> to vector<8x32xf32>
      %cst_271 = arith.constant dense<0.000000e+00> : vector<6x32xf32>
      %821 = tpu.matmul %819, %820, %cst_271 {dimension_numbers = #tpu.dot_dimension_numbers<[1], [0], [0], [1], [0, 0, 1, 1], [], []>} : vector<6x8xf32>, vector<8x32xf32>, vector<6x32xf32> -> vector<6x32xf32>
      %822 = arith.addf %804, %821 : vector<6x32xf32>
      %823 = tpu.concatenate %746, %822 in 0 : vector<6x32xf32>, vector<6x32xf32> -> vector<12x32xf32>
      %824 = arith.addf %645, %823 : vector<12x32xf32>
      %cst_272 = arith.constant dense<0.000000e+00> : vector<12xf32>
      %825 = vector.multi_reduction <add>, %824, %cst_272 [1] : vector<12x32xf32> to vector<12xf32>
      %826 = vector.shape_cast %825 : vector<12xf32> to vector<12x1xf32>
      %cst_273 = arith.constant 3.200000e+01 : f32
      %827 = vector.broadcast %cst_273 : f32 to vector<12x1xf32>
      %828 = arith.divf %826, %827 : vector<12x1xf32>
      %829 = vector.broadcast %828 : vector<12x1xf32> to vector<12x32xf32>
      %830 = arith.subf %824, %829 : vector<12x32xf32>
      %831 = arith.mulf %830, %830 : vector<12x32xf32>
      %cst_274 = arith.constant dense<0.000000e+00> : vector<12xf32>
      %832 = vector.multi_reduction <add>, %831, %cst_274 [1] : vector<12x32xf32> to vector<12xf32>
      %833 = vector.shape_cast %832 : vector<12xf32> to vector<12x1xf32>
      %cst_275 = arith.constant 3.200000e+01 : f32
      %834 = vector.broadcast %cst_275 : f32 to vector<12x1xf32>
      %835 = arith.divf %833, %834 : vector<12x1xf32>
      %836 = vector.broadcast %828 : vector<12x1xf32> to vector<12x32xf32>
      %837 = arith.subf %824, %836 : vector<12x32xf32>
      %cst_276 = arith.constant 9.99999974E-6 : f32
      %838 = vector.broadcast %cst_276 : f32 to vector<12x1xf32>
      %839 = arith.addf %835, %838 : vector<12x1xf32>
      %840 = math.rsqrt %839 : vector<12x1xf32>
      %841 = vector.broadcast %840 : vector<12x1xf32> to vector<12x32xf32>
      %842 = arith.mulf %837, %841 : vector<12x32xf32>
      %843 = vector.broadcast %31 : vector<1x32xf32> to vector<12x32xf32>
      %844 = arith.mulf %842, %843 : vector<12x32xf32>
      %845 = vector.broadcast %33 : vector<1x32xf32> to vector<12x32xf32>
      %846 = arith.addf %844, %845 : vector<12x32xf32>
      %cst_277 = arith.constant dense<0.000000e+00> : vector<12x64xf32>
      %847 = tpu.matmul %846, %35, %cst_277 {dimension_numbers = #tpu.dot_dimension_numbers<[1], [0], [0], [1], [0, 0, 1, 1], [], []>} : vector<12x32xf32>, vector<32x64xf32>, vector<12x64xf32> -> vector<12x64xf32>
      %848 = vector.broadcast %37 : vector<1x64xf32> to vector<12x64xf32>
      %849 = arith.addf %847, %848 : vector<12x64xf32>
      %850 = arith.mulf %849, %849 : vector<12x64xf32>
      %851 = arith.mulf %849, %850 : vector<12x64xf32>
      %cst_278 = arith.constant 4.471500e-02 : f32
      %852 = vector.broadcast %cst_278 : f32 to vector<12x64xf32>
      %853 = arith.mulf %852, %851 : vector<12x64xf32>
      %854 = arith.addf %849, %853 : vector<12x64xf32>
      %cst_279 = arith.constant 0.797884583 : f32
      %855 = vector.broadcast %cst_279 : f32 to vector<12x64xf32>
      %856 = arith.mulf %855, %854 : vector<12x64xf32>
      %857 = math.tanh %856 : vector<12x64xf32>
      %cst_280 = arith.constant 1.000000e+00 : f32
      %858 = vector.broadcast %cst_280 : f32 to vector<12x64xf32>
      %859 = arith.addf %858, %857 : vector<12x64xf32>
      %cst_281 = arith.constant 5.000000e-01 : f32
      %860 = vector.broadcast %cst_281 : f32 to vector<12x64xf32>
      %861 = arith.mulf %860, %859 : vector<12x64xf32>
      %862 = arith.mulf %849, %861 : vector<12x64xf32>
      %cst_282 = arith.constant dense<0.000000e+00> : vector<12x32xf32>
      %863 = tpu.matmul %862, %39, %cst_282 {dimension_numbers = #tpu.dot_dimension_numbers<[1], [0], [0], [1], [0, 0, 1, 1], [], []>} : vector<12x64xf32>, vector<64x32xf32>, vector<12x32xf32> -> vector<12x32xf32>
      %864 = vector.broadcast %41 : vector<1x32xf32> to vector<12x32xf32>
      %865 = arith.addf %863, %864 : vector<12x32xf32>
      %866 = arith.addf %824, %865 : vector<12x32xf32>
      %c0_283 = arith.constant 0 : index
      %c0_284 = arith.constant 0 : index
      %867 = vector.load %arg34[%c0_283, %c0_284] : memref<12x32xf32, #tpu.memory_space<vmem>>, vector<12x32xf32>
      tpu.vector_store %arg34[%c0_283, %c0_284], %866 {strides = array<i32>} : memref<12x32xf32, #tpu.memory_space<vmem>>, vector<12x32xf32>,
    } else {
    }
    %c1_i32_184 = arith.constant 1 : i32
    %489 = arith.cmpi eq, %arg1, %c1_i32_184 : i32
    %490 = arith.extui %489 : i1 to i32
    %c0_i32_185 = arith.constant 0 : i32
    %491 = arith.cmpi ne, %490, %c0_i32_185 : i32
    scf.if %491 {
      %c0_186 = arith.constant 0 : index
      %c0_187 = arith.constant 0 : index
      %492 = vector.load %arg27[%c0_186, %c0_187] : memref<1x32xf32, #tpu.memory_space<vmem>>, vector<1x32xf32>
      %c0_188 = arith.constant 0 : index
      %c0_189 = arith.constant 0 : index
      %493 = vector.load %arg28[%c0_188, %c0_189] : memref<1x32xf32, #tpu.memory_space<vmem>>, vector<1x32xf32>
      %cst_190 = arith.constant dense<0.000000e+00> : vector<12xf32>
      %494 = vector.multi_reduction <add>, %484, %cst_190 [1] : vector<12x32xf32> to vector<12xf32>
      %495 = vector.shape_cast %494 : vector<12xf32> to vector<12x1xf32>
      %cst_191 = arith.constant 3.200000e+01 : f32
      %496 = vector.broadcast %cst_191 : f32 to vector<12x1xf32>
      %497 = arith.divf %495, %496 : vector<12x1xf32>
      %498 = vector.broadcast %497 : vector<12x1xf32> to vector<12x32xf32>
      %499 = arith.subf %484, %498 : vector<12x32xf32>
      %500 = arith.mulf %499, %499 : vector<12x32xf32>
      %cst_192 = arith.constant dense<0.000000e+00> : vector<12xf32>
      %501 = vector.multi_reduction <add>, %500, %cst_192 [1] : vector<12x32xf32> to vector<12xf32>
      %502 = vector.shape_cast %501 : vector<12xf32> to vector<12x1xf32>
      %cst_193 = arith.constant 3.200000e+01 : f32
      %503 = vector.broadcast %cst_193 : f32 to vector<12x1xf32>
      %504 = arith.divf %502, %503 : vector<12x1xf32>
      %505 = vector.broadcast %497 : vector<12x1xf32> to vector<12x32xf32>
      %506 = arith.subf %484, %505 : vector<12x32xf32>
      %cst_194 = arith.constant 9.99999974E-6 : f32
      %507 = vector.broadcast %cst_194 : f32 to vector<12x1xf32>
      %508 = arith.addf %504, %507 : vector<12x1xf32>
      %509 = math.rsqrt %508 : vector<12x1xf32>
      %510 = vector.broadcast %509 : vector<12x1xf32> to vector<12x32xf32>
      %511 = arith.mulf %506, %510 : vector<12x32xf32>
      %512 = vector.broadcast %492 : vector<1x32xf32> to vector<12x32xf32>
      %513 = arith.mulf %511, %512 : vector<12x32xf32>
      %514 = vector.broadcast %493 : vector<1x32xf32> to vector<12x32xf32>
      %515 = arith.addf %513, %514 : vector<12x32xf32>
      %c0_195 = arith.constant 0 : index
      %c0_196 = arith.constant 0 : index
      %516 = vector.load %arg32[%c0_195, %c0_196] : memref<12x32xf32, #tpu.memory_space<vmem>>, vector<12x32xf32>
      tpu.vector_store %arg32[%c0_195, %c0_196], %515 {strides = array<i32>} : memref<12x32xf32, #tpu.memory_space<vmem>>, vector<12x32xf32>,
      %c0_197 = arith.constant 0 : index
      %c0_198 = arith.constant 0 : index
      %517 = vector.load %arg29[%c0_197, %c0_198] : memref<32x128xf32, #tpu.memory_space<vmem>>, vector<32x128xf32>
      %cst_199 = arith.constant dense<0.000000e+00> : vector<12x128xf32>
      %518 = tpu.matmul %515, %517, %cst_199 {dimension_numbers = #tpu.dot_dimension_numbers<[1], [0], [0], [1], [0, 0, 1, 1], [], []>} : vector<12x32xf32>, vector<32x128xf32>, vector<12x128xf32> -> vector<12x128xf32>
      %c0_200 = arith.constant 0 : index
      %c0_201 = arith.constant 0 : index
      %519 = vector.load %arg30[%c0_200, %c0_201] : memref<1x128xf32, #tpu.memory_space<vmem>>, vector<1x128xf32>
      %520 = vector.broadcast %519 : vector<1x128xf32> to vector<12x128xf32>
      %521 = arith.addf %518, %520 : vector<12x128xf32>
      %c0_202 = arith.constant 0 : index
      %c0_203 = arith.constant 0 : index
      %522 = vector.load %arg31[%c0_202, %c0_203] : memref<12x128xf32, #tpu.memory_space<vmem>>, vector<12x128xf32>
      tpu.vector_store %arg31[%c0_202, %c0_203], %521 {strides = array<i32>} : memref<12x128xf32, #tpu.memory_space<vmem>>, vector<12x128xf32>,
    } else {
    }
    return
  }
  func.func @transform_0(%arg0: i32, %arg1: i32) -> (i32, i32) {
    %c0_i32 = arith.constant 0 : i32
    %c0_i32_0 = arith.constant 0 : i32
    return %arg0, %c0_i32 : i32, i32
  }
  func.func @transform_1(%arg0: i32, %arg1: i32) -> (i32, i32) {
    %c0_i32 = arith.constant 0 : i32
    %c0_i32_0 = arith.constant 0 : i32
    return %arg0, %c0_i32 : i32, i32
  }
  func.func @transform_2(%arg0: i32, %arg1: i32) -> (i32, i32) {
    %c0_i32 = arith.constant 0 : i32
    %c0_i32_0 = arith.constant 0 : i32
    return %arg0, %c0_i32 : i32, i32
  }
  func.func @transform_3(%arg0: i32, %arg1: i32) -> (i32, i32, i32) {
    %c0_i32 = arith.constant 0 : i32
    %c0_i32_0 = arith.constant 0 : i32
    %c0_i32_1 = arith.constant 0 : i32
    return %arg1, %c0_i32, %c0_i32_0 : i32, i32, i32
  }
  func.func @transform_4(%arg0: i32, %arg1: i32) -> (i32, i32, i32) {
    %c0_i32 = arith.constant 0 : i32
    %c0_i32_0 = arith.constant 0 : i32
    %c0_i32_1 = arith.constant 0 : i32
    return %arg1, %c0_i32, %c0_i32_0 : i32, i32, i32
  }
  func.func @transform_5(%arg0: i32, %arg1: i32) -> (i32, i32, i32) {
    %c0_i32 = arith.constant 0 : i32
    %c0_i32_0 = arith.constant 0 : i32
    %c0_i32_1 = arith.constant 0 : i32
    return %arg1, %c0_i32, %c0_i32_0 : i32, i32, i32
  }
  func.func @transform_6(%arg0: i32, %arg1: i32) -> (i32, i32, i32) {
    %c0_i32 = arith.constant 0 : i32
    %c0_i32_0 = arith.constant 0 : i32
    %c0_i32_1 = arith.constant 0 : i32
    return %arg1, %c0_i32, %c0_i32_0 : i32, i32, i32
  }
  func.func @transform_7(%arg0: i32, %arg1: i32) -> (i32, i32, i32) {
    %c0_i32 = arith.constant 0 : i32
    %c0_i32_0 = arith.constant 0 : i32
    %c0_i32_1 = arith.constant 0 : i32
    return %arg1, %c0_i32, %c0_i32_0 : i32, i32, i32
  }
  func.func @transform_8(%arg0: i32, %arg1: i32) -> (i32, i32, i32) {
    %c0_i32 = arith.constant 0 : i32
    %c0_i32_0 = arith.constant 0 : i32
    %c0_i32_1 = arith.constant 0 : i32
    return %arg1, %c0_i32, %c0_i32_0 : i32, i32, i32
  }
  func.func @transform_9(%arg0: i32, %arg1: i32) -> (i32, i32, i32) {
    %c0_i32 = arith.constant 0 : i32
    %c0_i32_0 = arith.constant 0 : i32
    %c0_i32_1 = arith.constant 0 : i32
    return %arg1, %c0_i32, %c0_i32_0 : i32, i32, i32
  }
  func.func @transform_10(%arg0: i32, %arg1: i32) -> (i32, i32, i32) {
    %c0_i32 = arith.constant 0 : i32
    %c0_i32_0 = arith.constant 0 : i32
    %c0_i32_1 = arith.constant 0 : i32
    return %arg1, %c0_i32, %c0_i32_0 : i32, i32, i32
  }
  func.func @transform_11(%arg0: i32, %arg1: i32) -> (i32, i32, i32) {
    %c0_i32 = arith.constant 0 : i32
    %c0_i32_0 = arith.constant 0 : i32
    %c0_i32_1 = arith.constant 0 : i32
    return %arg1, %c0_i32, %c0_i32_0 : i32, i32, i32
  }
  func.func @transform_12(%arg0: i32, %arg1: i32) -> (i32, i32, i32) {
    %c0_i32 = arith.constant 0 : i32
    %c0_i32_0 = arith.constant 0 : i32
    %c0_i32_1 = arith.constant 0 : i32
    return %arg1, %c0_i32, %c0_i32_0 : i32, i32, i32
  }
  func.func @transform_13(%arg0: i32, %arg1: i32) -> (i32, i32, i32) {
    %c0_i32 = arith.constant 0 : i32
    %c0_i32_0 = arith.constant 0 : i32
    %c0_i32_1 = arith.constant 0 : i32
    return %arg1, %c0_i32, %c0_i32_0 : i32, i32, i32
  }
  func.func @transform_14(%arg0: i32, %arg1: i32) -> (i32, i32, i32) {
    %c0_i32 = arith.constant 0 : i32
    %c0_i32_0 = arith.constant 0 : i32
    %c0_i32_1 = arith.constant 0 : i32
    return %arg1, %c0_i32, %c0_i32_0 : i32, i32, i32
  }
  func.func @transform_15(%arg0: i32, %arg1: i32) -> (i32, i32, i32) {
    %c0_i32 = arith.constant 0 : i32
    %c0_i32_0 = arith.constant 0 : i32
    %c0_i32_1 = arith.constant 0 : i32
    return %arg1, %c0_i32, %c0_i32_0 : i32, i32, i32
  }
  func.func @transform_16(%arg0: i32, %arg1: i32) -> (i32, i32, i32) {
    %c0_i32 = arith.constant 0 : i32
    %c0_i32_0 = arith.constant 0 : i32
    %c0_i32_1 = arith.constant 0 : i32
    return %arg1, %c0_i32, %c0_i32_0 : i32, i32, i32
  }
  func.func @transform_17(%arg0: i32, %arg1: i32) -> (i32, i32, i32) {
    %c0_i32 = arith.constant 0 : i32
    %c0_i32_0 = arith.constant 0 : i32
    %c0_i32_1 = arith.constant 0 : i32
    return %arg1, %c0_i32, %c0_i32_0 : i32, i32, i32
  }
  func.func @transform_18(%arg0: i32, %arg1: i32) -> (i32, i32, i32) {
    %c0_i32 = arith.constant 0 : i32
    %c0_i32_0 = arith.constant 0 : i32
    %c0_i32_1 = arith.constant 0 : i32
    return %arg1, %c0_i32, %c0_i32_0 : i32, i32, i32
  }
  func.func @transform_19(%arg0: i32, %arg1: i32) -> (i32, i32, i32) {
    %c0_i32 = arith.constant 0 : i32
    %c0_i32_0 = arith.constant 0 : i32
    %c0_i32_1 = arith.constant 0 : i32
    return %arg1, %c0_i32, %c0_i32_0 : i32, i32, i32
  }
  func.func @transform_20(%arg0: i32, %arg1: i32) -> (i32, i32, i32) {
    %c0_i32 = arith.constant 0 : i32
    %c0_i32_0 = arith.constant 0 : i32
    %c0_i32_1 = arith.constant 0 : i32
    return %arg1, %c0_i32, %c0_i32_0 : i32, i32, i32
  }
  func.func @transform_21(%arg0: i32, %arg1: i32) -> (i32, i32, i32) {
    %c0_i32 = arith.constant 0 : i32
    %c0_i32_0 = arith.constant 0 : i32
    %c0_i32_1 = arith.constant 0 : i32
    return %arg1, %c0_i32, %c0_i32_0 : i32, i32, i32
  }
  func.func @transform_22(%arg0: i32, %arg1: i32) -> (i32, i32, i32) {
    %c0_i32 = arith.constant 0 : i32
    %c0_i32_0 = arith.constant 0 : i32
    %c0_i32_1 = arith.constant 0 : i32
    return %arg1, %c0_i32, %c0_i32_0 : i32, i32, i32
  }
  func.func @transform_23(%arg0: i32, %arg1: i32) -> (i32, i32, i32) {
    %c0_i32 = arith.constant 0 : i32
    %c0_i32_0 = arith.constant 0 : i32
    %c0_i32_1 = arith.constant 0 : i32
    return %arg1, %c0_i32, %c0_i32_0 : i32, i32, i32
  }
  func.func @transform_24(%arg0: i32, %arg1: i32) -> (i32, i32, i32) {
    %c0_i32 = arith.constant 0 : i32
    %c0_i32_0 = arith.constant 0 : i32
    %c0_i32_1 = arith.constant 0 : i32
    return %arg1, %c0_i32, %c0_i32_0 : i32, i32, i32
  }
  func.func @transform_25(%arg0: i32, %arg1: i32) -> (i32, i32) {
    %c0_i32 = arith.constant 0 : i32
    %c0_i32_0 = arith.constant 0 : i32
    %c0_i32_1 = arith.constant 0 : i32
    return %c0_i32, %c0_i32_0 : i32, i32
  }
  func.func @transform_26(%arg0: i32, %arg1: i32) -> (i32, i32) {
    %c0_i32 = arith.constant 0 : i32
    %c0_i32_0 = arith.constant 0 : i32
    %c0_i32_1 = arith.constant 0 : i32
    return %c0_i32, %c0_i32_0 : i32, i32
  }
  func.func @transform_27(%arg0: i32, %arg1: i32) -> (i32, i32) {
    %c0_i32 = arith.constant 0 : i32
    %c0_i32_0 = arith.constant 0 : i32
    %c0_i32_1 = arith.constant 0 : i32
    return %c0_i32, %c0_i32_0 : i32, i32
  }
  func.func @transform_28(%arg0: i32, %arg1: i32) -> (i32, i32) {
    %c0_i32 = arith.constant 0 : i32
    %c0_i32_0 = arith.constant 0 : i32
    %c0_i32_1 = arith.constant 0 : i32
    return %c0_i32, %c0_i32_0 : i32, i32
  }
  func.func @transform_29(%arg0: i32, %arg1: i32) -> (i32, i32) {
    %c0_i32 = arith.constant 0 : i32
    %c0_i32_0 = arith.constant 0 : i32
    return %arg0, %c0_i32 : i32, i32
  }
  func.func @transform_30(%arg0: i32, %arg1: i32) -> (i32, i32) {
    %c0_i32 = arith.constant 0 : i32
    %c0_i32_0 = arith.constant 0 : i32
    return %arg0, %c0_i32 : i32, i32
  }
}

</mosaic_0001>

<bundles_post_ra>
// kernel: tpu_custom_call.1
= control target key start
LH: loop header
LB: loop body
LE: loop exit
PB: predicated region body
PF: predicated region fallthrough
CT: control target
= control target key end

     0   :  { %s13026_s6 = smov 1   ;;  %s13027_s10 = smov 2   ;;  %s15014_s0 = inlined_call_operand.smem [shape: u32[31], index: -1, kind: input, shape index: {}] }
   0x1   :  { %s13108_s5 = sld [smem:[%s15014_s0]]   ;;  %s13028_s14 = smov 3  }
   0x2   :  { %s13113_s9 = sld [smem:[%s15014_s0 + %s13026_s6]]   ;;  %s13029_s18 = smov 4  }
   0x3   :  { %s13118_s13 = sld [smem:[%s15014_s0 + %s13027_s10]]   ;;  %s13030_s22 = smov 5  }
   0x4   :  { %s13123_s17 = sld [smem:[%s15014_s0 + %s13028_s14]]   ;;  %s13031_s26 = smov 6  }
   0x5   :  { %s13128_s21 = sld [smem:[%s15014_s0 + %s13029_s18]]   ;;  %s13032_s30 = smov 7  }
   0x6   :  { %s13133_s25 = sld [smem:[%s15014_s0 + %s13030_s22]]   ;;  %s13033_s4 = smov 8  }
   0x7   :  { %15083 = sst [smem:[#allocation48_spill]] %s13108_s5  ;;  %s13034_s10 = smov 9  }
   0x8   :  { %15084 = sst [smem:[#allocation49_spill]] %s13113_s9  ;;  %s13035_s15 = smov 10  }
   0x9   :  { %15085 = sst [smem:[#allocation50_spill]] %s13118_s13  ;;  %s13036_s20 = smov 11  }
   0xa   :  { %15086 = sst [smem:[#allocation51_spill]] %s13123_s17  ;;  %s13038_s1 = smov 13  }
   0xb   :  { %15087 = sst [smem:[#allocation52_spill]] %s13128_s21  ;;  %s13039_s7 = smov 14  }
   0xc   :  { %15088 = sst [smem:[#allocation53_spill]] %s13133_s25  ;;  %s13041_s22 = smov 16  }
   0xd   :  { %s13138_s29 = sld [smem:[%s15014_s0 + %s13031_s26]]   ;;  %s13037_s26 = smov 12  }
   0xe   :  { %s13143_s3 = sld [smem:[%s15014_s0 + %s13032_s30]]   ;;  %s13042_s28 = smov 17  }
   0xf   :  { %s13148_s8 = sld [smem:[%s15014_s0 + %s13033_s4]]  }
  0x10   :  { %s13153_s14 = sld [smem:[%s15014_s0 + %s13034_s10]]  }
  0x11   :  { %s13158_s19 = sld [smem:[%s15014_s0 + %s13035_s15]]   ;;  %s13040_s15 = smov 15  }
  0x12   :  { %s13163_s24 = sld [smem:[%s15014_s0 + %s13036_s20]]  }
  0x13   :  { %s13168_s30 = sld [smem:[%s15014_s0 + %s13037_s26]]  }
  0x14   :  { %15089 = sst [smem:[#allocation54_spill]] %s13143_s3 }
  0x15   :  { %15090 = sst [smem:[#allocation55_spill]] %s13148_s8 }
  0x16   :  { %15091 = sst [smem:[#allocation56_spill]] %s13153_s14 }
  0x17   :  { %15092 = sst [smem:[#allocation57_spill]] %s13158_s19 }
  0x18   :  { %15093 = sst [smem:[#allocation58_spill]] %s13163_s24 }
  0x19   :  { %s13173_s6 = sld [smem:[%s15014_s0 + %s13038_s1]]  }
  0x1a   :  { %s13178_s12 = sld [smem:[%s15014_s0 + %s13039_s7]]   ;;  %s13043_s7 = smov 18  }
  0x1b   :  { %s13183_s20 = sld [smem:[%s15014_s0 + %s13040_s15]]   ;;  %s13044_s15 = smov 19  }
  0x1c   :  { %s13188_s27 = sld [smem:[%s15014_s0 + %s13041_s22]]   ;;  %s13045_s22 = smov 20  }
  0x1d   :  { %s13193_s4 = sld [smem:[%s15014_s0 + %s13042_s28]]   ;;  %s13046_s28 = smov 21  }
  0x1e   :  { %s13198_s24 = sld [smem:[%s15014_s0 + %s13043_s7]]   ;;  %s13047_s7 = smov 22  }
  0x1f   :  { %15094 = sst [smem:[#allocation59_spill]] %s13173_s6 }
  0x20   :  { %15095 = sst [smem:[#allocation60_spill]] %s13178_s12 }
  0x21   :  { %15096 = sst [smem:[#allocation61_spill]] %s13183_s20 }
  0x22   :  { %s13203_s14 = sld [smem:[%s15014_s0 + %s13044_s15]]   ;;  %s13048_s15 = smov 23  }
  0x23   :  { %15097 = sst [smem:[#allocation62_spill]] %s13193_s4 }
  0x24   :  { %15098 = sst [smem:[#allocation63_spill]] %s13198_s24 }
  0x25   :  { %s13208_s3 = sld [smem:[%s15014_s0 + %s13045_s22]]   ;;  %s13049_s22 = smov 24  }
  0x26   :  { %s13213_s4 = sld [smem:[%s15014_s0 + %s13046_s28]]   ;;  %s13050_s28 = smov 25  }
  0x27   :  { %s13218_s20 = sld [smem:[%s15014_s0 + %s13047_s7]]   ;;  %s13051_s7 = smov 26  }
  0x28   :  { %15099 = sst [smem:[#allocation64_spill]] %s13203_s14 }
  0x29   :  { %s13223_s14 = sld [smem:[%s15014_s0 + %s13048_s15]]   ;;  %s13052_s15 = smov 27  }
  0x2b   :  { %15100 = sst [smem:[#allocation65_spill]] %s13208_s3 }
  0x2c   :  { %15101 = sst [smem:[#allocation66_spill]] %s13213_s4 }
  0x2d   :  { %15102 = sst [smem:[#allocation67_spill]] %s13218_s20 }
  0x2e   :  { %s13228_s3 = sld [smem:[%s15014_s0 + %s13049_s22]]   ;;  %s13053_s22 = smov 28  }
  0x2f   :  { %15103 = sst [smem:[#allocation68_spill]] %s13223_s14 }
  0x30   :  { %s13233_s4 = sld [smem:[%s15014_s0 + %s13050_s28]]   ;;  %s13054_s28 = smov 29  }
  0x31   :  { %s13238_s20 = sld [smem:[%s15014_s0 + %s13051_s7]]   ;;  %s13055_s7 = smov 30  }
  0x32   :  { %s13243_s14 = sld [smem:[%s15014_s0 + %s13052_s15]]  }
  0x34   :  { %15104 = sst [smem:[#allocation69_spill]] %s13228_s3 }
  0x35   :  { %s13248_s3 = sld [smem:[%s15014_s0 + %s13053_s22]]  }
  0x36   :  { %15105 = sst [smem:[#allocation70_spill]] %s13233_s4 }
  0x37   :  { %15106 = sst [smem:[#allocation71_spill]] %s13238_s20 }
  0x38   :  { %15107 = sst [smem:[#allocation72_spill]] %s13243_s14 }
  0x39   :  { %s13253_s4 = sld [smem:[%s15014_s0 + %s13054_s28]]  }
  0x3a   :  { %s13258_s20 = sld [smem:[%s15014_s0 + %s13055_s7]]  }
  0x3b   :  { %15108 = sst [smem:[#allocation73_spill]] %s13248_s3 }
  0x3f   :  { %15109 = sst [smem:[#allocation74_spill]] %s13253_s4 }
  0x40   :  { %15110 = sst [smem:[#allocation75_spill]] %s13258_s20 }
  0x41   :  { %67 = vsyncpa [#allocation5], 0 }
  0x42   :  { %68 = vsyncpa [#allocation8], 0 }
  0x43   :  { %69 = vsyncpa [#allocation11], 0 }
  0x44   :  { %71 = vsyncpa [#allocation11 + $0x1], 0 }
  0x45   :  { %72 = vsyncpa [#allocation14], 0 }
  0x46   :  { %74 = vsyncpa [#allocation14 + $0x1], 0 }
  0x47   :  { %75 = vsyncpa [#allocation17], 0 }
  0x48   :  { %77 = vsyncpa [#allocation17 + $0x1], 0 }
  0x49   :  { %78 = vsyncpa [#allocation20], 0 }
  0x4a   :  { %80 = vsyncpa [#allocation20 + $0x1], 0 }
  0x4b   :  { %81 = vsyncpa [#allocation23], 0 }
  0x4c   :  { %83 = vsyncpa [#allocation23 + $0x1], 0 }
  0x4d   :  { %84 = vsyncpa [#allocation26], 0 }
  0x4e   :  { %86 = vsyncpa [#allocation26 + $0x1], 0 }
  0x4f   :  { %87 = vsyncpa [#allocation29], 0 }
  0x50   :  { %89 = vsyncpa [#allocation29 + $0x1], 0 }
  0x51   :  { %90 = vsyncpa [#allocation32], 0 }
  0x52   :  { %92 = vsyncpa [#allocation32 + $0x1], 0 }
  0x53   :  { %93 = vsyncpa [#allocation6], 0 }
  0x54   :  { %94 = vsyncpa [#allocation35], 0  ;;  %s13260_s0 = smov 0   ;;  %s13262_s15 = smov 0  }
  0x55   :  { %s13264_s16 = smov 0   ;;  %s13266_s18 = smov 0  }
  0x56   :  { %s13268_s22 = smov 0   ;;  %s13270_s23 = smov 0  }
  0x57 LB: > { %s15111_s25 = sld [smem:[#allocation53_spill]]  ;;  %s13289_s26 = sadd.s32 4294967295, %s13024_s23   ;;  %s13008_s15 = sphi %s13262_s15, %s15229_s15   ;;  %s13004_s0 = sphi %s13260_s0, %s15228_s0   ;;  %s13024_s23 = sphi %s13270_s23, %s100_s23   ;;  %s13020_s22 = sphi %s13268_s22, %s15232_s22   ;;  %s13016_s18 = sphi %s13266_s18, %s15231_s18   ;;  %s13012_s16 = sphi %s13264_s16, %s15230_s16  }
  0x58   : > { %s15112_s24 = sld [smem:[#allocation63_spill]]  ;;  %s109_s28 = sadd.s32 1, %s13020_s22 }
  0x59   : > { %s15113_s21 = sld [smem:[#allocation52_spill]]  ;;  %p110_p0 = scmp.ge.s32.totalorder %s109_s28, 2 }
  0x5a   : > { %s15114_s19 = sld [smem:[#allocation57_spill]]  ;;  %s197_s1 = sadd.s32 1, %s13012_s16 }
  0x5b   : > { %s15115_s12 = sld [smem:[#allocation60_spill]]  ;;  %p204_p1 = scmp.ne.s32.totalorder %s13012_s16, %s13008_s15 }
  0x5c   : > { %s15116_s6 = sld [smem:[#allocation59_spill]]  ;;  %p205_p2 = scmp.eq.s32.totalorder %s13024_s23, 0 }
  0x5d   : > { %s15117_s8 = sld [smem:[#allocation55_spill]]  ;;  %s15234_s28 = smov (%p110_p0, %s109_s28), 0 }
  0x5e   : > { %s15118_s17 = sld [smem:[#allocation51_spill]]  ;;  %p13298_p3 = por %p205_p2, %p204_p1 }
  0x5f   : > { %15119 = sst [smem:[#allocation76_spill]] %s15234_s28  ;;  %p210_p4 = scmp.ne.s32.totalorder %s13008_s15, %s13004_s0 }
  0x60   : > { %s194_s7 = ssub.s32 %s13020_s22, %s15234_s28  ;;  %p15020_p5 = scmp.eq.s32.totalorder %s13289_s26, 0 }
  0x61   : > { %p195_p6 = scmp.eq.s32.totalorder %s194_s7, 0  ;;  %p10968_p7 = scmp.ge.s32.totalorder %s13024_s23, 1 }
  0x62   : > { %p13309_p8 = por %p15020_p5, %p210_p4  ;;  %p903_p9 = scmp.lt.s32.totalorder %s13024_s23, 3 }
  0x63   : > { %s13315_s11 = scalar_select %p195_p6, %s13012_s16, %s197_s1  }
  0x64   : > { %s15121_s10 = scalar_select %p13309_p8, 1, 0 }
  0x65   : > { %15122 = sst [smem:[#allocation77_spill]] %s13315_s11  ;;  %p13317_p10 = pnand %p10968_p7, %p903_p9 }
  0x66   : > { %s13056_s0 = smov [#allocation7]   ;;  %s13057_s4 = smov [#allocation4]  }
  0x67   : > { %s15123_s20 = scalar_select %p13317_p10, 1, 0 }
  0x68   : > { %p12123_p11 = pneg %p13317_p10  ;;  %s934_s28 = sshll.u32 %s13056_s0, 4  ;;  %s935_s28 = int_to_ptr.vmem [resolvable:$true] %s934_s28 }
  0x69   : > { %s918_s1 = sshll.u32 %s13057_s4, 4  ;;  %s12425_s11 = scalar_lea.vmem %s935_s28, 256  ;;  %s919_s1 = int_to_ptr.vmem [resolvable:$true] %s918_s1 }
  0x6a   : > { %p13325_p12 = pnand %p12123_p11, %p15020_p5  ;;  %p12426_p0 = scmp.ne.s32.totalorder %s935_s28, %s12425_s11 }
  0x6b   : > { %p12433_p4 = scmp.lt.s32.totalorder %s935_s28, %s935_s28  ;;  %p12434_p6 = scmp.lt.s32.totalorder %s12425_s11, %s12425_s11 }
  0x6c   : > { %p12416_p13 = pneg %p13325_p12 }
  0x6d   : > { %p12435_p7 = por %p12434_p6, %p12433_p4 }
  0x6e   : > { %p12428_p1 = pnand %p12426_p0, %p12416_p13 }
  0x70   : > { %p12429_p2 = pneg %p12428_p1 }
  0x72   : > { %p12436_p9 = pnand %p12435_p7, %p12429_p2 }
  0x74   : > { %12439 = shalt.err (!%p12436_p9)
}
  0x75   : > { %s13058_s0 = smov 128   ;;  %s15125_s9 = sld [smem:[#allocation49_spill]] }
  0x76   : > { %s13059_s3 = smov 8   ;;  %s12451_s4 = scalar_lea.vmem %s919_s1, 256 }
  0x77   : > { %p12452_p11 = scmp.ne.s32.totalorder %s919_s1, %s12451_s4  ;;  %p12459_p1 = scmp.lt.s32.totalorder %s919_s1, %s919_s1 }
  0x78   : > { %p12460_p8 = scmp.lt.s32.totalorder %s12451_s4, %s12451_s4 }
  0x79   : > { %p12454_p5 = pnand %p12452_p11, %p12416_p13 }
  0x7a   : > { %p12461_p10 = por %p12460_p8, %p12459_p1 }
  0x7b   : > { %12129 = dma.hbm_to_vmem [thread:$0]  (!%p13325_p12), %s15125_s9, 256, %s935_s28, [#allocation8], %s13058_s0, %s13058_s0, %s13059_s3  }
  0x7c   : > { %p12455_p0 = pneg %p12454_p5 }
  0x7e   : > { %p12462_p4 = pnand %p12461_p10, %p12455_p0 }
  0x80   : > { %12465 = shalt.err (!%p12462_p4)
}
  0x81   : > { %s15126_s5 = sld [smem:[#allocation48_spill]]  ;;  %s13060_s11 = smov [#allocation9]  }
  0x82   : > { %s950_s14 = sshll.u32 %s13060_s11, 4  ;;  %s951_s14 = int_to_ptr.vmem [resolvable:$true] %s950_s14 }
  0x83   : > { %s12477_s28 = scalar_lea.vmem %s951_s14, 256  ;;  %p12485_p5 = scmp.lt.s32.totalorder %s951_s14, %s951_s14 }
  0x84   : > { %p12478_p2 = scmp.ne.s32.totalorder %s951_s14, %s12477_s28  ;;  %p12486_p9 = scmp.lt.s32.totalorder %s12477_s28, %s12477_s28 }
  0x86   : > { %p12480_p6 = pnand %p12478_p2, %p12416_p13  ;;  %p12487_p11 = por %p12486_p9, %p12485_p5 }
  0x87   : > { %12126 = dma.hbm_to_vmem [thread:$0]  (!%p13325_p12), %s15126_s5, 256, %s919_s1, [#allocation5], %s13058_s0, %s13058_s0, %s13059_s3  }
  0x88   : > { %p12481_p7 = pneg %p12480_p6 }
  0x8a   : > { %p12488_p8 = pnand %p12487_p11, %p12481_p7 }
  0x8c   : > { %12491 = shalt.err (!%p12488_p8)
}
  0x8d   : > { %s15127_s13 = sld [smem:[#allocation50_spill]]  ;;  %p10972_p10 = scmp.ge.s32.totalorder %s13024_s23, 2 }
  0x8e   : > { %s13351_s1 = sand.u32 (!%p10972_p10), 1, %s13024_s23   ;;  %s13354_s4 = sand.u32 (!%p10972_p10), 1, %s13012_s16  }
  0x8f   : > { %972 = sbr.rel (%p10972_p10) target bundleno = 495 (0x1ef), region = 44  ;;  %s13357_s11 = sshll.u32 (!%p10972_p10), %s13020_s22, 4 }
  0x90   : > { %s984_s7 = scalar_lea.hbm (!%p10972_p10), %s15118_s17, %s13357_s11  ;;  %s12496_s5 = scalar_lea.hbm (!%p10972_p10), %s15118_s17, 32 }
  0x91   : > { %s12492_s28 = scalar_lea.hbm (!%p10972_p10), %s984_s7, 16  ;;  %p12497_p1 = scmp.lt.s32.totalorder (!%p10972_p10), %s984_s7, %s15118_s17 }
  0x92   : > { %p12498_p4 = scmp.lt.s32.totalorder (!%p10972_p10), %s12496_s5, %s12492_s28 }
  0x93   : > { %12132 = dma.hbm_to_vmem [thread:$0]  (!%p13325_p12), %s15127_s13, 256, %s951_s14, [#allocation8], %s13058_s0, %s13058_s0, %s13059_s3  }
  0x94   : > { %s979_s3 = scalar_lea.vmem [#allocation10], %s13354_s4  ;;  %p12493_p12 = scmp.ne.s32.totalorder %s984_s7, %s12492_s28 }
  0x95   : > { %s986_s14 = sshll.u32 %s979_s3, 4  ;;  %p12499_p2 = por %p12498_p4, %p12497_p1  ;;  %s987_s14 = int_to_ptr.vmem [resolvable:$true] %s986_s14 }
  0x96   : > { %p12494_p13 = pnand %p12493_p12, %p13298_p3 }
  0x98   : > { %p12495_p0 = pneg %p12494_p13 }
  0x9a   : > { %p12500_p6 = pnand %p12499_p2, %p12495_p0 }
  0x9c   : > { %12503 = shalt.err (!%p12500_p6)
}
  0x9d   : > { %s12504_s9 = scalar_lea.vmem %s987_s14, 16  ;;  %s13061_s3 = smov [#allocation10]  }
  0x9e   : > { %p12505_p7 = scmp.ne.s32.totalorder %s987_s14, %s12504_s9  ;;  %s12508_s13 = sshll.u32 %s13061_s3, 4  ;;  %s12509_s13 = int_to_ptr.vmem [resolvable:$false] %s12508_s13 }
  0x9f   : > { %s12510_s0 = scalar_lea.vmem %s12509_s13, 32  ;;  %p12511_p11 = scmp.lt.s32.totalorder %s987_s14, %s12509_s13 }
  0xa0   : > { %p12506_p5 = pnand %p12505_p7, %p13298_p3  ;;  %p12512_p8 = scmp.lt.s32.totalorder %s12510_s0, %s12504_s9 }
  0xa2   : > { %p12507_p9 = pneg %p12506_p5  ;;  %p12513_p10 = por %p12512_p8, %p12511_p11 }
  0xa4   : > { %p12514_p12 = pnand %p12513_p10, %p12507_p9 }
  0xa6   : > { %12517 = shalt.err (!%p12514_p12)
}
  0xa7   : > { %s15128_s5 = scalar_lea.sflag [#allocation11], %s13351_s1  ;;  %s13375_s28 = scalar_lea.hbm %s15111_s25, %s13357_s11 }
  0xa8   : > { %12079 = dma.hbm_to_vmem [thread:$0]  (%p13298_p3), %s984_s7, 16, %s987_s14, %s15128_s5  }
  0xa9   : > { %s1013_s9 = scalar_lea.vmem [#allocation13], %s13354_s4  ;;  %s15025_s0 = scalar_lea.sflag [#allocation14], %s13351_s1 }
  0xaa   : > { %s1020_s13 = sshll.u32 %s1013_s9, 4  ;;  %s12518_s3 = scalar_lea.hbm %s13375_s28, 16  ;;  %s1021_s13 = int_to_ptr.vmem [resolvable:$true] %s1020_s13 }
  0xab   : > { %p12519_p13 = scmp.ne.s32.totalorder %s13375_s28, %s12518_s3  ;;  %s12522_s17 = scalar_lea.hbm %s15111_s25, 32 }
  0xac   : > { %p12523_p4 = scmp.lt.s32.totalorder %s13375_s28, %s15111_s25  ;;  %p12524_p2 = scmp.lt.s32.totalorder %s12522_s17, %s12518_s3 }
  0xad   : > { %p12520_p0 = pnand %p12519_p13, %p13298_p3 }
  0xae   : > { %p12525_p6 = por %p12524_p2, %p12523_p4 }
  0xaf   : > { %p12521_p1 = pneg %p12520_p0 }
  0xb1   : > { %p12526_p7 = pnand %p12525_p6, %p12521_p1 }
  0xb3   : > { %12529 = shalt.err (!%p12526_p7)
}
  0xb4   : > { %s12530_s14 = scalar_lea.vmem %s1021_s13, 16  ;;  %s13062_s7 = smov [#allocation13]  }
  0xb5   : > { %p12531_p5 = scmp.ne.s32.totalorder %s1021_s13, %s12530_s14  ;;  %s12534_s5 = sshll.u32 %s13062_s7, 4  ;;  %s12535_s5 = int_to_ptr.vmem [resolvable:$false] %s12534_s5 }
  0xb6   : > { %s12536_s9 = scalar_lea.vmem %s12535_s5, 32  ;;  %p12537_p8 = scmp.lt.s32.totalorder %s1021_s13, %s12535_s5 }
  0xb7   : > { %p12532_p9 = pnand %p12531_p5, %p13298_p3  ;;  %p12538_p10 = scmp.lt.s32.totalorder %s12536_s9, %s12530_s14 }
  0xb9   : > { %p12533_p11 = pneg %p12532_p9  ;;  %p12539_p12 = por %p12538_p10, %p12537_p8 }
  0xbb   : > { %p12540_p13 = pnand %p12539_p12, %p12533_p11 }
  0xbd   : > { %12543 = shalt.err (!%p12540_p13)
}
  0xbe   : > { %12081 = dma.hbm_to_vmem [thread:$0]  (%p13298_p3), %s13375_s28, 16, %s1021_s13, %s15025_s0  }
  0xbf   : > { %s13395_s17 = scalar_lea.hbm %s15117_s8, %s13357_s11  ;;  %s1055_s3 = scalar_lea.vmem [#allocation16], %s13354_s4 }
  0xc0   : > { %s1062_s14 = sshll.u32 %s1055_s3, 4  ;;  %s15026_s7 = scalar_lea.sflag [#allocation17], %s13351_s1  ;;  %s1063_s14 = int_to_ptr.vmem [resolvable:$true] %s1062_s14 }
  0xc1   : > { %s12544_s5 = scalar_lea.hbm %s13395_s17, 16  ;;  %s12548_s9 = scalar_lea.hbm %s15117_s8, 32 }
  0xc2   : > { %p12545_p0 = scmp.ne.s32.totalorder %s13395_s17, %s12544_s5  ;;  %p12549_p2 = scmp.lt.s32.totalorder %s13395_s17, %s15117_s8 }
  0xc3   : > { %p12550_p6 = scmp.lt.s32.totalorder %s12548_s9, %s12544_s5 }
  0xc4   : > { %p12546_p1 = pnand %p12545_p0, %p13298_p3 }
  0xc5   : > { %p12551_p7 = por %p12550_p6, %p12549_p2 }
  0xc6   : > { %p12547_p4 = pneg %p12546_p1 }
  0xc8   : > { %p12552_p5 = pnand %p12551_p7, %p12547_p4 }
  0xca   : > { %12555 = shalt.err (!%p12552_p5)
}
  0xcb   : > { %s12556_s28 = scalar_lea.vmem %s1063_s14, 16  ;;  %s13063_s13 = smov [#allocation16]  }
  0xcc   : > { %p12557_p9 = scmp.ne.s32.totalorder %s1063_s14, %s12556_s28  ;;  %s12560_s3 = sshll.u32 %s13063_s13, 4  ;;  %s12561_s3 = int_to_ptr.vmem [resolvable:$false] %s12560_s3 }
  0xcd   : > { %s12562_s0 = scalar_lea.vmem %s12561_s3, 32  ;;  %p12563_p10 = scmp.lt.s32.totalorder %s1063_s14, %s12561_s3 }
  0xce   : > { %p12558_p11 = pnand %p12557_p9, %p13298_p3  ;;  %p12564_p12 = scmp.lt.s32.totalorder %s12562_s0, %s12556_s28 }
  0xd0   : > { %p12559_p8 = pneg %p12558_p11  ;;  %p12565_p13 = por %p12564_p12, %p12563_p10 }
  0xd2   : > { %p12566_p0 = pnand %p12565_p13, %p12559_p8 }
  0xd4   : > { %12569 = shalt.err (!%p12566_p0)
}
  0xd5   : > { %12083 = dma.hbm_to_vmem [thread:$0]  (%p13298_p3), %s13395_s17, 16, %s1063_s14, %s15026_s7  }
  0xd6   : > { %s13415_s5 = scalar_lea.hbm %s13168_s30, %s13357_s11  ;;  %s1105_s0 = scalar_lea.vmem [#allocation19], %s13354_s4 }
  0xd7   : > { %s1112_s9 = sshll.u32 %s1105_s0, 4  ;;  %s15027_s28 = scalar_lea.sflag [#allocation20], %s13351_s1  ;;  %s1113_s9 = int_to_ptr.vmem [resolvable:$true] %s1112_s9 }
  0xd8   : > { %s12570_s13 = scalar_lea.hbm %s13415_s5, 16  ;;  %s12574_s3 = scalar_lea.hbm %s13168_s30, 32 }
  0xd9   : > { %p12571_p1 = scmp.ne.s32.totalorder %s13415_s5, %s12570_s13  ;;  %p12575_p6 = scmp.lt.s32.totalorder %s13415_s5, %s13168_s30 }
  0xda   : > { %p12576_p7 = scmp.lt.s32.totalorder %s12574_s3, %s12570_s13 }
  0xdb   : > { %p12572_p4 = pnand %p12571_p1, %p13298_p3 }
  0xdc   : > { %p12577_p5 = por %p12576_p7, %p12575_p6 }
  0xdd   : > { %p12573_p2 = pneg %p12572_p4 }
  0xdf   : > { %p12578_p9 = pnand %p12577_p5, %p12573_p2 }
  0xe1   : > { %12581 = shalt.err (!%p12578_p9)
}
  0xe2   : > { %s12582_s17 = scalar_lea.vmem %s1113_s9, 16  ;;  %s13064_s14 = smov [#allocation19]  }
  0xe3   : > { %p12583_p11 = scmp.ne.s32.totalorder %s1113_s9, %s12582_s17  ;;  %s12586_s0 = sshll.u32 %s13064_s14, 4  ;;  %s12587_s0 = int_to_ptr.vmem [resolvable:$false] %s12586_s0 }
  0xe4   : > { %s12588_s7 = scalar_lea.vmem %s12587_s0, 32  ;;  %p12589_p12 = scmp.lt.s32.totalorder %s1113_s9, %s12587_s0 }
  0xe5   : > { %p12584_p8 = pnand %p12583_p11, %p13298_p3  ;;  %p12590_p13 = scmp.lt.s32.totalorder %s12588_s7, %s12582_s17 }
  0xe7   : > { %p12585_p10 = pneg %p12584_p8  ;;  %p12591_p0 = por %p12590_p13, %p12589_p12 }
  0xe9   : > { %p12592_p1 = pnand %p12591_p0, %p12585_p10 }
  0xeb   : > { %12595 = shalt.err (!%p12592_p1)
}
  0xec   : > { %12085 = dma.hbm_to_vmem [thread:$0]  (%p13298_p3), %s13415_s5, 16, %s1113_s9, %s15027_s28  }
  0xed   : > { %s13435_s13 = scalar_lea.hbm %s15115_s12, %s13357_s11  ;;  %s1143_s7 = scalar_lea.vmem [#allocation22], %s13354_s4 }
  0xee   : > { %s1150_s3 = sshll.u32 %s1143_s7, 4  ;;  %s15028_s17 = scalar_lea.sflag [#allocation23], %s13351_s1  ;;  %s1151_s3 = int_to_ptr.vmem [resolvable:$true] %s1150_s3 }
  0xef   : > { %s12596_s14 = scalar_lea.hbm %s13435_s13, 16  ;;  %s12600_s0 = scalar_lea.hbm %s15115_s12, 32 }
  0xf0   : > { %p12597_p4 = scmp.ne.s32.totalorder %s13435_s13, %s12596_s14  ;;  %p12601_p7 = scmp.lt.s32.totalorder %s13435_s13, %s15115_s12 }
  0xf1   : > { %p12602_p5 = scmp.lt.s32.totalorder %s12600_s0, %s12596_s14 }
  0xf2   : > { %p12598_p2 = pnand %p12597_p4, %p13298_p3 }
  0xf3   : > { %p12603_p9 = por %p12602_p5, %p12601_p7 }
  0xf4   : > { %p12599_p6 = pneg %p12598_p2 }
  0xf6   : > { %p12604_p11 = pnand %p12603_p9, %p12599_p6 }
  0xf8   : > { %12607 = shalt.err (!%p12604_p11)
}
  0xf9   : > { %s12608_s5 = scalar_lea.vmem %s1151_s3, 16  ;;  %s13065_s9 = smov [#allocation22]  }
  0xfa   : > { %p12609_p8 = scmp.ne.s32.totalorder %s1151_s3, %s12608_s5  ;;  %s12612_s7 = sshll.u32 %s13065_s9, 4  ;;  %s12613_s7 = int_to_ptr.vmem [resolvable:$false] %s12612_s7 }
  0xfb   : > { %s12614_s28 = scalar_lea.vmem %s12613_s7, 32  ;;  %p12615_p13 = scmp.lt.s32.totalorder %s1151_s3, %s12613_s7 }
  0xfc   : > { %p12610_p10 = pnand %p12609_p8, %p13298_p3  ;;  %p12616_p0 = scmp.lt.s32.totalorder %s12614_s28, %s12608_s5 }
  0xfe   : > { %p12611_p12 = pneg %p12610_p10  ;;  %p12617_p1 = por %p12616_p0, %p12615_p13 }
 0x100   : > { %p12618_p4 = pnand %p12617_p1, %p12611_p12 }
 0x102   : > { %12621 = shalt.err (!%p12618_p4)
}
 0x103   : > { %12087 = dma.hbm_to_vmem [thread:$0]  (%p13298_p3), %s13435_s13, 16, %s1151_s3, %s15028_s17  }
 0x104   : > { %s13455_s14 = scalar_lea.hbm %s13188_s27, %s13357_s11  ;;  %s1181_s28 = scalar_lea.vmem [#allocation25], %s13354_s4 }
 0x105   : > { %s1188_s0 = sshll.u32 %s1181_s28, 4  ;;  %s15030_s5 = scalar_lea.sflag [#allocation26], %s13351_s1  ;;  %s1189_s0 = int_to_ptr.vmem [resolvable:$true] %s1188_s0 }
 0x106   : > { %s12622_s9 = scalar_lea.hbm %s13455_s14, 16  ;;  %s12626_s7 = scalar_lea.hbm %s13188_s27, 32 }
 0x107   : > { %p12623_p2 = scmp.ne.s32.totalorder %s13455_s14, %s12622_s9  ;;  %p12627_p5 = scmp.lt.s32.totalorder %s13455_s14, %s13188_s27 }
 0x108   : > { %p12628_p9 = scmp.lt.s32.totalorder %s12626_s7, %s12622_s9 }
 0x109   : > { %p12624_p6 = pnand %p12623_p2, %p13298_p3 }
 0x10a   : > { %p12629_p11 = por %p12628_p9, %p12627_p5 }
 0x10b   : > { %p12625_p7 = pneg %p12624_p6 }
 0x10d   : > { %p12630_p8 = pnand %p12629_p11, %p12625_p7 }
 0x10f   : > { %12633 = shalt.err (!%p12630_p8)
}
 0x110   : > { %s12634_s13 = scalar_lea.vmem %s1189_s0, 16  ;;  %s13066_s3 = smov [#allocation25]  }
 0x111   : > { %p12635_p10 = scmp.ne.s32.totalorder %s1189_s0, %s12634_s13  ;;  %s12638_s28 = sshll.u32 %s13066_s3, 4  ;;  %s12639_s28 = int_to_ptr.vmem [resolvable:$false] %s12638_s28 }
 0x112   : > { %s12640_s17 = scalar_lea.vmem %s12639_s28, 32  ;;  %p12641_p0 = scmp.lt.s32.totalorder %s1189_s0, %s12639_s28 }
 0x113   : > { %p12636_p12 = pnand %p12635_p10, %p13298_p3  ;;  %p12642_p1 = scmp.lt.s32.totalorder %s12640_s17, %s12634_s13 }
 0x115   : > { %p12637_p13 = pneg %p12636_p12  ;;  %p12643_p4 = por %p12642_p1, %p12641_p0 }
 0x117   : > { %p12644_p2 = pnand %p12643_p4, %p12637_p13 }
 0x119   : > { %12647 = shalt.err (!%p12644_p2)
}
 0x11a   : > { %12089 = dma.hbm_to_vmem [thread:$0]  (%p13298_p3), %s13455_s14, 16, %s1189_s0, %s15030_s5  }
 0x11b   : > { %s13475_s9 = scalar_lea.hbm %s15112_s24, %s13357_s11  ;;  %s1215_s17 = scalar_lea.vmem [#allocation28], %s13354_s4 }
 0x11c   : > { %s1222_s7 = sshll.u32 %s1215_s17, 4  ;;  %s13480_s13 = scalar_lea.hbm %s15113_s21, %s13357_s11  ;;  %s1223_s7 = int_to_ptr.vmem [resolvable:$true] %s1222_s7 }
 0x11d   : > { %s15031_s3 = scalar_lea.sflag [#allocation29], %s13351_s1  ;;  %s12648_s28 = scalar_lea.hbm %s13475_s9, 16 }
 0x11e   : > { %p12649_p6 = scmp.ne.s32.totalorder %s13475_s9, %s12648_s28  ;;  %s12652_s8 = scalar_lea.hbm %s15112_s24, 32 }
 0x11f   : > { %p12653_p9 = scmp.lt.s32.totalorder %s13475_s9, %s15112_s24  ;;  %p12654_p11 = scmp.lt.s32.totalorder %s12652_s8, %s12648_s28 }
 0x120   : > { %p12650_p7 = pnand %p12649_p6, %p13298_p3 }
 0x121   : > { %p12655_p8 = por %p12654_p11, %p12653_p9 }
 0x122   : > { %p12651_p5 = pneg %p12650_p7 }
 0x124   : > { %p12656_p10 = pnand %p12655_p8, %p12651_p5 }
 0x126   : > { %12659 = shalt.err (!%p12656_p10)
}
 0x127   : > { %s12660_s14 = scalar_lea.vmem %s1223_s7, 16  ;;  %s13067_s0 = smov [#allocation28]  }
 0x128   : > { %p12661_p12 = scmp.ne.s32.totalorder %s1223_s7, %s12660_s14  ;;  %s12664_s17 = sshll.u32 %s13067_s0, 4  ;;  %s12665_s17 = int_to_ptr.vmem [resolvable:$false] %s12664_s17 }
 0x129   : > { %s12666_s5 = scalar_lea.vmem %s12665_s17, 32  ;;  %p12667_p1 = scmp.lt.s32.totalorder %s1223_s7, %s12665_s17 }
 0x12a   : > { %p12662_p13 = pnand %p12661_p12, %p13298_p3  ;;  %p12668_p4 = scmp.lt.s32.totalorder %s12666_s5, %s12660_s14 }
 0x12c   : > { %p12663_p0 = pneg %p12662_p13  ;;  %p12669_p2 = por %p12668_p4, %p12667_p1 }
 0x12e   : > { %p12670_p6 = pnand %p12669_p2, %p12663_p0 }
 0x130   : > { %12673 = shalt.err (!%p12670_p6)
}
 0x131   : > { %12091 = dma.hbm_to_vmem [thread:$0]  (%p13298_p3), %s13475_s9, 16, %s1223_s7, %s15031_s3  }
 0x132   : > { %s996_s8 = scalar_lea.vmem [#allocation12], %s13354_s4  ;;  %s13500_s28 = scalar_lea.hbm %s13138_s29, %s13357_s11 }
 0x133   : > { %s1003_s5 = sshll.u32 %s996_s8, 4  ;;  %s12674_s14 = scalar_lea.hbm %s13480_s13, 16  ;;  %s1004_s5 = int_to_ptr.vmem [resolvable:$true] %s1003_s5 }
 0x134   : > { %p12675_p7 = scmp.ne.s32.totalorder %s13480_s13, %s12674_s14  ;;  %s12678_s0 = scalar_lea.hbm %s15113_s21, 32 }
 0x135   : > { %p12679_p11 = scmp.lt.s32.totalorder %s13480_s13, %s15113_s21  ;;  %p12680_p8 = scmp.lt.s32.totalorder %s12678_s0, %s12674_s14 }
 0x136   : > { %p12676_p5 = pnand %p12675_p7, %p13298_p3 }
 0x137   : > { %p12681_p10 = por %p12680_p8, %p12679_p11 }
 0x138   : > { %p12677_p9 = pneg %p12676_p5 }
 0x13a   : > { %p12682_p12 = pnand %p12681_p10, %p12677_p9 }
 0x13c   : > { %12685 = shalt.err (!%p12682_p12)
}
 0x13d   : > { %s12686_s17 = scalar_lea.vmem %s1004_s5, 16  ;;  %s13068_s9 = smov [#allocation12]  }
 0x13e   : > { %p12687_p13 = scmp.ne.s32.totalorder %s1004_s5, %s12686_s17  ;;  %s12690_s7 = sshll.u32 %s13068_s9, 4  ;;  %s12691_s7 = int_to_ptr.vmem [resolvable:$false] %s12690_s7 }
 0x13f   : > { %s12692_s8 = scalar_lea.vmem %s12691_s7, 32  ;;  %p12693_p4 = scmp.lt.s32.totalorder %s1004_s5, %s12691_s7 }
 0x140   : > { %p12688_p0 = pnand %p12687_p13, %p13298_p3  ;;  %p12694_p2 = scmp.lt.s32.totalorder %s12692_s8, %s12686_s17 }
 0x142   : > { %p12689_p1 = pneg %p12688_p0  ;;  %p12695_p6 = por %p12694_p2, %p12693_p4 }
 0x144   : > { %p12696_p7 = pnand %p12695_p6, %p12689_p1 }
 0x146   : > { %12699 = shalt.err (!%p12696_p7)
}
 0x147   : > { %s15129_s14 = scalar_lea.sflag [#allocation11], %s13351_s1  ;;  %s1030_s0 = scalar_lea.vmem [#allocation15], %s13354_s4 }
 0x148   : > { %12080 = dma.hbm_to_vmem [thread:$0]  (%p13298_p3), %s13480_s13, 16, %s1004_s5, %s15129_s14  }
 0x149   : > { %s1037_s17 = sshll.u32 %s1030_s0, 4  ;;  %s13519_s9 = scalar_lea.hbm %s15114_s19, %s13357_s11  ;;  %s1038_s17 = int_to_ptr.vmem [resolvable:$true] %s1037_s17 }
 0x14a   : > { %s12700_s7 = scalar_lea.hbm %s13500_s28, 16  ;;  %s12704_s8 = scalar_lea.hbm %s13138_s29, 32 }
 0x14b   : > { %p12701_p5 = scmp.ne.s32.totalorder %s13500_s28, %s12700_s7  ;;  %p12705_p8 = scmp.lt.s32.totalorder %s13500_s28, %s13138_s29 }
 0x14c   : > { %p12706_p10 = scmp.lt.s32.totalorder %s12704_s8, %s12700_s7 }
 0x14d   : > { %p12702_p9 = pnand %p12701_p5, %p13298_p3 }
 0x14e   : > { %p12707_p12 = por %p12706_p10, %p12705_p8 }
 0x14f   : > { %p12703_p11 = pneg %p12702_p9 }
 0x151   : > { %p12708_p13 = pnand %p12707_p12, %p12703_p11 }
 0x153   : > { %12711 = shalt.err (!%p12708_p13)
}
 0x154   : > { %s12712_s3 = scalar_lea.vmem %s1038_s17, 16  ;;  %s13069_s13 = smov [#allocation15]  }
 0x155   : > { %p12713_p0 = scmp.ne.s32.totalorder %s1038_s17, %s12712_s3  ;;  %s12716_s5 = sshll.u32 %s13069_s13, 4  ;;  %s12717_s5 = int_to_ptr.vmem [resolvable:$false] %s12716_s5 }
 0x156   : > { %s12718_s14 = scalar_lea.vmem %s12717_s5, 32  ;;  %p12719_p2 = scmp.lt.s32.totalorder %s1038_s17, %s12717_s5 }
 0x157   : > { %p12714_p1 = pnand %p12713_p0, %p13298_p3  ;;  %p12720_p6 = scmp.lt.s32.totalorder %s12718_s14, %s12712_s3 }
 0x159   : > { %p12715_p4 = pneg %p12714_p1  ;;  %p12721_p7 = por %p12720_p6, %p12719_p2 }
 0x15b   : > { %p12722_p5 = pnand %p12721_p7, %p12715_p4 }
 0x15d   : > { %12725 = shalt.err (!%p12722_p5)
}
 0x15e   : > { %s15130_s0 = scalar_lea.sflag [#allocation14], %s13351_s1  ;;  %s1080_s7 = scalar_lea.vmem [#allocation18], %s13354_s4 }
 0x15f   : > { %12082 = dma.hbm_to_vmem [thread:$0]  (%p13298_p3), %s13500_s28, 16, %s1038_s17, %s15130_s0  }
 0x160   : > { %s1087_s8 = sshll.u32 %s1080_s7, 4  ;;  %s13537_s3 = sshll.u32 %s13354_s4, 5  ;;  %s1088_s8 = int_to_ptr.vmem [resolvable:$true] %s1087_s8 }
 0x161   : > { %s12726_s13 = scalar_lea.hbm %s13519_s9, 16  ;;  %s12730_s5 = scalar_lea.hbm %s15114_s19, 32 }
 0x162   : > { %p12727_p9 = scmp.ne.s32.totalorder %s13519_s9, %s12726_s13  ;;  %p12731_p10 = scmp.lt.s32.totalorder %s13519_s9, %s15114_s19 }
 0x163   : > { %p12732_p12 = scmp.lt.s32.totalorder %s12730_s5, %s12726_s13 }
 0x164   : > { %p12728_p11 = pnand %p12727_p9, %p13298_p3 }
 0x165   : > { %p12733_p13 = por %p12732_p12, %p12731_p10 }
 0x166   : > { %p12729_p8 = pneg %p12728_p11 }
 0x168   : > { %p12734_p0 = pnand %p12733_p13, %p12729_p8 }
 0x16a   : > { %12737 = shalt.err (!%p12734_p0)
}
 0x16b   : > { %s12738_s14 = scalar_lea.vmem %s1088_s8, 16  ;;  %s13070_s28 = smov [#allocation18]  }
 0x16c   : > { %p12739_p1 = scmp.ne.s32.totalorder %s1088_s8, %s12738_s14  ;;  %s12742_s17 = sshll.u32 %s13070_s28, 4  ;;  %s12743_s17 = int_to_ptr.vmem [resolvable:$false] %s12742_s17 }
 0x16d   : > { %s12744_s0 = scalar_lea.vmem %s12743_s17, 32  ;;  %p12745_p6 = scmp.lt.s32.totalorder %s1088_s8, %s12743_s17 }
 0x16e   : > { %p12740_p4 = pnand %p12739_p1, %p13298_p3  ;;  %p12746_p7 = scmp.lt.s32.totalorder %s12744_s0, %s12738_s14 }
 0x170   : > { %p12741_p2 = pneg %p12740_p4  ;;  %p12747_p5 = por %p12746_p7, %p12745_p6 }
 0x172   : > { %p12748_p9 = pnand %p12747_p5, %p12741_p2 }
 0x174   : > { %12751 = shalt.err (!%p12748_p9)
}
 0x175   : > { %s15131_s7 = scalar_lea.sflag [#allocation17], %s13351_s1  ;;  %s13554_s13 = sshll.u32 %s13020_s22, 9 }
 0x176   : > { %12084 = dma.hbm_to_vmem [thread:$0]  (%p13298_p3), %s13519_s9, 16, %s1088_s8, %s15131_s7  }
 0x177   : > { %s1123_s5 = scalar_lea.vmem [#allocation21], %s13537_s3  ;;  %s13559_s28 = scalar_lea.hbm %s15116_s6, %s13554_s13 }
 0x178   : > { %s1130_s14 = sshll.u32 %s1123_s5, 4  ;;  %s12752_s17 = scalar_lea.hbm %s13559_s28, 512  ;;  %s13561_s14 = int_to_ptr.vmem [resolvable:$true] %s1130_s14 }
 0x179   : > { %p12753_p11 = scmp.ne.s32.totalorder %s13559_s28, %s12752_s17  ;;  %s12756_s0 = scalar_lea.hbm %s15116_s6, 1024 }
 0x17a   : > { %p12757_p12 = scmp.lt.s32.totalorder %s13559_s28, %s15116_s6  ;;  %p12758_p13 = scmp.lt.s32.totalorder %s12756_s0, %s12752_s17 }
 0x17b   : > { %p12754_p8 = pnand %p12753_p11, %p13298_p3 }
 0x17c   : > { %p12759_p0 = por %p12758_p13, %p12757_p12 }
 0x17d   : > { %p12755_p10 = pneg %p12754_p8 }
 0x17f   : > { %p12760_p1 = pnand %p12759_p0, %p12755_p10 }
 0x181   : > { %12763 = shalt.err (!%p12760_p1)
}
 0x182   : > { %s12764_s9 = scalar_lea.vmem %s13561_s14, 512  ;;  %s13071_s8 = smov [#allocation21]  }
 0x183   : > { %p12765_p4 = scmp.ne.s32.totalorder %s13561_s14, %s12764_s9  ;;  %s12768_s7 = sshll.u32 %s13071_s8, 4  ;;  %s12769_s7 = int_to_ptr.vmem [resolvable:$false] %s12768_s7 }
 0x184   : > { %s12770_s5 = scalar_lea.vmem %s12769_s7, 1024  ;;  %p12771_p7 = scmp.lt.s32.totalorder %s13561_s14, %s12769_s7 }
 0x185   : > { %p12766_p2 = pnand %p12765_p4, %p13298_p3  ;;  %p12772_p5 = scmp.lt.s32.totalorder %s12770_s5, %s12764_s9 }
 0x187   : > { %p12767_p6 = pneg %p12766_p2  ;;  %p12773_p9 = por %p12772_p5, %p12771_p7 }
 0x189   : > { %p12774_p11 = pnand %p12773_p9, %p12767_p6 }
 0x18b   : > { %12777 = shalt.err (!%p12774_p11)
}
 0x18c   : > { %s13072_s17 = smov 128   ;;  %s15132_s0 = sld [smem:[#allocation61_spill]] }
 0x18d   : > { %s15134_s12 = sld [smem:[#allocation62_spill]]  ;;  %s13073_s8 = smov 8  }
 0x18e   : > { %s15135_s9 = scalar_lea.sflag [#allocation20], %s13351_s1  ;;  %s1161_s5 = scalar_lea.vmem [#allocation24], %s13537_s3 }
 0x18f   : > { %12086 = dma.hbm_to_vmem [thread:$0]  (%p13298_p3), %s13559_s28, 512, %s13561_s14, %s15135_s9, %s13072_s17, %s13072_s17, %s13073_s8  }
 0x190   : > { %s1168_s19 = sshll.u32 %s1161_s5, 4  ;;  %s13589_s19 = int_to_ptr.vmem [resolvable:$true] %s1168_s19 }
 0x192   : > { %s15133_s6 = smov %s15132_s0  ;;  %s13586_s7 = scalar_lea.hbm %s15132_s0, %s13554_s13 }
 0x193   : > { %s13593_s21 = scalar_lea.hbm %s15134_s12, %s13357_s11  ;;  %s12778_s24 = scalar_lea.hbm %s13586_s7, 512 }
 0x194   : > { %p12779_p8 = scmp.ne.s32.totalorder %s13586_s7, %s12778_s24  ;;  %s12782_s25 = scalar_lea.hbm %s15133_s6, 1024 }
 0x195   : > { %p12783_p13 = scmp.lt.s32.totalorder %s13586_s7, %s15133_s6  ;;  %p12784_p0 = scmp.lt.s32.totalorder %s12782_s25, %s12778_s24 }
 0x196   : > { %p12780_p10 = pnand %p12779_p8, %p13298_p3 }
 0x197   : > { %p12785_p1 = por %p12784_p0, %p12783_p13 }
 0x198   : > { %p12781_p12 = pneg %p12780_p10 }
 0x19a   : > { %p12786_p4 = pnand %p12785_p1, %p12781_p12 }
 0x19c   : > { %12789 = shalt.err (!%p12786_p4)
}
 0x19d   : > { %s12790_s14 = scalar_lea.vmem %s13589_s19, 512  ;;  %s13074_s28 = smov [#allocation24]  }
 0x19e   : > { %p12791_p2 = scmp.ne.s32.totalorder %s13589_s19, %s12790_s14  ;;  %s12794_s0 = sshll.u32 %s13074_s28, 4  ;;  %s12795_s0 = int_to_ptr.vmem [resolvable:$false] %s12794_s0 }
 0x19f   : > { %s12796_s9 = scalar_lea.vmem %s12795_s0, 1024  ;;  %p12797_p5 = scmp.lt.s32.totalorder %s13589_s19, %s12795_s0 }
 0x1a0   : > { %p12792_p6 = pnand %p12791_p2, %p13298_p3  ;;  %p12798_p9 = scmp.lt.s32.totalorder %s12796_s9, %s12790_s14 }
 0x1a2   : > { %p12793_p7 = pneg %p12792_p6  ;;  %p12799_p11 = por %p12798_p9, %p12797_p5 }
 0x1a4   : > { %p12800_p8 = pnand %p12799_p11, %p12793_p7 }
 0x1a6   : > { %12803 = shalt.err (!%p12800_p8)
}
 0x1a7   : > { %s15136_s25 = scalar_lea.sflag [#allocation23], %s13351_s1  ;;  %s15137_s24 = sld [smem:[#allocation64_spill]] }
 0x1a8   : > { %12088 = dma.hbm_to_vmem [thread:$0]  (%p13298_p3), %s13586_s7, 512, %s13589_s19, %s15136_s25, %s13072_s17, %s13072_s17, %s13073_s8  }
 0x1a9   : > { %s1198_s5 = scalar_lea.vmem [#allocation27], %s13354_s4  ;;  %s12804_s0 = scalar_lea.hbm %s13593_s21, 16 }
 0x1aa   : > { %s1205_s14 = sshll.u32 %s1198_s5, 4  ;;  %p12805_p10 = scmp.ne.s32.totalorder %s13593_s21, %s12804_s0  ;;  %s1206_s14 = int_to_ptr.vmem [resolvable:$true] %s1205_s14 }
 0x1ab   : > { %s12808_s9 = scalar_lea.hbm %s15134_s12, 32  ;;  %p12809_p0 = scmp.lt.s32.totalorder %s13593_s21, %s15134_s12 }
 0x1ac   : > { %p12806_p12 = pnand %p12805_p10, %p13298_p3  ;;  %p12810_p1 = scmp.lt.s32.totalorder %s12808_s9, %s12804_s0 }
 0x1ad   : > { %s13619_s28 = scalar_lea.hbm %s15137_s24, %s13357_s11 }
 0x1ae   : > { %p12807_p13 = pneg %p12806_p12  ;;  %p12811_p4 = por %p12810_p1, %p12809_p0 }
 0x1b0   : > { %p12812_p2 = pnand %p12811_p4, %p12807_p13 }
 0x1b2   : > { %12815 = shalt.err (!%p12812_p2)
}
 0x1b3   : > { %s12816_s6 = scalar_lea.vmem %s1206_s14, 16  ;;  %s13075_s19 = smov [#allocation27]  }
 0x1b4   : > { %p12817_p6 = scmp.ne.s32.totalorder %s1206_s14, %s12816_s6  ;;  %s12820_s11 = sshll.u32 %s13075_s19, 4  ;;  %s12821_s11 = int_to_ptr.vmem [resolvable:$false] %s12820_s11 }
 0x1b5   : > { %s12822_s7 = scalar_lea.vmem %s12821_s11, 32  ;;  %p12823_p9 = scmp.lt.s32.totalorder %s1206_s14, %s12821_s11 }
 0x1b6   : > { %p12818_p7 = pnand %p12817_p6, %p13298_p3  ;;  %p12824_p11 = scmp.lt.s32.totalorder %s12822_s7, %s12816_s6 }
 0x1b8   : > { %p12819_p5 = pneg %p12818_p7  ;;  %p12825_p8 = por %p12824_p11, %p12823_p9 }
 0x1ba   : > { %p12826_p10 = pnand %p12825_p8, %p12819_p5 }
 0x1bc   : > { %12829 = shalt.err (!%p12826_p10)
}
 0x1bd   : > { %s15138_s25 = scalar_lea.sflag [#allocation26], %s13351_s1  ;;  %s1232_s5 = scalar_lea.vmem [#allocation30], %s13354_s4 }
 0x1be   : > { %12090 = dma.hbm_to_vmem [thread:$0]  (%p13298_p3), %s13593_s21, 16, %s1206_s14, %s15138_s25  }
 0x1bf   : > { %s1239_s0 = sshll.u32 %s1232_s5, 4  ;;  %s12830_s6 = scalar_lea.hbm %s13619_s28, 16  ;;  %s1240_s0 = int_to_ptr.vmem [resolvable:$true] %s1239_s0 }
 0x1c0   : > { %p12831_p12 = scmp.ne.s32.totalorder %s13619_s28, %s12830_s6  ;;  %s12834_s9 = scalar_lea.hbm %s15137_s24, 32 }
 0x1c1   : > { %p12835_p1 = scmp.lt.s32.totalorder %s13619_s28, %s15137_s24  ;;  %p12836_p4 = scmp.lt.s32.totalorder %s12834_s9, %s12830_s6 }
 0x1c2   : > { %p12832_p13 = pnand %p12831_p12, %p13298_p3 }
 0x1c3   : > { %p12837_p2 = por %p12836_p4, %p12835_p1 }
 0x1c4   : > { %p12833_p0 = pneg %p12832_p13 }
 0x1c6   : > { %p12838_p6 = pnand %p12837_p2, %p12833_p0 }
 0x1c8   : > { %12841 = shalt.err (!%p12838_p6)
}
 0x1c9   : > { %s12842_s19 = scalar_lea.vmem %s1240_s0, 16  ;;  %s13076_s21 = smov [#allocation30]  }
 0x1ca   : > { %p12843_p7 = scmp.ne.s32.totalorder %s1240_s0, %s12842_s19  ;;  %s12846_s14 = sshll.u32 %s13076_s21, 4  ;;  %s12847_s14 = int_to_ptr.vmem [resolvable:$false] %s12846_s14 }
 0x1cb   : > { %s12848_s11 = scalar_lea.vmem %s12847_s14, 32  ;;  %p12849_p11 = scmp.lt.s32.totalorder %s1240_s0, %s12847_s14 }
 0x1cc   : > { %p12844_p5 = pnand %p12843_p7, %p13298_p3  ;;  %p12850_p8 = scmp.lt.s32.totalorder %s12848_s11, %s12842_s19 }
 0x1ce   : > { %p12845_p9 = pneg %p12844_p5  ;;  %p12851_p10 = por %p12850_p8, %p12849_p11 }
 0x1d0   : > { %p12852_p12 = pnand %p12851_p10, %p12845_p9 }
 0x1d2   : > { %12855 = shalt.err (!%p12852_p12)
}
 0x1d3   : > { %s15139_s7 = scalar_lea.sflag [#allocation29], %s13351_s1  ;;  %s15140_s25 = sld [smem:[#allocation66_spill]] }
 0x1d4   : > { %12092 = dma.hbm_to_vmem [thread:$0]  (%p13298_p3), %s13619_s28, 16, %s1240_s0, %s15139_s7  }
 0x1d5   : > { %s1256_s6 = scalar_lea.vmem [#allocation31], %s13537_s3  ;;  %s1253_s19 = scalar_lea.sflag [#allocation32], %s13354_s4 }
 0x1d6   : > { %s1263_s9 = sshll.u32 %s1256_s6, 4  ;;  %s13655_s9 = int_to_ptr.vmem [resolvable:$true] %s1263_s9 }
 0x1d9   : > { %s13652_s5 = scalar_lea.hbm %s15140_s25, %s13554_s13  ;;  %s12860_s21 = scalar_lea.hbm %s15140_s25, 1024 }
 0x1da   : > { %s12856_s1 = scalar_lea.hbm %s13652_s5, 512  ;;  %p12861_p4 = scmp.lt.s32.totalorder %s13652_s5, %s15140_s25 }
 0x1db   : > { %p12857_p13 = scmp.ne.s32.totalorder %s13652_s5, %s12856_s1  ;;  %p12862_p2 = scmp.lt.s32.totalorder %s12860_s21, %s12856_s1 }
 0x1dd   : > { %p12858_p0 = pnand %p12857_p13, %p13298_p3  ;;  %p12863_p6 = por %p12862_p2, %p12861_p4 }
 0x1df   : > { %p12859_p1 = pneg %p12858_p0 }
 0x1e1   : > { %p12864_p7 = pnand %p12863_p6, %p12859_p1 }
 0x1e3   : > { %12867 = shalt.err (!%p12864_p7)
}
 0x1e4   : > { %s12868_s3 = scalar_lea.vmem %s13655_s9, 512  ;;  %s13077_s4 = smov [#allocation31]  }
 0x1e5   : > { %p12869_p5 = scmp.ne.s32.totalorder %s13655_s9, %s12868_s3  ;;  %s12872_s13 = sshll.u32 %s13077_s4, 4  ;;  %s12873_s13 = int_to_ptr.vmem [resolvable:$false] %s12872_s13 }
 0x1e6   : > { %s12874_s28 = scalar_lea.vmem %s12873_s13, 1024  ;;  %p12875_p8 = scmp.lt.s32.totalorder %s13655_s9, %s12873_s13 }
 0x1e7   : > { %p12870_p9 = pnand %p12869_p5, %p13298_p3  ;;  %p12876_p10 = scmp.lt.s32.totalorder %s12874_s28, %s12868_s3 }
 0x1e9   : > { %p12871_p11 = pneg %p12870_p9  ;;  %p12877_p12 = por %p12876_p10, %p12875_p8 }
 0x1eb   : > { %p12878_p13 = pnand %p12877_p12, %p12871_p11 }
 0x1ed   : > { %12881 = shalt.err (!%p12878_p13)
}
 0x1ee   : > { %12093 = dma.hbm_to_vmem [thread:$0]  (%p13298_p3), %s13652_s5, 512, %s13655_s9, %s1253_s19, %s13072_s17, %s13072_s17, %s13073_s8  }
 0x1ef PF: > { %p15141_p0 = scmp.ne.s32.totalorder %s15123_s20, 0 }
 0x1f1   : > { %1295 = sbr.rel (%p15141_p0) target bundleno = 21771 (0x550b), region = 136 }
 0x1f6   : > { %p15142_p1 = scmp.eq.s32.totalorder %s13289_s26, 0 }
 0x1f8   : > { %12955 = dma.done.wait (%p15142_p1), [#allocation5], 256   ;;  %p15143_p4 = pmov %p15142_p1 }
 0x1f9   : > { %p15144_p2 = pmov %p15142_p1 }
 0x1fa   : > { %12957 = vsyncadd (%p15143_p4), [#allocation5], 4294967040 }
 0x1fb   : > { %12959 = dma.done.wait (%p15144_p2), [#allocation8], 512   ;;  %p15145_p6 = pmov %p15142_p1 }
 0x1fc   : > { %s13688_s2 = sand.u32 1, %s13289_s26   ;;  %s13691_s20 = sand.u32 1, %s13008_s15  }
 0x1fd   : > { %12961 = vsyncadd (%p15145_p6), [#allocation8], 4294966784  ;;  %s1310_s17 = scalar_lea.sflag [#allocation11], %s13688_s2  ;;  %p15146_p3 = scmp.ne.s32.totalorder %s15121_s10, 0 }
 0x1ff   : > { %12963 = dma.done.wait (%p15146_p3), %s1310_s17, 32  }
 0x200   : > { %12965 = vsyncadd (%p15146_p3), %s1310_s17, 4294967264  ;;  %s1326_s14 = scalar_lea.sflag [#allocation14], %s13688_s2 }
 0x201   : > { %12967 = dma.done.wait (%p15146_p3), %s1326_s14, 32  }
 0x202   : > { %12969 = vsyncadd (%p15146_p3), %s1326_s14, 4294967264  ;;  %s1342_s5 = scalar_lea.sflag [#allocation17], %s13688_s2 }
 0x203   : > { %12971 = dma.done.wait (%p15146_p3), %s1342_s5, 32  }
 0x204   : > { %12973 = vsyncadd (%p15146_p3), %s1342_s5, 4294967264  ;;  %s1358_s19 = scalar_lea.sflag [#allocation20], %s13688_s2 }
 0x205   : > { %12975 = dma.done.wait (%p15146_p3), %s1358_s19, 528  }
 0x206   : > { %12977 = vsyncadd (%p15146_p3), %s1358_s19, 4294966768  ;;  %s10998_s21 = sshll.u32 %s13691_s20, 5  ;;  %s1375_s4 = scalar_lea.sflag [#allocation23], %s13688_s2 }
 0x207   : > { %s13721_s3 = scalar_lea.vmem [#allocation21], %s10998_s21 }
 0x208   : > { %12979 = dma.done.wait (%p15146_p3), %s1375_s4, 528  }
 0x209   : > { %12981 = vsyncadd (%p15146_p3), %s1375_s4, 4294966768  ;;  %s13729_s28 = scalar_lea.vmem [#allocation24], %s10998_s21  ;;  %s1392_s17 = scalar_lea.sflag [#allocation26], %s13688_s2 }
 0x20a   : > { %12983 = dma.done.wait (%p15146_p3), %s1392_s17, 32  }
 0x20b   : > { %12985 = vsyncadd (%p15146_p3), %s1392_s17, 4294967264  ;;  %s1408_s19 = scalar_lea.sflag [#allocation29], %s13688_s2 }
 0x20c   : > { %12987 = dma.done.wait (%p15146_p3), %s1408_s19, 32  }
 0x20d   : > { %12989 = vsyncadd (%p15146_p3), %s1408_s19, 4294967264  ;;  %s1424_s14 = scalar_lea.sflag [#allocation32], %s13691_s20  ;;  %s13746_s9 = scalar_lea.vmem [#allocation31], %s10998_s21 }
 0x20e   : > { %12991 = dma.done.wait (%p15146_p3), %s1424_s14, 512  }
 0x20f   : > { %12993 = vsyncadd (%p15146_p3), %s1424_s14, 4294966784  ;;  %s15147_s2 = sld [smem:[#allocation65_spill]]  ;;  %p1589_p7 = scmp.lt.s32.totalorder %s13016_s18, 1 }
 0x210   : > { %s15148_s17 = sld [smem:[#allocation54_spill]]  ;;  %p11009_p5 = scmp.ne.s32.totalorder %s13016_s18, 0 }
 0x211   : > { %s15149_s1 = sld [smem:[#allocation56_spill]] }
 0x212   : > { %s15150_s5 = sld [smem:[#allocation58_spill]] }
 0x213   : > { %s15151_s13 = sld [smem:[#allocation67_spill]] }
 0x214   : > { %s15152_s19 = sld [smem:[#allocation69_spill]] }
 0x215   : > { %s15153_s6 = sld [smem:[#allocation68_spill]] }
 0x216   : > { %s13754_s0 = scalar_select %p1589_p7, %s13016_s18, 1 }
 0x218   : > { %s11203_s21 = sshll.u32 %s13754_s0, 5  ;;  %s1606_s10 = scalar_lea.vmem %s15147_s2, %s13754_s0 }
 0x219   : > { %s13760_s14 = scalar_lea.vmem %s15148_s17, %s11203_s21  ;;  %s13763_s4 = scalar_lea.vmem %s15149_s1, %s11203_s21 }
 0x21a   : > { %s13766_s8 = scalar_lea.vmem %s15150_s5, %s11203_s21  ;;  %s1609_s7 = scalar_lea.vmem %s15151_s13, %s13754_s0 }
 0x21b   : > { %s11206_s11 = sshll.u32 %s13754_s0, 6  ;;  %s1617_s12 = scalar_lea.vmem %s15152_s19, %s13754_s0 }
 0x21c   : > { %s13774_s24 = scalar_lea.vmem %s15153_s6, %s11206_s11  ;;  %1623 = sbr.rel (%p11009_p5) target bundleno = 548 (0x224), region = 212 }
 0x221   : > { %v1624_v0 = vld [vmem:[#allocation4] sm:$0xff]  ;;  %vm1626_vm0 = vcmask 261120   ;;  %v1625_v1 = vld [vmem:[#allocation4 + $0x8] sm:$0xf]  ;;  %vm1628_vm1 = vcmask 257024   ;;  %v1630_v2 = vld [vmem:[#allocation7] sm:$0xff] }
 0x222   : > { %1627 = vst.msk [vmem:[#allocation2] sm:$0xff] %vm1626_vm0, %v1624_v0  ;;  %1632 = vst.msk [vmem:[#allocation3] sm:$0xff] %vm1626_vm0, %v1630_v2  ;;  %v1631_v3 = vld [vmem:[#allocation7 + $0x8] sm:$0xf] }
 0x223   : > { %1629 = vst.msk [vmem:[#allocation2 + $0x8] sm:$0xf] %vm1628_vm1, %v1625_v1  ;;  %1633 = vst.msk [vmem:[#allocation3 + $0x8] sm:$0xf] %vm1628_vm1, %v1631_v3 }
 0x224 PF: > { %vm1685_vm2 = vcmask 261120   ;;  %vm1689_vm3 = vcmask 257024   ;;  %v1643_v32 = vld [vmem:[%s13760_s14 + $0x18] sm:$0xff]  ;;  %v1642_v33 = vld [vmem:[%s13760_s14 + $0x10] sm:$0xff]  ;;  %v1641_v34 = vld [vmem:[%s13760_s14 + $0x8] sm:$0xff]  ;;  %s15154_s11 = scalar_lea.vmem [#allocation13], %s13691_s20 }
 0x225   : > { %11467 = vmatprep.subr.mxu0 %v1643_v32  ;;  %11478 = vmatprep.subr.mxu1 %v1643_v32  ;;  %v1640_v35 = vld [vmem:[%s13760_s14] sm:$0xff]  ;;  %s15155_s6 = scalar_lea.vmem [#allocation15], %s13691_s20  ;;  %s15156_s1 = scalar_lea.vmem [#allocation10], %s13691_s20  ;;  %vm13079_vm4 = vmmov 0   ;;  %vm2032_vm5 = vcmask 64512   ;;  %vm2108_vm6 = vcmask 46080  }
 0x226   : > { %11468 = vmatpush3.msra.mxu0 %v1643_v32  ;;  %11479 = vmatpush3.msra.mxu1 %v1643_v32  ;;  %v11012_v49 = vld [vmem:[%s15154_s11] ss:$0 sm:$0xff]  ;;  %s15157_s13 = scalar_lea.vmem [#allocation12], %s13691_s20  ;;  %s15158_s5 = scalar_lea.vmem [#allocation16], %s13691_s20  ;;  %vm2126_vm7 = vcmask 1045504   ;;  %vm2122_vm8 = vcmask 48128  }
 0x227   : > { %11469 = vmatprep.subr.mxu0 %v1642_v33  ;;  %11480 = vmatprep.subr.mxu1 %v1642_v33  ;;  %v11013_v51 = vld [vmem:[%s15155_s6] ss:$0 sm:$0xff]  ;;  %s13081_s2 = smov 88   ;;  %s15159_s17 = scalar_lea.vmem [#allocation22], %s13691_s20  ;;  %vm3000_vm9 = vcmask 1041408   ;;  %vm4177_vm10 = vcmask 62464  }
 0x228   : > { %11470 = vmatpush3.msra.mxu0 %v1642_v33  ;;  %11481 = vmatpush3.msra.mxu1 %v1642_v33  ;;  %v11010_v54 = vld [vmem:[%s15156_s1] ss:$0 sm:$0xff]  ;;  %s13082_s19 = smov 64   ;;  %s13083_s21 = smov 120   ;;  %vm6178_vm11 = vcmask 523264  }
 0x229   : > { %v13777_v4 = vld [vmem:[#allocation3] sm:$0xff]  ;;  %v13781_v6 = vld [vmem:[#allocation2] sm:$0xff]  ;;  %11471 = vmatprep.subr.mxu0 %v1641_v34  ;;  %11482 = vmatprep.subr.mxu1 %v1641_v34  ;;  %s13084_s14 = smov 56   ;;  %s13085_s11 = smov 112  }
 0x22a   : > { %v13779_v5 = vld [vmem:[#allocation3 + $0x8] sm:$0xf]  ;;  %v1732_v7 = vsel %vm1685_vm2, %v13777_v4, 0.0  ;;  %v1686_v8 = vsel %vm1685_vm2, %v13781_v6, 0.0  ;;  %v13787_v9 = vld [vmem:[#allocation2 + $0x8] sm:$0xf]  ;;  %11472 = vmatpush3.msra.mxu0 %v1641_v34  ;;  %11483 = vmatpush3.msra.mxu1 %v1641_v34 }
 0x22b   : > { %1733 = vadd.xlane.f32.xlu0 %v1732_v7  ;;  %1687 = vadd.xlane.f32.xlu1 %v1686_v8  ;;  %v1735_v10 = vsel %vm1689_vm3, %v13779_v5, 0.0  ;;  %v1690_v11 = vsel %vm1689_vm3, %v13787_v9, 0.0  ;;  %v11011_v59 = vld [vmem:[%s15157_s13] ss:$0 sm:$0xff]  ;;  %v1658_v7 = vld [vmem:[%s13721_s3 + $0x18] sm:$0xff]  ;;  %v1657_v8 = vld [vmem:[%s13721_s3 + $0x10] sm:$0xff] }
 0x22c   : > { %11473 = vmatprep.subr.mxu0 %v1640_v35  ;;  %11484 = vmatprep.subr.mxu1 %v1640_v35  ;;  %s13086_s6 = smov 80   ;;  %s13087_s1 = smov 72  }
 0x22d   : > { %11474 = vmatpush3.msra.mxu0 %v1640_v35  ;;  %11485 = vmatpush3.msra.mxu1 %v1640_v35  ;;  %s13088_s13 = smov 104   ;;  %p11109_p9 = scmp.ge.s32.totalorder %s13016_s18, 1 }
 0x22e   : > { %11489 = vmatprep.subr.mxu0 %v1658_v7  ;;  %s13094_s0 = smov (!%p11109_p9), 112  }
 0x22f   : > { %1736 = vadd.xlane.f32.xlu0 %v1735_v10  ;;  %1691 = vadd.xlane.f32.xlu1 %v1690_v11  ;;  %v1638_v10 = vld [vmem:[#allocation9] sm:$0xff]  ;;  %v15041_v11 = vmov 0.0  }
 0x230   : > { %11505 = vmatprep.subr.mxu1 %v15041_v11 }
 0x2b4   : > { %v1734_v12 = vpop.xlane.xlu0 %1733  ;;  %v1688_v13 = vpop.xlane.xlu1 %1687 }
 0x2b5   : > { %v1738_v14 = vmul.f32 0.03125, %v1734_v12  ;;  %v1694_v15 = vmul.f32 0.03125, %v1688_v13  ;;  %v1656_v12 = vld [vmem:[%s13721_s3 + $0x8] sm:$0xff]  ;;  %v1655_v13 = vld [vmem:[%s13721_s3] sm:$0xff]  ;;  %s13080_s3 = smov 96  }
 0x2b7   : > { %v1740_v16 = vsub.f32 %v13777_v4, %v1738_v14  ;;  %v13795_v17 = vsub.f32 %v13781_v6, %v1694_v15  ;;  %v1639_v14 = vld [vmem:[#allocation9 + $0x8] sm:$0xff]  ;;  %v11014_v15 = vld [vmem:[%s15158_s5] ss:$0 sm:$0xff]  ;;  %s13089_s5 = smov 48  }
 0x2b8   : > { %v1737_v18 = vpop.xlane.xlu0 %1736  ;;  %v1692_v19 = vpop.xlane.xlu1 %1691 }
 0x2b9   : > { %v1739_v20 = vmul.f32 0.03125, %v1737_v18  ;;  %v1742_v21 = vmul.f32 %v1740_v16, %v1740_v16  ;;  %v1695_v22 = vmul.f32 0.03125, %v1692_v19  ;;  %v1698_v23 = vmul.f32 %v13795_v17, %v13795_v17 }
 0x2bb   : > { %v1741_v24 = vsub.f32 %v13779_v5, %v1739_v20  ;;  %v1744_v25 = vsel %vm1685_vm2, %v1742_v21, 0.0  ;;  %v1697_v26 = vsub.f32 %v13787_v9, %v1695_v22  ;;  %v1700_v28 = vsel %vm1685_vm2, %v1698_v23, 0.0  ;;  %v13848_v22 = vld [vmem:[%s15159_s17] ss:$0 sm:$0xff]  ;;  %s15161_s17 = scalar_lea.vmem [#allocation18], %s13691_s20 }
 0x2bc   : > { %1745 = vadd.xlane.f32.xlu0 %v1744_v25 }
 0x2bd   : > { %v1743_v27 = vmul.f32 %v1741_v24, %v1741_v24  ;;  %v1699_v29 = vmul.f32 %v1697_v26, %v1697_v26 }
 0x2bf   : > { %v1747_v30 = vsel %vm1689_vm3, %v1743_v27, 0.0  ;;  %v1703_v31 = vsel %vm1689_vm3, %v1699_v29, 0.0 }
 0x2c0   : > { %1748 = vadd.xlane.f32.xlu1 %v1747_v30  ;;  %1701 = vadd.xlane.f32.xlu0 %v1700_v28 }
 0x2c4   : > { %1704 = vadd.xlane.f32.xlu1 %v1703_v31 }
 0x345   : > { %v1746_v36 = vpop.xlane.xlu0 %1745 }
 0x346   : > { %v1750_v37 = vmul.f32 0.03125, %v1746_v36 }
 0x348   : > { %v1752_v38 = vadd.f32 1e-05, %v1750_v37 }
 0x349   : > { %v1702_v39 = vpop.xlane.xlu0 %1701  ;;  %v1749_v40 = vpop.xlane.xlu1 %1748 }
 0x34a   : > { %12250 = vrsqrt.f32 %v1752_v38  ;;  %v1706_v41 = vmul.f32 0.03125, %v1702_v39  ;;  %v1751_v42 = vmul.f32 0.03125, %v1749_v40 }
 0x34c   : > { %v1708_v43 = vadd.f32 1e-05, %v1706_v41  ;;  %v1753_v44 = vadd.f32 1e-05, %v1751_v42 }
 0x34d   : > { %v1705_v45 = vpop.xlane.xlu1 %1704 }
 0x34e   : > { %12252 = vrsqrt.f32 %v1708_v43  ;;  %v1707_v46 = vmul.f32 0.03125, %v1705_v45  ;;  %v13889_v43 = vld [vmem:[%s13763_s4] sm:$0xff] }
 0x34f   : > { %12254 = vrsqrt.f32 %v1753_v44 }
 0x350   : > { %v1709_v47 = vadd.f32 1e-05, %v1707_v46 }
 0x352   : > { %12256 = vrsqrt.f32 %v1709_v47 }
 0x357   : > { %v12251_v48 = vpop.eup %12250 }
 0x358   : > { %v1756_v50 = vmul.f32 %v12251_v48, %v1740_v16 }
 0x35a   : > { %v1764_v52 = vmul.f32 %v11012_v49, %v1756_v50 }
 0x35b   : > { %v12253_v53 = vpop.eup %12252 }
 0x35c   : > { %v12255_v55 = vpop.eup %12254  ;;  %v1772_v56 = vadd.f32 %v11013_v51, %v1764_v52  ;;  %v1712_v57 = vmul.f32 %v12253_v53, %v13795_v17 }
 0x35d   : > { %v1757_v58 = vmul.f32 %v12255_v55, %v1741_v24 }
 0x35e   : > { %11475 = vmatprep.mubr.msk.f32.mxu0 %vm1685_vm2, %v1772_v56  ;;  %v1720_v60 = vmul.f32 %v11010_v54, %v1712_v57 }
 0x35f   : > { %v12257_v61 = vpop.eup %12256  ;;  %v1765_v62 = vmul.f32 %v11012_v49, %v1757_v58 }
 0x360   : > { %v1713_v63 = vmul.f32 %v12257_v61, %v1697_v26  ;;  %v1728_v0 = vadd.f32 %v11011_v59, %v1720_v60 }
 0x361   : > { %v1773_v1 = vadd.f32 %v11013_v51, %v1765_v62  ;;  %v13921_v62 = vld [vmem:[%s13763_s4 + $0x8] sm:$0xff] }
 0x362   : > { %v1721_v2 = vmul.f32 %v11010_v54, %v1713_v63  ;;  %11486 = vmatprep.mubr.msk.f32.mxu1 %vm1685_vm2, %v1728_v0 }
 0x363   : > { %11476 = vmatmul.mubr.msk.f32.vlgmr.msra.gmra.mxu0 %vm1685_vm2, %v1773_v1 }
 0x364   : > { %v1729_v3 = vadd.f32 %v11011_v59, %v1721_v2  ;;  %11490 = vmatpush3.msra.mxu0 %v1658_v7  ;;  %11497 = vmatprep.mubr.msk.f32.mxu0 %vm1685_vm2, %v1638_v10 }
 0x365   : > { %11491 = vmatprep.subr.mxu0 %v1657_v8 }
 0x366   : > { %11487 = vmatmul.mubr.msk.f32.vlgmr.msra.gmra.mxu1 %vm1685_vm2, %v1729_v3  ;;  %11492 = vmatpush3.msra.mxu0 %v1657_v8 }
 0x367   : > { %11493 = vmatprep.subr.mxu0 %v1656_v12  ;;  %11507 = vmatprep.mubr.msk.f32.mxu1 %vm13079_vm4, %v15041_v11 }
 0x368   : > { %11494 = vmatpush3.msra.mxu0 %v1656_v12 }
 0x369   : > { %11495 = vmatprep.subr.mxu0 %v1655_v13 }
 0x36a   : > { %11496 = vmatpush3.msra.mxu0 %v1655_v13 }
 0x36b   : > { %11498 = vmatmul.mubr.msk.f32.vlgmr.msra.gmra.mxu0 %vm1685_vm2, %v1639_v14  ;;  %11500 = vmatprep.subr.mxu0 %v15041_v11  ;;  %v13938_v14 = vld [vmem:[%s15161_s17] ss:$0 sm:$0xff]  ;;  %s13090_s17 = smov 40  }
 0x36c   : > { %11502 = vmatprep.mubr.msk.f32.mxu0 %vm13079_vm4, %v15041_v11 }
 0x423   : > { %v11477_v16 = vpop.f32.mrf.mxu0 }
 0x424   : > { %v13836_v17 = vadd.f32 %v11477_v16, %v11014_v15 }
 0x425   : > { %v1852_v18 = vpop.f32.mrf.mxu0 }
 0x426   : > { %v13838_v19 = vadd.f32 %v11014_v15, %v1852_v18  ;;  %v11488_v20 = vpop.f32.mrf.mxu1 }
 0x427   : > { %v13840_v21 = vadd.f32 %v11488_v20, %v11014_v15 }
 0x428   : > { %2030 = vrot.lane.b32.xlu0 %v13838_v19, %s13080_s3  ;;  %v1933_v25 = vpop.f32.mrf.mxu1 }
 0x429   : > { %v13857_v27 = vadd.f32 %v11014_v15, %v1933_v25 }
 0x42b   : > { %v11499_v23 = vpop.f32.mrf.mxu0 }
 0x42c   : > { %2281 = vrot.lane.b32.xlu0 %v13838_v19, %s13081_s2  ;;  %v13851_v24 = vadd.f32 %v11499_v23, %v13848_v22 }
 0x42d   : > { %v13864_v28 = vpop.f32.mrf.mxu0 }
 0x42e   : > { %15160 = vst [vmem:[#allocation78_spill] sm:$0xff] %v13851_v24 }
 0x49a   : > { %v13853_v26 = vpop.permute.xlu0 %2030 }
 0x49b   : > { %11501 = vmatpush3.xpose.msk.msra.mxu0 %vm2032_vm5, %v13853_v26 }
 0x49c   : > { %11510 = vmatprep.subr.mxu0 %v15041_v11 }
 0x49e   : > { %11503 = vmatmul.mubr.msk.f32.vlgmr.msra.gmra.mxu0 %vm2032_vm5, %v13857_v27  ;;  %v13877_v41 = vpop.permute.xlu0 %2281 }
 0x49f   : > { %11512 = vmatprep.mubr.msk.f32.mxu0 %vm13079_vm4, %v15041_v11  ;;  %11511 = vmatpush3.msra.mxu0 %v13889_v43 }
 0x4a0   : > { %11520 = vmatprep.subr.mxu0 %v15041_v11 }
 0x55e   : > { %v2104_v29 = vpop.f32.mrf.mxu0 }
 0x55f   : > { %v2109_v30 = vsel %vm2108_vm6, %v2104_v29, -inf }
 0x560   : > { %2110 = vmax.xlane.f32.xlu1 %v2109_v30  ;;  %v11504_v31 = vpop.f32.mrf.mxu0 }
 0x571   : > { %2120 = vrot.lane.b32.xlu1 %v13838_v19, %s13082_s19 }
 0x5e9   : > { %v2111_v32 = vpop.xlane.xlu1 %2110 }
 0x5ea   : > { %v2112_v33 = vsub.f32 %v2104_v29, %v2111_v32 }
 0x5ec   : > { %v2113_v34 = vmul.f32 1.442695, %v2112_v33  ;;  %v13958_v33 = vld [vmem:[%s13763_s4 + $0x10] sm:$0xff] }
 0x5ed   : > { %v13869_v35 = vpop.permute.xlu1 %2120 }
 0x5ee   : > { %12258 = vpow2.f32 %v2113_v34  ;;  %11506 = vmatpush3.msk.msra.mxu1 %vm2126_vm7, %v13869_v35 }
 0x5ef   : > { %11515 = vmatprep.subr.mxu1 %v15041_v11 }
 0x5fb   : > { %v12259_v36 = vpop.eup %12258 }
 0x5fc   : > { %v2115_v37 = vsel %vm2108_vm6, %v12259_v36, 0.0 }
 0x5fd   : > { %2116 = vadd.xlane.f32.xlu1 %v2115_v37 }
 0x60e   : > { %2279 = vrot.lane.b32.xlu1 %v13857_v27, %s13083_s21 }
 0x686   : > { %v2117_v38 = vpop.xlane.xlu1 %2116 }
 0x687   : > { %12260 = vrcp.f32 %v2117_v38 }
 0x68a   : > { %v2280_v42 = vpop.permute.xlu1 %2279 }
 0x694   : > { %v12261_v39 = vpop.eup %12260 }
 0x695   : > { %v2119_v40 = vmul.f32 %v12261_v39, %v12259_v36 }
 0x697   : > { %11508 = vmatmul.mubr.msk.f32.vlgmr.msra.gmra.mxu1 %vm2122_vm8, %v2119_v40 }
 0x698   : > { %11516 = vmatpush3.xpose.msk.msra.mxu1 %vm2032_vm5, %v13877_v41  ;;  %11517 = vmatprep.mubr.msk.f32.mxu1 %vm13079_vm4, %v15041_v11 }
 0x699   : > { %11525 = vmatprep.subr.mxu1 %v15041_v11 }
 0x69b   : > { %11518 = vmatmul.mubr.msk.f32.vlgmr.msra.gmra.mxu1 %vm2032_vm5, %v2280_v42 }
 0x69c   : > { %11527 = vmatprep.mubr.msk.f32.mxu1 %vm13079_vm4, %v15041_v11  ;;  %11526 = vmatpush3.msra.mxu1 %v13921_v62 }
 0x69d   : > { %11535 = vmatprep.subr.mxu1 %v15041_v11 }
 0x757   : > { %v2195_v44 = vpop.f32.mrf.mxu1 }
 0x758   : > { %11513 = vmatmul.mubr.msk.f32.vlgmr.msra.gmra.mxu0 %vm2032_vm5, %v2195_v44 }
 0x759   : > { %v11509_v45 = vpop.f32.mrf.mxu1  ;;  %11522 = vmatprep.mubr.msk.f32.mxu0 %vm13079_vm4, %v15041_v11 }
 0x75b   : > { %v2353_v46 = vpop.f32.mrf.mxu1 }
 0x75c   : > { %v2357_v47 = vsel %vm2108_vm6, %v2353_v46, -inf }
 0x75d   : > { %2358 = vmax.xlane.f32.xlu0 %v2357_v47  ;;  %v11519_v48 = vpop.f32.mrf.mxu1 }
 0x75e   : > { %v3005_v48 = vrot.slane %v13838_v19, 6 }
 0x773   : > { %2368 = vrot.lane.b32.xlu0 %v13838_v19, %s13084_s14 }
 0x777   : > { %2519 = vrot.lane.b32.xlu0 %v13857_v27, %s13085_s11 }
 0x7e6   : > { %v2359_v49 = vpop.xlane.xlu0 %2358 }
 0x7e7   : > { %v2360_v50 = vsub.f32 %v2353_v46, %v2359_v49  ;;  %v3006_v49 = vrot.slane %v13836_v17, 6  ;;  %v3002_v17 = vrot.slane %v13840_v21, 6  ;;  %v14001_v21 = vld [vmem:[%s13763_s4 + $0x18] sm:$0xff]  ;;  %s15162_s4 = scalar_lea.vmem [#allocation27], %s13691_s20 }
 0x7e9   : > { %v2361_v51 = vmul.f32 1.442695, %v2360_v50  ;;  %v13977_v50 = vsel %vm3000_vm9, %v3005_v48, %v3006_v49 }
 0x7ea   : > { %v13901_v52 = vpop.permute.xlu0 %2368 }
 0x7eb   : > { %12262 = vpow2.f32 %v2361_v51  ;;  %11521 = vmatpush3.msk.msra.mxu0 %vm2126_vm7, %v13901_v52 }
 0x7ec   : > { %11530 = vmatprep.subr.mxu0 %v15041_v11 }
 0x7ee   : > { %v2520_v61 = vpop.permute.xlu0 %2519 }
 0x7f8   : > { %v12263_v53 = vpop.eup %12262 }
 0x7f9   : > { %v2363_v54 = vsel %vm2108_vm6, %v12263_v53, 0.0 }
 0x7fa   : > { %2364 = vadd.xlane.f32.xlu1 %v2363_v54 }
 0x80b   : > { %2521 = vrot.lane.b32.xlu1 %v13838_v19, %s13086_s6 }
 0x818   : > { %v2268_v55 = vpop.f32.mrf.mxu0 }
 0x819   : > { %v2278_v15 = vadd.f32 %v13938_v14, %v2268_v55 }
 0x81a   : > { %v11514_v56 = vpop.f32.mrf.mxu0 }
 0x883   : > { %v2365_v57 = vpop.xlane.xlu1 %2364 }
 0x884   : > { %12264 = vrcp.f32 %v2365_v57 }
 0x887   : > { %v13909_v60 = vpop.permute.xlu1 %2521 }
 0x891   : > { %v12265_v58 = vpop.eup %12264 }
 0x892   : > { %v2367_v59 = vmul.f32 %v12265_v58, %v12263_v53  ;;  %v3001_v58 = vrot.slane %v13857_v27, 6 }
 0x894   : > { %11523 = vmatmul.mubr.msk.f32.vlgmr.msra.gmra.mxu0 %vm2122_vm8, %v2367_v59 }
 0x895   : > { %11531 = vmatpush3.xpose.msk.msra.mxu0 %vm2032_vm5, %v13909_v60  ;;  %11532 = vmatprep.mubr.msk.f32.mxu0 %vm13079_vm4, %v15041_v11 }
 0x896   : > { %11540 = vmatprep.subr.mxu0 %v15041_v11 }
 0x898   : > { %11533 = vmatmul.mubr.msk.f32.vlgmr.msra.gmra.mxu0 %vm2032_vm5, %v2520_v61  ;;  %v13992_v61 = vsel %vm3000_vm9, %v3001_v58, %v3002_v17 }
 0x899   : > { %11542 = vmatprep.mubr.msk.f32.mxu0 %vm13079_vm4, %v15041_v11  ;;  %11541 = vmatpush3.msra.mxu0 %v13958_v33 }
 0x89a   : > { %11550 = vmatprep.subr.mxu0 %v15041_v11 }
 0x954   : > { %v2441_v63 = vpop.f32.mrf.mxu0 }
 0x955   : > { %11528 = vmatmul.mubr.msk.f32.vlgmr.msra.gmra.mxu1 %vm2032_vm5, %v2441_v63 }
 0x956   : > { %v11524_v0 = vpop.f32.mrf.mxu0  ;;  %11537 = vmatprep.mubr.msk.f32.mxu1 %vm13079_vm4, %v15041_v11 }
 0x958   : > { %v2593_v1 = vpop.f32.mrf.mxu0 }
 0x959   : > { %v2597_v2 = vsel %vm2108_vm6, %v2593_v1, -inf }
 0x95a   : > { %2598 = vmax.xlane.f32.xlu1 %v2597_v2  ;;  %v11534_v3 = vpop.f32.mrf.mxu0 }
 0x96b   : > { %2761 = vrot.lane.b32.xlu1 %v13838_v19, %s13087_s1 }
 0x96f   : > { %2759 = vrot.lane.b32.xlu1 %v13857_v27, %s13088_s13 }
 0x9e3   : > { %v2599_v7 = vpop.xlane.xlu1 %2598 }
 0x9e4   : > { %v2600_v8 = vsub.f32 %v2593_v1, %v2599_v7 }
 0x9e6   : > { %v2601_v10 = vmul.f32 1.442695, %v2600_v8 }
 0x9e7   : > { %v13946_v30 = vpop.permute.xlu1 %2761 }
 0x9e8   : > { %12266 = vpow2.f32 %v2601_v10 }
 0x9eb   : > { %v2760_v32 = vpop.permute.xlu1 %2759 }
 0x9f5   : > { %v12267_v12 = vpop.eup %12266 }
 0x9f6   : > { %v2603_v13 = vsel %vm2108_vm6, %v12267_v12, 0.0 }
 0x9f7   : > { %2604 = vadd.xlane.f32.xlu0 %v2603_v13 }
 0xa0d   : > { %2608 = vrot.lane.b32.xlu0 %v13838_v19, %s13089_s5 }
 0xa15   : > { %v2514_v16 = vpop.f32.mrf.mxu1 }
 0xa16   : > { %v2518_v18 = vadd.f32 %v2514_v16, %v2278_v15 }
 0xa17   : > { %v11529_v20 = vpop.f32.mrf.mxu1 }
 0xa80   : > { %v2605_v23 = vpop.xlane.xlu0 %2604 }
 0xa81   : > { %12268 = vrcp.f32 %v2605_v23 }
 0xa84   : > { %v13941_v25 = vpop.permute.xlu0 %2608 }
 0xa85   : > { %11536 = vmatpush3.msk.msra.mxu1 %vm2126_vm7, %v13941_v25 }
 0xa86   : > { %11545 = vmatprep.subr.mxu1 %v15041_v11 }
 0xa8e   : > { %v12269_v29 = vpop.eup %12268 }
 0xa8f   : > { %v2607_v31 = vmul.f32 %v12269_v29, %v12267_v12 }
 0xa91   : > { %11538 = vmatmul.mubr.msk.f32.vlgmr.msra.gmra.mxu1 %vm2122_vm8, %v2607_v31 }
 0xa92   : > { %11546 = vmatpush3.xpose.msk.msra.mxu1 %vm2032_vm5, %v13946_v30  ;;  %11547 = vmatprep.mubr.msk.f32.mxu1 %vm13079_vm4, %v15041_v11 }
 0xa93   : > { %11555 = vmatprep.subr.mxu1 %v15041_v11 }
 0xa95   : > { %11548 = vmatmul.mubr.msk.f32.vlgmr.msra.gmra.mxu1 %vm2032_vm5, %v2760_v32 }
 0xa96   : > { %11557 = vmatprep.mubr.msk.f32.mxu1 %vm13079_vm4, %v15041_v11  ;;  %11556 = vmatpush3.msra.mxu1 %v14001_v21 }
 0xa97   : > { %11565 = vmatprep.subr.mxu1 %v15041_v11 }
 0xb51   : > { %v2681_v34 = vpop.f32.mrf.mxu1 }
 0xb52   : > { %11543 = vmatmul.mubr.msk.f32.vlgmr.msra.gmra.mxu0 %vm2032_vm5, %v2681_v34 }
 0xb53   : > { %v11539_v36 = vpop.f32.mrf.mxu1  ;;  %11552 = vmatprep.mubr.msk.f32.mxu0 %vm13079_vm4, %v15041_v11 }
 0xb55   : > { %v2833_v37 = vpop.f32.mrf.mxu1 }
 0xb56   : > { %v2837_v38 = vsel %vm2108_vm6, %v2833_v37, -inf }
 0xb57   : > { %2838 = vmax.xlane.f32.xlu0 %v2837_v38  ;;  %v11549_v39 = vpop.f32.mrf.mxu1 }
 0xb6d   : > { %2848 = vrot.lane.b32.xlu0 %v13838_v19, %s13090_s17 }
 0xbe0   : > { %v2839_v40 = vpop.xlane.xlu0 %2838 }
 0xbe1   : > { %v2840_v42 = vsub.f32 %v2833_v37, %v2839_v40 }
 0xbe3   : > { %v2841_v44 = vmul.f32 1.442695, %v2840_v42 }
 0xbe4   : > { %v13968_v45 = vpop.permute.xlu0 %2848 }
 0xbe5   : > { %12270 = vpow2.f32 %v2841_v44  ;;  %11551 = vmatpush3.msk.msra.mxu0 %vm2126_vm7, %v13968_v45 }
 0xbe6   : > { %11560 = vmatprep.subr.mxu0 %v15041_v11 }
 0xbf2   : > { %v12271_v46 = vpop.eup %12270 }
 0xbf3   : > { %v2843_v47 = vsel %vm2108_vm6, %v12271_v46, 0.0 }
 0xbf4   : > { %2844 = vadd.xlane.f32.xlu1 %v2843_v47 }
 0xc05   : > { %3008 = vrot.lane.b32.xlu1 %v13977_v50, %s13080_s3 }
 0xc12   : > { %v2754_v51 = vpop.f32.mrf.mxu0 }
 0xc13   : > { %v2758_v53 = vadd.f32 %v2754_v51, %v2518_v18 }
 0xc14   : > { %v11544_v54 = vpop.f32.mrf.mxu0 }
 0xc7d   : > { %v2845_v55 = vpop.xlane.xlu1 %2844 }
 0xc7e   : > { %12272 = vrcp.f32 %v2845_v55 }
 0xc81   : > { %v13982_v59 = vpop.permute.xlu1 %3008 }
 0xc8b   : > { %v12273_v56 = vpop.eup %12272 }
 0xc8c   : > { %v2847_v57 = vmul.f32 %v12273_v56, %v12271_v46 }
 0xc8e   : > { %11553 = vmatmul.mubr.msk.f32.vlgmr.msra.gmra.mxu0 %vm2122_vm8, %v2847_v57 }
 0xc8f   : > { %11561 = vmatpush3.xpose.msk.msra.mxu0 %vm2032_vm5, %v13982_v59  ;;  %11562 = vmatprep.mubr.msk.f32.mxu0 %vm13079_vm4, %v15041_v11 }
 0xc90   : > { %11570 = vmatprep.subr.mxu0 %v15041_v11 }
 0xc92   : > { %11563 = vmatmul.mubr.msk.f32.vlgmr.msra.gmra.mxu0 %vm2032_vm5, %v13992_v61 }
 0xc93   : > { %11571 = vmatpush3.msra.mxu0 %v13889_v43  ;;  %11572 = vmatprep.mubr.msk.f32.mxu0 %vm13079_vm4, %v15041_v11 }
 0xc94   : > { %11580 = vmatprep.subr.mxu0 %v15041_v11 }
 0xd4e   : > { %v2921_v27 = vpop.f32.mrf.mxu0 }
 0xd4f   : > { %11558 = vmatmul.mubr.msk.f32.vlgmr.msra.gmra.mxu1 %vm2032_vm5, %v2921_v27 }
 0xd50   : > { %v11554_v63 = vpop.f32.mrf.mxu0  ;;  %11567 = vmatprep.mubr.msk.f32.mxu1 %vm13079_vm4, %v15041_v11 }
 0xd52   : > { %v3080_v0 = vpop.f32.mrf.mxu0 }
 0xd53   : > { %v3084_v1 = vsel %vm2108_vm6, %v3080_v0, -inf }
 0xd54   : > { %3085 = vmax.xlane.f32.xlu0 %v3084_v1  ;;  %v11564_v2 = vpop.f32.mrf.mxu0 }
 0xd6a   : > { %3095 = vrot.lane.b32.xlu0 %v13977_v50, %s13082_s19  ;;  %s15164_s19 = scalar_lea.vmem [#allocation19], %s13691_s20 }
 0xd6e   : > { %3246 = vrot.lane.b32.xlu0 %v13992_v61, %s13083_s21 }
 0xddd   : > { %v3086_v3 = vpop.xlane.xlu0 %3085 }
 0xdde   : > { %v3087_v7 = vsub.f32 %v3080_v0, %v3086_v3 }
 0xde0   : > { %v3088_v8 = vmul.f32 1.442695, %v3087_v7 }
 0xde1   : > { %v14013_v10 = vpop.permute.xlu0 %3095 }
 0xde2   : > { %12274 = vpow2.f32 %v3088_v8  ;;  %11566 = vmatpush3.msk.msra.mxu1 %vm2126_vm7, %v14013_v10 }
 0xde3   : > { %11575 = vmatprep.subr.mxu1 %v15041_v11 }
 0xde5   : > { %v3247_v32 = vpop.permute.xlu0 %3246 }
 0xdef   : > { %v12275_v12 = vpop.eup %12274 }
 0xdf0   : > { %v3090_v13 = vsel %vm2108_vm6, %v12275_v12, 0.0 }
 0xdf1   : > { %3091 = vadd.xlane.f32.xlu1 %v3090_v13 }
 0xe02   : > { %3248 = vrot.lane.b32.xlu1 %v13977_v50, %s13081_s2 }
 0xe0f   : > { %v2994_v15 = vpop.f32.mrf.mxu1 }
 0xe10   : > { %v14021_v16 = vadd.f32 %v2994_v15, %v2758_v53 }
 0xe11   : > { %v11559_v18 = vpop.f32.mrf.mxu1 }
 0xe7a   : > { %v3092_v20 = vpop.xlane.xlu1 %3091 }
 0xe7b   : > { %12276 = vrcp.f32 %v3092_v20 }
 0xe7e   : > { %v14023_v31 = vpop.permute.xlu1 %3248 }
 0xe88   : > { %v12277_v23 = vpop.eup %12276 }
 0xe89   : > { %v3094_v29 = vmul.f32 %v12277_v23, %v12275_v12 }
 0xe8b   : > { %11568 = vmatmul.mubr.msk.f32.vlgmr.msra.gmra.mxu1 %vm2122_vm8, %v3094_v29 }
 0xe8c   : > { %11576 = vmatpush3.xpose.msk.msra.mxu1 %vm2032_vm5, %v14023_v31  ;;  %11577 = vmatprep.mubr.msk.f32.mxu1 %vm13079_vm4, %v15041_v11 }
 0xe8d   : > { %11585 = vmatprep.subr.mxu1 %v15041_v11 }
 0xe8f   : > { %11578 = vmatmul.mubr.msk.f32.vlgmr.msra.gmra.mxu1 %vm2032_vm5, %v3247_v32 }
 0xe90   : > { %11586 = vmatpush3.msra.mxu1 %v13921_v62  ;;  %11587 = vmatprep.mubr.msk.f32.mxu1 %vm13079_vm4, %v15041_v11 }
 0xe91   : > { %11595 = vmatprep.subr.mxu1 %v15041_v11 }
 0xf4b   : > { %v3168_v34 = vpop.f32.mrf.mxu1 }
 0xf4c   : > { %11573 = vmatmul.mubr.msk.f32.vlgmr.msra.gmra.mxu0 %vm2032_vm5, %v3168_v34 }
 0xf4d   : > { %v11569_v36 = vpop.f32.mrf.mxu1  ;;  %11582 = vmatprep.mubr.msk.f32.mxu0 %vm13079_vm4, %v15041_v11 }
 0xf4f   : > { %v3320_v37 = vpop.f32.mrf.mxu1 }
 0xf50   : > { %v3324_v38 = vsel %vm2108_vm6, %v3320_v37, -inf }
 0xf51   : > { %3325 = vmax.xlane.f32.xlu1 %v3324_v38  ;;  %v11579_v39 = vpop.f32.mrf.mxu1 }
 0xf62   : > { %3488 = vrot.lane.b32.xlu1 %v13977_v50, %s13086_s6 }
 0xf66   : > { %3486 = vrot.lane.b32.xlu1 %v13992_v61, %s13085_s11 }
 0xfda   : > { %v3326_v40 = vpop.xlane.xlu1 %3325 }
 0xfdb   : > { %v3327_v42 = vsub.f32 %v3320_v37, %v3326_v40 }
 0xfdd   : > { %v3328_v44 = vmul.f32 1.442695, %v3327_v42 }
 0xfde   : > { %v14052_v55 = vpop.permute.xlu1 %3488 }
 0xfdf   : > { %12278 = vpow2.f32 %v3328_v44 }
 0xfe2   : > { %v3487_v57 = vpop.permute.xlu1 %3486 }
 0xfec   : > { %v12279_v46 = vpop.eup %12278 }
 0xfed   : > { %v3330_v47 = vsel %vm2108_vm6, %v12279_v46, 0.0 }
 0xfee   : > { %3331 = vadd.xlane.f32.xlu0 %v3330_v47 }
0x1004   : > { %3335 = vrot.lane.b32.xlu0 %v13977_v50, %s13084_s14  ;;  %s15165_s14 = scalar_lea.vmem [#allocation25], %s13691_s20 }
0x100c   : > { %v3241_v48 = vpop.f32.mrf.mxu0 }
0x100e   : > { %v11574_v49 = vpop.f32.mrf.mxu0 }
0x1077   : > { %v3332_v51 = vpop.xlane.xlu0 %3331 }
0x1078   : > { %12280 = vrcp.f32 %v3332_v51 }
0x107b   : > { %v14047_v53 = vpop.permute.xlu0 %3335 }
0x107c   : > { %11581 = vmatpush3.msk.msra.mxu0 %vm2126_vm7, %v14047_v53 }
0x107d   : > { %11590 = vmatprep.subr.mxu0 %v15041_v11 }
0x1085   : > { %v12281_v54 = vpop.eup %12280 }
0x1086   : > { %v3334_v56 = vmul.f32 %v12281_v54, %v12279_v46 }
0x1088   : > { %11583 = vmatmul.mubr.msk.f32.vlgmr.msra.gmra.mxu0 %vm2122_vm8, %v3334_v56 }
0x1089   : > { %11591 = vmatpush3.xpose.msk.msra.mxu0 %vm2032_vm5, %v14052_v55  ;;  %11592 = vmatprep.mubr.msk.f32.mxu0 %vm13079_vm4, %v15041_v11 }
0x108a   : > { %11600 = vmatprep.subr.mxu0 %v15041_v11 }
0x108c   : > { %11593 = vmatmul.mubr.msk.f32.vlgmr.msra.gmra.mxu0 %vm2032_vm5, %v3487_v57 }
0x108d   : > { %11601 = vmatpush3.msra.mxu0 %v13958_v33  ;;  %11602 = vmatprep.mubr.msk.f32.mxu0 %vm13079_vm4, %v15041_v11 }
0x108e   : > { %11610 = vmatprep.subr.mxu0 %v15041_v11 }
0x1148   : > { %v3408_v58 = vpop.f32.mrf.mxu0 }
0x1149   : > { %11588 = vmatmul.mubr.msk.f32.vlgmr.msra.gmra.mxu1 %vm2032_vm5, %v3408_v58 }
0x114a   : > { %v11584_v17 = vpop.f32.mrf.mxu0  ;;  %11597 = vmatprep.mubr.msk.f32.mxu1 %vm13079_vm4, %v15041_v11 }
0x114c   : > { %v3560_v27 = vpop.f32.mrf.mxu0 }
0x114d   : > { %v3564_v63 = vsel %vm2108_vm6, %v3560_v27, -inf }
0x114e   : > { %3565 = vmax.xlane.f32.xlu0 %v3564_v63  ;;  %v11594_v0 = vpop.f32.mrf.mxu0 }
0x1164   : > { %3575 = vrot.lane.b32.xlu0 %v13977_v50, %s13089_s5 }
0x1168   : > { %3726 = vrot.lane.b32.xlu0 %v13992_v61, %s13088_s13  ;;  %v3245_v61 = vadd.f32 %v13938_v14, %v3241_v48 }
0x11d7   : > { %v3566_v1 = vpop.xlane.xlu0 %3565 }
0x11d8   : > { %v3567_v2 = vsub.f32 %v3560_v27, %v3566_v1  ;;  %v14109_v27 = vadd.f32 %v13848_v22, %v13864_v28 }
0x11da   : > { %v3568_v3 = vmul.f32 1.442695, %v3567_v2 }
0x11db   : > { %v14073_v7 = vpop.permute.xlu0 %3575 }
0x11dc   : > { %12282 = vpow2.f32 %v3568_v3  ;;  %11596 = vmatpush3.msk.msra.mxu1 %vm2126_vm7, %v14073_v7 }
0x11dd   : > { %11605 = vmatprep.subr.mxu1 %v15041_v11 }
0x11df   : > { %v3727_v34 = vpop.permute.xlu0 %3726 }
0x11e9   : > { %v12283_v8 = vpop.eup %12282 }
0x11ea   : > { %v3570_v12 = vsel %vm2108_vm6, %v12283_v8, 0.0 }
0x11eb   : > { %3571 = vadd.xlane.f32.xlu1 %v3570_v12 }
0x11fc   : > { %3728 = vrot.lane.b32.xlu1 %v13977_v50, %s13087_s1 }
0x1209   : > { %v3481_v13 = vpop.f32.mrf.mxu1 }
0x120a   : > { %v3485_v15 = vadd.f32 %v3481_v13, %v3245_v61 }
0x120b   : > { %v11589_v18 = vpop.f32.mrf.mxu1 }
0x1274   : > { %v3572_v20 = vpop.xlane.xlu1 %3571 }
0x1275   : > { %12284 = vrcp.f32 %v3572_v20 }
0x1278   : > { %v14082_v32 = vpop.permute.xlu1 %3728 }
0x1282   : > { %v12285_v23 = vpop.eup %12284 }
0x1283   : > { %v3574_v29 = vmul.f32 %v12285_v23, %v12283_v8 }
0x1285   : > { %11598 = vmatmul.mubr.msk.f32.vlgmr.msra.gmra.mxu1 %vm2122_vm8, %v3574_v29 }
0x1286   : > { %11606 = vmatpush3.xpose.msk.msra.mxu1 %vm2032_vm5, %v14082_v32  ;;  %11607 = vmatprep.mubr.msk.f32.mxu1 %vm13079_vm4, %v15041_v11 }
0x1287   : > { %11615 = vmatprep.subr.mxu1 %v15041_v11 }
0x1289   : > { %11608 = vmatmul.mubr.msk.f32.vlgmr.msra.gmra.mxu1 %vm2032_vm5, %v3727_v34 }
0x128a   : > { %11616 = vmatpush3.msra.mxu1 %v14001_v21  ;;  %11617 = vmatprep.mubr.msk.f32.mxu1 %vm13079_vm4, %v15041_v11 }
0x128b   : > { %11631 = vmatprep.subr.mxu1 %v15041_v11 }
0x1345   : > { %v3648_v36 = vpop.f32.mrf.mxu1 }
0x1346   : > { %11603 = vmatmul.mubr.msk.f32.vlgmr.msra.gmra.mxu0 %vm2032_vm5, %v3648_v36 }
0x1347   : > { %v11599_v37 = vpop.f32.mrf.mxu1  ;;  %11612 = vmatprep.mubr.msk.f32.mxu0 %vm13079_vm4, %v15041_v11 }
0x1348   : > { %v14134_v37 = vld [vmem:[%s13766_s8 + $0x18] sm:$0xff] }
0x1349   : > { %v3800_v38 = vpop.f32.mrf.mxu1 }
0x134a   : > { %v3804_v39 = vsel %vm2108_vm6, %v3800_v38, -inf }
0x134b   : > { %3805 = vmax.xlane.f32.xlu1 %v3804_v39  ;;  %v11609_v40 = vpop.f32.mrf.mxu1  ;;  %v14142_v39 = vld [vmem:[%s13766_s8 + $0x8] sm:$0xff] }
0x134c   : > { %v14149_v40 = vld [vmem:[%s13766_s8] sm:$0xff] }
0x13d4   : > { %v3806_v42 = vpop.xlane.xlu1 %3805 }
0x13d5   : > { %v3807_v44 = vsub.f32 %v3800_v38, %v3806_v42  ;;  %v14137_v38 = vld [vmem:[%s13766_s8 + $0x10] sm:$0xff]  ;;  %s15163_s8 = scalar_lea.vmem [#allocation28], %s13691_s20 }
0x13d7   : > { %v3808_v46 = vmul.f32 1.442695, %v3807_v44 }
0x13d9   : > { %12286 = vpow2.f32 %v3808_v46 }
0x13e6   : > { %v12287_v47 = vpop.eup %12286 }
0x13e7   : > { %v3810_v48 = vsel %vm2108_vm6, %v12287_v47, 0.0 }
0x13e8   : > { %3811 = vadd.xlane.f32.xlu0 %v3810_v48 }
0x13fe   : > { %3815 = vrot.lane.b32.xlu0 %v13977_v50, %s13090_s17 }
0x1406   : > { %v3721_v49 = vpop.f32.mrf.mxu0 }
0x1407   : > { %v3725_v51 = vadd.f32 %v3721_v49, %v3485_v15 }
0x1408   : > { %v11604_v54 = vpop.f32.mrf.mxu0 }
0x1409   : > { %v14156_v54 = vld [vmem:[%s15162_s4] ss:$0 sm:$0xff] }
0x1471   : > { %v3812_v56 = vpop.xlane.xlu0 %3811 }
0x1472   : > { %12288 = vrcp.f32 %v3812_v56 }
0x1475   : > { %v14102_v57 = vpop.permute.xlu0 %3815 }
0x1476   : > { %11611 = vmatpush3.msk.msra.mxu0 %vm2126_vm7, %v14102_v57 }
0x1477   : > { %11620 = vmatprep.subr.mxu0 %v14134_v37 }
0x147f   : > { %v12289_v58 = vpop.eup %12288 }
0x1480   : > { %v3814_v17 = vmul.f32 %v12289_v58, %v12287_v47  ;;  %v14160_v58 = vld [vmem:[%s15163_s8] ss:$0 sm:$0xff] }
0x1482   : > { %11613 = vmatmul.mubr.msk.f32.vlgmr.msra.gmra.mxu0 %vm2122_vm8, %v3814_v17 }
0x1483   : > { %11621 = vmatpush3.msra.mxu0 %v14134_v37 }
0x1484   : > { %11622 = vmatprep.subr.mxu0 %v14137_v38 }
0x1485   : > { %11623 = vmatpush3.msra.mxu0 %v14137_v38 }
0x1486   : > { %11624 = vmatprep.subr.mxu0 %v14142_v39 }
0x1487   : > { %11625 = vmatpush3.msra.mxu0 %v14142_v39 }
0x1488   : > { %11626 = vmatprep.subr.mxu0 %v14149_v40 }
0x1489   : > { %11627 = vmatpush3.msra.mxu0 %v14149_v40 }
0x148a   : > { %11641 = vmatprep.subr.mxu0 %v15041_v11 }
0x1542   : > { %v3888_v63 = vpop.f32.mrf.mxu0 }
0x1543   : > { %11618 = vmatmul.mubr.msk.f32.vlgmr.msra.gmra.mxu1 %vm2032_vm5, %v3888_v63 }
0x1544   : > { %11632 = vmatpush3.xpose.msk.msra.mxu1 %vm2032_vm5, %v14109_v27  ;;  %v11614_v0 = vpop.f32.mrf.mxu0  ;;  %11633 = vmatprep.mubr.msk.f32.mxu1 %vm13079_vm4, %v15041_v11 }
0x1545   : > { %11636 = vmatprep.subr.mxu1 %v15041_v11 }
0x1603   : > { %v3961_v1 = vpop.f32.mrf.mxu1 }
0x1604   : > { %v3965_v2 = vadd.f32 %v3961_v1, %v3725_v51 }
0x1605   : > { %v11619_v3 = vpop.f32.mrf.mxu1 }
0x1606   : > { %v3967_v8 = vrot.slane %v3965_v2, 2 }
0x1608   : > { %v3969_v22 = vsel %vm2126_vm7, %v14021_v16, %v3967_v8  ;;  %v14123_v12 = vadd.f32 %v3967_v8, %v13787_v9  ;;  %v14172_v8 = vld [vmem:[%s15164_s19] ss:$0 sm:$0xff] }
0x1609   : > { %v14120_v28 = vadd.f32 %v3969_v22, %v13781_v6 }
0x160a   : > { %v3975_v13 = vsel %vm1689_vm3, %v14123_v12, 0.0 }
0x160b   : > { %v3972_v61 = vsel %vm1685_vm2, %v14120_v28, 0.0 }
0x160c   : > { %3973 = vadd.xlane.f32.xlu1 %v3972_v61 }
0x1610   : > { %3976 = vadd.xlane.f32.xlu1 %v3975_v13 }
0x1695   : > { %v3974_v15 = vpop.xlane.xlu1 %3973 }
0x1696   : > { %v3978_v18 = vmul.f32 0.03125, %v3974_v15 }
0x1698   : > { %v3980_v16 = vsub.f32 %v14120_v28, %v3978_v18 }
0x1699   : > { %v3977_v6 = vpop.xlane.xlu1 %3976 }
0x169a   : > { %v3979_v20 = vmul.f32 0.03125, %v3977_v6  ;;  %v3982_v23 = vmul.f32 %v3980_v16, %v3980_v16 }
0x169c   : > { %v3981_v9 = vsub.f32 %v14123_v12, %v3979_v20  ;;  %v3984_v29 = vsel %vm1685_vm2, %v3982_v23, 0.0 }
0x169d   : > { %3985 = vadd.xlane.f32.xlu1 %v3984_v29 }
0x169e   : > { %v3983_v34 = vmul.f32 %v3981_v9, %v3981_v9 }
0x16a0   : > { %v3987_v36 = vsel %vm1689_vm3, %v3983_v34, 0.0 }
0x16a1   : > { %3988 = vadd.xlane.f32.xlu1 %v3987_v36 }
0x1726   : > { %v3986_v42 = vpop.xlane.xlu1 %3985 }
0x1727   : > { %v3990_v44 = vmul.f32 0.03125, %v3986_v42  ;;  %v14199_v42 = vld [vmem:[%s13729_s28] sm:$0xff] }
0x1729   : > { %v3992_v46 = vadd.f32 1e-05, %v3990_v44 }
0x172a   : > { %v3989_v47 = vpop.xlane.xlu1 %3988 }
0x172b   : > { %12290 = vrsqrt.f32 %v3992_v46  ;;  %v3991_v48 = vmul.f32 0.03125, %v3989_v47 }
0x172d   : > { %v3993_v49 = vadd.f32 1e-05, %v3991_v48 }
0x172f   : > { %12292 = vrsqrt.f32 %v3993_v49 }
0x1738   : > { %v12291_v51 = vpop.eup %12290 }
0x1739   : > { %v3996_v56 = vmul.f32 %v12291_v51, %v3980_v16 }
0x173b   : > { %v4004_v17 = vmul.f32 %v14156_v54, %v3996_v56 }
0x173c   : > { %v12293_v63 = vpop.eup %12292 }
0x173d   : > { %v3997_v0 = vmul.f32 %v12293_v63, %v3981_v9  ;;  %v4012_v1 = vadd.f32 %v14160_v58, %v4004_v17 }
0x173f   : > { %v4005_v2 = vmul.f32 %v14156_v54, %v3997_v0  ;;  %11628 = vmatprep.mubr.msk.f32.mxu0 %vm1685_vm2, %v4012_v1 }
0x1741   : > { %v4013_v3 = vadd.f32 %v14160_v58, %v4005_v2 }
0x1743   : > { %11629 = vmatmul.mubr.msk.f32.vlgmr.msra.gmra.mxu0 %vm1685_vm2, %v4013_v3 }
0x1744   : > { %11643 = vmatprep.mubr.msk.f32.mxu0 %vm13079_vm4, %v15041_v11  ;;  %11642 = vmatpush3.msra.mxu0 %v14199_v42 }
0x1745   : > { %11651 = vmatprep.subr.mxu0 %v15041_v11 }
0x1803   : > { %v11630_v22 = vpop.f32.mrf.mxu0 }
0x1804   : > { %v14175_v61 = vadd.f32 %v11630_v22, %v14172_v8 }
0x1805   : > { %v4092_v13 = vpop.f32.mrf.mxu0 }
0x1806   : > { %v14178_v15 = vadd.f32 %v14172_v8, %v4092_v13 }
0x1808   : > { %11634 = vmatmul.mubr.msk.f32.vlgmr.msra.gmra.mxu1 %vm2032_vm5, %v14178_v15 }
0x1809   : > { %11638 = vmatprep.mubr.msk.f32.mxu1 %vm13079_vm4, %v15041_v11 }
0x18c8   : > { %v4173_v18 = vpop.f32.mrf.mxu1 }
0x18c9   : > { %v4178_v16 = vsel %vm4177_vm10, %v4173_v18, -inf }
0x18ca   : > { %4179 = vmax.xlane.f32.xlu1 %v4178_v16  ;;  %v11635_v6 = vpop.f32.mrf.mxu1 }
0x18db   : > { %4189 = vrot.lane.b32.xlu1 %v14109_v27, %s13080_s3 }
0x18df   : > { %4347 = vrot.lane.b32.xlu1 %v14109_v27, %s13083_s21 }
0x18e3   : > { %4345 = vrot.lane.b32.xlu1 %v14178_v15, %s13083_s21 }
0x1953   : > { %v4180_v20 = vpop.xlane.xlu1 %4179 }
0x1954   : > { %v4181_v23 = vsub.f32 %v4173_v18, %v4180_v20 }
0x1956   : > { %v4182_v9 = vmul.f32 1.442695, %v4181_v23 }
0x1957   : > { %v14191_v29 = vpop.permute.xlu1 %4189 }
0x1958   : > { %12294 = vpow2.f32 %v4182_v9  ;;  %11637 = vmatpush3.msra.mxu1 %v14191_v29 }
0x1959   : > { %11646 = vmatprep.subr.mxu1 %v15041_v11 }
0x195b   : > { %v14203_v47 = vpop.permute.xlu1 %4347 }
0x195f   : > { %v4346_v49 = vpop.permute.xlu1 %4345 }
0x1965   : > { %v12295_v34 = vpop.eup %12294 }
0x1966   : > { %v4184_v36 = vsel %vm4177_vm10, %v12295_v34, 0.0 }
0x1967   : > { %4185 = vadd.xlane.f32.xlu0 %v4184_v36 }
0x197d   : > { %4434 = vrot.lane.b32.xlu0 %v14109_v27, %s13081_s2 }
0x19f0   : > { %v4186_v44 = vpop.xlane.xlu0 %4185 }
0x19f1   : > { %12296 = vrcp.f32 %v4186_v44  ;;  %v14239_v44 = vld [vmem:[%s13729_s28 + $0x8] sm:$0xff] }
0x19f4   : > { %v14214_v56 = vpop.permute.xlu0 %4434 }
0x19fe   : > { %v12297_v46 = vpop.eup %12296 }
0x19ff   : > { %v4188_v48 = vmul.f32 %v12297_v46, %v12295_v34 }
0x1a01   : > { %11639 = vmatmul.mubr.msk.f32.vlgmr.msra.gmra.mxu1 %vm2032_vm5, %v4188_v48 }
0x1a02   : > { %11647 = vmatpush3.xpose.msk.msra.mxu1 %vm2032_vm5, %v14203_v47  ;;  %11648 = vmatprep.mubr.msk.f32.mxu1 %vm13079_vm4, %v15041_v11 }
0x1a03   : > { %11656 = vmatprep.subr.mxu1 %v15041_v11 }
0x1a05   : > { %11649 = vmatmul.mubr.msk.f32.vlgmr.msra.gmra.mxu1 %vm2032_vm5, %v4346_v49 }
0x1a06   : > { %11658 = vmatprep.mubr.msk.f32.mxu1 %vm13079_vm4, %v15041_v11  ;;  %11657 = vmatpush3.msra.mxu1 %v14239_v44 }
0x1a07   : > { %11666 = vmatprep.subr.mxu1 %v15041_v11 }
0x1ac1   : > { %v4261_v51 = vpop.f32.mrf.mxu1 }
0x1ac2   : > { %11644 = vmatmul.mubr.msk.f32.vlgmr.msra.gmra.mxu0 %vm2032_vm5, %v4261_v51 }
0x1ac3   : > { %11652 = vmatpush3.msra.mxu0 %v14214_v56  ;;  %v11640_v17 = vpop.f32.mrf.mxu1  ;;  %11653 = vmatprep.mubr.msk.f32.mxu0 %vm13079_vm4, %v15041_v11 }
0x1ac4   : > { %11661 = vmatprep.subr.mxu0 %v15041_v11 }
0x1ac5   : > { %v4419_v63 = vpop.f32.mrf.mxu1 }
0x1ac6   : > { %v4423_v0 = vsel %vm4177_vm10, %v4419_v63, -inf }
0x1ac7   : > { %4424 = vmax.xlane.f32.xlu1 %v4423_v0  ;;  %v11650_v1 = vpop.f32.mrf.mxu1 }
0x1b50   : > { %v4425_v2 = vpop.xlane.xlu1 %4424 }
0x1b51   : > { %v4426_v3 = vsub.f32 %v4419_v63, %v4425_v2 }
0x1b53   : > { %v4427_v22 = vmul.f32 1.442695, %v4426_v3 }
0x1b55   : > { %12298 = vpow2.f32 %v4427_v22 }
0x1b62   : > { %v12299_v13 = vpop.eup %12298 }
0x1b63   : > { %v4429_v18 = vsel %vm4177_vm10, %v12299_v13, 0.0 }
0x1b64   : > { %4430 = vadd.xlane.f32.xlu0 %v4429_v18 }
0x1b7a   : > { %4586 = vrot.lane.b32.xlu0 %v14109_v27, %s13085_s11 }
0x1b7e   : > { %4584 = vrot.lane.b32.xlu0 %v14178_v15, %s13085_s11 }
0x1b82   : > { %v4334_v16 = vpop.f32.mrf.mxu0 }
0x1b84   : > { %v11645_v6 = vpop.f32.mrf.mxu0 }
0x1bed   : > { %v4431_v20 = vpop.xlane.xlu0 %4430 }
0x1bee   : > { %12300 = vrcp.f32 %v4431_v20 }
0x1bf1   : > { %v14227_v9 = vpop.permute.xlu0 %4586 }
0x1bf5   : > { %v4585_v36 = vpop.permute.xlu0 %4584 }
0x1bfb   : > { %v12301_v23 = vpop.eup %12300 }
0x1bfc   : > { %v4433_v34 = vmul.f32 %v12301_v23, %v12299_v13  ;;  %v14260_v13 = vld [vmem:[%s15165_s14] ss:$0 sm:$0xff] }
0x1bfd   : > { %v4344_v18 = vadd.f32 %v14260_v13, %v4334_v16 }
0x1bfe   : > { %11654 = vmatmul.mubr.msk.f32.vlgmr.msra.gmra.mxu0 %vm2032_vm5, %v4433_v34 }
0x1bff   : > { %11662 = vmatpush3.xpose.msk.msra.mxu0 %vm2032_vm5, %v14227_v9  ;;  %11663 = vmatprep.mubr.msk.f32.mxu0 %vm13079_vm4, %v15041_v11 }
0x1c00   : > { %11671 = vmatprep.subr.mxu0 %v15041_v11 }
0x1c02   : > { %11664 = vmatmul.mubr.msk.f32.vlgmr.msra.gmra.mxu0 %vm2032_vm5, %v4585_v36 }
0x1c03   : > { %11673 = vmatprep.mubr.msk.f32.mxu0 %vm13079_vm4, %v15041_v11 }
0x1cbe   : > { %v4506_v46 = vpop.f32.mrf.mxu0 }
0x1cbf   : > { %11659 = vmatmul.mubr.msk.f32.vlgmr.msra.gmra.mxu1 %vm2032_vm5, %v4506_v46 }
0x1cc0   : > { %v11655_v48 = vpop.f32.mrf.mxu0  ;;  %11668 = vmatprep.mubr.msk.f32.mxu1 %vm13079_vm4, %v15041_v11 }
0x1cc2   : > { %v4658_v49 = vpop.f32.mrf.mxu0 }
0x1cc3   : > { %v4662_v51 = vsel %vm4177_vm10, %v4658_v49, -inf }
0x1cc4   : > { %4663 = vmax.xlane.f32.xlu1 %v4662_v51  ;;  %v11665_v17 = vpop.f32.mrf.mxu0 }
0x1cd5   : > { %4673 = vrot.lane.b32.xlu1 %v14109_v27, %s13086_s6 }
0x1cd9   : > { %4825 = vrot.lane.b32.xlu1 %v14109_v27, %s13088_s13 }
0x1cdd   : > { %4823 = vrot.lane.b32.xlu1 %v14178_v15, %s13088_s13 }
0x1d4d   : > { %v4664_v63 = vpop.xlane.xlu1 %4663 }
0x1d4e   : > { %v4665_v0 = vsub.f32 %v4658_v49, %v4664_v63  ;;  %v14275_v49 = vld [vmem:[%s13729_s28 + $0x10] sm:$0xff] }
0x1d4f   : > { %11672 = vmatpush3.msra.mxu0 %v14275_v49 }
0x1d50   : > { %v4666_v1 = vmul.f32 1.442695, %v4665_v0  ;;  %11681 = vmatprep.subr.mxu0 %v15041_v11 }
0x1d51   : > { %v14253_v2 = vpop.permute.xlu1 %4673 }
0x1d52   : > { %12302 = vpow2.f32 %v4666_v1  ;;  %11667 = vmatpush3.msra.mxu1 %v14253_v2 }
0x1d53   : > { %11676 = vmatprep.subr.mxu1 %v15041_v11 }
0x1d55   : > { %v14263_v46 = vpop.permute.xlu1 %4825 }
0x1d56   : > { %15166 = vst [vmem:[#allocation79_spill] sm:$0xff] %v14263_v46 }
0x1d59   : > { %v4824_v16 = vpop.permute.xlu1 %4823 }
0x1d5f   : > { %v12303_v3 = vpop.eup %12302 }
0x1d60   : > { %v4668_v22 = vsel %vm4177_vm10, %v12303_v3, 0.0 }
0x1d61   : > { %4669 = vadd.xlane.f32.xlu0 %v4668_v22 }
0x1d7f   : > { %v4579_v6 = vpop.f32.mrf.mxu1 }
0x1d80   : > { %v4583_v20 = vadd.f32 %v4579_v6, %v4344_v18 }
0x1d81   : > { %v11660_v23 = vpop.f32.mrf.mxu1 }
0x1dea   : > { %v4670_v34 = vpop.xlane.xlu0 %4669 }
0x1deb   : > { %12304 = vrcp.f32 %v4670_v34 }
0x1df8   : > { %v12305_v36 = vpop.eup %12304 }
0x1df9   : > { %v4672_v48 = vmul.f32 %v12305_v36, %v12303_v3  ;;  %v14289_v36 = vld [vmem:[%s13729_s28 + $0x18] sm:$0xff] }
0x1dfa   : > { %15167 = vst [vmem:[#allocation80_spill] sm:$0xff] %v14289_v36 }
0x1dfb   : > { %11669 = vmatmul.mubr.msk.f32.vlgmr.msra.gmra.mxu1 %vm2032_vm5, %v4672_v48 }
0x1dfc   : > { %11677 = vmatpush3.xpose.msk.msra.mxu1 %vm2032_vm5, %v14263_v46  ;;  %11678 = vmatprep.mubr.msk.f32.mxu1 %vm13079_vm4, %v15041_v11 }
0x1dfd   : > { %11686 = vmatprep.subr.mxu1 %v15041_v11 }
0x1dff   : > { %11679 = vmatmul.mubr.msk.f32.vlgmr.msra.gmra.mxu1 %vm2032_vm5, %v4824_v16 }
0x1e00   : > { %11688 = vmatprep.mubr.msk.f32.mxu1 %vm13079_vm4, %v15041_v11  ;;  %11687 = vmatpush3.msra.mxu1 %v14289_v36 }
0x1e01   : > { %11696 = vmatprep.subr.mxu1 %v15041_v11 }
0x1ebb   : > { %v4745_v51 = vpop.f32.mrf.mxu1 }
0x1ebc   : > { %11674 = vmatmul.mubr.msk.f32.vlgmr.msra.gmra.mxu0 %vm2032_vm5, %v4745_v51 }
0x1ebd   : > { %v11670_v17 = vpop.f32.mrf.mxu1  ;;  %11683 = vmatprep.mubr.msk.f32.mxu0 %vm13079_vm4, %v15041_v11 }
0x1ebf   : > { %v4897_v63 = vpop.f32.mrf.mxu1 }
0x1ec0   : > { %v4901_v0 = vsel %vm4177_vm10, %v4897_v63, -inf }
0x1ec1   : > { %4902 = vmax.xlane.f32.xlu1 %v4901_v0  ;;  %v11680_v1 = vpop.f32.mrf.mxu1 }
0x1ec2   : > { %v5063_v1 = vrot.slane %v14178_v15, 6 }
0x1ed2   : > { %5152 = vrot.lane.b32.xlu1 %v13851_v24, %s13080_s3  ;;  %s15182_s3 = scalar_lea.vmem [#allocation30], %s13691_s20 }
0x1f4a   : > { %v4903_v3 = vpop.xlane.xlu1 %4902 }
0x1f4b   : > { %v4904_v22 = vsub.f32 %v4897_v63, %v4903_v3 }
0x1f4d   : > { %v4905_v18 = vmul.f32 1.442695, %v4904_v22 }
0x1f4e   : > { %v14314_v15 = vpop.permute.xlu1 %5152 }
0x1f4f   : > { %12306 = vpow2.f32 %v4905_v18  ;;  %15169 = vst [vmem:[#allocation82_spill] sm:$0xff] %v14314_v15 }
0x1f5c   : > { %v12307_v6 = vpop.eup %12306 }
0x1f5d   : > { %v4907_v23 = vsel %vm4177_vm10, %v12307_v6, 0.0 }
0x1f5e   : > { %4908 = vadd.xlane.f32.xlu0 %v4907_v23 }
0x1f74   : > { %4912 = vrot.lane.b32.xlu0 %v14109_v27, %s13087_s1 }
0x1f7c   : > { %v4818_v34 = vpop.f32.mrf.mxu0 }
0x1f7d   : > { %v4822_v48 = vadd.f32 %v4818_v34, %v4583_v20  ;;  %v5064_v20 = vrot.slane %v14175_v61, 6 }
0x1f7e   : > { %v11675_v16 = vpop.f32.mrf.mxu0 }
0x1f7f   : > { %v14306_v3 = vsel %vm3000_vm9, %v5063_v1, %v5064_v20 }
0x1fe7   : > { %v4909_v51 = vpop.xlane.xlu0 %4908 }
0x1fe8   : > { %12308 = vrcp.f32 %v4909_v51 }
0x1feb   : > { %v14293_v17 = vpop.permute.xlu0 %4912 }
0x1fec   : > { %15168 = vst [vmem:[#allocation81_spill] sm:$0xff] %v14293_v17  ;;  %11682 = vmatpush3.msra.mxu0 %v14293_v17 }
0x1fed   : > { %11691 = vmatprep.subr.mxu0 %v15041_v11 }
0x1ff5   : > { %v12309_v63 = vpop.eup %12308 }
0x1ff6   : > { %v4911_v0 = vmul.f32 %v12309_v63, %v12307_v6 }
0x1ff8   : > { %11684 = vmatmul.mubr.msk.f32.vlgmr.msra.gmra.mxu0 %vm2032_vm5, %v4911_v0 }
0x1ff9   : > { %11692 = vmatpush3.xpose.msk.msra.mxu0 %vm2032_vm5, %v13851_v24  ;;  %11693 = vmatprep.mubr.msk.f32.mxu0 %vm13079_vm4, %v15041_v11 }
0x1ffa   : > { %11701 = vmatprep.subr.mxu0 %v15041_v11 }
0x1ffc   : > { %11694 = vmatmul.mubr.msk.f32.vlgmr.msra.gmra.mxu0 %vm2032_vm5, %v14306_v3 }
0x1ffd   : > { %11702 = vmatpush3.msra.mxu0 %v14199_v42  ;;  %11703 = vmatprep.mubr.msk.f32.mxu0 %vm13079_vm4, %v15041_v11 }
0x1ffe   : > { %11711 = vmatprep.subr.mxu0 %v15041_v11 }
0x20b8   : > { %v4984_v61 = vpop.f32.mrf.mxu0 }
0x20b9   : > { %11689 = vmatmul.mubr.msk.f32.vlgmr.msra.gmra.mxu1 %vm2032_vm5, %v4984_v61 }
0x20ba   : > { %11697 = vmatpush3.msra.mxu1 %v14314_v15  ;;  %v11685_v22 = vpop.f32.mrf.mxu0  ;;  %11698 = vmatprep.mubr.msk.f32.mxu1 %vm13079_vm4, %v15041_v11 }
0x20bb   : > { %11706 = vmatprep.subr.mxu1 %v15041_v11 }
0x20bc   : > { %v5137_v18 = vpop.f32.mrf.mxu0 }
0x20bd   : > { %v5141_v6 = vsel %vm4177_vm10, %v5137_v18, -inf }
0x20be   : > { %5142 = vmax.xlane.f32.xlu0 %v5141_v6  ;;  %v11695_v23 = vpop.f32.mrf.mxu0 }
0x20d4   : > { %5302 = vrot.lane.b32.xlu0 %v14306_v3, %s13083_s21 }
0x2147   : > { %v5143_v34 = vpop.xlane.xlu0 %5142 }
0x2148   : > { %v5144_v16 = vsub.f32 %v5137_v18, %v5143_v34  ;;  %v15171_v18 = vmov 0.0  }
0x214a   : > { %v5145_v51 = vmul.f32 1.442695, %v5144_v16 }
0x214b   : > { %v5303_v34 = vpop.permute.xlu0 %5302 }
0x214c   : > { %12310 = vpow2.f32 %v5145_v51 }
0x2159   : > { %v12311_v63 = vpop.eup %12310 }
0x215a   : > { %v5147_v0 = vsel %vm4177_vm10, %v12311_v63, 0.0 }
0x215b   : > { %5148 = vadd.xlane.f32.xlu1 %v5147_v0 }
0x216c   : > { %5304 = vrot.lane.b32.xlu1 %v13851_v24, %s13083_s21 }
0x2179   : > { %v5057_v1 = vpop.f32.mrf.mxu1 }
0x217a   : > { %v14327_v20 = vadd.f32 %v5057_v1, %v4822_v48 }
0x217b   : > { %v11690_v61 = vpop.f32.mrf.mxu1 }
0x21e4   : > { %v5149_v22 = vpop.xlane.xlu1 %5148 }
0x21e5   : > { %12312 = vrcp.f32 %v5149_v22 }
0x21e8   : > { %v14329_v11 = vpop.permute.xlu1 %5304 }
0x21e9   : > { %15170 = vst [vmem:[#allocation83_spill] sm:$0xff] %v14329_v11 }
0x21f2   : > { %v12313_v6 = vpop.eup %12312 }
0x21f3   : > { %v5151_v23 = vmul.f32 %v12313_v6, %v12311_v63 }
0x21f5   : > { %11699 = vmatmul.mubr.msk.f32.vlgmr.msra.gmra.mxu1 %vm2032_vm5, %v5151_v23 }
0x21f6   : > { %11707 = vmatpush3.xpose.msk.msra.mxu1 %vm2032_vm5, %v14329_v11  ;;  %11708 = vmatprep.mubr.msk.f32.mxu1 %vm13079_vm4, %v15171_v18 }
0x21f7   : > { %11716 = vmatprep.subr.mxu1 %v15171_v18 }
0x21f9   : > { %11709 = vmatmul.mubr.msk.f32.vlgmr.msra.gmra.mxu1 %vm2032_vm5, %v5303_v34 }
0x21fa   : > { %11717 = vmatpush3.msra.mxu1 %v14239_v44  ;;  %11718 = vmatprep.mubr.msk.f32.mxu1 %vm13079_vm4, %v15171_v18 }
0x21fb   : > { %11726 = vmatprep.subr.mxu1 %v15171_v18 }
0x22b5   : > { %v5224_v48 = vpop.f32.mrf.mxu1 }
0x22b6   : > { %11704 = vmatmul.mubr.msk.f32.vlgmr.msra.gmra.mxu0 %vm2032_vm5, %v5224_v48 }
0x22b7   : > { %v11700_v16 = vpop.f32.mrf.mxu1  ;;  %11713 = vmatprep.mubr.msk.f32.mxu0 %vm13079_vm4, %v15171_v18 }
0x22b9   : > { %v5376_v51 = vpop.f32.mrf.mxu1 }
0x22ba   : > { %v5380_v63 = vsel %vm4177_vm10, %v5376_v51, -inf }
0x22bb   : > { %5381 = vmax.xlane.f32.xlu1 %v5380_v63  ;;  %v11710_v0 = vpop.f32.mrf.mxu1 }
0x22cc   : > { %5391 = vrot.lane.b32.xlu1 %v13851_v24, %s13081_s2 }
0x22d0   : > { %5541 = vrot.lane.b32.xlu1 %v14306_v3, %s13085_s11 }
0x2344   : > { %v5382_v1 = vpop.xlane.xlu1 %5381 }
0x2345   : > { %v5383_v61 = vsub.f32 %v5376_v51, %v5382_v1 }
0x2347   : > { %v5384_v22 = vmul.f32 1.442695, %v5383_v61 }
0x2348   : > { %v14350_v6 = vpop.permute.xlu1 %5391 }
0x2349   : > { %15172 = vst [vmem:[#allocation84_spill] sm:$0xff] %v14350_v6  ;;  %12314 = vpow2.f32 %v5384_v22  ;;  %11712 = vmatpush3.msra.mxu0 %v14350_v6 }
0x234a   : > { %11721 = vmatprep.subr.mxu0 %v15171_v18 }
0x234c   : > { %v5542_v61 = vpop.permute.xlu1 %5541 }
0x2356   : > { %v12315_v23 = vpop.eup %12314 }
0x2357   : > { %v5386_v34 = vsel %vm4177_vm10, %v12315_v23, 0.0 }
0x2358   : > { %5387 = vadd.xlane.f32.xlu0 %v5386_v34 }
0x236e   : > { %5543 = vrot.lane.b32.xlu0 %v13851_v24, %s13085_s11 }
0x2376   : > { %v5297_v48 = vpop.f32.mrf.mxu0 }
0x2378   : > { %v11705_v16 = vpop.f32.mrf.mxu0 }
0x23e1   : > { %v5388_v63 = vpop.xlane.xlu0 %5387 }
0x23e2   : > { %12316 = vrcp.f32 %v5388_v63 }
0x23e5   : > { %v14357_v1 = vpop.permute.xlu0 %5543 }
0x23e6   : > { %15173 = vst [vmem:[#allocation85_spill] sm:$0xff] %v14357_v1 }
0x23ef   : > { %v12317_v51 = vpop.eup %12316 }
0x23f0   : > { %v5390_v0 = vmul.f32 %v12317_v51, %v12315_v23 }
0x23f2   : > { %11714 = vmatmul.mubr.msk.f32.vlgmr.msra.gmra.mxu0 %vm2032_vm5, %v5390_v0 }
0x23f3   : > { %11722 = vmatpush3.xpose.msk.msra.mxu0 %vm2032_vm5, %v14357_v1  ;;  %11723 = vmatprep.mubr.msk.f32.mxu0 %vm13079_vm4, %v15171_v18 }
0x23f4   : > { %11731 = vmatprep.subr.mxu0 %v15171_v18 }
0x23f6   : > { %11724 = vmatmul.mubr.msk.f32.vlgmr.msra.gmra.mxu0 %vm2032_vm5, %v5542_v61 }
0x23f7   : > { %11732 = vmatpush3.msra.mxu0 %v14275_v49  ;;  %11733 = vmatprep.mubr.msk.f32.mxu0 %vm13079_vm4, %v15171_v18 }
0x23f8   : > { %11741 = vmatprep.subr.mxu0 %v15171_v18 }
0x24b2   : > { %v5463_v22 = vpop.f32.mrf.mxu0 }
0x24b3   : > { %11719 = vmatmul.mubr.msk.f32.vlgmr.msra.gmra.mxu1 %vm2032_vm5, %v5463_v22 }
0x24b4   : > { %v11715_v23 = vpop.f32.mrf.mxu0  ;;  %11728 = vmatprep.mubr.msk.f32.mxu1 %vm13079_vm4, %v15171_v18 }
0x24b6   : > { %v5615_v34 = vpop.f32.mrf.mxu0 }
0x24b7   : > { %v5619_v16 = vsel %vm4177_vm10, %v5615_v34, -inf }
0x24b8   : > { %5620 = vmax.xlane.f32.xlu1 %v5619_v16  ;;  %v11725_v63 = vpop.f32.mrf.mxu0  ;;  %v5301_v16 = vadd.f32 %v14260_v13, %v5297_v48 }
0x24c9   : > { %5630 = vrot.lane.b32.xlu1 %v13851_v24, %s13086_s6 }
0x24cd   : > { %5780 = vrot.lane.b32.xlu1 %v14306_v3, %s13088_s13 }
0x2541   : > { %v5621_v51 = vpop.xlane.xlu1 %5620 }
0x2542   : > { %v5622_v0 = vsub.f32 %v5615_v34, %v5621_v51 }
0x2544   : > { %v5623_v61 = vmul.f32 1.442695, %v5622_v0 }
0x2545   : > { %v14378_v1 = vpop.permute.xlu1 %5630 }
0x2546   : > { %15174 = vst [vmem:[#allocation86_spill] sm:$0xff] %v14378_v1  ;;  %12318 = vpow2.f32 %v5623_v61  ;;  %11727 = vmatpush3.msra.mxu1 %v14378_v1 }
0x2547   : > { %11736 = vmatprep.subr.mxu1 %v15171_v18 }
0x2549   : > { %v5781_v48 = vpop.permute.xlu1 %5780 }
0x2553   : > { %v12319_v22 = vpop.eup %12318 }
0x2554   : > { %v5625_v23 = vsel %vm4177_vm10, %v12319_v22, 0.0 }
0x2555   : > { %5626 = vadd.xlane.f32.xlu0 %v5625_v23 }
0x256b   : > { %5782 = vrot.lane.b32.xlu0 %v13851_v24, %s13088_s13 }
0x2573   : > { %v5536_v3 = vpop.f32.mrf.mxu1 }
0x2574   : > { %v5540_v63 = vadd.f32 %v5536_v3, %v5301_v16 }
0x2575   : > { %v11720_v34 = vpop.f32.mrf.mxu1 }
0x25de   : > { %v5627_v51 = vpop.xlane.xlu0 %5626 }
0x25df   : > { %12320 = vrcp.f32 %v5627_v51 }
0x25e2   : > { %v14386_v6 = vpop.permute.xlu0 %5782 }
0x25e3   : > { %15175 = vst [vmem:[#allocation87_spill] sm:$0xff] %v14386_v6 }
0x25ec   : > { %v12321_v0 = vpop.eup %12320 }
0x25ed   : > { %v5629_v61 = vmul.f32 %v12321_v0, %v12319_v22 }
0x25ef   : > { %11729 = vmatmul.mubr.msk.f32.vlgmr.msra.gmra.mxu1 %vm2032_vm5, %v5629_v61 }
0x25f0   : > { %11737 = vmatpush3.xpose.msk.msra.mxu1 %vm2032_vm5, %v14386_v6  ;;  %11738 = vmatprep.mubr.msk.f32.mxu1 %vm13079_vm4, %v15171_v18 }
0x25f1   : > { %11746 = vmatprep.subr.mxu1 %v15171_v18 }
0x25f3   : > { %11739 = vmatmul.mubr.msk.f32.vlgmr.msra.gmra.mxu1 %vm2032_vm5, %v5781_v48 }
0x25f4   : > { %11747 = vmatpush3.msra.mxu1 %v14289_v36  ;;  %11748 = vmatprep.mubr.msk.f32.mxu1 %vm13079_vm4, %v15171_v18 }
0x26af   : > { %v5702_v22 = vpop.f32.mrf.mxu1 }
0x26b0   : > { %11734 = vmatmul.mubr.msk.f32.vlgmr.msra.gmra.mxu0 %vm2032_vm5, %v5702_v22 }
0x26b1   : > { %v11730_v23 = vpop.f32.mrf.mxu1  ;;  %11743 = vmatprep.mubr.msk.f32.mxu0 %vm13079_vm4, %v15171_v18 }
0x26b3   : > { %v5854_v16 = vpop.f32.mrf.mxu1 }
0x26b4   : > { %v5858_v3 = vsel %vm4177_vm10, %v5854_v16, -inf }
0x26b5   : > { %5859 = vmax.xlane.f32.xlu1 %v5858_v3  ;;  %v11740_v34 = vpop.f32.mrf.mxu1 }
0x26c6   : > { %5869 = vrot.lane.b32.xlu1 %v13851_v24, %s13087_s1 }
0x273e   : > { %v5860_v51 = vpop.xlane.xlu1 %5859 }
0x273f   : > { %v5861_v0 = vsub.f32 %v5854_v16, %v5860_v51 }
0x2741   : > { %v5862_v61 = vmul.f32 1.442695, %v5861_v0 }
0x2742   : > { %v14404_v48 = vpop.permute.xlu1 %5869 }
0x2743   : > { %15176 = vst [vmem:[#allocation88_spill] sm:$0xff] %v14404_v48  ;;  %12322 = vpow2.f32 %v5862_v61  ;;  %11742 = vmatpush3.msra.mxu0 %v14404_v48 }
0x2750   : > { %v12323_v22 = vpop.eup %12322 }
0x2751   : > { %v5864_v23 = vsel %vm4177_vm10, %v12323_v22, 0.0 }
0x2752   : > { %5865 = vadd.xlane.f32.xlu0 %v5864_v23 }
0x2770   : > { %v5775_v18 = vpop.f32.mrf.mxu0 }
0x2771   : > { %v5779_v6 = vadd.f32 %v5775_v18, %v5540_v63 }
0x2772   : > { %v11735_v1 = vpop.f32.mrf.mxu0 }
0x27db   : > { %v5866_v3 = vpop.xlane.xlu0 %5865 }
0x27dc   : > { %12324 = vrcp.f32 %v5866_v3 }
0x27e9   : > { %v12325_v34 = vpop.eup %12324 }
0x27ea   : > { %v5868_v11 = vmul.f32 %v12325_v34, %v12323_v22 }
0x27ec   : > { %11744 = vmatmul.mubr.msk.f32.vlgmr.msra.gmra.mxu0 %vm2032_vm5, %v5868_v11 }
0x28ac   : > { %v5941_v16 = vpop.f32.mrf.mxu0 }
0x28ad   : > { %11749 = vmatmul.mubr.msk.f32.vlgmr.msra.gmra.mxu1 %vm2032_vm5, %v5941_v16 }
0x28ae   : > { %v11745_v51 = vpop.f32.mrf.mxu0 }
0x28af   : > { %v14427_v51 = vld [vmem:[%s13746_s9 + $0x18] sm:$0xff] }
0x28b0   : > { %15177 = vst [vmem:[#allocation89_spill] sm:$0xff] %v14427_v51  ;;  %11751 = vmatprep.subr.mxu0 %v14427_v51 }
0x28b1   : > { %11752 = vmatpush3.msra.mxu0 %v14427_v51 }
0x296d   : > { %v6014_v0 = vpop.f32.mrf.mxu1 }
0x296e   : > { %v6018_v61 = vadd.f32 %v6014_v0, %v5779_v6  ;;  %v14430_v0 = vld [vmem:[%s13746_s9 + $0x10] sm:$0xff] }
0x296f   : > { %v11750_v48 = vpop.f32.mrf.mxu1  ;;  %15178 = vst [vmem:[#allocation90_spill] sm:$0xff] %v14430_v0  ;;  %11753 = vmatprep.subr.mxu0 %v14430_v0 }
0x2970   : > { %v6020_v15 = vrot.slane %v6018_v61, 2  ;;  %v14435_v61 = vld [vmem:[%s13746_s9 + $0x8] sm:$0xff]  ;;  %11754 = vmatpush3.msra.mxu0 %v14430_v0 }
0x2971   : > { %15179 = vst [vmem:[#allocation91_spill] sm:$0xff] %v14435_v61  ;;  %11755 = vmatprep.subr.mxu0 %v14435_v61 }
0x2972   : > { %v6022_v23 = vsel %vm2126_vm7, %v14327_v20, %v6020_v15  ;;  %v14416_v1 = vadd.f32 %v6020_v15, %v14123_v12  ;;  %11756 = vmatpush3.msra.mxu0 %v14435_v61 }
0x2973   : > { %v14413_v63 = vadd.f32 %v6022_v23, %v14120_v28  ;;  %v14442_v23 = vld [vmem:[%s13746_s9] sm:$0xff] }
0x2974   : > { %v6028_v6 = vsel %vm1689_vm3, %v14416_v1, 0.0  ;;  %15181 = vst [vmem:[#allocation92_spill] sm:$0xff] %v14442_v23  ;;  %11757 = vmatprep.subr.mxu0 %v14442_v23 }
0x2975   : > { %v6025_v11 = vsel %vm1685_vm2, %v14413_v63, 0.0  ;;  %11758 = vmatpush3.msra.mxu0 %v14442_v23 }
0x2976   : > { %6026 = vadd.xlane.f32.xlu0 %v6025_v11 }
0x297a   : > { %6029 = vadd.xlane.f32.xlu0 %v6028_v6 }
0x29ff   : > { %v6027_v48 = vpop.xlane.xlu0 %6026 }
0x2a00   : > { %v6031_v22 = vmul.f32 0.03125, %v6027_v48 }
0x2a02   : > { %v6033_v20 = vsub.f32 %v14413_v63, %v6031_v22 }
0x2a03   : > { %v6030_v28 = vpop.xlane.xlu0 %6029 }
0x2a04   : > { %v6032_v18 = vmul.f32 0.03125, %v6030_v28  ;;  %v6035_v3 = vmul.f32 %v6033_v20, %v6033_v20 }
0x2a06   : > { %v6034_v12 = vsub.f32 %v14416_v1, %v6032_v18  ;;  %v6037_v15 = vsel %vm1685_vm2, %v6035_v3, 0.0 }
0x2a07   : > { %6038 = vadd.xlane.f32.xlu0 %v6037_v15  ;;  %v14448_v15 = vld [vmem:[%s15182_s3] ss:$0 sm:$0xff] }
0x2a08   : > { %v6036_v34 = vmul.f32 %v6034_v12, %v6034_v12  ;;  %15183 = vst [vmem:[#allocation93_spill] sm:$0xff] %v14448_v15 }
0x2a0a   : > { %v6040_v16 = vsel %vm1689_vm3, %v6036_v34, 0.0 }
0x2a0b   : > { %6041 = vadd.xlane.f32.xlu1 %v6040_v16  ;;  %v14453_v16 = vld [vmem:[%s1606_s10] ss:$0 sm:$0xff] }
0x2a0c   : > { %15184 = vst [vmem:[#allocation94_spill] sm:$0xff] %v14453_v16 }
0x2a90   : > { %v6039_v11 = vpop.xlane.xlu0 %6038 }
0x2a91   : > { %v6043_v6 = vmul.f32 0.03125, %v6039_v11 }
0x2a93   : > { %v6045_v48 = vadd.f32 1e-05, %v6043_v6 }
0x2a94   : > { %v6042_v22 = vpop.xlane.xlu1 %6041 }
0x2a95   : > { %12326 = vrsqrt.f32 %v6045_v48  ;;  %v6044_v28 = vmul.f32 0.03125, %v6042_v22 }
0x2a97   : > { %v6046_v18 = vadd.f32 1e-05, %v6044_v28 }
0x2a99   : > { %12328 = vrsqrt.f32 %v6046_v18  ;;  %v14477_v18 = vld [vmem:[%s13774_s24 + $0x20] sm:$0xff] }
0x2a9a   : > { %15189 = vst [vmem:[#allocation98_spill] sm:$0xff] %v14477_v18 }
0x2aa2   : > { %v12327_v3 = vpop.eup %12326 }
0x2aa3   : > { %v6049_v34 = vmul.f32 %v12327_v3, %v6033_v20  ;;  %v14462_v20 = vld [vmem:[%s13774_s24 + $0x38] sm:$0xff] }
0x2aa4   : > { %15185 = vst [vmem:[#allocation95_spill] sm:$0xff] %v14462_v20  ;;  %11762 = vmatprep.subr.mxu1 %v14462_v20  ;;  %v14482_v3 = vld [vmem:[%s13774_s24 + $0x18] sm:$0xff] }
0x2aa5   : > { %v6057_v23 = vmul.f32 %v14448_v15, %v6049_v34  ;;  %11763 = vmatpush3.msra.mxu1 %v14462_v20  ;;  %15190 = vst [vmem:[#allocation99_spill] sm:$0xff] %v14482_v3  ;;  %v14487_v34 = vld [vmem:[%s13774_s24 + $0x10] sm:$0xff] }
0x2aa6   : > { %v12329_v11 = vpop.eup %12328  ;;  %15191 = vst [vmem:[#allocation100_spill] sm:$0xff] %v14487_v34 }
0x2aa7   : > { %v6050_v6 = vmul.f32 %v12329_v11, %v6034_v12  ;;  %v6065_v48 = vadd.f32 %v14453_v16, %v6057_v23  ;;  %v14467_v12 = vld [vmem:[%s13774_s24 + $0x30] sm:$0xff]  ;;  %v14472_v23 = vld [vmem:[%s13774_s24 + $0x28] sm:$0xff] }
0x2aa8   : > { %15186 = vst [vmem:[#allocation96_spill] sm:$0xff] %v14467_v12  ;;  %11764 = vmatprep.subr.mxu1 %v14467_v12  ;;  %15187 = vst [vmem:[#allocation97_spill] sm:$0xff] %v14472_v23  ;;  %v14491_v11 = vld [vmem:[%s13774_s24 + $0x8] sm:$0xff] }
0x2aa9   : > { %v6058_v22 = vmul.f32 %v14448_v15, %v6050_v6  ;;  %11759 = vmatprep.mubr.msk.f32.mxu0 %vm1685_vm2, %v6065_v48  ;;  %11765 = vmatpush3.msra.mxu1 %v14467_v12  ;;  %15192 = vst [vmem:[#allocation101_spill] sm:$0xff] %v14491_v11  ;;  %v14495_v6 = vld [vmem:[%s13774_s24] sm:$0xff] }
0x2aaa   : > { %11766 = vmatprep.subr.mxu1 %v14472_v23  ;;  %15193 = vst [vmem:[#allocation102_spill] sm:$0xff] %v14495_v6  ;;  %v14504_v48 = vld [vmem:[%s1609_s7] ss:$0 sm:$0xff]  ;;  %s13095_s7 = smov (!%p11109_p9), 104  }
0x2aab   : > { %v6066_v28 = vadd.f32 %v14453_v16, %v6058_v22  ;;  %11767 = vmatpush3.msra.mxu1 %v14472_v23 }
0x2aac   : > { %11768 = vmatprep.subr.mxu1 %v14477_v18 }
0x2aad   : > { %11760 = vmatmul.mubr.msk.f32.vlgmr.msra.gmra.mxu0 %vm1685_vm2, %v6066_v28  ;;  %11769 = vmatpush3.msra.mxu1 %v14477_v18 }
0x2aae   : > { %11770 = vmatprep.subr.mxu1 %v14482_v3 }
0x2aaf   : > { %11771 = vmatpush3.msra.mxu1 %v14482_v3 }
0x2ab0   : > { %11772 = vmatprep.subr.mxu1 %v14487_v34 }
0x2ab1   : > { %11773 = vmatpush3.msra.mxu1 %v14487_v34 }
0x2ab2   : > { %11774 = vmatprep.subr.mxu1 %v14491_v11 }
0x2ab3   : > { %11775 = vmatpush3.msra.mxu1 %v14491_v11 }
0x2ab4   : > { %11776 = vmatprep.subr.mxu1 %v14495_v6 }
0x2ab5   : > { %11777 = vmatpush3.msra.mxu1 %v14495_v6 }
0x2b6d   : > { %v11761_v22 = vpop.f32.mrf.mxu0 }
0x2b6e   : > { %v6151_v28 = vadd.f32 %v11761_v22, %v14504_v48 }
0x2b6f   : > { %v6145_v16 = vpop.f32.mrf.mxu0 }
0x2b70   : > { %v6155_v15 = vmul.f32 %v6151_v28, %v6151_v28  ;;  %v6146_v34 = vadd.f32 %v14504_v48, %v6145_v16 }
0x2b72   : > { %v6157_v3 = vmul.f32 %v6155_v15, %v6151_v28  ;;  %v6154_v18 = vmul.f32 %v6146_v34, %v6146_v34 }
0x2b74   : > { %v6159_v23 = vmul.f32 0.044715, %v6157_v3  ;;  %v6156_v12 = vmul.f32 %v6154_v18, %v6146_v34 }
0x2b76   : > { %v6161_v61 = vadd.f32 %v6159_v23, %v6151_v28  ;;  %v6158_v11 = vmul.f32 0.044715, %v6156_v12 }
0x2b78   : > { %v6163_v0 = vmul.f32 0.7978846, %v6161_v61  ;;  %v6160_v6 = vadd.f32 %v6158_v11, %v6146_v34  ;;  %v14513_v61 = vld [vmem:[%s1617_s12] ss:$0 sm:$0xff]  ;;  %s13093_s12 = smov (!%p11109_p9), 120  }
0x2b7a   : > { %12330 = vtanh.f32 %v6163_v0  ;;  %v6162_v51 = vmul.f32 0.7978846, %v6160_v6 }
0x2b7c   : > { %12332 = vtanh.f32 %v6162_v51 }
0x2b87   : > { %v12331_v20 = vpop.eup %12330 }
0x2b88   : > { %v6167_v24 = vadd.f32 1.0, %v12331_v20 }
0x2b89   : > { %v12333_v22 = vpop.eup %12332 }
0x2b8a   : > { %v6166_v17 = vadd.f32 1.0, %v12333_v22  ;;  %v6169_v36 = vmul.f32 0.5, %v6167_v24 }
0x2b8c   : > { %v6168_v46 = vmul.f32 0.5, %v6166_v17  ;;  %v6171_v16 = vmul.f32 %v6169_v36, %v6151_v28 }
0x2b8e   : > { %v6170_v15 = vmul.f32 %v6168_v46, %v6146_v34 }
0x2b90   : > { %11778 = vmatprep.mubr.msk.f32.mxu1 %vm6178_vm11, %v6170_v15 }
0x2b91   : > { %11779 = vmatmul.mubr.msk.f32.vlgmr.msra.gmra.mxu1 %vm6178_vm11, %v6171_v16 }
0x2c51   : > { %v11780_v12 = vpop.f32.mrf.mxu1 }
0x2c52   : > { %v6257_v0 = vadd.f32 %v11780_v12, %v14513_v61 }
0x2c53   : > { %v6251_v51 = vpop.f32.mrf.mxu1 }
0x2c54   : > { %v14517_v20 = vadd.f32 %v6257_v0, %v14416_v1  ;;  %v6252_v24 = vadd.f32 %v14513_v61, %v6251_v51  ;;  %6267 = sbr.rel (%p11109_p9) target bundleno = 21217 (0x52e1), region = 216 }
0x2c56   : > { %6263 = vst.msk [vmem:[#allocation2 + $0x8] sm:$0xf] %vm1689_vm3, %v14517_v20  ;;  %v14523_v46 = vadd.f32 %v6252_v24, %v14413_v63 }
0x2c58   : > { %6262 = vst.msk [vmem:[#allocation2] sm:$0xff] %vm1685_vm2, %v14523_v46 }
0x2c59   : > { %v13091_v36 = vmov 0.0   ;;  %vm13092_vm12 = vmmov 0   ;;  %6498 = vrot.lane.b32.xlu0 %v13838_v19, %s13093_s12 }
0x2c5a   : > { %11781 = vmatprep.subr.mxu1 %v13091_v36  ;;  %11783 = vmatprep.mubr.msk.f32.mxu1 %vm13092_vm12, %v13091_v36 }
0x2c5b   : > { %11782 = vmatpush3.xpose.msk.msra.mxu1 %vm2032_vm5, %v13853_v26  ;;  %11796 = vmatprep.subr.mxu0 %v13091_v36 }
0x2c5c   : > { %11798 = vmatprep.mubr.msk.f32.mxu0 %vm13092_vm12, %v13091_v36  ;;  %11797 = vmatpush3.xpose.msk.msra.mxu0 %vm2032_vm5, %v13877_v41 }
0x2c5d   : > { %11786 = vmatprep.subr.mxu1 %v13091_v36  ;;  %11806 = vmatprep.subr.mxu0 %v13091_v36 }
0x2c5e   : > { %11784 = vmatmul.mubr.msk.f32.vlgmr.msra.gmra.mxu1 %vm2032_vm5, %v13838_v19 }
0x2c5f   : > { %11787 = vmatpush3.msk.msra.mxu1 %vm2126_vm7, %v13869_v35  ;;  %11788 = vmatprep.mubr.msk.f32.mxu1 %vm13092_vm12, %v13091_v36 }
0x2c60   : > { %11791 = vmatprep.subr.mxu1 %v13091_v36 }
0x2ccb   : > { %v6499_v26 = vpop.permute.xlu0 %6498 }
0x2ccc   : > { %11799 = vmatmul.mubr.msk.f32.vlgmr.msra.gmra.mxu0 %vm2032_vm5, %v6499_v26 }
0x2ccd   : > { %11807 = vmatpush3.msra.mxu0 %v13921_v62  ;;  %11808 = vmatprep.mubr.msk.f32.mxu0 %vm13092_vm12, %v13091_v36 }
0x2cce   : > { %11816 = vmatprep.subr.mxu0 %v13091_v36 }
0x2d1e   : > { %v6336_v41 = vpop.f32.mrf.mxu1 }
0x2d1f   : > { %v6340_v17 = vsel %vm2108_vm6, %v6336_v41, -inf }
0x2d20   : > { %6341 = vmax.xlane.f32.xlu0 %v6340_v17  ;;  %v11785_v35 = vpop.f32.mrf.mxu1 }
0x2d8c   : > { %v6568_v63 = vpop.f32.mrf.mxu0 }
0x2d8d   : > { %v6572_v6 = vsel %vm2108_vm6, %v6568_v63, -inf }
0x2d8e   : > { %v11800_v1 = vpop.f32.mrf.mxu0 }
0x2da9   : > { %v6342_v23 = vpop.xlane.xlu0 %6341 }
0x2daa   : > { %v6343_v18 = vsub.f32 %v6336_v41, %v6342_v23 }
0x2dac   : > { %v6344_v3 = vmul.f32 1.442695, %v6343_v18 }
0x2dae   : > { %12334 = vpow2.f32 %v6344_v3 }
0x2dbb   : > { %v12335_v34 = vpop.eup %12334 }
0x2dbc   : > { %v6346_v11 = vsel %vm2108_vm6, %v12335_v34, 0.0 }
0x2dbd   : > { %6347 = vadd.xlane.f32.xlu1 %v6346_v11 }
0x2dc1   : > { %6573 = vmax.xlane.f32.xlu1 %v6572_v6 }
0x2e46   : > { %v6348_v28 = vpop.xlane.xlu1 %6347 }
0x2e47   : > { %12336 = vrcp.f32 %v6348_v28 }
0x2e4a   : > { %v6574_v22 = vpop.xlane.xlu1 %6573 }
0x2e4b   : > { %v6575_v15 = vsub.f32 %v6568_v63, %v6574_v22 }
0x2e4d   : > { %v6576_v16 = vmul.f32 1.442695, %v6575_v15 }
0x2e4f   : > { %12338 = vpow2.f32 %v6576_v16 }
0x2e54   : > { %v12337_v12 = vpop.eup %12336 }
0x2e55   : > { %v6350_v0 = vmul.f32 %v12337_v12, %v12335_v34 }
0x2e57   : > { %11789 = vmatmul.mubr.msk.f32.vlgmr.msra.gmra.mxu1 %vm2122_vm8, %v6350_v0 }
0x2e58   : > { %11792 = vmatpush3.msra.mxu1 %v13889_v43  ;;  %11793 = vmatprep.mubr.msk.f32.mxu1 %vm13092_vm12, %v13091_v36 }
0x2e59   : > { %11801 = vmatprep.subr.mxu1 %v13091_v36 }
0x2e5c   : > { %v12339_v51 = vpop.eup %12338 }
0x2e5d   : > { %v6578_v24 = vsel %vm2108_vm6, %v12339_v51, 0.0 }
0x2e5e   : > { %6579 = vadd.xlane.f32.xlu1 %v6578_v24 }
0x2e6f   : > { %6730 = vrot.lane.b32.xlu1 %v13838_v19, %s13094_s0 }
0x2ee7   : > { %v6580_v26 = vpop.xlane.xlu1 %6579 }
0x2ee8   : > { %12340 = vrcp.f32 %v6580_v26 }
0x2eeb   : > { %v6731_v1 = vpop.permute.xlu1 %6730 }
0x2ef5   : > { %v12341_v41 = vpop.eup %12340 }
0x2ef6   : > { %v6582_v63 = vmul.f32 %v12341_v41, %v12339_v51 }
0x2f17   : > { %v6420_v17 = vpop.f32.mrf.mxu1 }
0x2f18   : > { %11794 = vmatmul.mubr.msk.f32.vlgmr.msra.gmra.mxu1 %vm2032_vm5, %v6420_v17 }
0x2f19   : > { %11802 = vmatpush3.msk.msra.mxu1 %vm2126_vm7, %v13901_v52  ;;  %v11790_v35 = vpop.f32.mrf.mxu1  ;;  %11803 = vmatprep.mubr.msk.f32.mxu1 %vm13092_vm12, %v13091_v36 }
0x2f1a   : > { %11811 = vmatprep.subr.mxu1 %v13091_v36 }
0x2f1c   : > { %11804 = vmatmul.mubr.msk.f32.vlgmr.msra.gmra.mxu1 %vm2122_vm8, %v6582_v63 }
0x2f1d   : > { %11812 = vmatpush3.xpose.msk.msra.mxu1 %vm2032_vm5, %v13909_v60  ;;  %11813 = vmatprep.mubr.msk.f32.mxu1 %vm13092_vm12, %v13091_v36 }
0x2f1e   : > { %11821 = vmatprep.subr.mxu1 %v13091_v36 }
0x2f20   : > { %11814 = vmatmul.mubr.msk.f32.vlgmr.msra.gmra.mxu1 %vm2032_vm5, %v6731_v1 }
0x2f21   : > { %11822 = vmatpush3.msra.mxu1 %v13958_v33  ;;  %11823 = vmatprep.mubr.msk.f32.mxu1 %vm13092_vm12, %v13091_v36 }
0x2f22   : > { %11831 = vmatprep.subr.mxu1 %v13091_v36 }
0x2fd8   : > { %v6493_v52 = vpop.f32.mrf.mxu1 }
0x2fda   : > { %v11795_v23 = vpop.f32.mrf.mxu1 }
0x2fdc   : > { %v6652_v18 = vpop.f32.mrf.mxu1 }
0x2fdd   : > { %11809 = vmatmul.mubr.msk.f32.vlgmr.msra.gmra.mxu0 %vm2032_vm5, %v6652_v18 }
0x2fde   : > { %v11805_v60 = vpop.f32.mrf.mxu1  ;;  %11817 = vmatpush3.msk.msra.mxu0 %vm2126_vm7, %v13941_v25  ;;  %11818 = vmatprep.mubr.msk.f32.mxu0 %vm13092_vm12, %v13091_v36  ;;  %v6497_v25 = vadd.f32 %v13938_v14, %v6493_v52 }
0x2fdf   : > { %11826 = vmatprep.subr.mxu0 %v13091_v36 }
0x2fe0   : > { %v6800_v3 = vpop.f32.mrf.mxu1 }
0x2fe1   : > { %v6804_v34 = vsel %vm2108_vm6, %v6800_v3, -inf }
0x2fe2   : > { %6805 = vmax.xlane.f32.xlu1 %v6804_v34  ;;  %v11815_v11 = vpop.f32.mrf.mxu1 }
0x306b   : > { %v6806_v6 = vpop.xlane.xlu1 %6805 }
0x306c   : > { %v6807_v28 = vsub.f32 %v6800_v3, %v6806_v6 }
0x306e   : > { %v6808_v22 = vmul.f32 1.442695, %v6807_v28 }
0x3070   : > { %12342 = vpow2.f32 %v6808_v22 }
0x307d   : > { %v12343_v15 = vpop.eup %12342 }
0x307e   : > { %v6810_v16 = vsel %vm2108_vm6, %v12343_v15, 0.0 }
0x307f   : > { %6811 = vadd.xlane.f32.xlu0 %v6810_v16 }
0x3095   : > { %6962 = vrot.lane.b32.xlu0 %v13838_v19, %s13095_s7 }
0x309d   : > { %v6725_v12 = vpop.f32.mrf.mxu0 }
0x309e   : > { %v6729_v0 = vadd.f32 %v6725_v12, %v6497_v25 }
0x309f   : > { %v11810_v51 = vpop.f32.mrf.mxu0 }
0x3108   : > { %v6812_v24 = vpop.xlane.xlu0 %6811 }
0x3109   : > { %12344 = vrcp.f32 %v6812_v24 }
0x310c   : > { %v6963_v17 = vpop.permute.xlu0 %6962 }
0x3116   : > { %v12345_v26 = vpop.eup %12344 }
0x3117   : > { %v6814_v41 = vmul.f32 %v12345_v26, %v12343_v15 }
0x3119   : > { %11819 = vmatmul.mubr.msk.f32.vlgmr.msra.gmra.mxu0 %vm2122_vm8, %v6814_v41 }
0x311a   : > { %11827 = vmatpush3.xpose.msk.msra.mxu0 %vm2032_vm5, %v13946_v30  ;;  %11828 = vmatprep.mubr.msk.f32.mxu0 %vm13092_vm12, %v13091_v36 }
0x311b   : > { %11836 = vmatprep.subr.mxu0 %v13091_v36 }
0x311d   : > { %11829 = vmatmul.mubr.msk.f32.vlgmr.msra.gmra.mxu0 %vm2032_vm5, %v6963_v17 }
0x311e   : > { %11837 = vmatpush3.msra.mxu0 %v14001_v21  ;;  %11838 = vmatprep.mubr.msk.f32.mxu0 %vm13092_vm12, %v13091_v36 }
0x311f   : > { %11846 = vmatprep.subr.mxu0 %v13091_v36 }
0x31d9   : > { %v6884_v19 = vpop.f32.mrf.mxu0 }
0x31da   : > { %11824 = vmatmul.mubr.msk.f32.vlgmr.msra.gmra.mxu1 %vm2032_vm5, %v6884_v19 }
0x31db   : > { %v11820_v35 = vpop.f32.mrf.mxu0  ;;  %11832 = vmatpush3.msk.msra.mxu1 %vm2126_vm7, %v13968_v45  ;;  %11833 = vmatprep.mubr.msk.f32.mxu1 %vm13092_vm12, %v13091_v36 }
0x31dc   : > { %11841 = vmatprep.subr.mxu1 %v13091_v36 }
0x31dd   : > { %v7032_v30 = vpop.f32.mrf.mxu0 }
0x31de   : > { %v7036_v63 = vsel %vm2108_vm6, %v7032_v30, -inf }
0x31df   : > { %7037 = vmax.xlane.f32.xlu0 %v7036_v63  ;;  %v11830_v1 = vpop.f32.mrf.mxu0 }
0x3268   : > { %v7038_v52 = vpop.xlane.xlu0 %7037 }
0x3269   : > { %v7039_v23 = vsub.f32 %v7032_v30, %v7038_v52 }
0x326b   : > { %v7040_v18 = vmul.f32 1.442695, %v7039_v23 }
0x326d   : > { %12346 = vpow2.f32 %v7040_v18 }
0x327a   : > { %v12347_v60 = vpop.eup %12346 }
0x327b   : > { %v7042_v3 = vsel %vm2108_vm6, %v12347_v60, 0.0 }
0x327c   : > { %7043 = vadd.xlane.f32.xlu1 %v7042_v3 }
0x329a   : > { %v6957_v34 = vpop.f32.mrf.mxu1 }
0x329b   : > { %v6961_v45 = vadd.f32 %v6957_v34, %v6729_v0 }
0x329c   : > { %v11825_v11 = vpop.f32.mrf.mxu1 }
0x3305   : > { %v7044_v6 = vpop.xlane.xlu1 %7043 }
0x3306   : > { %12348 = vrcp.f32 %v7044_v6 }
0x3313   : > { %v12349_v28 = vpop.eup %12348 }
0x3314   : > { %v7046_v22 = vmul.f32 %v12349_v28, %v12347_v60 }
0x3316   : > { %11834 = vmatmul.mubr.msk.f32.vlgmr.msra.gmra.mxu1 %vm2122_vm8, %v7046_v22 }
0x3317   : > { %11842 = vmatpush3.xpose.msk.msra.mxu1 %vm2032_vm5, %v13982_v59  ;;  %11843 = vmatprep.mubr.msk.f32.mxu1 %vm13092_vm12, %v13091_v36 }
0x3318   : > { %11851 = vmatprep.subr.mxu1 %v13091_v36 }
0x331a   : > { %11844 = vmatmul.mubr.msk.f32.vlgmr.msra.gmra.mxu1 %vm2032_vm5, %v13977_v50 }
0x331b   : > { %11852 = vmatpush3.msra.mxu1 %v13889_v43  ;;  %11853 = vmatprep.mubr.msk.f32.mxu1 %vm13092_vm12, %v13091_v36 }
0x331c   : > { %11861 = vmatprep.subr.mxu1 %v13091_v36 }
0x33d6   : > { %v7116_v15 = vpop.f32.mrf.mxu1 }
0x33d7   : > { %11839 = vmatmul.mubr.msk.f32.vlgmr.msra.gmra.mxu0 %vm2032_vm5, %v7116_v15 }
0x33d8   : > { %v11835_v16 = vpop.f32.mrf.mxu1  ;;  %11847 = vmatpush3.msk.msra.mxu0 %vm2126_vm7, %v14013_v10  ;;  %11848 = vmatprep.mubr.msk.f32.mxu0 %vm13092_vm12, %v13091_v36 }
0x33d9   : > { %11856 = vmatprep.subr.mxu0 %v13091_v36 }
0x33da   : > { %v7262_v59 = vpop.f32.mrf.mxu1 }
0x33db   : > { %v7266_v43 = vsel %vm2108_vm6, %v7262_v59, -inf }
0x33dc   : > { %7267 = vmax.xlane.f32.xlu1 %v7266_v43  ;;  %v11845_v25 = vpop.f32.mrf.mxu1 }
0x3465   : > { %v7268_v12 = vpop.xlane.xlu1 %7267 }
0x3466   : > { %v7269_v0 = vsub.f32 %v7262_v59, %v7268_v12 }
0x3468   : > { %v7270_v51 = vmul.f32 1.442695, %v7269_v0 }
0x346a   : > { %12350 = vpow2.f32 %v7270_v51 }
0x3477   : > { %v12351_v24 = vpop.eup %12350 }
0x3478   : > { %v7272_v26 = vsel %vm2108_vm6, %v12351_v24, 0.0 }
0x3479   : > { %7273 = vadd.xlane.f32.xlu1 %v7272_v26 }
0x348a   : > { %7424 = vrot.lane.b32.xlu1 %v13977_v50, %s13093_s12 }
0x3497   : > { %v7189_v10 = vpop.f32.mrf.mxu0 }
0x3498   : > { %v14634_v41 = vadd.f32 %v7189_v10, %v6961_v45 }
0x3499   : > { %v11840_v17 = vpop.f32.mrf.mxu0 }
0x3502   : > { %v7274_v19 = vpop.xlane.xlu1 %7273 }
0x3503   : > { %12352 = vrcp.f32 %v7274_v19 }
0x3506   : > { %v7425_v63 = vpop.permute.xlu1 %7424 }
0x3510   : > { %v12353_v35 = vpop.eup %12352 }
0x3511   : > { %v7276_v30 = vmul.f32 %v12353_v35, %v12351_v24 }
0x3513   : > { %11849 = vmatmul.mubr.msk.f32.vlgmr.msra.gmra.mxu0 %vm2122_vm8, %v7276_v30 }
0x3514   : > { %11857 = vmatpush3.xpose.msk.msra.mxu0 %vm2032_vm5, %v14023_v31  ;;  %11858 = vmatprep.mubr.msk.f32.mxu0 %vm13092_vm12, %v13091_v36 }
0x3515   : > { %11866 = vmatprep.subr.mxu0 %v13091_v36 }
0x3517   : > { %11859 = vmatmul.mubr.msk.f32.vlgmr.msra.gmra.mxu0 %vm2032_vm5, %v7425_v63 }
0x3518   : > { %11867 = vmatpush3.msra.mxu0 %v13921_v62  ;;  %11868 = vmatprep.mubr.msk.f32.mxu0 %vm13092_vm12, %v13091_v36 }
0x3519   : > { %11876 = vmatprep.subr.mxu0 %v13091_v36 }
0x35d3   : > { %v7346_v1 = vpop.f32.mrf.mxu0 }
0x35d4   : > { %11854 = vmatmul.mubr.msk.f32.vlgmr.msra.gmra.mxu1 %vm2032_vm5, %v7346_v1 }
0x35d5   : > { %v11850_v52 = vpop.f32.mrf.mxu0  ;;  %11862 = vmatpush3.msk.msra.mxu1 %vm2126_vm7, %v14047_v53  ;;  %11863 = vmatprep.mubr.msk.f32.mxu1 %vm13092_vm12, %v13091_v36 }
0x35d6   : > { %11871 = vmatprep.subr.mxu1 %v13091_v36 }
0x35d7   : > { %v7494_v31 = vpop.f32.mrf.mxu0 }
0x35d8   : > { %v7498_v62 = vsel %vm2108_vm6, %v7494_v31, -inf }
0x35d9   : > { %7499 = vmax.xlane.f32.xlu0 %v7498_v62  ;;  %v11860_v23 = vpop.f32.mrf.mxu0 }
0x35ef   : > { %7656 = vrot.lane.b32.xlu0 %v13977_v50, %s13094_s0 }
0x3662   : > { %v7500_v18 = vpop.xlane.xlu0 %7499 }
0x3663   : > { %v7501_v60 = vsub.f32 %v7494_v31, %v7500_v18 }
0x3665   : > { %v7502_v3 = vmul.f32 1.442695, %v7501_v60 }
0x3666   : > { %v7657_v15 = vpop.permute.xlu0 %7656 }
0x3667   : > { %12354 = vpow2.f32 %v7502_v3 }
0x3674   : > { %v12355_v34 = vpop.eup %12354 }
0x3675   : > { %v7504_v53 = vsel %vm2108_vm6, %v12355_v34, 0.0 }
0x3676   : > { %7505 = vadd.xlane.f32.xlu1 %v7504_v53 }
0x3694   : > { %v7419_v45 = vpop.f32.mrf.mxu1 }
0x3696   : > { %v11855_v11 = vpop.f32.mrf.mxu1 }
0x36ff   : > { %v7506_v6 = vpop.xlane.xlu1 %7505 }
0x3700   : > { %12356 = vrcp.f32 %v7506_v6 }
0x370d   : > { %v12357_v28 = vpop.eup %12356 }
0x370e   : > { %v7508_v22 = vmul.f32 %v12357_v28, %v12355_v34 }
0x3710   : > { %11864 = vmatmul.mubr.msk.f32.vlgmr.msra.gmra.mxu1 %vm2122_vm8, %v7508_v22 }
0x3711   : > { %11872 = vmatpush3.xpose.msk.msra.mxu1 %vm2032_vm5, %v14052_v55  ;;  %11873 = vmatprep.mubr.msk.f32.mxu1 %vm13092_vm12, %v13091_v36 }
0x3712   : > { %11881 = vmatprep.subr.mxu1 %v13091_v36 }
0x3714   : > { %11874 = vmatmul.mubr.msk.f32.vlgmr.msra.gmra.mxu1 %vm2032_vm5, %v7657_v15 }
0x3715   : > { %11882 = vmatpush3.msra.mxu1 %v13958_v33  ;;  %11883 = vmatprep.mubr.msk.f32.mxu1 %vm13092_vm12, %v13091_v36 }
0x3716   : > { %11891 = vmatprep.subr.mxu1 %v13091_v36 }
0x37d0   : > { %v7578_v16 = vpop.f32.mrf.mxu1 }
0x37d1   : > { %11869 = vmatmul.mubr.msk.f32.vlgmr.msra.gmra.mxu0 %vm2032_vm5, %v7578_v16 }
0x37d2   : > { %v11865_v59 = vpop.f32.mrf.mxu1  ;;  %11877 = vmatpush3.msk.msra.mxu0 %vm2126_vm7, %v14073_v7  ;;  %11878 = vmatprep.mubr.msk.f32.mxu0 %vm13092_vm12, %v13091_v36  ;;  %v7423_v7 = vadd.f32 %v13938_v14, %v7419_v45 }
0x37d3   : > { %11886 = vmatprep.subr.mxu0 %v13091_v36 }
0x37d4   : > { %v7726_v55 = vpop.f32.mrf.mxu1 }
0x37d5   : > { %v7730_v33 = vsel %vm2108_vm6, %v7726_v55, -inf }
0x37d6   : > { %7731 = vmax.xlane.f32.xlu0 %v7730_v33  ;;  %v11875_v43 = vpop.f32.mrf.mxu1 }
0x385f   : > { %v7732_v25 = vpop.xlane.xlu0 %7731 }
0x3860   : > { %v7733_v12 = vsub.f32 %v7726_v55, %v7732_v25 }
0x3862   : > { %v7734_v0 = vmul.f32 1.442695, %v7733_v12 }
0x3864   : > { %12358 = vpow2.f32 %v7734_v0 }
0x3871   : > { %v12359_v51 = vpop.eup %12358 }
0x3872   : > { %v7736_v24 = vsel %vm2108_vm6, %v12359_v51, 0.0 }
0x3873   : > { %7737 = vadd.xlane.f32.xlu1 %v7736_v24 }
0x3884   : > { %7888 = vrot.lane.b32.xlu1 %v13977_v50, %s13095_s7 }
0x3891   : > { %v7651_v26 = vpop.f32.mrf.mxu0 }
0x3892   : > { %v7655_v10 = vadd.f32 %v7651_v26, %v7423_v7 }
0x3893   : > { %v11870_v17 = vpop.f32.mrf.mxu0 }
0x38fc   : > { %v7738_v19 = vpop.xlane.xlu1 %7737 }
0x38fd   : > { %12360 = vrcp.f32 %v7738_v19 }
0x3900   : > { %v7889_v63 = vpop.permute.xlu1 %7888 }
0x390a   : > { %v12361_v35 = vpop.eup %12360 }
0x390b   : > { %v7740_v30 = vmul.f32 %v12361_v35, %v12359_v51 }
0x390d   : > { %11879 = vmatmul.mubr.msk.f32.vlgmr.msra.gmra.mxu0 %vm2122_vm8, %v7740_v30 }
0x390e   : > { %11887 = vmatpush3.xpose.msk.msra.mxu0 %vm2032_vm5, %v14082_v32  ;;  %11888 = vmatprep.mubr.msk.f32.mxu0 %vm13092_vm12, %v13091_v36 }
0x390f   : > { %11896 = vmatprep.subr.mxu0 %v13091_v36 }
0x3911   : > { %11889 = vmatmul.mubr.msk.f32.vlgmr.msra.gmra.mxu0 %vm2032_vm5, %v7889_v63 }
0x3912   : > { %11897 = vmatpush3.msra.mxu0 %v14001_v21  ;;  %11898 = vmatprep.mubr.msk.f32.mxu0 %vm13092_vm12, %v13091_v36 }
0x3913   : > { %11912 = vmatprep.subr.mxu0 %v13091_v36 }
0x39cd   : > { %v7810_v14 = vpop.f32.mrf.mxu0 }
0x39ce   : > { %11884 = vmatmul.mubr.msk.f32.vlgmr.msra.gmra.mxu1 %vm2032_vm5, %v7810_v14 }
0x39cf   : > { %v11880_v50 = vpop.f32.mrf.mxu0  ;;  %11892 = vmatpush3.msk.msra.mxu1 %vm2126_vm7, %v14102_v57  ;;  %11893 = vmatprep.mubr.msk.f32.mxu1 %vm13092_vm12, %v13091_v36 }
0x39d0   : > { %11901 = vmatprep.subr.mxu1 %v14134_v37 }
0x39d1   : > { %v7958_v32 = vpop.f32.mrf.mxu0 }
0x39d2   : > { %v7962_v21 = vsel %vm2108_vm6, %v7958_v32, -inf }
0x39d3   : > { %7963 = vmax.xlane.f32.xlu0 %v7962_v21  ;;  %v11890_v1 = vpop.f32.mrf.mxu0 }
0x3a5c   : > { %v7964_v52 = vpop.xlane.xlu0 %7963 }
0x3a5d   : > { %v7965_v31 = vsub.f32 %v7958_v32, %v7964_v52 }
0x3a5f   : > { %v7966_v62 = vmul.f32 1.442695, %v7965_v31 }
0x3a61   : > { %12362 = vpow2.f32 %v7966_v62 }
0x3a6e   : > { %v12363_v23 = vpop.eup %12362 }
0x3a6f   : > { %v7968_v18 = vsel %vm2108_vm6, %v12363_v23, 0.0 }
0x3a70   : > { %7969 = vadd.xlane.f32.xlu1 %v7968_v18 }
0x3a8e   : > { %v7883_v60 = vpop.f32.mrf.mxu1 }
0x3a8f   : > { %v7887_v57 = vadd.f32 %v7883_v60, %v7655_v10 }
0x3a90   : > { %v11885_v3 = vpop.f32.mrf.mxu1 }
0x3af9   : > { %v7970_v34 = vpop.xlane.xlu1 %7969 }
0x3afa   : > { %12364 = vrcp.f32 %v7970_v34 }
0x3b07   : > { %v12365_v53 = vpop.eup %12364 }
0x3b08   : > { %v7972_v45 = vmul.f32 %v12365_v53, %v12363_v23 }
0x3b0a   : > { %11894 = vmatmul.mubr.msk.f32.vlgmr.msra.gmra.mxu1 %vm2122_vm8, %v7972_v45 }
0x3b0b   : > { %11902 = vmatpush3.msra.mxu1 %v14134_v37 }
0x3b0c   : > { %11903 = vmatprep.subr.mxu1 %v14137_v38 }
0x3b0d   : > { %11904 = vmatpush3.msra.mxu1 %v14137_v38 }
0x3b0e   : > { %11905 = vmatprep.subr.mxu1 %v14142_v39 }
0x3b0f   : > { %11906 = vmatpush3.msra.mxu1 %v14142_v39 }
0x3b10   : > { %11907 = vmatprep.subr.mxu1 %v14149_v40 }
0x3b11   : > { %11908 = vmatpush3.msra.mxu1 %v14149_v40 }
0x3b12   : > { %11922 = vmatprep.subr.mxu1 %v13091_v36 }
0x3bca   : > { %v8042_v11 = vpop.f32.mrf.mxu1 }
0x3bcb   : > { %11899 = vmatmul.mubr.msk.f32.vlgmr.msra.gmra.mxu0 %vm2032_vm5, %v8042_v11 }
0x3bcc   : > { %v11895_v6 = vpop.f32.mrf.mxu1  ;;  %11913 = vmatpush3.xpose.msk.msra.mxu0 %vm2032_vm5, %v14109_v27  ;;  %11914 = vmatprep.mubr.msk.f32.mxu0 %vm13092_vm12, %v13091_v36 }
0x3bcd   : > { %11917 = vmatprep.subr.mxu0 %v13091_v36 }
0x3c8b   : > { %v8115_v37 = vpop.f32.mrf.mxu0 }
0x3c8c   : > { %v8119_v38 = vadd.f32 %v8115_v37, %v7887_v57 }
0x3c8d   : > { %v11900_v39 = vpop.f32.mrf.mxu0 }
0x3c8e   : > { %v8121_v28 = vrot.slane %v8119_v38, 2 }
0x3c90   : > { %v8123_v40 = vsel %vm2126_vm7, %v14634_v41, %v8121_v28  ;;  %v14719_v15 = vadd.f32 %v8121_v28, %v13779_v5 }
0x3c91   : > { %v14716_v22 = vadd.f32 %v8123_v40, %v13777_v4 }
0x3c92   : > { %v8129_v16 = vsel %vm1689_vm3, %v14719_v15, 0.0 }
0x3c93   : > { %v8126_v27 = vsel %vm1685_vm2, %v14716_v22, 0.0 }
0x3c94   : > { %8127 = vadd.xlane.f32.xlu0 %v8126_v27 }
0x3c98   : > { %8130 = vadd.xlane.f32.xlu0 %v8129_v16 }
0x3d1d   : > { %v8128_v59 = vpop.xlane.xlu0 %8127 }
0x3d1e   : > { %v8132_v55 = vmul.f32 0.03125, %v8128_v59 }
0x3d20   : > { %v8134_v33 = vsub.f32 %v14716_v22, %v8132_v55 }
0x3d21   : > { %v8131_v43 = vpop.xlane.xlu0 %8130 }
0x3d22   : > { %v8133_v41 = vmul.f32 0.03125, %v8131_v43  ;;  %v8136_v25 = vmul.f32 %v8134_v33, %v8134_v33 }
0x3d24   : > { %v8135_v4 = vsub.f32 %v14719_v15, %v8133_v41  ;;  %v8138_v5 = vsel %vm1685_vm2, %v8136_v25, 0.0 }
0x3d25   : > { %8139 = vadd.xlane.f32.xlu0 %v8138_v5 }
0x3d26   : > { %v8137_v12 = vmul.f32 %v8135_v4, %v8135_v4 }
0x3d28   : > { %v8141_v0 = vsel %vm1689_vm3, %v8137_v12, 0.0 }
0x3d29   : > { %8142 = vadd.xlane.f32.xlu0 %v8141_v0 }
0x3dae   : > { %v8140_v51 = vpop.xlane.xlu0 %8139 }
0x3daf   : > { %v8144_v24 = vmul.f32 0.03125, %v8140_v51 }
0x3db1   : > { %v8146_v7 = vadd.f32 1e-05, %v8144_v24 }
0x3db2   : > { %v8143_v26 = vpop.xlane.xlu0 %8142 }
0x3db3   : > { %12366 = vrsqrt.f32 %v8146_v7  ;;  %v8145_v10 = vmul.f32 0.03125, %v8143_v26 }
0x3db5   : > { %v8147_v17 = vadd.f32 1e-05, %v8145_v10 }
0x3db7   : > { %12368 = vrsqrt.f32 %v8147_v17 }
0x3dc0   : > { %v12367_v19 = vpop.eup %12366 }
0x3dc1   : > { %v8150_v35 = vmul.f32 %v12367_v19, %v8134_v33 }
0x3dc3   : > { %v8152_v30 = vmul.f32 %v14156_v54, %v8150_v35 }
0x3dc4   : > { %v12369_v63 = vpop.eup %12368 }
0x3dc5   : > { %v8154_v14 = vadd.f32 %v14160_v58, %v8152_v30  ;;  %v8151_v50 = vmul.f32 %v12369_v63, %v8135_v4 }
0x3dc7   : > { %11909 = vmatprep.mubr.msk.f32.mxu1 %vm1685_vm2, %v8154_v14  ;;  %v8153_v32 = vmul.f32 %v14156_v54, %v8151_v50  ;;  %v15195_v14 = vld [vmem:[#allocation79_spill] sm:$0xff] }
0x3dc9   : > { %v8155_v21 = vadd.f32 %v14160_v58, %v8153_v32  ;;  %v15196_v32 = vld [vmem:[#allocation80_spill] sm:$0xff] }
0x3dcb   : > { %11910 = vmatmul.mubr.msk.f32.vlgmr.msra.gmra.mxu1 %vm1685_vm2, %v8155_v21 }
0x3dcc   : > { %11923 = vmatpush3.msra.mxu1 %v14199_v42  ;;  %11924 = vmatprep.mubr.msk.f32.mxu1 %vm13092_vm12, %v13091_v36 }
0x3dcd   : > { %11932 = vmatprep.subr.mxu1 %v13091_v36 }
0x3e8b   : > { %v14739_v1 = vpop.f32.mrf.mxu1 }
0x3e8d   : > { %v8228_v52 = vpop.f32.mrf.mxu1 }
0x3e8e   : > { %v14742_v31 = vadd.f32 %v14172_v8, %v8228_v52 }
0x3e90   : > { %11915 = vmatmul.mubr.msk.f32.vlgmr.msra.gmra.mxu0 %vm2032_vm5, %v14742_v31 }
0x3e91   : > { %11918 = vmatpush3.msra.mxu0 %v14191_v29  ;;  %11919 = vmatprep.mubr.msk.f32.mxu0 %vm13092_vm12, %v13091_v36 }
0x3e92   : > { %11927 = vmatprep.subr.mxu0 %v13091_v36 }
0x3f50   : > { %v8306_v54 = vpop.f32.mrf.mxu0 }
0x3f51   : > { %v8310_v58 = vsel %vm4177_vm10, %v8306_v54, -inf }
0x3f52   : > { %8311 = vmax.xlane.f32.xlu0 %v8310_v58  ;;  %v11916_v62 = vpop.f32.mrf.mxu0 }
0x3fdb   : > { %v8312_v23 = vpop.xlane.xlu0 %8311 }
0x3fdc   : > { %v8313_v18 = vsub.f32 %v8306_v54, %v8312_v23  ;;  %v15197_v54 = vld [vmem:[#allocation81_spill] sm:$0xff] }
0x3fde   : > { %v8314_v60 = vmul.f32 1.442695, %v8313_v18 }
0x3fe0   : > { %12370 = vpow2.f32 %v8314_v60 }
0x3fed   : > { %v12371_v57 = vpop.eup %12370 }
0x3fee   : > { %v8316_v3 = vsel %vm4177_vm10, %v12371_v57, 0.0 }
0x3fef   : > { %8317 = vadd.xlane.f32.xlu0 %v8316_v3 }
0x4005   : > { %8468 = vrot.lane.b32.xlu0 %v14742_v31, %s13093_s12 }
0x4078   : > { %v8318_v29 = vpop.xlane.xlu0 %8317 }
0x4079   : > { %12372 = vrcp.f32 %v8318_v29 }
0x407c   : > { %v8469_v45 = vpop.permute.xlu0 %8468 }
0x4086   : > { %v12373_v34 = vpop.eup %12372 }
0x4087   : > { %v8320_v53 = vmul.f32 %v12373_v34, %v12371_v57 }
0x4089   : > { %11920 = vmatmul.mubr.msk.f32.vlgmr.msra.gmra.mxu0 %vm2032_vm5, %v8320_v53 }
0x408a   : > { %11928 = vmatpush3.xpose.msk.msra.mxu0 %vm2032_vm5, %v14203_v47  ;;  %11929 = vmatprep.mubr.msk.f32.mxu0 %vm13092_vm12, %v13091_v36 }
0x408b   : > { %11937 = vmatprep.subr.mxu0 %v13091_v36 }
0x408d   : > { %11930 = vmatmul.mubr.msk.f32.vlgmr.msra.gmra.mxu0 %vm2032_vm5, %v8469_v45 }
0x408e   : > { %11938 = vmatpush3.msra.mxu0 %v14239_v44  ;;  %11939 = vmatprep.mubr.msk.f32.mxu0 %vm13092_vm12, %v13091_v36 }
0x408f   : > { %11947 = vmatprep.subr.mxu0 %v13091_v36 }
0x4149   : > { %v8390_v11 = vpop.f32.mrf.mxu0 }
0x414a   : > { %11925 = vmatmul.mubr.msk.f32.vlgmr.msra.gmra.mxu1 %vm2032_vm5, %v8390_v11 }
0x414b   : > { %v11921_v6 = vpop.f32.mrf.mxu0  ;;  %11933 = vmatpush3.msra.mxu1 %v14214_v56  ;;  %11934 = vmatprep.mubr.msk.f32.mxu1 %vm13092_vm12, %v13091_v36 }
0x414c   : > { %11942 = vmatprep.subr.mxu1 %v13091_v36 }
0x414d   : > { %v8538_v47 = vpop.f32.mrf.mxu0 }
0x414e   : > { %v8542_v37 = vsel %vm4177_vm10, %v8538_v47, -inf }
0x414f   : > { %8543 = vmax.xlane.f32.xlu1 %v8542_v37  ;;  %v11931_v38 = vpop.f32.mrf.mxu0 }
0x4150   : > { %v9165_v38 = vrot.slane %v14742_v31, 6 }
0x41d8   : > { %v8544_v39 = vpop.xlane.xlu1 %8543 }
0x41d9   : > { %v8545_v28 = vsub.f32 %v8538_v47, %v8544_v39  ;;  %v8234_v47 = vadd.f32 %v14739_v1, %v14172_v8 }
0x41db   : > { %v8546_v40 = vmul.f32 1.442695, %v8545_v28  ;;  %v9166_v39 = vrot.slane %v8234_v47, 6  ;;  %v15198_v28 = vld [vmem:[#allocation78_spill] sm:$0xff] }
0x41dd   : > { %12374 = vpow2.f32 %v8546_v40  ;;  %v14823_v40 = vsel %vm3000_vm9, %v9165_v38, %v9166_v39 }
0x41ea   : > { %v12375_v27 = vpop.eup %12374 }
0x41eb   : > { %v8548_v16 = vsel %vm4177_vm10, %v12375_v27, 0.0 }
0x41ec   : > { %8549 = vadd.xlane.f32.xlu1 %v8548_v16 }
0x41fd   : > { %8700 = vrot.lane.b32.xlu1 %v14742_v31, %s13094_s0 }
0x420a   : > { %v8463_v56 = vpop.f32.mrf.mxu1 }
0x420b   : > { %v8467_v26 = vadd.f32 %v14260_v13, %v8463_v56 }
0x420c   : > { %v11926_v59 = vpop.f32.mrf.mxu1 }
0x4275   : > { %v8550_v55 = vpop.xlane.xlu1 %8549 }
0x4276   : > { %12376 = vrcp.f32 %v8550_v55 }
0x4279   : > { %v8701_v41 = vpop.permute.xlu1 %8700 }
0x4283   : > { %v12377_v33 = vpop.eup %12376 }
0x4284   : > { %v8552_v43 = vmul.f32 %v12377_v33, %v12375_v27 }
0x4286   : > { %11935 = vmatmul.mubr.msk.f32.vlgmr.msra.gmra.mxu1 %vm2032_vm5, %v8552_v43 }
0x4287   : > { %11943 = vmatpush3.xpose.msk.msra.mxu1 %vm2032_vm5, %v14227_v9  ;;  %11944 = vmatprep.mubr.msk.f32.mxu1 %vm13092_vm12, %v13091_v36 }
0x4288   : > { %11952 = vmatprep.subr.mxu1 %v13091_v36 }
0x428a   : > { %11945 = vmatmul.mubr.msk.f32.vlgmr.msra.gmra.mxu1 %vm2032_vm5, %v8701_v41 }
0x428b   : > { %11953 = vmatpush3.msra.mxu1 %v14275_v49  ;;  %11954 = vmatprep.mubr.msk.f32.mxu1 %vm13092_vm12, %v13091_v36 }
0x428c   : > { %11962 = vmatprep.subr.mxu1 %v13091_v36 }
0x4346   : > { %v8622_v25 = vpop.f32.mrf.mxu1 }
0x4347   : > { %11940 = vmatmul.mubr.msk.f32.vlgmr.msra.gmra.mxu0 %vm2032_vm5, %v8622_v25 }
0x4348   : > { %v11936_v4 = vpop.f32.mrf.mxu1  ;;  %11948 = vmatpush3.msra.mxu0 %v14253_v2  ;;  %11949 = vmatprep.mubr.msk.f32.mxu0 %vm13092_vm12, %v13091_v36 }
0x4349   : > { %11957 = vmatprep.subr.mxu0 %v13091_v36 }
0x434a   : > { %v8770_v9 = vpop.f32.mrf.mxu1 }
0x434b   : > { %v8774_v5 = vsel %vm4177_vm10, %v8770_v9, -inf }
0x434c   : > { %8775 = vmax.xlane.f32.xlu0 %v8774_v5  ;;  %v11946_v12 = vpop.f32.mrf.mxu1 }
0x4362   : > { %8932 = vrot.lane.b32.xlu0 %v14742_v31, %s13095_s7  ;;  %v15199_v31 = vld [vmem:[#allocation82_spill] sm:$0xff] }
0x43d5   : > { %v8776_v0 = vpop.xlane.xlu0 %8775 }
0x43d6   : > { %v8777_v51 = vsub.f32 %v8770_v9, %v8776_v0  ;;  %v15200_v0 = vld [vmem:[#allocation83_spill] sm:$0xff] }
0x43d8   : > { %v8778_v24 = vmul.f32 1.442695, %v8777_v51 }
0x43d9   : > { %v8933_v50 = vpop.permute.xlu0 %8932 }
0x43da   : > { %12378 = vpow2.f32 %v8778_v24 }
0x43e7   : > { %v12379_v7 = vpop.eup %12378 }
0x43e8   : > { %v8780_v2 = vsel %vm4177_vm10, %v12379_v7, 0.0 }
0x43e9   : > { %8781 = vadd.xlane.f32.xlu1 %v8780_v2  ;;  %v15201_v2 = vld [vmem:[#allocation84_spill] sm:$0xff] }
0x4407   : > { %v8695_v10 = vpop.f32.mrf.mxu0 }
0x4408   : > { %v8699_v17 = vadd.f32 %v8695_v10, %v8467_v26 }
0x4409   : > { %v11941_v19 = vpop.f32.mrf.mxu0 }
0x4472   : > { %v8782_v35 = vpop.xlane.xlu1 %8781 }
0x4473   : > { %12380 = vrcp.f32 %v8782_v35 }
0x4480   : > { %v12381_v30 = vpop.eup %12380 }
0x4481   : > { %v8784_v63 = vmul.f32 %v12381_v30, %v12379_v7 }
0x4483   : > { %11950 = vmatmul.mubr.msk.f32.vlgmr.msra.gmra.mxu0 %vm2032_vm5, %v8784_v63 }
0x4484   : > { %11958 = vmatpush3.xpose.msk.msra.mxu0 %vm2032_vm5, %v15195_v14  ;;  %11959 = vmatprep.mubr.msk.f32.mxu0 %vm13092_vm12, %v13091_v36 }
0x4485   : > { %11967 = vmatprep.subr.mxu0 %v13091_v36 }
0x4487   : > { %11960 = vmatmul.mubr.msk.f32.vlgmr.msra.gmra.mxu0 %vm2032_vm5, %v8933_v50 }
0x4488   : > { %11968 = vmatpush3.msra.mxu0 %v15196_v32  ;;  %11969 = vmatprep.mubr.msk.f32.mxu0 %vm13092_vm12, %v13091_v36 }
0x4489   : > { %11977 = vmatprep.subr.mxu0 %v13091_v36 }
0x4543   : > { %v8854_v21 = vpop.f32.mrf.mxu0 }
0x4544   : > { %11955 = vmatmul.mubr.msk.f32.vlgmr.msra.gmra.mxu1 %vm2032_vm5, %v8854_v21 }
0x4545   : > { %v11951_v52 = vpop.f32.mrf.mxu0  ;;  %11963 = vmatpush3.msra.mxu1 %v15197_v54  ;;  %11964 = vmatprep.mubr.msk.f32.mxu1 %vm13092_vm12, %v13091_v36 }
0x4546   : > { %11972 = vmatprep.subr.mxu1 %v13091_v36 }
0x4547   : > { %v9002_v58 = vpop.f32.mrf.mxu0 }
0x4548   : > { %v9006_v62 = vsel %vm4177_vm10, %v9002_v58, -inf }
0x4549   : > { %9007 = vmax.xlane.f32.xlu1 %v9006_v62  ;;  %v11961_v23 = vpop.f32.mrf.mxu0 }
0x45d2   : > { %v9008_v18 = vpop.xlane.xlu1 %9007 }
0x45d3   : > { %v9009_v60 = vsub.f32 %v9002_v58, %v9008_v18  ;;  %v15202_v58 = vld [vmem:[#allocation85_spill] sm:$0xff] }
0x45d5   : > { %v9010_v57 = vmul.f32 1.442695, %v9009_v60  ;;  %v15203_v60 = vld [vmem:[#allocation86_spill] sm:$0xff] }
0x45d7   : > { %12382 = vpow2.f32 %v9010_v57 }
0x45e4   : > { %v12383_v3 = vpop.eup %12382 }
0x45e5   : > { %v9012_v29 = vsel %vm4177_vm10, %v12383_v3, 0.0 }
0x45e6   : > { %9013 = vadd.xlane.f32.xlu0 %v9012_v29 }
0x4604   : > { %v8927_v34 = vpop.f32.mrf.mxu1 }
0x4605   : > { %v8931_v53 = vadd.f32 %v8927_v34, %v8699_v17 }
0x4606   : > { %v11956_v45 = vpop.f32.mrf.mxu1 }
0x466f   : > { %v9014_v11 = vpop.xlane.xlu0 %9013 }
0x4670   : > { %12384 = vrcp.f32 %v9014_v11 }
0x467d   : > { %v12385_v6 = vpop.eup %12384 }
0x467e   : > { %v9016_v37 = vmul.f32 %v12385_v6, %v12383_v3 }
0x4680   : > { %11965 = vmatmul.mubr.msk.f32.vlgmr.msra.gmra.mxu1 %vm2032_vm5, %v9016_v37 }
0x4681   : > { %11973 = vmatpush3.xpose.msk.msra.mxu1 %vm2032_vm5, %v15198_v28  ;;  %11974 = vmatprep.mubr.msk.f32.mxu1 %vm13092_vm12, %v13091_v36 }
0x4682   : > { %11982 = vmatprep.subr.mxu1 %v13091_v36 }
0x4684   : > { %11975 = vmatmul.mubr.msk.f32.vlgmr.msra.gmra.mxu1 %vm2032_vm5, %v14823_v40 }
0x4685   : > { %11983 = vmatpush3.msra.mxu1 %v14199_v42  ;;  %11984 = vmatprep.mubr.msk.f32.mxu1 %vm13092_vm12, %v13091_v36 }
0x4686   : > { %11992 = vmatprep.subr.mxu1 %v13091_v36 }
0x4740   : > { %v9086_v8 = vpop.f32.mrf.mxu1 }
0x4741   : > { %11970 = vmatmul.mubr.msk.f32.vlgmr.msra.gmra.mxu0 %vm2032_vm5, %v9086_v8 }
0x4742   : > { %v11966_v1 = vpop.f32.mrf.mxu1  ;;  %11978 = vmatpush3.msra.mxu0 %v15199_v31  ;;  %11979 = vmatprep.mubr.msk.f32.mxu0 %vm13092_vm12, %v13091_v36 }
0x4743   : > { %11987 = vmatprep.subr.mxu0 %v13091_v36  ;;  %v15204_v1 = vld [vmem:[#allocation87_spill] sm:$0xff] }
0x4744   : > { %v9236_v27 = vpop.f32.mrf.mxu1 }
0x4745   : > { %v9240_v16 = vsel %vm4177_vm10, %v9236_v27, -inf }
0x4746   : > { %9241 = vmax.xlane.f32.xlu1 %v9240_v16  ;;  %v11976_v42 = vpop.f32.mrf.mxu1  ;;  %v15206_v16 = vld [vmem:[#allocation88_spill] sm:$0xff] }
0x4747   : > { %v15207_v42 = vld [vmem:[#allocation89_spill] sm:$0xff] }
0x47cf   : > { %v9242_v56 = vpop.xlane.xlu1 %9241 }
0x47d0   : > { %v9243_v59 = vsub.f32 %v9236_v27, %v9242_v56 }
0x47d2   : > { %v9244_v55 = vmul.f32 1.442695, %v9243_v59 }
0x47d4   : > { %12386 = vpow2.f32 %v9244_v55 }
0x47e1   : > { %v12387_v33 = vpop.eup %12386 }
0x47e2   : > { %v9246_v43 = vsel %vm4177_vm10, %v12387_v33, 0.0 }
0x47e3   : > { %9247 = vadd.xlane.f32.xlu1 %v9246_v43 }
0x47f4   : > { %9398 = vrot.lane.b32.xlu1 %v14823_v40, %s13093_s12 }
0x4801   : > { %v9159_v41 = vpop.f32.mrf.mxu0 }
0x4802   : > { %v14840_v25 = vadd.f32 %v9159_v41, %v8931_v53 }
0x4803   : > { %v11971_v4 = vpop.f32.mrf.mxu0 }
0x486c   : > { %v9248_v9 = vpop.xlane.xlu1 %9247 }
0x486d   : > { %12388 = vrcp.f32 %v9248_v9 }
0x4870   : > { %v9399_v51 = vpop.permute.xlu1 %9398 }
0x487a   : > { %v12389_v5 = vpop.eup %12388 }
0x487b   : > { %v9250_v12 = vmul.f32 %v12389_v5, %v12387_v33 }
0x487d   : > { %11980 = vmatmul.mubr.msk.f32.vlgmr.msra.gmra.mxu0 %vm2032_vm5, %v9250_v12 }
0x487e   : > { %11988 = vmatpush3.xpose.msk.msra.mxu0 %vm2032_vm5, %v15200_v0  ;;  %11989 = vmatprep.mubr.msk.f32.mxu0 %vm13092_vm12, %v13091_v36 }
0x487f   : > { %11997 = vmatprep.subr.mxu0 %v13091_v36 }
0x4881   : > { %11990 = vmatmul.mubr.msk.f32.vlgmr.msra.gmra.mxu0 %vm2032_vm5, %v9399_v51 }
0x4882   : > { %11998 = vmatpush3.msra.mxu0 %v14239_v44  ;;  %11999 = vmatprep.mubr.msk.f32.mxu0 %vm13092_vm12, %v13091_v36 }
0x4883   : > { %12007 = vmatprep.subr.mxu0 %v13091_v36 }
0x493d   : > { %v9320_v24 = vpop.f32.mrf.mxu0 }
0x493e   : > { %11985 = vmatmul.mubr.msk.f32.vlgmr.msra.gmra.mxu1 %vm2032_vm5, %v9320_v24  ;;  %v15208_v24 = vld [vmem:[#allocation90_spill] sm:$0xff] }
0x493f   : > { %v11981_v7 = vpop.f32.mrf.mxu0  ;;  %11993 = vmatpush3.msra.mxu1 %v15201_v2  ;;  %11994 = vmatprep.mubr.msk.f32.mxu1 %vm13092_vm12, %v13091_v36  ;;  %v15210_v2 = vld [vmem:[#allocation92_spill] sm:$0xff] }
0x4940   : > { %12002 = vmatprep.subr.mxu1 %v13091_v36  ;;  %v15209_v7 = vld [vmem:[#allocation91_spill] sm:$0xff] }
0x4941   : > { %v9468_v26 = vpop.f32.mrf.mxu0 }
0x4942   : > { %v9472_v10 = vsel %vm4177_vm10, %v9468_v26, -inf }
0x4943   : > { %9473 = vmax.xlane.f32.xlu1 %v9472_v10  ;;  %v11991_v44 = vpop.f32.mrf.mxu0 }
0x4944   : > { %v15211_v44 = vld [vmem:[#allocation96_spill] sm:$0xff] }
0x49cc   : > { %v9474_v17 = vpop.xlane.xlu1 %9473 }
0x49cd   : > { %v9475_v19 = vsub.f32 %v9468_v26, %v9474_v17  ;;  %v15212_v17 = vld [vmem:[#allocation97_spill] sm:$0xff] }
0x49cf   : > { %v9476_v35 = vmul.f32 1.442695, %v9475_v19  ;;  %v15213_v19 = vld [vmem:[#allocation98_spill] sm:$0xff] }
0x49d1   : > { %12390 = vpow2.f32 %v9476_v35  ;;  %v15214_v35 = vld [vmem:[#allocation99_spill] sm:$0xff] }
0x49de   : > { %v12391_v30 = vpop.eup %12390 }
0x49df   : > { %v9478_v63 = vsel %vm4177_vm10, %v12391_v30, 0.0 }
0x49e0   : > { %9479 = vadd.xlane.f32.xlu0 %v9478_v63  ;;  %v15216_v63 = vld [vmem:[#allocation101_spill] sm:$0xff] }
0x49f6   : > { %9630 = vrot.lane.b32.xlu0 %v14823_v40, %s13094_s0 }
0x49fe   : > { %v9393_v14 = vpop.f32.mrf.mxu1 }
0x49ff   : > { %v9397_v6 = vadd.f32 %v14260_v13, %v9393_v14  ;;  %v15205_v13 = vld [vmem:[#allocation95_spill] sm:$0xff]  ;;  %v15217_v14 = vld [vmem:[#allocation102_spill] sm:$0xff] }
0x4a00   : > { %v11986_v50 = vpop.f32.mrf.mxu1 }
0x4a69   : > { %v9480_v21 = vpop.xlane.xlu0 %9479 }
0x4a6a   : > { %12392 = vrcp.f32 %v9480_v21 }
0x4a6d   : > { %v9631_v62 = vpop.permute.xlu0 %9630 }
0x4a77   : > { %v12393_v52 = vpop.eup %12392 }
0x4a78   : > { %v9482_v54 = vmul.f32 %v12393_v52, %v12391_v30  ;;  %v15215_v30 = vld [vmem:[#allocation100_spill] sm:$0xff] }
0x4a7a   : > { %11995 = vmatmul.mubr.msk.f32.vlgmr.msra.gmra.mxu1 %vm2032_vm5, %v9482_v54 }
0x4a7b   : > { %12003 = vmatpush3.xpose.msk.msra.mxu1 %vm2032_vm5, %v15202_v58  ;;  %12004 = vmatprep.mubr.msk.f32.mxu1 %vm13092_vm12, %v13091_v36 }
0x4a7c   : > { %12012 = vmatprep.subr.mxu1 %v13091_v36 }
0x4a7e   : > { %12005 = vmatmul.mubr.msk.f32.vlgmr.msra.gmra.mxu1 %vm2032_vm5, %v9631_v62 }
0x4a7f   : > { %12013 = vmatpush3.msra.mxu1 %v14275_v49  ;;  %12014 = vmatprep.mubr.msk.f32.mxu1 %vm13092_vm12, %v13091_v36 }
0x4a80   : > { %12022 = vmatprep.subr.mxu1 %v13091_v36 }
0x4b3a   : > { %v9552_v23 = vpop.f32.mrf.mxu1 }
0x4b3b   : > { %12000 = vmatmul.mubr.msk.f32.vlgmr.msra.gmra.mxu0 %vm2032_vm5, %v9552_v23 }
0x4b3c   : > { %v11996_v18 = vpop.f32.mrf.mxu1  ;;  %12008 = vmatpush3.msra.mxu0 %v15203_v60  ;;  %12009 = vmatprep.mubr.msk.f32.mxu0 %vm13092_vm12, %v13091_v36 }
0x4b3d   : > { %12017 = vmatprep.subr.mxu0 %v13091_v36 }
0x4b3e   : > { %v9700_v57 = vpop.f32.mrf.mxu1 }
0x4b3f   : > { %v9704_v3 = vsel %vm4177_vm10, %v9700_v57, -inf }
0x4b40   : > { %9705 = vmax.xlane.f32.xlu0 %v9704_v3  ;;  %v12006_v49 = vpop.f32.mrf.mxu1 }
0x4bc9   : > { %v9706_v29 = vpop.xlane.xlu0 %9705 }
0x4bca   : > { %v9707_v34 = vsub.f32 %v9700_v57, %v9706_v29 }
0x4bcc   : > { %v9708_v53 = vmul.f32 1.442695, %v9707_v34 }
0x4bce   : > { %12394 = vpow2.f32 %v9708_v53 }
0x4bdb   : > { %v12395_v45 = vpop.eup %12394 }
0x4bdc   : > { %v9710_v11 = vsel %vm4177_vm10, %v12395_v45, 0.0 }
0x4bdd   : > { %9711 = vadd.xlane.f32.xlu1 %v9710_v11 }
0x4bee   : > { %9862 = vrot.lane.b32.xlu1 %v14823_v40, %s13095_s7 }
0x4bfb   : > { %v9625_v47 = vpop.f32.mrf.mxu0 }
0x4bfc   : > { %v9629_v37 = vadd.f32 %v9625_v47, %v9397_v6 }
0x4bfd   : > { %v12001_v38 = vpop.f32.mrf.mxu0 }
0x4c66   : > { %v9712_v39 = vpop.xlane.xlu1 %9711 }
0x4c67   : > { %12396 = vrcp.f32 %v9712_v39 }
0x4c6a   : > { %v9863_v40 = vpop.permute.xlu1 %9862 }
0x4c74   : > { %v12397_v28 = vpop.eup %12396 }
0x4c75   : > { %v9714_v8 = vmul.f32 %v12397_v28, %v12395_v45 }
0x4c77   : > { %12010 = vmatmul.mubr.msk.f32.vlgmr.msra.gmra.mxu0 %vm2032_vm5, %v9714_v8 }
0x4c78   : > { %12018 = vmatpush3.xpose.msk.msra.mxu0 %vm2032_vm5, %v15204_v1  ;;  %12019 = vmatprep.mubr.msk.f32.mxu0 %vm13092_vm12, %v13091_v36  ;;  %v15218_v1 = vld [vmem:[#allocation93_spill] sm:$0xff] }
0x4c79   : > { %12027 = vmatprep.subr.mxu0 %v13091_v36 }
0x4c7b   : > { %12020 = vmatmul.mubr.msk.f32.vlgmr.msra.gmra.mxu0 %vm2032_vm5, %v9863_v40 }
0x4c7c   : > { %12028 = vmatpush3.msra.mxu0 %v15196_v32  ;;  %12029 = vmatprep.mubr.msk.f32.mxu0 %vm13092_vm12, %v13091_v36 }
0x4c7d   : > { %12043 = vmatprep.subr.mxu0 %v15205_v13 }
0x4d37   : > { %v9784_v31 = vpop.f32.mrf.mxu0 }
0x4d38   : > { %12015 = vmatmul.mubr.msk.f32.vlgmr.msra.gmra.mxu1 %vm2032_vm5, %v9784_v31  ;;  %v15219_v31 = vld [vmem:[#allocation94_spill] sm:$0xff] }
0x4d39   : > { %v12011_v27 = vpop.f32.mrf.mxu0  ;;  %12023 = vmatpush3.msra.mxu1 %v15206_v16  ;;  %12024 = vmatprep.mubr.msk.f32.mxu1 %vm13092_vm12, %v13091_v36 }
0x4d3a   : > { %12032 = vmatprep.subr.mxu1 %v15207_v42 }
0x4d3b   : > { %v9932_v56 = vpop.f32.mrf.mxu0 }
0x4d3c   : > { %v9936_v59 = vsel %vm4177_vm10, %v9932_v56, -inf }
0x4d3d   : > { %9937 = vmax.xlane.f32.xlu1 %v9936_v59  ;;  %v12021_v32 = vpop.f32.mrf.mxu0 }
0x4dc6   : > { %v9938_v55 = vpop.xlane.xlu1 %9937 }
0x4dc7   : > { %v9939_v33 = vsub.f32 %v9932_v56, %v9938_v55 }
0x4dc9   : > { %v9940_v43 = vmul.f32 1.442695, %v9939_v33 }
0x4dcb   : > { %12398 = vpow2.f32 %v9940_v43 }
0x4dd8   : > { %v12399_v41 = vpop.eup %12398 }
0x4dd9   : > { %v9942_v4 = vsel %vm4177_vm10, %v12399_v41, 0.0 }
0x4dda   : > { %9943 = vadd.xlane.f32.xlu0 %v9942_v4 }
0x4df8   : > { %v9857_v9 = vpop.f32.mrf.mxu1 }
0x4df9   : > { %v9861_v5 = vadd.f32 %v9857_v9, %v9629_v37 }
0x4dfa   : > { %v12016_v12 = vpop.f32.mrf.mxu1 }
0x4e63   : > { %v9944_v0 = vpop.xlane.xlu0 %9943 }
0x4e64   : > { %12400 = vrcp.f32 %v9944_v0 }
0x4e71   : > { %v12401_v36 = vpop.eup %12400 }
0x4e72   : > { %v9946_v51 = vmul.f32 %v12401_v36, %v12399_v41 }
0x4e74   : > { %12025 = vmatmul.mubr.msk.f32.vlgmr.msra.gmra.mxu1 %vm2032_vm5, %v9946_v51 }
0x4e75   : > { %12033 = vmatpush3.msra.mxu1 %v15207_v42 }
0x4e76   : > { %12034 = vmatprep.subr.mxu1 %v15208_v24 }
0x4e77   : > { %12035 = vmatpush3.msra.mxu1 %v15208_v24 }
0x4e78   : > { %12036 = vmatprep.subr.mxu1 %v15209_v7 }
0x4e79   : > { %12037 = vmatpush3.msra.mxu1 %v15209_v7 }
0x4e7a   : > { %12038 = vmatprep.subr.mxu1 %v15210_v2 }
0x4e7b   : > { %12039 = vmatpush3.msra.mxu1 %v15210_v2 }
0x4f34   : > { %v10016_v26 = vpop.f32.mrf.mxu1 }
0x4f35   : > { %12030 = vmatmul.mubr.msk.f32.vlgmr.msra.gmra.mxu0 %vm2032_vm5, %v10016_v26 }
0x4f36   : > { %v12026_v10 = vpop.f32.mrf.mxu1  ;;  %12044 = vmatpush3.msra.mxu0 %v15205_v13 }
0x4f37   : > { %12045 = vmatprep.subr.mxu0 %v15211_v44 }
0x4f38   : > { %12046 = vmatpush3.msra.mxu0 %v15211_v44 }
0x4f39   : > { %12047 = vmatprep.subr.mxu0 %v15212_v17 }
0x4f3a   : > { %12048 = vmatpush3.msra.mxu0 %v15212_v17 }
0x4f3b   : > { %12049 = vmatprep.subr.mxu0 %v15213_v19 }
0x4f3c   : > { %12050 = vmatpush3.msra.mxu0 %v15213_v19 }
0x4f3d   : > { %12051 = vmatprep.subr.mxu0 %v15214_v35 }
0x4f3e   : > { %12052 = vmatpush3.msra.mxu0 %v15214_v35 }
0x4f3f   : > { %12053 = vmatprep.subr.mxu0 %v15215_v30 }
0x4f40   : > { %12054 = vmatpush3.msra.mxu0 %v15215_v30 }
0x4f41   : > { %12055 = vmatprep.subr.mxu0 %v15216_v63 }
0x4f42   : > { %12056 = vmatpush3.msra.mxu0 %v15216_v63 }
0x4f43   : > { %12057 = vmatprep.subr.mxu0 %v15217_v14 }
0x4f44   : > { %12058 = vmatpush3.msra.mxu0 %v15217_v14 }
0x4ff5   : > { %v10089_v50 = vpop.f32.mrf.mxu0 }
0x4ff6   : > { %v10093_v21 = vadd.f32 %v10089_v50, %v9861_v5 }
0x4ff7   : > { %v12031_v52 = vpop.f32.mrf.mxu0 }
0x4ff8   : > { %v10095_v54 = vrot.slane %v10093_v21, 2 }
0x4ffa   : > { %v10097_v58 = vsel %vm2126_vm7, %v14840_v25, %v10095_v54  ;;  %v14931_v23 = vadd.f32 %v10095_v54, %v14719_v15 }
0x4ffb   : > { %v14928_v62 = vadd.f32 %v10097_v58, %v14716_v22 }
0x4ffc   : > { %v10103_v60 = vsel %vm1689_vm3, %v14931_v23, 0.0 }
0x4ffd   : > { %v10100_v18 = vsel %vm1685_vm2, %v14928_v62, 0.0 }
0x4ffe   : > { %10101 = vadd.xlane.f32.xlu0 %v10100_v18 }
0x5002   : > { %10104 = vadd.xlane.f32.xlu0 %v10103_v60 }
0x5087   : > { %v10102_v57 = vpop.xlane.xlu0 %10101 }
0x5088   : > { %v10106_v3 = vmul.f32 0.03125, %v10102_v57 }
0x508a   : > { %v10108_v49 = vsub.f32 %v14928_v62, %v10106_v3 }
0x508b   : > { %v10105_v29 = vpop.xlane.xlu0 %10104 }
0x508c   : > { %v10107_v25 = vmul.f32 0.03125, %v10105_v29  ;;  %v10110_v34 = vmul.f32 %v10108_v49, %v10108_v49 }
0x508e   : > { %v10109_v22 = vsub.f32 %v14931_v23, %v10107_v25  ;;  %v10112_v15 = vsel %vm1685_vm2, %v10110_v34, 0.0 }
0x508f   : > { %10113 = vadd.xlane.f32.xlu0 %v10112_v15 }
0x5090   : > { %v10111_v53 = vmul.f32 %v10109_v22, %v10109_v22 }
0x5092   : > { %v10115_v45 = vsel %vm1689_vm3, %v10111_v53, 0.0 }
0x5093   : > { %10116 = vadd.xlane.f32.xlu0 %v10115_v45 }
0x5118   : > { %v10114_v11 = vpop.xlane.xlu0 %10113 }
0x5119   : > { %v10118_v6 = vmul.f32 0.03125, %v10114_v11 }
0x511b   : > { %v10120_v47 = vadd.f32 1e-05, %v10118_v6 }
0x511c   : > { %v10117_v37 = vpop.xlane.xlu0 %10116 }
0x511d   : > { %12402 = vrsqrt.f32 %v10120_v47  ;;  %v10119_v38 = vmul.f32 0.03125, %v10117_v37 }
0x511f   : > { %v10121_v39 = vadd.f32 1e-05, %v10119_v38 }
0x5121   : > { %12404 = vrsqrt.f32 %v10121_v39 }
0x512a   : > { %v12403_v28 = vpop.eup %12402 }
0x512b   : > { %v10124_v8 = vmul.f32 %v12403_v28, %v10108_v49 }
0x512d   : > { %v10126_v40 = vmul.f32 %v15218_v1, %v10124_v8 }
0x512e   : > { %v12405_v13 = vpop.eup %12404 }
0x512f   : > { %v10128_v27 = vadd.f32 %v15219_v31, %v10126_v40  ;;  %v10125_v16 = vmul.f32 %v12405_v13, %v10109_v22 }
0x5131   : > { %12040 = vmatprep.mubr.msk.f32.mxu1 %vm1685_vm2, %v10128_v27  ;;  %v10127_v42 = vmul.f32 %v15218_v1, %v10125_v16 }
0x5133   : > { %v10129_v56 = vadd.f32 %v15219_v31, %v10127_v42 }
0x5135   : > { %12041 = vmatmul.mubr.msk.f32.vlgmr.msra.gmra.mxu1 %vm1685_vm2, %v10129_v56 }
0x51f5   : > { %v12042_v59 = vpop.f32.mrf.mxu1 }
0x51f6   : > { %v10208_v32 = vadd.f32 %v12042_v59, %v14504_v48 }
0x51f7   : > { %v10202_v55 = vpop.f32.mrf.mxu1 }
0x51f8   : > { %v10212_v33 = vmul.f32 %v10208_v32, %v10208_v32  ;;  %v10203_v43 = vadd.f32 %v14504_v48, %v10202_v55 }
0x51fa   : > { %v10214_v41 = vmul.f32 %v10212_v33, %v10208_v32  ;;  %v10211_v4 = vmul.f32 %v10203_v43, %v10203_v43 }
0x51fc   : > { %v10216_v9 = vmul.f32 0.044715, %v10214_v41  ;;  %v10213_v5 = vmul.f32 %v10211_v4, %v10203_v43 }
0x51fe   : > { %v10218_v12 = vadd.f32 %v10216_v9, %v10208_v32  ;;  %v10215_v0 = vmul.f32 0.044715, %v10213_v5 }
0x5200   : > { %v10220_v36 = vmul.f32 0.7978846, %v10218_v12  ;;  %v10217_v51 = vadd.f32 %v10215_v0, %v10203_v43 }
0x5202   : > { %12406 = vtanh.f32 %v10220_v36  ;;  %v10219_v24 = vmul.f32 0.7978846, %v10217_v51 }
0x5204   : > { %12408 = vtanh.f32 %v10219_v24 }
0x520f   : > { %v12407_v7 = vpop.eup %12406 }
0x5210   : > { %v10224_v2 = vadd.f32 1.0, %v12407_v7 }
0x5211   : > { %v12409_v26 = vpop.eup %12408 }
0x5212   : > { %v10223_v10 = vadd.f32 1.0, %v12409_v26  ;;  %v10226_v44 = vmul.f32 0.5, %v10224_v2 }
0x5214   : > { %v10225_v17 = vmul.f32 0.5, %v10223_v10  ;;  %v10228_v35 = vmul.f32 %v10226_v44, %v10208_v32 }
0x5216   : > { %v10227_v19 = vmul.f32 %v10225_v17, %v10203_v43 }
0x5218   : > { %12059 = vmatprep.mubr.msk.f32.mxu0 %vm6178_vm11, %v10227_v19 }
0x5219   : > { %12060 = vmatmul.mubr.msk.f32.vlgmr.msra.gmra.mxu0 %vm6178_vm11, %v10228_v35 }
0x52d9   : > { %v12061_v48 = vpop.f32.mrf.mxu0 }
0x52da   : > { %v10307_v30 = vadd.f32 %v12061_v48, %v14513_v61 }
0x52db   : > { %v10301_v63 = vpop.f32.mrf.mxu0 }
0x52dc   : > { %v10311_v14 = vadd.f32 %v10307_v30, %v14931_v23  ;;  %v10302_v50 = vadd.f32 %v14513_v61, %v10301_v63 }
0x52de   : > { %10313 = vst.msk [vmem:[#allocation3 + $0x8] sm:$0xf] %vm1689_vm3, %v10311_v14  ;;  %v10310_v21 = vadd.f32 %v10302_v50, %v14928_v62 }
0x52e0   : > { %10312 = vst.msk [vmem:[#allocation3] sm:$0xff] %vm1685_vm2, %v10310_v21 }
0x52e1 PF: > { %p11188_p11 = scmp.ne.s32.totalorder %s13016_s18, 1 }
0x52e2   : > { %s15220_s9 = sld [smem:[#allocation72_spill]] (!%p11188_p11) }
0x52e3   : > { %10317 = sbr.rel (%p11188_p11) target bundleno = 21734 (0x54e6), region = 220  ;;  %s15221_s18 = sld [smem:[#allocation70_spill]] (!%p11188_p11) }
0x52e4   : > { %s15222_s10 = sld [smem:[#allocation71_spill]] (!%p11188_p11) }
0x52e5   : > { %s15223_s2 = sld [smem:[#allocation73_spill]] (!%p11188_p11) }
0x52e8   : > { %v10320_v52 = vsel %vm1685_vm2, %v14523_v46, 0.0  ;;  %v10323_v54 = vsel %vm1689_vm3, %v14517_v20, 0.0  ;;  %v10367_v25 = vld [vmem:[%s15220_s9 + $0x18] sm:$0xff]  ;;  %v10366_v34 = vld [vmem:[%s15220_s9 + $0x10] sm:$0xff]  ;;  %v10365_v22 = vld [vmem:[%s15220_s9 + $0x8] sm:$0xff] }
0x52e9   : > { %10321 = vadd.xlane.f32.xlu0 %v10320_v52  ;;  %12062 = vmatprep.subr.mxu0 %v10367_v25  ;;  %v11189_v37 = vld [vmem:[%s15221_s18] ss:$0 sm:$0xff] }
0x52ea   : > { %12063 = vmatpush3.msra.mxu0 %v10367_v25  ;;  %v11190_v39 = vld [vmem:[%s15222_s10] ss:$0 sm:$0xff] }
0x52eb   : > { %12064 = vmatprep.subr.mxu0 %v10366_v34  ;;  %v11191_v27 = vld [vmem:[%s15223_s2] ss:$0 sm:$0xff] }
0x52ec   : > { %12065 = vmatpush3.msra.mxu0 %v10366_v34 }
0x52ed   : > { %10324 = vadd.xlane.f32.xlu0 %v10323_v54  ;;  %12066 = vmatprep.subr.mxu0 %v10365_v22 }
0x52ee   : > { %12067 = vmatpush3.msra.mxu0 %v10365_v22 }
0x5372   : > { %v10322_v61 = vpop.xlane.xlu0 %10321 }
0x5373   : > { %v10326_v58 = vmul.f32 0.03125, %v10322_v61 }
0x5375   : > { %v10328_v62 = vsub.f32 %v14523_v46, %v10326_v58  ;;  %v10364_v46 = vld [vmem:[%s15220_s9] sm:$0xff] }
0x5376   : > { %v10325_v23 = vpop.xlane.xlu0 %10324  ;;  %12068 = vmatprep.subr.mxu0 %v10364_v46 }
0x5377   : > { %v10327_v18 = vmul.f32 0.03125, %v10325_v23  ;;  %v10330_v60 = vmul.f32 %v10328_v62, %v10328_v62  ;;  %12069 = vmatpush3.msra.mxu0 %v10364_v46 }
0x5379   : > { %v10329_v57 = vsub.f32 %v14517_v20, %v10327_v18  ;;  %v10332_v3 = vsel %vm1685_vm2, %v10330_v60, 0.0 }
0x537a   : > { %10333 = vadd.xlane.f32.xlu1 %v10332_v3 }
0x537b   : > { %v10331_v49 = vmul.f32 %v10329_v57, %v10329_v57 }
0x537d   : > { %v10335_v29 = vsel %vm1689_vm3, %v10331_v49, 0.0 }
0x537e   : > { %10336 = vadd.xlane.f32.xlu1 %v10335_v29 }
0x5403   : > { %v10334_v20 = vpop.xlane.xlu1 %10333 }
0x5404   : > { %v10338_v15 = vmul.f32 0.03125, %v10334_v20 }
0x5406   : > { %v10340_v53 = vadd.f32 1e-05, %v10338_v15 }
0x5407   : > { %v10337_v45 = vpop.xlane.xlu1 %10336 }
0x5408   : > { %12410 = vrsqrt.f32 %v10340_v53  ;;  %v10339_v11 = vmul.f32 0.03125, %v10337_v45 }
0x540a   : > { %v10341_v6 = vadd.f32 1e-05, %v10339_v11 }
0x540c   : > { %12412 = vrsqrt.f32 %v10341_v6 }
0x5415   : > { %v12411_v47 = vpop.eup %12410 }
0x5416   : > { %v10344_v38 = vmul.f32 %v12411_v47, %v10328_v62 }
0x5418   : > { %v10352_v28 = vmul.f32 %v11189_v37, %v10344_v38 }
0x5419   : > { %v12413_v8 = vpop.eup %12412 }
0x541a   : > { %v10345_v1 = vmul.f32 %v12413_v8, %v10329_v57  ;;  %v10360_v40 = vadd.f32 %v11190_v39, %v10352_v28 }
0x541c   : > { %v10353_v13 = vmul.f32 %v11189_v37, %v10345_v1  ;;  %10362 = vst.msk [vmem:[#allocation34] sm:$0xff] %vm1685_vm2, %v10360_v40  ;;  %12070 = vmatprep.mubr.msk.f32.mxu0 %vm1685_vm2, %v10360_v40 }
0x541e   : > { %v10361_v31 = vadd.f32 %v11190_v39, %v10353_v13 }
0x5420   : > { %10363 = vst.msk [vmem:[#allocation34 + $0x8] sm:$0xf] %vm1689_vm3, %v10361_v31  ;;  %12071 = vmatmul.mubr.msk.f32.vlgmr.msra.gmra.mxu0 %vm1685_vm2, %v10361_v31 }
0x54e0   : > { %v12072_v16 = vpop.f32.mrf.mxu0 }
0x54e1   : > { %v10453_v42 = vadd.f32 %v12072_v16, %v11191_v27 }
0x54e2   : > { %v10447_v56 = vpop.f32.mrf.mxu0 }
0x54e3   : > { %10457 = vst [vmem:[#allocation33 + $0x8] sm:$0xf] %v10453_v42  ;;  %v10448_v59 = vadd.f32 %v11191_v27, %v10447_v56 }
0x54e5   : > { %10456 = vst [vmem:[#allocation33] sm:$0xff] %v10448_v59 }
0x54e6 PF: > { %p12139_p8 = scmp.eq.s32.totalorder %s13289_s26, 1  ;;  %s13096_s21 = smov [#allocation33]  }
0x54e7   : > { %s10467_s11 = sshll.u32 %s13096_s21, 4  ;;  %s10468_s11 = int_to_ptr.vmem [resolvable:$true] %s10467_s11 }
0x54e8   : > { %s12882_s6 = scalar_lea.vmem %s10468_s11, 256  ;;  %p12889_p0 = scmp.lt.s32.totalorder %s10468_s11, %s10468_s11 }
0x54e9   : > { %p12883_p10 = scmp.ne.s32.totalorder %s10468_s11, %s12882_s6  ;;  %p12890_p1 = scmp.lt.s32.totalorder %s12882_s6, %s12882_s6 }
0x54eb   : > { %p12884_p12 = pnand %p12883_p10, %p12139_p8  ;;  %p12891_p4 = por %p12890_p1, %p12889_p0 }
0x54ed   : > { %p12885_p13 = pneg %p12884_p12 }
0x54ef   : > { %p12892_p2 = pnand %p12891_p4, %p12885_p13 }
0x54f1   : > { %12895 = shalt.err (!%p12892_p2)
}
0x54f2   : > { %s13097_s1 = smov 128   ;;  %s15224_s13 = sld [smem:[#allocation74_spill]] }
0x54f3   : > { %s13098_s5 = smov 8   ;;  %s13099_s17 = smov [#allocation34]  }
0x54f4   : > { %s10483_s4 = sshll.u32 %s13099_s17, 4  ;;  %s10484_s4 = int_to_ptr.vmem [resolvable:$true] %s10483_s4 }
0x54f5   : > { %s12906_s8 = scalar_lea.vmem %s10484_s4, 256  ;;  %p12913_p5 = scmp.lt.s32.totalorder %s10484_s4, %s10484_s4 }
0x54f6   : > { %p12907_p6 = scmp.ne.s32.totalorder %s10484_s4, %s12906_s8  ;;  %p12914_p9 = scmp.lt.s32.totalorder %s12906_s8, %s12906_s8 }
0x54f8   : > { %12116 = dma.vmem_to_hbm [thread:$0]  (%p12139_p8), %s10468_s11, 256, %s15224_s13, [#allocation6], %s13097_s1, %s13097_s1, %s13098_s5  }
0x54f9   : > { %p12908_p3 = pnand %p12907_p6, %p12139_p8  ;;  %p12915_p11 = por %p12914_p9, %p12913_p5 }
0x54fb   : > { %p12909_p7 = pneg %p12908_p3 }
0x54fd   : > { %p12916_p10 = pnand %p12915_p11, %p12909_p7 }
0x54ff   : > { %12919 = shalt.err (!%p12916_p10)
}
0x5500   : > { %s15225_s19 = sld [smem:[#allocation75_spill]] }
0x5506   : > { %12118 = dma.vmem_to_hbm [thread:$0]  (%p12139_p8), %s10484_s4, 256, %s15225_s19, [#allocation35], %s13097_s1, %s13097_s1, %s13098_s5  }
0x5507   : > { %12995 = dma.done.wait (%p12139_p8), [#allocation6], 256  }
0x5508   : > { %12997 = vsyncadd (%p12139_p8), [#allocation6], 4294967040 }
0x5509   : > { %12999 = dma.done.wait (%p12139_p8), [#allocation35], 256  }
0x550a   : > { %13001 = vsyncadd (%p12139_p8), [#allocation35], 4294967040 }
0x550b PF: > { %s100_s23 = sadd.s32 1, %s13024_s23   ;;  %s15226_s14 = sld [smem:[#allocation77_spill]] }
0x550c   : > { %p97_p12 = scmp.ge.s32.totalorder %s100_s23, 4   ;;  %s15227_s28 = sld [smem:[#allocation76_spill]] }
0x550d   : > { %s15228_s0 = smov %s13008_s15  ;;  %s15229_s15 = smov %s13012_s16 }
0x550e   : > { %s15231_s18 = smov %s13020_s22  ;;  %99 = sbr.rel (!%p97_p12) target bundleno = 87 (0x57), region = 430 }
0x5511   : > { %s15230_s16 = smov %s15226_s14 }
0x5512   : > { %s15232_s22 = smov %s15227_s28 }
0x5513   :  { %10503 = vsyncpa [#allocation5], 1 }
0x5514   :  { %10505 = vsyncpa [#allocation5 + $0x1], 1 }
0x5515   :  { %10506 = vsyncpa [#allocation8], 1 }
0x5516   :  { %10507 = vsyncpa [#allocation11], 1 }
0x5517   :  { %10509 = vsyncpa [#allocation11 + $0x1], 1 }
0x5518   :  { %10510 = vsyncpa [#allocation14], 1 }
0x5519   :  { %10512 = vsyncpa [#allocation14 + $0x1], 1 }
0x551a   :  { %10513 = vsyncpa [#allocation17], 1 }
0x551b   :  { %10515 = vsyncpa [#allocation17 + $0x1], 1 }
0x551c   :  { %10516 = vsyncpa [#allocation20], 1 }
0x551d   :  { %10518 = vsyncpa [#allocation20 + $0x1], 1 }
0x551e   :  { %10519 = vsyncpa [#allocation23], 1 }
0x551f   :  { %10521 = vsyncpa [#allocation23 + $0x1], 1 }
0x5520   :  { %10522 = vsyncpa [#allocation26], 1 }
0x5521   :  { %10524 = vsyncpa [#allocation26 + $0x1], 1 }
0x5522   :  { %10525 = vsyncpa [#allocation29], 1 }
0x5523   :  { %10527 = vsyncpa [#allocation29 + $0x1], 1 }
0x5524   :  { %10528 = vsyncpa [#allocation32], 1 }
0x5525   :  { %10530 = vsyncpa [#allocation32 + $0x1], 1 }
0x5526   :  { %10531 = vsyncpa [#allocation6], 1 }
0x5527   :  { %10533 = vsyncpa [#allocation6 + $0x1], 1 }
0x5528   :  { %10534 = vsyncpa [#allocation35], 1 }

</bundles_post_ra>
